<compile_context>
chip_gen: v5e
topology: v5e:2x2
jax: 0.10.0
libtpu: 0.0.40
codegen_flags: <defaults>
</compile_context>

<pallas_src>
import functools

import jax
import jax.numpy as jnp
from jax.experimental import pallas as pl
from jax.experimental.pallas import tpu as pltpu


def _round_up(x, m):
    return ((x + m - 1) // m) * m


def _make_kernels(H, W, Ho, Wo, K, pad, Cin, Cp, Cop, pool, mxu_dtype):
    """Kernel bodies; each grid step processes one image of the batch."""
    f32 = jnp.float32

    def _fill_pad(pad_ref, act_hwc, h, w):
        # pad_ref: (h+2*pad, w+2*pad, Cp) f32 scratch.  Zero the whole buffer
        # (a handful of full-width vector stores - far cheaper than the removed
        # 9x im2col copy), then store the real-channel interior once.  The
        # lane-pad region (Cin..Cp) must be zero: uninitialised VMEM could hold
        # NaN/Inf, which would poison the matmul even against zero weight rows.
        pad_ref[...] = jnp.zeros_like(pad_ref)
        pad_ref[pad:pad + h, pad:pad + w, :Cin] = act_hwc

    def _conv(pad_ref, w_ref, h, w):
        # Per-tap MXU accumulation reading shifted slices of pad_ref directly
        # (no staging buffer, no per-tap copies).  f32 accumulation.
        acc = None
        for ti in range(K):
            for tj in range(K):
                t = ti * K + tj
                lhs = pad_ref[ti:ti + h, tj:tj + w, :].reshape(h * w, Cp)
                part = jnp.dot(lhs.astype(mxu_dtype),
                               w_ref[t * Cp:(t + 1) * Cp, :],
                               preferred_element_type=jnp.float32)
                acc = part if acc is None else acc + part
        return acc                      # (h*w, Cout_padded) f32

    def _store_stats(y, s_ref):
        # Per-image centered statistics: row0 = sum, row1 = sum((y - mean_i)^2).
        mu = jnp.mean(y, axis=0, keepdims=True)
        d = y - mu
        s_ref[0:1, :] = jnp.sum(y, axis=0, keepdims=True)
        s_ref[1:2, :] = jnp.sum(d * d, axis=0, keepdims=True)

    def conv1_kernel(x_ref, w_ref, y_ref, s_ref, pad_ref):
        # conv1 (bias dropped: exactly cancelled by the train-mode BN next).
        _fill_pad(pad_ref, x_ref[...], H, W)
        y = _conv(pad_ref, w_ref, H, W)[:, :Cin]        # (H*W, Cin) f32
        y_ref[...] = y.astype(y_ref.dtype)
        _store_stats(y, s_ref)

    def bn_conv_kernel(yin_ref, sc_ref, sh_ref, w_ref, y_ref, s_ref, pad_ref):
        # bn1 + relu + conv2 (+ bn2 statistics); BN math in f32.
        a = jnp.maximum(yin_ref[...].astype(f32) * sc_ref[...] + sh_ref[...],
                        0.0)
        _fill_pad(pad_ref, a.reshape(H, W, Cin), H, W)
        y = _conv(pad_ref, w_ref, H, W)[:, :Cin]
        y_ref[...] = y.astype(y_ref.dtype)
        _store_stats(y, s_ref)

    def tail_kernel(yin_ref, sc_ref, sh_ref, x_ref, w_ref, b_ref, o_ref,
                    pad_ref):
        # bn2 + relu + residual add + maxpool(pool) + conv_inp (with bias).
        a = jnp.maximum(yin_ref[...].astype(f32) * sc_ref[...] + sh_ref[...],
                        0.0)
        a = a.reshape(H, W, Cin) + x_ref[...]
        a = a[:Ho * pool, :Wo * pool, :]                          # floor pool
        a = jnp.max(a.reshape(Ho * pool, Wo, pool, Cin), axis=2)  # pool W
        a = jnp.max(a.reshape(Ho, pool, Wo, Cin), axis=1)         # pool H
        _fill_pad(pad_ref, a, Ho, Wo)
        o_ref[...] = _conv(pad_ref, w_ref, Ho, Wo) + b_ref[...]

    return conv1_kernel, bn_conv_kernel, tail_kernel


def basic_block_forward(x_nchw, params, *, kernel_size, padding, pool,
                        eps=1e-5, mxu_dtype=jnp.bfloat16):
    """BasicBlock forward.  x_nchw: (N, Cin, H, W) f32, params in PyTorch layout.
    Returns (N, Cout, H//pool, W//pool) f32.

    mxu_dtype controls matmul-operand and intermediate-activation precision;
    accumulation, BatchNorm, residual and pooling stay f32.  Use jnp.float32
    for strict f32 conv numerics."""
    N, Cin, H, W = x_nchw.shape
    Cout = params["wi"].shape[0]
    K = kernel_size
    assert 2 * padding == K - 1, "BasicBlock residual add implies 'same' convs"
    Ho, Wo = H // pool, W // pool
    Cp = _round_up(Cin, 128)      # lane width used only inside VMEM / matmuls
    Cop = _round_up(Cout, 128)    # lane-dense output of the last conv
    f32 = jnp.float32
    act_dt = mxu_dtype            # inter-call intermediate storage dtype

    # NCHW -> NHWC; HBM keeps the REAL channel width (no 128-padding in HBM).
    x = jnp.transpose(x_nchw, (0, 2, 3, 1)).astype(f32)       # (N, H, W, Cin)

    def conv_mat(w, cout_p):
        # torch (Co, Ci, Kh, Kw) -> per-tap weight matrix (K*K*Cp, cout_p);
        # input channels zero-padded to Cp, output channels to cout_p.
        co, ci, kh, kw = w.shape
        w = jnp.transpose(w, (2, 3, 1, 0))
        w = jnp.pad(w, ((0, 0), (0, 0), (0, Cp - ci), (0, cout_p - co)))
        return w.reshape(kh * kw * Cp, cout_p).astype(mxu_dtype)

    w1m = conv_mat(params["w1"], Cp)
    w2m = conv_mat(params["w2"], Cp)
    wim = conv_mat(params["wi"], Cop)
    bim = jnp.pad(params["bi"].astype(f32), (0, Cop - Cout)).reshape(1, Cop)
    # conv1/conv2 biases (b1/b2) intentionally unused: a per-channel constant
    # added before train-mode BatchNorm is cancelled by the mean subtraction.
    g1, be1 = params["g1"].astype(f32), params["be1"].astype(f32)
    g2, be2 = params["g2"].astype(f32), params["be2"].astype(f32)

    k_conv1, k_bnconv, k_tail = _make_kernels(H, W, Ho, Wo, K, padding,
                                              Cin, Cp, Cop, pool, mxu_dtype)

    cparams = pltpu.CompilerParams(
        dimension_semantics=("parallel",),     # batch axis -> both TCs on v7x
        vmem_limit_bytes=32 * 1024 * 1024,     # well under v7x's 64 MiB
    )

    # ---- block specs (HBM blocks at real channel width) ---------------------
    x_spec = pl.BlockSpec((None, H, W, Cin), lambda n: (n, 0, 0, 0))
    y_spec = pl.BlockSpec((None, H * W, Cin), lambda n: (n, 0, 0))
    s_spec = pl.BlockSpec((None, 2, Cin), lambda n: (n, 0, 0))
    o_spec = pl.BlockSpec((None, Ho * Wo, Cop), lambda n: (n, 0, 0))
    vec = lambda c: pl.BlockSpec((1, c), lambda n: (0, 0))
    w_spec = lambda cout_p: pl.BlockSpec((K * K * Cp, cout_p), lambda n: (0, 0))

    conv_scratch = [pltpu.VMEM((H + 2 * padding, W + 2 * padding, Cp), f32)]
    tail_scratch = [pltpu.VMEM((Ho + 2 * padding, Wo + 2 * padding, Cp), f32)]

    esize = jnp.dtype(mxu_dtype).itemsize
    asize = jnp.dtype(act_dt).itemsize
    act_bytes = N * H * W * Cin * asize
    x_bytes = N * H * W * Cin * 4
    stat_bytes = N * 2 * Cin * 4
    conv_flops = 2 * N * H * W * K * K * Cp * Cp
    tail_flops = 2 * N * Ho * Wo * K * K * Cp * Cop

    y_struct = jax.ShapeDtypeStruct((N, H * W, Cin), act_dt)
    s_struct = jax.ShapeDtypeStruct((N, 2, Cin), f32)

    # ---- call 1: conv1 + per-image bn1 statistics ---------------------------
    y1, s1 = pl.pallas_call(
        k_conv1, grid=(N,),
        in_specs=[x_spec, w_spec(Cp)],
        out_specs=(y_spec, s_spec),
        out_shape=(y_struct, s_struct),
        scratch_shapes=conv_scratch,
        compiler_params=cparams,
        cost_estimate=pl.CostEstimate(
            flops=conv_flops, transcendentals=0,
            bytes_accessed=x_bytes + act_bytes + w1m.size * esize + stat_bytes),
    )(x, w1m)

    def bn_affine(stats, gamma, beta):
        # Combine per-image centered stats (tiny (Cin,) vectors, plain JAX):
        # mean over N*H*W, biased variance via parallel-Welford combination.
        hw = float(H * W)
        s, m2 = stats[:, 0, :], stats[:, 1, :]
        mu_i = s / hw
        mean = jnp.sum(s, axis=0) / (N * hw)
        var = (jnp.sum(m2, axis=0)
               + hw * jnp.sum((mu_i - mean) ** 2, axis=0)) / (N * hw)
        scale = gamma * jax.lax.rsqrt(var + eps)
        return scale.reshape(1, Cin), (beta - mean * scale).reshape(1, Cin)

    sc1, sh1 = bn_affine(s1, g1, be1)

    # ---- call 2: bn1 + relu + conv2 + per-image bn2 statistics --------------
    y2, s2 = pl.pallas_call(
        k_bnconv, grid=(N,),
        in_specs=[y_spec, vec(Cin), vec(Cin), w_spec(Cp)],
        out_specs=(y_spec, s_spec),
        out_shape=(y_struct, s_struct),
        scratch_shapes=conv_scratch,
        compiler_params=cparams,
        cost_estimate=pl.CostEstimate(
            flops=conv_flops, transcendentals=0,
            bytes_accessed=2 * act_bytes + w2m.size * esize + stat_bytes),
    )(y1, sc1, sh1, w2m)

    sc2, sh2 = bn_affine(s2, g2, be2)

    # ---- call 3: bn2 + relu + residual + maxpool + conv_inp -----------------
    out = pl.pallas_call(
        k_tail, grid=(N,),
        in_specs=[y_spec, vec(Cin), vec(Cin), x_spec, w_spec(Cop), vec(Cop)],
        out_specs=o_spec,
        out_shape=jax.ShapeDtypeStruct((N, Ho * Wo, Cop), f32),
        scratch_shapes=tail_scratch,
        compiler_params=cparams,
        cost_estimate=pl.CostEstimate(
            flops=tail_flops, transcendentals=0,
            bytes_accessed=act_bytes + x_bytes + wim.size * esize
                           + N * Ho * Wo * Cop * 4),
    )(y2, sc2, sh2, x, wim, bim)

    out = out.reshape(N, Ho, Wo, Cop)[..., :Cout]
    return jnp.transpose(out, (0, 3, 1, 2))              # back to NCHW


def init_params(key, inchannels, outchannels, kernel):
    """PyTorch-layout parameters with nn.Conv2d / nn.BatchNorm2d default-style init."""
    ks = jax.random.split(key, 3)

    def conv_init(k, cout, cin, kh, kw):
        fan_in = cin * kh * kw
        bound = 1.0 / (fan_in ** 0.5)
        kw_, kb_ = jax.random.split(k)
        w = jax.random.uniform(kw_, (cout, cin, kh, kw), jnp.float32, -bound, bound)
        b = jax.random.uniform(kb_, (cout,), jnp.float32, -bound, bound)
        return w, b

    w1, b1 = conv_init(ks[0], inchannels, inchannels, kernel, kernel)
    w2, b2 = conv_init(ks[1], inchannels, inchannels, kernel, kernel)
    wi, bi = conv_init(ks[2], outchannels, inchannels, kernel, kernel)
    gamma = jnp.ones((inchannels,), jnp.float32)
    beta = jnp.zeros((inchannels,), jnp.float32)
    # b1/b2 mirror the PyTorch module but are mathematically cancelled by the
    # train-mode BatchNorm that follows each conv, so the kernels skip them.
    return dict(w1=w1, b1=b1, g1=gamma, be1=beta,
                w2=w2, b2=b2, g2=gamma, be2=beta,
                wi=wi, bi=bi)


if __name__ == "__main__":
    # BasicBlock(4, 8, kernel=3, padding=1, pool=2) at small shapes.
    N, Cin, H, W = 2, 4, 16, 16
    Cout, kernel, padding, pool = 8, 3, 1, 2

    key = jax.random.PRNGKey(0)
    kx, kp = jax.random.split(key)
    x = jax.random.normal(kx, (N, Cin, H, W), jnp.float32)      # PyTorch NCHW
    params = init_params(kp, Cin, Cout, kernel)

    fwd = jax.jit(functools.partial(basic_block_forward,
                                    kernel_size=kernel, padding=padding,
                                    pool=pool))
    out = fwd(x, params)
    jax.block_until_ready(out)
    assert out.shape == (N, Cout, H // pool, W // pool)
    print("KERNEL_OK")
</pallas_src>

<mosaic_0001>
module attributes {stable_mosaic.version = 11 : i64} {
  func.func @conv1_kernel(%arg0: i32, %arg1: memref<1x16x16x4xf32, #tpu.memory_space<vmem>>, %arg2: memref<1152x128xbf16, #tpu.memory_space<vmem>>, %arg3: memref<1x256x4xbf16, #tpu.memory_space<vmem>>, %arg4: memref<1x2x4xf32, #tpu.memory_space<vmem>>, %arg5: memref<18x18x128xf32, #tpu.memory_space<vmem>>) attributes {dimension_semantics = [#tpu.dimension_semantics<parallel>], iteration_bounds = array<i64: 2>, scalar_prefetch = 0 : i64, scratch_operands = 1 : i64, tpu.core_type = #tpu.core_type<tc>, window_params = [{transform_indices = @transform_0, window_bounds = array<i64: 1, 16, 16, 4>}, {pipeline_mode = #tpu.pipeline_mode<synchronous>, transform_indices = @transform_1, window_bounds = array<i64: 1152, 128>}, {transform_indices = @transform_2, window_bounds = array<i64: 1, 256, 4>}, {transform_indices = @transform_3, window_bounds = array<i64: 1, 2, 4>}]} {
    %c0 = arith.constant 0 : index
    %c0_0 = arith.constant 0 : index
    %c0_1 = arith.constant 0 : index
    %c0_2 = arith.constant 0 : index
    %0 = vector.load %arg1[%c0, %c0_0, %c0_1, %c0_2] : memref<1x16x16x4xf32, #tpu.memory_space<vmem>>, vector<1x16x16x4xf32>
    %1 = vector.shape_cast %0 : vector<1x16x16x4xf32> to vector<16x16x4xf32>
    %cst = arith.constant 0.000000e+00 : f32
    %2 = vector.broadcast %cst : f32 to vector<18x18x128xf32>
    %c0_3 = arith.constant 0 : index
    %c0_4 = arith.constant 0 : index
    %c0_5 = arith.constant 0 : index
    %3 = vector.load %arg5[%c0_3, %c0_4, %c0_5] : memref<18x18x128xf32, #tpu.memory_space<vmem>>, vector<18x18x128xf32>
    tpu.vector_store %arg5[%c0_3, %c0_4, %c0_5], %2 {strides = array<i32>} : memref<18x18x128xf32, #tpu.memory_space<vmem>>, vector<18x18x128xf32>,
    %c1 = arith.constant 1 : index
    %c1_6 = arith.constant 1 : index
    %c0_7 = arith.constant 0 : index
    %4 = vector.load %arg5[%c1, %c1_6, %c0_7] : memref<18x18x128xf32, #tpu.memory_space<vmem>>, vector<16x16x4xf32>
    tpu.vector_store %arg5[%c1, %c1_6, %c0_7], %1 {strides = array<i32>} : memref<18x18x128xf32, #tpu.memory_space<vmem>>, vector<16x16x4xf32>,
    %c0_8 = arith.constant 0 : index
    %c0_9 = arith.constant 0 : index
    %c0_10 = arith.constant 0 : index
    %5 = vector.load %arg5[%c0_8, %c0_9, %c0_10] : memref<18x18x128xf32, #tpu.memory_space<vmem>>, vector<16x16x128xf32>
    %6 = vector.shape_cast %5 : vector<16x16x128xf32> to vector<256x128xf32>
    %7 = arith.truncf %6 : vector<256x128xf32> to vector<256x128xbf16>
    %c0_11 = arith.constant 0 : index
    %c0_12 = arith.constant 0 : index
    %8 = vector.load %arg2[%c0_11, %c0_12] : memref<1152x128xbf16, #tpu.memory_space<vmem>>, vector<128x128xbf16>
    %cst_13 = arith.constant dense<0.000000e+00> : vector<256x128xf32>
    %9 = tpu.matmul %7, %8, %cst_13 {dimension_numbers = #tpu.dot_dimension_numbers<[1], [0], [0], [1], [0, 0, 1, 1], [], []>} : vector<256x128xbf16>, vector<128x128xbf16>, vector<256x128xf32> -> vector<256x128xf32>
    %c0_14 = arith.constant 0 : index
    %c1_15 = arith.constant 1 : index
    %c0_16 = arith.constant 0 : index
    %10 = vector.load %arg5[%c0_14, %c1_15, %c0_16] : memref<18x18x128xf32, #tpu.memory_space<vmem>>, vector<16x16x128xf32>
    %11 = vector.shape_cast %10 : vector<16x16x128xf32> to vector<256x128xf32>
    %12 = arith.truncf %11 : vector<256x128xf32> to vector<256x128xbf16>
    %c128 = arith.constant 128 : index
    %c0_17 = arith.constant 0 : index
    %13 = vector.load %arg2[%c128, %c0_17] : memref<1152x128xbf16, #tpu.memory_space<vmem>>, vector<128x128xbf16>
    %cst_18 = arith.constant dense<0.000000e+00> : vector<256x128xf32>
    %14 = tpu.matmul %12, %13, %cst_18 {dimension_numbers = #tpu.dot_dimension_numbers<[1], [0], [0], [1], [0, 0, 1, 1], [], []>} : vector<256x128xbf16>, vector<128x128xbf16>, vector<256x128xf32> -> vector<256x128xf32>
    %15 = arith.addf %9, %14 : vector<256x128xf32>
    %c0_19 = arith.constant 0 : index
    %c2 = arith.constant 2 : index
    %c0_20 = arith.constant 0 : index
    %16 = vector.load %arg5[%c0_19, %c2, %c0_20] : memref<18x18x128xf32, #tpu.memory_space<vmem>>, vector<16x16x128xf32>
    %17 = vector.shape_cast %16 : vector<16x16x128xf32> to vector<256x128xf32>
    %18 = arith.truncf %17 : vector<256x128xf32> to vector<256x128xbf16>
    %c256 = arith.constant 256 : index
    %c0_21 = arith.constant 0 : index
    %19 = vector.load %arg2[%c256, %c0_21] : memref<1152x128xbf16, #tpu.memory_space<vmem>>, vector<128x128xbf16>
    %cst_22 = arith.constant dense<0.000000e+00> : vector<256x128xf32>
    %20 = tpu.matmul %18, %19, %cst_22 {dimension_numbers = #tpu.dot_dimension_numbers<[1], [0], [0], [1], [0, 0, 1, 1], [], []>} : vector<256x128xbf16>, vector<128x128xbf16>, vector<256x128xf32> -> vector<256x128xf32>
    %21 = arith.addf %15, %20 : vector<256x128xf32>
    %c1_23 = arith.constant 1 : index
    %c0_24 = arith.constant 0 : index
    %c0_25 = arith.constant 0 : index
    %22 = vector.load %arg5[%c1_23, %c0_24, %c0_25] : memref<18x18x128xf32, #tpu.memory_space<vmem>>, vector<16x16x128xf32>
    %23 = vector.shape_cast %22 : vector<16x16x128xf32> to vector<256x128xf32>
    %24 = arith.truncf %23 : vector<256x128xf32> to vector<256x128xbf16>
    %c384 = arith.constant 384 : index
    %c0_26 = arith.constant 0 : index
    %25 = vector.load %arg2[%c384, %c0_26] : memref<1152x128xbf16, #tpu.memory_space<vmem>>, vector<128x128xbf16>
    %cst_27 = arith.constant dense<0.000000e+00> : vector<256x128xf32>
    %26 = tpu.matmul %24, %25, %cst_27 {dimension_numbers = #tpu.dot_dimension_numbers<[1], [0], [0], [1], [0, 0, 1, 1], [], []>} : vector<256x128xbf16>, vector<128x128xbf16>, vector<256x128xf32> -> vector<256x128xf32>
    %27 = arith.addf %21, %26 : vector<256x128xf32>
    %c1_28 = arith.constant 1 : index
    %c1_29 = arith.constant 1 : index
    %c0_30 = arith.constant 0 : index
    %28 = vector.load %arg5[%c1_28, %c1_29, %c0_30] : memref<18x18x128xf32, #tpu.memory_space<vmem>>, vector<16x16x128xf32>
    %29 = vector.shape_cast %28 : vector<16x16x128xf32> to vector<256x128xf32>
    %30 = arith.truncf %29 : vector<256x128xf32> to vector<256x128xbf16>
    %c512 = arith.constant 512 : index
    %c0_31 = arith.constant 0 : index
    %31 = vector.load %arg2[%c512, %c0_31] : memref<1152x128xbf16, #tpu.memory_space<vmem>>, vector<128x128xbf16>
    %cst_32 = arith.constant dense<0.000000e+00> : vector<256x128xf32>
    %32 = tpu.matmul %30, %31, %cst_32 {dimension_numbers = #tpu.dot_dimension_numbers<[1], [0], [0], [1], [0, 0, 1, 1], [], []>} : vector<256x128xbf16>, vector<128x128xbf16>, vector<256x128xf32> -> vector<256x128xf32>
    %33 = arith.addf %27, %32 : vector<256x128xf32>
    %c1_33 = arith.constant 1 : index
    %c2_34 = arith.constant 2 : index
    %c0_35 = arith.constant 0 : index
    %34 = vector.load %arg5[%c1_33, %c2_34, %c0_35] : memref<18x18x128xf32, #tpu.memory_space<vmem>>, vector<16x16x128xf32>
    %35 = vector.shape_cast %34 : vector<16x16x128xf32> to vector<256x128xf32>
    %36 = arith.truncf %35 : vector<256x128xf32> to vector<256x128xbf16>
    %c640 = arith.constant 640 : index
    %c0_36 = arith.constant 0 : index
    %37 = vector.load %arg2[%c640, %c0_36] : memref<1152x128xbf16, #tpu.memory_space<vmem>>, vector<128x128xbf16>
    %cst_37 = arith.constant dense<0.000000e+00> : vector<256x128xf32>
    %38 = tpu.matmul %36, %37, %cst_37 {dimension_numbers = #tpu.dot_dimension_numbers<[1], [0], [0], [1], [0, 0, 1, 1], [], []>} : vector<256x128xbf16>, vector<128x128xbf16>, vector<256x128xf32> -> vector<256x128xf32>
    %39 = arith.addf %33, %38 : vector<256x128xf32>
    %c2_38 = arith.constant 2 : index
    %c0_39 = arith.constant 0 : index
    %c0_40 = arith.constant 0 : index
    %40 = vector.load %arg5[%c2_38, %c0_39, %c0_40] : memref<18x18x128xf32, #tpu.memory_space<vmem>>, vector<16x16x128xf32>
    %41 = vector.shape_cast %40 : vector<16x16x128xf32> to vector<256x128xf32>
    %42 = arith.truncf %41 : vector<256x128xf32> to vector<256x128xbf16>
    %c768 = arith.constant 768 : index
    %c0_41 = arith.constant 0 : index
    %43 = vector.load %arg2[%c768, %c0_41] : memref<1152x128xbf16, #tpu.memory_space<vmem>>, vector<128x128xbf16>
    %cst_42 = arith.constant dense<0.000000e+00> : vector<256x128xf32>
    %44 = tpu.matmul %42, %43, %cst_42 {dimension_numbers = #tpu.dot_dimension_numbers<[1], [0], [0], [1], [0, 0, 1, 1], [], []>} : vector<256x128xbf16>, vector<128x128xbf16>, vector<256x128xf32> -> vector<256x128xf32>
    %45 = arith.addf %39, %44 : vector<256x128xf32>
    %c2_43 = arith.constant 2 : index
    %c1_44 = arith.constant 1 : index
    %c0_45 = arith.constant 0 : index
    %46 = vector.load %arg5[%c2_43, %c1_44, %c0_45] : memref<18x18x128xf32, #tpu.memory_space<vmem>>, vector<16x16x128xf32>
    %47 = vector.shape_cast %46 : vector<16x16x128xf32> to vector<256x128xf32>
    %48 = arith.truncf %47 : vector<256x128xf32> to vector<256x128xbf16>
    %c896 = arith.constant 896 : index
    %c0_46 = arith.constant 0 : index
    %49 = vector.load %arg2[%c896, %c0_46] : memref<1152x128xbf16, #tpu.memory_space<vmem>>, vector<128x128xbf16>
    %cst_47 = arith.constant dense<0.000000e+00> : vector<256x128xf32>
    %50 = tpu.matmul %48, %49, %cst_47 {dimension_numbers = #tpu.dot_dimension_numbers<[1], [0], [0], [1], [0, 0, 1, 1], [], []>} : vector<256x128xbf16>, vector<128x128xbf16>, vector<256x128xf32> -> vector<256x128xf32>
    %51 = arith.addf %45, %50 : vector<256x128xf32>
    %c2_48 = arith.constant 2 : index
    %c2_49 = arith.constant 2 : index
    %c0_50 = arith.constant 0 : index
    %52 = vector.load %arg5[%c2_48, %c2_49, %c0_50] : memref<18x18x128xf32, #tpu.memory_space<vmem>>, vector<16x16x128xf32>
    %53 = vector.shape_cast %52 : vector<16x16x128xf32> to vector<256x128xf32>
    %54 = arith.truncf %53 : vector<256x128xf32> to vector<256x128xbf16>
    %c1024 = arith.constant 1024 : index
    %c0_51 = arith.constant 0 : index
    %55 = vector.load %arg2[%c1024, %c0_51] : memref<1152x128xbf16, #tpu.memory_space<vmem>>, vector<128x128xbf16>
    %cst_52 = arith.constant dense<0.000000e+00> : vector<256x128xf32>
    %56 = tpu.matmul %54, %55, %cst_52 {dimension_numbers = #tpu.dot_dimension_numbers<[1], [0], [0], [1], [0, 0, 1, 1], [], []>} : vector<256x128xbf16>, vector<128x128xbf16>, vector<256x128xf32> -> vector<256x128xf32>
    %57 = arith.addf %51, %56 : vector<256x128xf32>
    %58 = vector.extract_strided_slice %57 {offsets = [0, 0], sizes = [256, 4], strides = [1, 1]} : vector<256x128xf32> to vector<256x4xf32>
    %59 = arith.truncf %58 : vector<256x4xf32> to vector<256x4xbf16>
    %c0_53 = arith.constant 0 : index
    %c0_54 = arith.constant 0 : index
    %c0_55 = arith.constant 0 : index
    %60 = vector.load %arg3[%c0_53, %c0_54, %c0_55] : memref<1x256x4xbf16, #tpu.memory_space<vmem>>, vector<1x256x4xbf16>
    %61 = vector.shape_cast %60 : vector<1x256x4xbf16> to vector<256x4xbf16>
    %62 = vector.shape_cast %59 : vector<256x4xbf16> to vector<1x256x4xbf16>
    tpu.vector_store %arg3[%c0_53, %c0_54, %c0_55], %62 {strides = array<i32>} : memref<1x256x4xbf16, #tpu.memory_space<vmem>>, vector<1x256x4xbf16>,
    %cst_56 = arith.constant dense<0.000000e+00> : vector<4xf32>
    %63 = vector.multi_reduction <add>, %58, %cst_56 [0] : vector<256x4xf32> to vector<4xf32>
    %64 = vector.shape_cast %63 : vector<4xf32> to vector<1x4xf32>
    %cst_57 = arith.constant 2.560000e+02 : f32
    %65 = vector.broadcast %cst_57 : f32 to vector<1x4xf32>
    %66 = arith.divf %64, %65 : vector<1x4xf32>
    %67 = vector.broadcast %66 : vector<1x4xf32> to vector<256x4xf32>
    %68 = arith.subf %58, %67 : vector<256x4xf32>
    %cst_58 = arith.constant dense<0.000000e+00> : vector<4xf32>
    %69 = vector.multi_reduction <add>, %58, %cst_58 [0] : vector<256x4xf32> to vector<4xf32>
    %70 = vector.shape_cast %69 : vector<4xf32> to vector<1x4xf32>
    %c0_59 = arith.constant 0 : index
    %c0_60 = arith.constant 0 : index
    %c0_61 = arith.constant 0 : index
    %71 = vector.load %arg4[%c0_59, %c0_60, %c0_61] : memref<1x2x4xf32, #tpu.memory_space<vmem>>, vector<1x1x4xf32>
    %72 = vector.shape_cast %71 : vector<1x1x4xf32> to vector<1x4xf32>
    %73 = vector.shape_cast %70 : vector<1x4xf32> to vector<1x1x4xf32>
    tpu.vector_store %arg4[%c0_59, %c0_60, %c0_61], %73 {strides = array<i32>} : memref<1x2x4xf32, #tpu.memory_space<vmem>>, vector<1x1x4xf32>,
    %74 = arith.mulf %68, %68 : vector<256x4xf32>
    %cst_62 = arith.constant dense<0.000000e+00> : vector<4xf32>
    %75 = vector.multi_reduction <add>, %74, %cst_62 [0] : vector<256x4xf32> to vector<4xf32>
    %76 = vector.shape_cast %75 : vector<4xf32> to vector<1x4xf32>
    %c0_63 = arith.constant 0 : index
    %c1_64 = arith.constant 1 : index
    %c0_65 = arith.constant 0 : index
    %77 = vector.load %arg4[%c0_63, %c1_64, %c0_65] : memref<1x2x4xf32, #tpu.memory_space<vmem>>, vector<1x1x4xf32>
    %78 = vector.shape_cast %77 : vector<1x1x4xf32> to vector<1x4xf32>
    %79 = vector.shape_cast %76 : vector<1x4xf32> to vector<1x1x4xf32>
    tpu.vector_store %arg4[%c0_63, %c1_64, %c0_65], %79 {strides = array<i32>} : memref<1x2x4xf32, #tpu.memory_space<vmem>>, vector<1x1x4xf32>,
    return
  }
  func.func @transform_0(%arg0: i32) -> (i32, i32, i32, i32) {
    %c0_i32 = arith.constant 0 : i32
    %c0_i32_0 = arith.constant 0 : i32
    %c0_i32_1 = arith.constant 0 : i32
    %c0_i32_2 = arith.constant 0 : i32
    return %arg0, %c0_i32, %c0_i32_0, %c0_i32_1 : i32, i32, i32, i32
  }
  func.func @transform_1(%arg0: i32) -> (i32, i32) {
    %c0_i32 = arith.constant 0 : i32
    %c0_i32_0 = arith.constant 0 : i32
    %c0_i32_1 = arith.constant 0 : i32
    return %c0_i32, %c0_i32_0 : i32, i32
  }
  func.func @transform_2(%arg0: i32) -> (i32, i32, i32) {
    %c0_i32 = arith.constant 0 : i32
    %c0_i32_0 = arith.constant 0 : i32
    %c0_i32_1 = arith.constant 0 : i32
    return %arg0, %c0_i32, %c0_i32_0 : i32, i32, i32
  }
  func.func @transform_3(%arg0: i32) -> (i32, i32, i32) {
    %c0_i32 = arith.constant 0 : i32
    %c0_i32_0 = arith.constant 0 : i32
    %c0_i32_1 = arith.constant 0 : i32
    return %arg0, %c0_i32, %c0_i32_0 : i32, i32, i32
  }
}

module attributes {stable_mosaic.version = 11 : i64} {
  func.func @bn_conv_kernel(%arg0: i32, %arg1: memref<1x256x4xbf16, #tpu.memory_space<vmem>>, %arg2: memref<1x4xf32, #tpu.memory_space<vmem>>, %arg3: memref<1x4xf32, #tpu.memory_space<vmem>>, %arg4: memref<1152x128xbf16, #tpu.memory_space<vmem>>, %arg5: memref<1x256x4xbf16, #tpu.memory_space<vmem>>, %arg6: memref<1x2x4xf32, #tpu.memory_space<vmem>>, %arg7: memref<18x18x128xf32, #tpu.memory_space<vmem>>) attributes {dimension_semantics = [#tpu.dimension_semantics<parallel>], iteration_bounds = array<i64: 2>, scalar_prefetch = 0 : i64, scratch_operands = 1 : i64, tpu.core_type = #tpu.core_type<tc>, window_params = [{transform_indices = @transform_0, window_bounds = array<i64: 1, 256, 4>}, {pipeline_mode = #tpu.pipeline_mode<synchronous>, transform_indices = @transform_1, window_bounds = array<i64: 1, 4>}, {pipeline_mode = #tpu.pipeline_mode<synchronous>, transform_indices = @transform_2, window_bounds = array<i64: 1, 4>}, {pipeline_mode = #tpu.pipeline_mode<synchronous>, transform_indices = @transform_3, window_bounds = array<i64: 1152, 128>}, {transform_indices = @transform_4, window_bounds = array<i64: 1, 256, 4>}, {transform_indices = @transform_5, window_bounds = array<i64: 1, 2, 4>}]} {
    %c0 = arith.constant 0 : index
    %c0_0 = arith.constant 0 : index
    %c0_1 = arith.constant 0 : index
    %0 = vector.load %arg1[%c0, %c0_0, %c0_1] : memref<1x256x4xbf16, #tpu.memory_space<vmem>>, vector<1x256x4xbf16>
    %1 = vector.shape_cast %0 : vector<1x256x4xbf16> to vector<256x4xbf16>
    %2 = arith.extf %1 : vector<256x4xbf16> to vector<256x4xf32>
    %c0_2 = arith.constant 0 : index
    %c0_3 = arith.constant 0 : index
    %3 = vector.load %arg2[%c0_2, %c0_3] : memref<1x4xf32, #tpu.memory_space<vmem>>, vector<1x4xf32>
    %4 = vector.broadcast %3 : vector<1x4xf32> to vector<256x4xf32>
    %5 = arith.mulf %2, %4 : vector<256x4xf32>
    %c0_4 = arith.constant 0 : index
    %c0_5 = arith.constant 0 : index
    %6 = vector.load %arg3[%c0_4, %c0_5] : memref<1x4xf32, #tpu.memory_space<vmem>>, vector<1x4xf32>
    %7 = vector.broadcast %6 : vector<1x4xf32> to vector<256x4xf32>
    %8 = arith.addf %5, %7 : vector<256x4xf32>
    %cst = arith.constant 0.000000e+00 : f32
    %9 = vector.broadcast %cst : f32 to vector<256x4xf32>
    %10 = arith.maximumf %8, %9 : vector<256x4xf32>
    %11 = vector.shape_cast %10 : vector<256x4xf32> to vector<16x16x4xf32>
    %cst_6 = arith.constant 0.000000e+00 : f32
    %12 = vector.broadcast %cst_6 : f32 to vector<18x18x128xf32>
    %c0_7 = arith.constant 0 : index
    %c0_8 = arith.constant 0 : index
    %c0_9 = arith.constant 0 : index
    %13 = vector.load %arg7[%c0_7, %c0_8, %c0_9] : memref<18x18x128xf32, #tpu.memory_space<vmem>>, vector<18x18x128xf32>
    tpu.vector_store %arg7[%c0_7, %c0_8, %c0_9], %12 {strides = array<i32>} : memref<18x18x128xf32, #tpu.memory_space<vmem>>, vector<18x18x128xf32>,
    %c1 = arith.constant 1 : index
    %c1_10 = arith.constant 1 : index
    %c0_11 = arith.constant 0 : index
    %14 = vector.load %arg7[%c1, %c1_10, %c0_11] : memref<18x18x128xf32, #tpu.memory_space<vmem>>, vector<16x16x4xf32>
    tpu.vector_store %arg7[%c1, %c1_10, %c0_11], %11 {strides = array<i32>} : memref<18x18x128xf32, #tpu.memory_space<vmem>>, vector<16x16x4xf32>,
    %c0_12 = arith.constant 0 : index
    %c0_13 = arith.constant 0 : index
    %c0_14 = arith.constant 0 : index
    %15 = vector.load %arg7[%c0_12, %c0_13, %c0_14] : memref<18x18x128xf32, #tpu.memory_space<vmem>>, vector<16x16x128xf32>
    %16 = vector.shape_cast %15 : vector<16x16x128xf32> to vector<256x128xf32>
    %17 = arith.truncf %16 : vector<256x128xf32> to vector<256x128xbf16>
    %c0_15 = arith.constant 0 : index
    %c0_16 = arith.constant 0 : index
    %18 = vector.load %arg4[%c0_15, %c0_16] : memref<1152x128xbf16, #tpu.memory_space<vmem>>, vector<128x128xbf16>
    %cst_17 = arith.constant dense<0.000000e+00> : vector<256x128xf32>
    %19 = tpu.matmul %17, %18, %cst_17 {dimension_numbers = #tpu.dot_dimension_numbers<[1], [0], [0], [1], [0, 0, 1, 1], [], []>} : vector<256x128xbf16>, vector<128x128xbf16>, vector<256x128xf32> -> vector<256x128xf32>
    %c0_18 = arith.constant 0 : index
    %c1_19 = arith.constant 1 : index
    %c0_20 = arith.constant 0 : index
    %20 = vector.load %arg7[%c0_18, %c1_19, %c0_20] : memref<18x18x128xf32, #tpu.memory_space<vmem>>, vector<16x16x128xf32>
    %21 = vector.shape_cast %20 : vector<16x16x128xf32> to vector<256x128xf32>
    %22 = arith.truncf %21 : vector<256x128xf32> to vector<256x128xbf16>
    %c128 = arith.constant 128 : index
    %c0_21 = arith.constant 0 : index
    %23 = vector.load %arg4[%c128, %c0_21] : memref<1152x128xbf16, #tpu.memory_space<vmem>>, vector<128x128xbf16>
    %cst_22 = arith.constant dense<0.000000e+00> : vector<256x128xf32>
    %24 = tpu.matmul %22, %23, %cst_22 {dimension_numbers = #tpu.dot_dimension_numbers<[1], [0], [0], [1], [0, 0, 1, 1], [], []>} : vector<256x128xbf16>, vector<128x128xbf16>, vector<256x128xf32> -> vector<256x128xf32>
    %25 = arith.addf %19, %24 : vector<256x128xf32>
    %c0_23 = arith.constant 0 : index
    %c2 = arith.constant 2 : index
    %c0_24 = arith.constant 0 : index
    %26 = vector.load %arg7[%c0_23, %c2, %c0_24] : memref<18x18x128xf32, #tpu.memory_space<vmem>>, vector<16x16x128xf32>
    %27 = vector.shape_cast %26 : vector<16x16x128xf32> to vector<256x128xf32>
    %28 = arith.truncf %27 : vector<256x128xf32> to vector<256x128xbf16>
    %c256 = arith.constant 256 : index
    %c0_25 = arith.constant 0 : index
    %29 = vector.load %arg4[%c256, %c0_25] : memref<1152x128xbf16, #tpu.memory_space<vmem>>, vector<128x128xbf16>
    %cst_26 = arith.constant dense<0.000000e+00> : vector<256x128xf32>
    %30 = tpu.matmul %28, %29, %cst_26 {dimension_numbers = #tpu.dot_dimension_numbers<[1], [0], [0], [1], [0, 0, 1, 1], [], []>} : vector<256x128xbf16>, vector<128x128xbf16>, vector<256x128xf32> -> vector<256x128xf32>
    %31 = arith.addf %25, %30 : vector<256x128xf32>
    %c1_27 = arith.constant 1 : index
    %c0_28 = arith.constant 0 : index
    %c0_29 = arith.constant 0 : index
    %32 = vector.load %arg7[%c1_27, %c0_28, %c0_29] : memref<18x18x128xf32, #tpu.memory_space<vmem>>, vector<16x16x128xf32>
    %33 = vector.shape_cast %32 : vector<16x16x128xf32> to vector<256x128xf32>
    %34 = arith.truncf %33 : vector<256x128xf32> to vector<256x128xbf16>
    %c384 = arith.constant 384 : index
    %c0_30 = arith.constant 0 : index
    %35 = vector.load %arg4[%c384, %c0_30] : memref<1152x128xbf16, #tpu.memory_space<vmem>>, vector<128x128xbf16>
    %cst_31 = arith.constant dense<0.000000e+00> : vector<256x128xf32>
    %36 = tpu.matmul %34, %35, %cst_31 {dimension_numbers = #tpu.dot_dimension_numbers<[1], [0], [0], [1], [0, 0, 1, 1], [], []>} : vector<256x128xbf16>, vector<128x128xbf16>, vector<256x128xf32> -> vector<256x128xf32>
    %37 = arith.addf %31, %36 : vector<256x128xf32>
    %c1_32 = arith.constant 1 : index
    %c1_33 = arith.constant 1 : index
    %c0_34 = arith.constant 0 : index
    %38 = vector.load %arg7[%c1_32, %c1_33, %c0_34] : memref<18x18x128xf32, #tpu.memory_space<vmem>>, vector<16x16x128xf32>
    %39 = vector.shape_cast %38 : vector<16x16x128xf32> to vector<256x128xf32>
    %40 = arith.truncf %39 : vector<256x128xf32> to vector<256x128xbf16>
    %c512 = arith.constant 512 : index
    %c0_35 = arith.constant 0 : index
    %41 = vector.load %arg4[%c512, %c0_35] : memref<1152x128xbf16, #tpu.memory_space<vmem>>, vector<128x128xbf16>
    %cst_36 = arith.constant dense<0.000000e+00> : vector<256x128xf32>
    %42 = tpu.matmul %40, %41, %cst_36 {dimension_numbers = #tpu.dot_dimension_numbers<[1], [0], [0], [1], [0, 0, 1, 1], [], []>} : vector<256x128xbf16>, vector<128x128xbf16>, vector<256x128xf32> -> vector<256x128xf32>
    %43 = arith.addf %37, %42 : vector<256x128xf32>
    %c1_37 = arith.constant 1 : index
    %c2_38 = arith.constant 2 : index
    %c0_39 = arith.constant 0 : index
    %44 = vector.load %arg7[%c1_37, %c2_38, %c0_39] : memref<18x18x128xf32, #tpu.memory_space<vmem>>, vector<16x16x128xf32>
    %45 = vector.shape_cast %44 : vector<16x16x128xf32> to vector<256x128xf32>
    %46 = arith.truncf %45 : vector<256x128xf32> to vector<256x128xbf16>
    %c640 = arith.constant 640 : index
    %c0_40 = arith.constant 0 : index
    %47 = vector.load %arg4[%c640, %c0_40] : memref<1152x128xbf16, #tpu.memory_space<vmem>>, vector<128x128xbf16>
    %cst_41 = arith.constant dense<0.000000e+00> : vector<256x128xf32>
    %48 = tpu.matmul %46, %47, %cst_41 {dimension_numbers = #tpu.dot_dimension_numbers<[1], [0], [0], [1], [0, 0, 1, 1], [], []>} : vector<256x128xbf16>, vector<128x128xbf16>, vector<256x128xf32> -> vector<256x128xf32>
    %49 = arith.addf %43, %48 : vector<256x128xf32>
    %c2_42 = arith.constant 2 : index
    %c0_43 = arith.constant 0 : index
    %c0_44 = arith.constant 0 : index
    %50 = vector.load %arg7[%c2_42, %c0_43, %c0_44] : memref<18x18x128xf32, #tpu.memory_space<vmem>>, vector<16x16x128xf32>
    %51 = vector.shape_cast %50 : vector<16x16x128xf32> to vector<256x128xf32>
    %52 = arith.truncf %51 : vector<256x128xf32> to vector<256x128xbf16>
    %c768 = arith.constant 768 : index
    %c0_45 = arith.constant 0 : index
    %53 = vector.load %arg4[%c768, %c0_45] : memref<1152x128xbf16, #tpu.memory_space<vmem>>, vector<128x128xbf16>
    %cst_46 = arith.constant dense<0.000000e+00> : vector<256x128xf32>
    %54 = tpu.matmul %52, %53, %cst_46 {dimension_numbers = #tpu.dot_dimension_numbers<[1], [0], [0], [1], [0, 0, 1, 1], [], []>} : vector<256x128xbf16>, vector<128x128xbf16>, vector<256x128xf32> -> vector<256x128xf32>
    %55 = arith.addf %49, %54 : vector<256x128xf32>
    %c2_47 = arith.constant 2 : index
    %c1_48 = arith.constant 1 : index
    %c0_49 = arith.constant 0 : index
    %56 = vector.load %arg7[%c2_47, %c1_48, %c0_49] : memref<18x18x128xf32, #tpu.memory_space<vmem>>, vector<16x16x128xf32>
    %57 = vector.shape_cast %56 : vector<16x16x128xf32> to vector<256x128xf32>
    %58 = arith.truncf %57 : vector<256x128xf32> to vector<256x128xbf16>
    %c896 = arith.constant 896 : index
    %c0_50 = arith.constant 0 : index
    %59 = vector.load %arg4[%c896, %c0_50] : memref<1152x128xbf16, #tpu.memory_space<vmem>>, vector<128x128xbf16>
    %cst_51 = arith.constant dense<0.000000e+00> : vector<256x128xf32>
    %60 = tpu.matmul %58, %59, %cst_51 {dimension_numbers = #tpu.dot_dimension_numbers<[1], [0], [0], [1], [0, 0, 1, 1], [], []>} : vector<256x128xbf16>, vector<128x128xbf16>, vector<256x128xf32> -> vector<256x128xf32>
    %61 = arith.addf %55, %60 : vector<256x128xf32>
    %c2_52 = arith.constant 2 : index
    %c2_53 = arith.constant 2 : index
    %c0_54 = arith.constant 0 : index
    %62 = vector.load %arg7[%c2_52, %c2_53, %c0_54] : memref<18x18x128xf32, #tpu.memory_space<vmem>>, vector<16x16x128xf32>
    %63 = vector.shape_cast %62 : vector<16x16x128xf32> to vector<256x128xf32>
    %64 = arith.truncf %63 : vector<256x128xf32> to vector<256x128xbf16>
    %c1024 = arith.constant 1024 : index
    %c0_55 = arith.constant 0 : index
    %65 = vector.load %arg4[%c1024, %c0_55] : memref<1152x128xbf16, #tpu.memory_space<vmem>>, vector<128x128xbf16>
    %cst_56 = arith.constant dense<0.000000e+00> : vector<256x128xf32>
    %66 = tpu.matmul %64, %65, %cst_56 {dimension_numbers = #tpu.dot_dimension_numbers<[1], [0], [0], [1], [0, 0, 1, 1], [], []>} : vector<256x128xbf16>, vector<128x128xbf16>, vector<256x128xf32> -> vector<256x128xf32>
    %67 = arith.addf %61, %66 : vector<256x128xf32>
    %68 = vector.extract_strided_slice %67 {offsets = [0, 0], sizes = [256, 4], strides = [1, 1]} : vector<256x128xf32> to vector<256x4xf32>
    %69 = arith.truncf %68 : vector<256x4xf32> to vector<256x4xbf16>
    %c0_57 = arith.constant 0 : index
    %c0_58 = arith.constant 0 : index
    %c0_59 = arith.constant 0 : index
    %70 = vector.load %arg5[%c0_57, %c0_58, %c0_59] : memref<1x256x4xbf16, #tpu.memory_space<vmem>>, vector<1x256x4xbf16>
    %71 = vector.shape_cast %70 : vector<1x256x4xbf16> to vector<256x4xbf16>
    %72 = vector.shape_cast %69 : vector<256x4xbf16> to vector<1x256x4xbf16>
    tpu.vector_store %arg5[%c0_57, %c0_58, %c0_59], %72 {strides = array<i32>} : memref<1x256x4xbf16, #tpu.memory_space<vmem>>, vector<1x256x4xbf16>,
    %cst_60 = arith.constant dense<0.000000e+00> : vector<4xf32>
    %73 = vector.multi_reduction <add>, %68, %cst_60 [0] : vector<256x4xf32> to vector<4xf32>
    %74 = vector.shape_cast %73 : vector<4xf32> to vector<1x4xf32>
    %cst_61 = arith.constant 2.560000e+02 : f32
    %75 = vector.broadcast %cst_61 : f32 to vector<1x4xf32>
    %76 = arith.divf %74, %75 : vector<1x4xf32>
    %77 = vector.broadcast %76 : vector<1x4xf32> to vector<256x4xf32>
    %78 = arith.subf %68, %77 : vector<256x4xf32>
    %cst_62 = arith.constant dense<0.000000e+00> : vector<4xf32>
    %79 = vector.multi_reduction <add>, %68, %cst_62 [0] : vector<256x4xf32> to vector<4xf32>
    %80 = vector.shape_cast %79 : vector<4xf32> to vector<1x4xf32>
    %c0_63 = arith.constant 0 : index
    %c0_64 = arith.constant 0 : index
    %c0_65 = arith.constant 0 : index
    %81 = vector.load %arg6[%c0_63, %c0_64, %c0_65] : memref<1x2x4xf32, #tpu.memory_space<vmem>>, vector<1x1x4xf32>
    %82 = vector.shape_cast %81 : vector<1x1x4xf32> to vector<1x4xf32>
    %83 = vector.shape_cast %80 : vector<1x4xf32> to vector<1x1x4xf32>
    tpu.vector_store %arg6[%c0_63, %c0_64, %c0_65], %83 {strides = array<i32>} : memref<1x2x4xf32, #tpu.memory_space<vmem>>, vector<1x1x4xf32>,
    %84 = arith.mulf %78, %78 : vector<256x4xf32>
    %cst_66 = arith.constant dense<0.000000e+00> : vector<4xf32>
    %85 = vector.multi_reduction <add>, %84, %cst_66 [0] : vector<256x4xf32> to vector<4xf32>
    %86 = vector.shape_cast %85 : vector<4xf32> to vector<1x4xf32>
    %c0_67 = arith.constant 0 : index
    %c1_68 = arith.constant 1 : index
    %c0_69 = arith.constant 0 : index
    %87 = vector.load %arg6[%c0_67, %c1_68, %c0_69] : memref<1x2x4xf32, #tpu.memory_space<vmem>>, vector<1x1x4xf32>
    %88 = vector.shape_cast %87 : vector<1x1x4xf32> to vector<1x4xf32>
    %89 = vector.shape_cast %86 : vector<1x4xf32> to vector<1x1x4xf32>
    tpu.vector_store %arg6[%c0_67, %c1_68, %c0_69], %89 {strides = array<i32>} : memref<1x2x4xf32, #tpu.memory_space<vmem>>, vector<1x1x4xf32>,
    return
  }
  func.func @transform_0(%arg0: i32) -> (i32, i32, i32) {
    %c0_i32 = arith.constant 0 : i32
    %c0_i32_0 = arith.constant 0 : i32
    %c0_i32_1 = arith.constant 0 : i32
    return %arg0, %c0_i32, %c0_i32_0 : i32, i32, i32
  }
  func.func @transform_1(%arg0: i32) -> (i32, i32) {
    %c0_i32 = arith.constant 0 : i32
    %c0_i32_0 = arith.constant 0 : i32
    %c0_i32_1 = arith.constant 0 : i32
    return %c0_i32, %c0_i32_0 : i32, i32
  }
  func.func @transform_2(%arg0: i32) -> (i32, i32) {
    %c0_i32 = arith.constant 0 : i32
    %c0_i32_0 = arith.constant 0 : i32
    %c0_i32_1 = arith.constant 0 : i32
    return %c0_i32, %c0_i32_0 : i32, i32
  }
  func.func @transform_3(%arg0: i32) -> (i32, i32) {
    %c0_i32 = arith.constant 0 : i32
    %c0_i32_0 = arith.constant 0 : i32
    %c0_i32_1 = arith.constant 0 : i32
    return %c0_i32, %c0_i32_0 : i32, i32
  }
  func.func @transform_4(%arg0: i32) -> (i32, i32, i32) {
    %c0_i32 = arith.constant 0 : i32
    %c0_i32_0 = arith.constant 0 : i32
    %c0_i32_1 = arith.constant 0 : i32
    return %arg0, %c0_i32, %c0_i32_0 : i32, i32, i32
  }
  func.func @transform_5(%arg0: i32) -> (i32, i32, i32) {
    %c0_i32 = arith.constant 0 : i32
    %c0_i32_0 = arith.constant 0 : i32
    %c0_i32_1 = arith.constant 0 : i32
    return %arg0, %c0_i32, %c0_i32_0 : i32, i32, i32
  }
}

module attributes {stable_mosaic.version = 11 : i64} {
  func.func @tail_kernel(%arg0: i32, %arg1: memref<1x256x4xbf16, #tpu.memory_space<vmem>>, %arg2: memref<1x4xf32, #tpu.memory_space<vmem>>, %arg3: memref<1x4xf32, #tpu.memory_space<vmem>>, %arg4: memref<1x16x16x4xf32, #tpu.memory_space<vmem>>, %arg5: memref<1152x128xbf16, #tpu.memory_space<vmem>>, %arg6: memref<1x128xf32, #tpu.memory_space<vmem>>, %arg7: memref<1x64x128xf32, #tpu.memory_space<vmem>>, %arg8: memref<10x10x128xf32, #tpu.memory_space<vmem>>) attributes {dimension_semantics = [#tpu.dimension_semantics<parallel>], iteration_bounds = array<i64: 2>, scalar_prefetch = 0 : i64, scratch_operands = 1 : i64, tpu.core_type = #tpu.core_type<tc>, window_params = [{transform_indices = @transform_0, window_bounds = array<i64: 1, 256, 4>}, {pipeline_mode = #tpu.pipeline_mode<synchronous>, transform_indices = @transform_1, window_bounds = array<i64: 1, 4>}, {pipeline_mode = #tpu.pipeline_mode<synchronous>, transform_indices = @transform_2, window_bounds = array<i64: 1, 4>}, {transform_indices = @transform_3, window_bounds = array<i64: 1, 16, 16, 4>}, {pipeline_mode = #tpu.pipeline_mode<synchronous>, transform_indices = @transform_4, window_bounds = array<i64: 1152, 128>}, {pipeline_mode = #tpu.pipeline_mode<synchronous>, transform_indices = @transform_5, window_bounds = array<i64: 1, 128>}, {transform_indices = @transform_6, window_bounds = array<i64: 1, 64, 128>}]} {
    %c0 = arith.constant 0 : index
    %c0_0 = arith.constant 0 : index
    %c0_1 = arith.constant 0 : index
    %0 = vector.load %arg1[%c0, %c0_0, %c0_1] : memref<1x256x4xbf16, #tpu.memory_space<vmem>>, vector<1x256x4xbf16>
    %1 = vector.shape_cast %0 : vector<1x256x4xbf16> to vector<256x4xbf16>
    %2 = arith.extf %1 : vector<256x4xbf16> to vector<256x4xf32>
    %c0_2 = arith.constant 0 : index
    %c0_3 = arith.constant 0 : index
    %3 = vector.load %arg2[%c0_2, %c0_3] : memref<1x4xf32, #tpu.memory_space<vmem>>, vector<1x4xf32>
    %4 = vector.broadcast %3 : vector<1x4xf32> to vector<256x4xf32>
    %5 = arith.mulf %2, %4 : vector<256x4xf32>
    %c0_4 = arith.constant 0 : index
    %c0_5 = arith.constant 0 : index
    %6 = vector.load %arg3[%c0_4, %c0_5] : memref<1x4xf32, #tpu.memory_space<vmem>>, vector<1x4xf32>
    %7 = vector.broadcast %6 : vector<1x4xf32> to vector<256x4xf32>
    %8 = arith.addf %5, %7 : vector<256x4xf32>
    %cst = arith.constant 0.000000e+00 : f32
    %9 = vector.broadcast %cst : f32 to vector<256x4xf32>
    %10 = arith.maximumf %8, %9 : vector<256x4xf32>
    %11 = vector.shape_cast %10 : vector<256x4xf32> to vector<16x16x4xf32>
    %c0_6 = arith.constant 0 : index
    %c0_7 = arith.constant 0 : index
    %c0_8 = arith.constant 0 : index
    %c0_9 = arith.constant 0 : index
    %12 = vector.load %arg4[%c0_6, %c0_7, %c0_8, %c0_9] : memref<1x16x16x4xf32, #tpu.memory_space<vmem>>, vector<1x16x16x4xf32>
    %13 = vector.shape_cast %12 : vector<1x16x16x4xf32> to vector<16x16x4xf32>
    %14 = arith.addf %11, %13 : vector<16x16x4xf32>
    %15 = vector.shape_cast %14 : vector<16x16x4xf32> to vector<16x8x2x4xf32>
    %cst_10 = arith.constant dense<0xFF800000> : vector<16x8x4xf32>
    %16 = vector.multi_reduction <maximumf>, %15, %cst_10 [2] : vector<16x8x2x4xf32> to vector<16x8x4xf32>
    %17 = vector.shape_cast %16 : vector<16x8x4xf32> to vector<8x2x8x4xf32>
    %cst_11 = arith.constant dense<0xFF800000> : vector<8x8x4xf32>
    %18 = vector.multi_reduction <maximumf>, %17, %cst_11 [1] : vector<8x2x8x4xf32> to vector<8x8x4xf32>
    %cst_12 = arith.constant 0.000000e+00 : f32
    %19 = vector.broadcast %cst_12 : f32 to vector<10x10x128xf32>
    %c0_13 = arith.constant 0 : index
    %c0_14 = arith.constant 0 : index
    %c0_15 = arith.constant 0 : index
    %20 = vector.load %arg8[%c0_13, %c0_14, %c0_15] : memref<10x10x128xf32, #tpu.memory_space<vmem>>, vector<10x10x128xf32>
    tpu.vector_store %arg8[%c0_13, %c0_14, %c0_15], %19 {strides = array<i32>} : memref<10x10x128xf32, #tpu.memory_space<vmem>>, vector<10x10x128xf32>,
    %c1 = arith.constant 1 : index
    %c1_16 = arith.constant 1 : index
    %c0_17 = arith.constant 0 : index
    %21 = vector.load %arg8[%c1, %c1_16, %c0_17] : memref<10x10x128xf32, #tpu.memory_space<vmem>>, vector<8x8x4xf32>
    tpu.vector_store %arg8[%c1, %c1_16, %c0_17], %18 {strides = array<i32>} : memref<10x10x128xf32, #tpu.memory_space<vmem>>, vector<8x8x4xf32>,
    %c0_18 = arith.constant 0 : index
    %c0_19 = arith.constant 0 : index
    %c0_20 = arith.constant 0 : index
    %22 = vector.load %arg8[%c0_18, %c0_19, %c0_20] : memref<10x10x128xf32, #tpu.memory_space<vmem>>, vector<8x8x128xf32>
    %23 = vector.shape_cast %22 : vector<8x8x128xf32> to vector<64x128xf32>
    %24 = arith.truncf %23 : vector<64x128xf32> to vector<64x128xbf16>
    %c0_21 = arith.constant 0 : index
    %c0_22 = arith.constant 0 : index
    %25 = vector.load %arg5[%c0_21, %c0_22] : memref<1152x128xbf16, #tpu.memory_space<vmem>>, vector<128x128xbf16>
    %cst_23 = arith.constant dense<0.000000e+00> : vector<64x128xf32>
    %26 = tpu.matmul %24, %25, %cst_23 {dimension_numbers = #tpu.dot_dimension_numbers<[1], [0], [0], [1], [0, 0, 1, 1], [], []>} : vector<64x128xbf16>, vector<128x128xbf16>, vector<64x128xf32> -> vector<64x128xf32>
    %c0_24 = arith.constant 0 : index
    %c1_25 = arith.constant 1 : index
    %c0_26 = arith.constant 0 : index
    %27 = vector.load %arg8[%c0_24, %c1_25, %c0_26] : memref<10x10x128xf32, #tpu.memory_space<vmem>>, vector<8x8x128xf32>
    %28 = vector.shape_cast %27 : vector<8x8x128xf32> to vector<64x128xf32>
    %29 = arith.truncf %28 : vector<64x128xf32> to vector<64x128xbf16>
    %c128 = arith.constant 128 : index
    %c0_27 = arith.constant 0 : index
    %30 = vector.load %arg5[%c128, %c0_27] : memref<1152x128xbf16, #tpu.memory_space<vmem>>, vector<128x128xbf16>
    %cst_28 = arith.constant dense<0.000000e+00> : vector<64x128xf32>
    %31 = tpu.matmul %29, %30, %cst_28 {dimension_numbers = #tpu.dot_dimension_numbers<[1], [0], [0], [1], [0, 0, 1, 1], [], []>} : vector<64x128xbf16>, vector<128x128xbf16>, vector<64x128xf32> -> vector<64x128xf32>
    %32 = arith.addf %26, %31 : vector<64x128xf32>
    %c0_29 = arith.constant 0 : index
    %c2 = arith.constant 2 : index
    %c0_30 = arith.constant 0 : index
    %33 = vector.load %arg8[%c0_29, %c2, %c0_30] : memref<10x10x128xf32, #tpu.memory_space<vmem>>, vector<8x8x128xf32>
    %34 = vector.shape_cast %33 : vector<8x8x128xf32> to vector<64x128xf32>
    %35 = arith.truncf %34 : vector<64x128xf32> to vector<64x128xbf16>
    %c256 = arith.constant 256 : index
    %c0_31 = arith.constant 0 : index
    %36 = vector.load %arg5[%c256, %c0_31] : memref<1152x128xbf16, #tpu.memory_space<vmem>>, vector<128x128xbf16>
    %cst_32 = arith.constant dense<0.000000e+00> : vector<64x128xf32>
    %37 = tpu.matmul %35, %36, %cst_32 {dimension_numbers = #tpu.dot_dimension_numbers<[1], [0], [0], [1], [0, 0, 1, 1], [], []>} : vector<64x128xbf16>, vector<128x128xbf16>, vector<64x128xf32> -> vector<64x128xf32>
    %38 = arith.addf %32, %37 : vector<64x128xf32>
    %c1_33 = arith.constant 1 : index
    %c0_34 = arith.constant 0 : index
    %c0_35 = arith.constant 0 : index
    %39 = vector.load %arg8[%c1_33, %c0_34, %c0_35] : memref<10x10x128xf32, #tpu.memory_space<vmem>>, vector<8x8x128xf32>
    %40 = vector.shape_cast %39 : vector<8x8x128xf32> to vector<64x128xf32>
    %41 = arith.truncf %40 : vector<64x128xf32> to vector<64x128xbf16>
    %c384 = arith.constant 384 : index
    %c0_36 = arith.constant 0 : index
    %42 = vector.load %arg5[%c384, %c0_36] : memref<1152x128xbf16, #tpu.memory_space<vmem>>, vector<128x128xbf16>
    %cst_37 = arith.constant dense<0.000000e+00> : vector<64x128xf32>
    %43 = tpu.matmul %41, %42, %cst_37 {dimension_numbers = #tpu.dot_dimension_numbers<[1], [0], [0], [1], [0, 0, 1, 1], [], []>} : vector<64x128xbf16>, vector<128x128xbf16>, vector<64x128xf32> -> vector<64x128xf32>
    %44 = arith.addf %38, %43 : vector<64x128xf32>
    %c1_38 = arith.constant 1 : index
    %c1_39 = arith.constant 1 : index
    %c0_40 = arith.constant 0 : index
    %45 = vector.load %arg8[%c1_38, %c1_39, %c0_40] : memref<10x10x128xf32, #tpu.memory_space<vmem>>, vector<8x8x128xf32>
    %46 = vector.shape_cast %45 : vector<8x8x128xf32> to vector<64x128xf32>
    %47 = arith.truncf %46 : vector<64x128xf32> to vector<64x128xbf16>
    %c512 = arith.constant 512 : index
    %c0_41 = arith.constant 0 : index
    %48 = vector.load %arg5[%c512, %c0_41] : memref<1152x128xbf16, #tpu.memory_space<vmem>>, vector<128x128xbf16>
    %cst_42 = arith.constant dense<0.000000e+00> : vector<64x128xf32>
    %49 = tpu.matmul %47, %48, %cst_42 {dimension_numbers = #tpu.dot_dimension_numbers<[1], [0], [0], [1], [0, 0, 1, 1], [], []>} : vector<64x128xbf16>, vector<128x128xbf16>, vector<64x128xf32> -> vector<64x128xf32>
    %50 = arith.addf %44, %49 : vector<64x128xf32>
    %c1_43 = arith.constant 1 : index
    %c2_44 = arith.constant 2 : index
    %c0_45 = arith.constant 0 : index
    %51 = vector.load %arg8[%c1_43, %c2_44, %c0_45] : memref<10x10x128xf32, #tpu.memory_space<vmem>>, vector<8x8x128xf32>
    %52 = vector.shape_cast %51 : vector<8x8x128xf32> to vector<64x128xf32>
    %53 = arith.truncf %52 : vector<64x128xf32> to vector<64x128xbf16>
    %c640 = arith.constant 640 : index
    %c0_46 = arith.constant 0 : index
    %54 = vector.load %arg5[%c640, %c0_46] : memref<1152x128xbf16, #tpu.memory_space<vmem>>, vector<128x128xbf16>
    %cst_47 = arith.constant dense<0.000000e+00> : vector<64x128xf32>
    %55 = tpu.matmul %53, %54, %cst_47 {dimension_numbers = #tpu.dot_dimension_numbers<[1], [0], [0], [1], [0, 0, 1, 1], [], []>} : vector<64x128xbf16>, vector<128x128xbf16>, vector<64x128xf32> -> vector<64x128xf32>
    %56 = arith.addf %50, %55 : vector<64x128xf32>
    %c2_48 = arith.constant 2 : index
    %c0_49 = arith.constant 0 : index
    %c0_50 = arith.constant 0 : index
    %57 = vector.load %arg8[%c2_48, %c0_49, %c0_50] : memref<10x10x128xf32, #tpu.memory_space<vmem>>, vector<8x8x128xf32>
    %58 = vector.shape_cast %57 : vector<8x8x128xf32> to vector<64x128xf32>
    %59 = arith.truncf %58 : vector<64x128xf32> to vector<64x128xbf16>
    %c768 = arith.constant 768 : index
    %c0_51 = arith.constant 0 : index
    %60 = vector.load %arg5[%c768, %c0_51] : memref<1152x128xbf16, #tpu.memory_space<vmem>>, vector<128x128xbf16>
    %cst_52 = arith.constant dense<0.000000e+00> : vector<64x128xf32>
    %61 = tpu.matmul %59, %60, %cst_52 {dimension_numbers = #tpu.dot_dimension_numbers<[1], [0], [0], [1], [0, 0, 1, 1], [], []>} : vector<64x128xbf16>, vector<128x128xbf16>, vector<64x128xf32> -> vector<64x128xf32>
    %62 = arith.addf %56, %61 : vector<64x128xf32>
    %c2_53 = arith.constant 2 : index
    %c1_54 = arith.constant 1 : index
    %c0_55 = arith.constant 0 : index
    %63 = vector.load %arg8[%c2_53, %c1_54, %c0_55] : memref<10x10x128xf32, #tpu.memory_space<vmem>>, vector<8x8x128xf32>
    %64 = vector.shape_cast %63 : vector<8x8x128xf32> to vector<64x128xf32>
    %65 = arith.truncf %64 : vector<64x128xf32> to vector<64x128xbf16>
    %c896 = arith.constant 896 : index
    %c0_56 = arith.constant 0 : index
    %66 = vector.load %arg5[%c896, %c0_56] : memref<1152x128xbf16, #tpu.memory_space<vmem>>, vector<128x128xbf16>
    %cst_57 = arith.constant dense<0.000000e+00> : vector<64x128xf32>
    %67 = tpu.matmul %65, %66, %cst_57 {dimension_numbers = #tpu.dot_dimension_numbers<[1], [0], [0], [1], [0, 0, 1, 1], [], []>} : vector<64x128xbf16>, vector<128x128xbf16>, vector<64x128xf32> -> vector<64x128xf32>
    %68 = arith.addf %62, %67 : vector<64x128xf32>
    %c2_58 = arith.constant 2 : index
    %c2_59 = arith.constant 2 : index
    %c0_60 = arith.constant 0 : index
    %69 = vector.load %arg8[%c2_58, %c2_59, %c0_60] : memref<10x10x128xf32, #tpu.memory_space<vmem>>, vector<8x8x128xf32>
    %70 = vector.shape_cast %69 : vector<8x8x128xf32> to vector<64x128xf32>
    %71 = arith.truncf %70 : vector<64x128xf32> to vector<64x128xbf16>
    %c1024 = arith.constant 1024 : index
    %c0_61 = arith.constant 0 : index
    %72 = vector.load %arg5[%c1024, %c0_61] : memref<1152x128xbf16, #tpu.memory_space<vmem>>, vector<128x128xbf16>
    %cst_62 = arith.constant dense<0.000000e+00> : vector<64x128xf32>
    %73 = tpu.matmul %71, %72, %cst_62 {dimension_numbers = #tpu.dot_dimension_numbers<[1], [0], [0], [1], [0, 0, 1, 1], [], []>} : vector<64x128xbf16>, vector<128x128xbf16>, vector<64x128xf32> -> vector<64x128xf32>
    %74 = arith.addf %68, %73 : vector<64x128xf32>
    %c0_63 = arith.constant 0 : index
    %c0_64 = arith.constant 0 : index
    %75 = vector.load %arg6[%c0_63, %c0_64] : memref<1x128xf32, #tpu.memory_space<vmem>>, vector<1x128xf32>
    %76 = vector.broadcast %75 : vector<1x128xf32> to vector<64x128xf32>
    %77 = arith.addf %74, %76 : vector<64x128xf32>
    %c0_65 = arith.constant 0 : index
    %c0_66 = arith.constant 0 : index
    %c0_67 = arith.constant 0 : index
    %78 = vector.load %arg7[%c0_65, %c0_66, %c0_67] : memref<1x64x128xf32, #tpu.memory_space<vmem>>, vector<1x64x128xf32>
    %79 = vector.shape_cast %78 : vector<1x64x128xf32> to vector<64x128xf32>
    %80 = vector.shape_cast %77 : vector<64x128xf32> to vector<1x64x128xf32>
    tpu.vector_store %arg7[%c0_65, %c0_66, %c0_67], %80 {strides = array<i32>} : memref<1x64x128xf32, #tpu.memory_space<vmem>>, vector<1x64x128xf32>,
    return
  }
  func.func @transform_0(%arg0: i32) -> (i32, i32, i32) {
    %c0_i32 = arith.constant 0 : i32
    %c0_i32_0 = arith.constant 0 : i32
    %c0_i32_1 = arith.constant 0 : i32
    return %arg0, %c0_i32, %c0_i32_0 : i32, i32, i32
  }
  func.func @transform_1(%arg0: i32) -> (i32, i32) {
    %c0_i32 = arith.constant 0 : i32
    %c0_i32_0 = arith.constant 0 : i32
    %c0_i32_1 = arith.constant 0 : i32
    return %c0_i32, %c0_i32_0 : i32, i32
  }
  func.func @transform_2(%arg0: i32) -> (i32, i32) {
    %c0_i32 = arith.constant 0 : i32
    %c0_i32_0 = arith.constant 0 : i32
    %c0_i32_1 = arith.constant 0 : i32
    return %c0_i32, %c0_i32_0 : i32, i32
  }
  func.func @transform_3(%arg0: i32) -> (i32, i32, i32, i32) {
    %c0_i32 = arith.constant 0 : i32
    %c0_i32_0 = arith.constant 0 : i32
    %c0_i32_1 = arith.constant 0 : i32
    %c0_i32_2 = arith.constant 0 : i32
    return %arg0, %c0_i32, %c0_i32_0, %c0_i32_1 : i32, i32, i32, i32
  }
  func.func @transform_4(%arg0: i32) -> (i32, i32) {
    %c0_i32 = arith.constant 0 : i32
    %c0_i32_0 = arith.constant 0 : i32
    %c0_i32_1 = arith.constant 0 : i32
    return %c0_i32, %c0_i32_0 : i32, i32
  }
  func.func @transform_5(%arg0: i32) -> (i32, i32) {
    %c0_i32 = arith.constant 0 : i32
    %c0_i32_0 = arith.constant 0 : i32
    %c0_i32_1 = arith.constant 0 : i32
    return %c0_i32, %c0_i32_0 : i32, i32
  }
  func.func @transform_6(%arg0: i32) -> (i32, i32, i32) {
    %c0_i32 = arith.constant 0 : i32
    %c0_i32_0 = arith.constant 0 : i32
    %c0_i32_1 = arith.constant 0 : i32
    return %arg0, %c0_i32, %c0_i32_0 : i32, i32, i32
  }
}

</mosaic_0001>

<bundles_post_ra>
// kernel: basic_block_forward.5
= control target key start
LH: loop header
LB: loop body
LE: loop exit
PB: predicated region body
PF: predicated region fallthrough
CT: control target
= control target key end

     0   :  { %s3603_s21 = smov 0   ;;  %s5162_s0 = inlined_call_operand.vmem [shape: bf16[2,256,4], index: 0, kind: input, shape index: {}]   ;;  %s5163_s1 = inlined_call_operand.vmem [shape: f32[1,4], index: 1, kind: input, shape index: {}]   ;;  %s5164_s2 = inlined_call_operand.vmem [shape: f32[1,4], index: 2, kind: input, shape index: {}]   ;;  %s5165_s3 = inlined_call_operand.vmem [shape: f32[2,16,16,4], index: 3, kind: input, shape index: {}]   ;;  %s5166_s4 = inlined_call_operand.vmem [shape: bf16[1152,128], index: 4, kind: input, shape index: {}]   ;;  %s5167_s5 = inlined_call_operand.vmem [shape: f32[1,128], index: 5, kind: input, shape index: {}]   ;;  %s5168_s6 = inlined_call_operand.vmem [shape: f32[2,64,128], index: 6, kind: output, shape index: {}]  }
   0x1 LB: > { %s3071_s22 = sadd.s32 4294967295, %s3565_s21   ;;  %p3075_p0 = scmp.ge.s32.totalorder %s3565_s21, 1  ;;  %s3565_s21 = sphi %s3603_s21, %s16_s21  }
   0x2   : > { %p222_p1 = scmp.lt.s32.totalorder %s3565_s21, 3 }
   0x4   : > { %p223_p2 = pnand %p3075_p0, %p222_p1 }
   0x5   : > { %p257_p3 = scmp.lt.s32.totalorder (!%p223_p2), %s3071_s22, 1 }
   0x6   : > { %226 = sbr.rel (%p223_p2) target bundleno = 597 (0x255), region = 44 }
   0xb   : > { %v3390_v0 = vld [vmem:[%s5166_s4 + $0x78] sm:$0xff]  ;;  %v3389_v2 = vld [vmem:[%s5166_s4 + $0x70] sm:$0xff]  ;;  %s5172_s22 = smov (!%p257_p3, %s3071_s22), 1  ;;  %v3388_v5 = vld [vmem:[%s5166_s4 + $0x68] sm:$0xff]  ;;  %vm728_vm0 = vcmask 25600   ;;  %vm1625_vm1 = vcmask 31744  }
   0xc   : > { %v3398_v1 = vld [vmem:[%s5166_s4 + $0xb8] sm:$0xff]  ;;  %3526 = vmatpush.bf16.msra.mxu1 %v3390_v0  ;;  %2086 = vmatpush.bf16.msra.mxu0 %v3390_v0  ;;  %v3397_v3 = vld [vmem:[%s5166_s4 + $0xb0] sm:$0xff]  ;;  %s3372_s11 = sshll.u32 %s5172_s22, 7  ;;  %v3396_v6 = vld [vmem:[%s5166_s4 + $0xa8] sm:$0xff]  ;;  %s3373_s19 = sshll.u32 %s5172_s22, 8  ;;  %vm1902_vm2 = vcmask 1041409  }
   0xd   : > { %2268 = vmatpush.bf16.msra.mxu2 %v3398_v1  ;;  %v3406_v4 = vld [vmem:[%s5166_s4 + $0xf8] sm:$0xff]  ;;  %v3405_v7 = vld [vmem:[%s5166_s4 + $0xf0] sm:$0xff]  ;;  %s3641_s18 = scalar_lea.vmem %s5162_s0, %s3372_s11  ;;  %v3651_v16 = vld [vmem:[%s5163_s1] ss:$0 sm:$0xff]  ;;  %s3656_s26 = scalar_lea.vmem %s5165_s3, %s3373_s19  ;;  %vm1904_vm3 = vcmask 1042434   ;;  %vm1906_vm4 = vcmask 1043459  }
   0xe   : > { %2381 = vmatpush.bf16.msra.mxu3 %v3406_v4  ;;  %v3516_v8 = vld [vmem:[%s3641_s18 + $0x30] sm:$0xff]   ;;  %v3517_v9 = vld [vmem:[%s3641_s18 + $0x38] sm:$0xff]   ;;  %v3518_v10 = vld [vmem:[%s3641_s18 + $0x40] sm:$0xff]   ;;  %vm1908_vm5 = vcmask 1044484   ;;  %vm1910_vm6 = vcmask 1045509   ;;  %vm1912_vm7 = vcmask 1046534  }
   0xf   : > { %v3473_v11 = vunpack.c.l.bf16 %v3516_v8  ;;  %v3474_v12 = vunpack.c.h.bf16 %v3516_v8  ;;  %v3477_v13 = vunpack.c.l.bf16 %v3517_v9  ;;  %v3478_v14 = vunpack.c.h.bf16 %v3517_v9  ;;  %v3519_v15 = vld [vmem:[%s3641_s18 + $0x48] sm:$0xff]   ;;  %v3661_v21 = vld [vmem:[%s5164_s2] ss:$0 sm:$0xff]  ;;  %v454_v42 = vld [vmem:[%s3656_s26 + $0x70] sm:$0xff]  ;;  %s3374_s16 = sshll.u32 %s5172_s22, 6 }
  0x10   : > { %3527 = vmatpush.bf16.msra.mxu1 %v3389_v2  ;;  %2087 = vmatpush.bf16.msra.mxu0 %v3389_v2  ;;  %v3481_v17 = vunpack.c.l.bf16 %v3518_v10  ;;  %v3482_v18 = vunpack.c.h.bf16 %v3518_v10  ;;  %v3485_v19 = vunpack.c.l.bf16 %v3519_v15  ;;  %v3486_v20 = vunpack.c.h.bf16 %v3519_v15  ;;  %v3404_v22 = vld [vmem:[%s5166_s4 + $0xe8] sm:$0xff]  ;;  %v3387_v27 = vld [vmem:[%s5166_s4 + $0x60] sm:$0xff]  ;;  %v455_v43 = vld [vmem:[%s3656_s26 + $0x78] sm:$0xff]  ;;  %s5127_s23 = scalar_lea.vmem %s5168_s6, %s3374_s16 }
  0x11   : > { %2269 = vmatpush.bf16.msra.mxu2 %v3397_v3  ;;  %v352_v23 = vmul.f32 %v3651_v16, %v3473_v11  ;;  %v353_v24 = vmul.f32 %v3651_v16, %v3474_v12  ;;  %v354_v25 = vmul.f32 %v3651_v16, %v3477_v13  ;;  %v355_v26 = vmul.f32 %v3651_v16, %v3478_v14  ;;  %v3395_v31 = vld [vmem:[%s5166_s4 + $0xa0] sm:$0xff]  ;;  %v453_v41 = vld [vmem:[%s3656_s26 + $0x68] sm:$0xff]  ;;  %v458_v50 = vld [vmem:[%s3656_s26 + $0x90] sm:$0xff] }
  0x12   : > { %2382 = vmatpush.bf16.msra.mxu3 %v3405_v7  ;;  %v356_v28 = vmul.f32 %v3651_v16, %v3481_v17  ;;  %v357_v29 = vmul.f32 %v3651_v16, %v3482_v18  ;;  %v358_v30 = vmul.f32 %v3651_v16, %v3485_v19  ;;  %v359_v32 = vmul.f32 %v3651_v16, %v3486_v20  ;;  %v452_v36 = vld [vmem:[%s3656_s26 + $0x60] sm:$0xff]  ;;  %v457_v49 = vld [vmem:[%s3656_s26 + $0x88] sm:$0xff]  ;;  %v3386_v51 = vld [vmem:[%s5166_s4 + $0x58] sm:$0xff] }
  0x13   : > { %v388_v33 = vadd.f32 %v3661_v21, %v352_v23  ;;  %v389_v34 = vadd.f32 %v3661_v21, %v353_v24  ;;  %v390_v35 = vadd.f32 %v3661_v21, %v354_v25  ;;  %v391_v37 = vadd.f32 %v3661_v21, %v355_v26  ;;  %v456_v48 = vld [vmem:[%s3656_s26 + $0x80] sm:$0xff]  ;;  %v459_v56 = vld [vmem:[%s3656_s26 + $0x98] sm:$0xff]  ;;  %v3393_v11 = vld [vmem:[%s5166_s4 + $0x90] sm:$0xff] }
  0x14   : > { %3528 = vmatpush.bf16.msra.mxu1 %v3388_v5  ;;  %2088 = vmatpush.bf16.msra.mxu0 %v3388_v5  ;;  %v392_v38 = vadd.f32 %v3661_v21, %v356_v28  ;;  %v393_v39 = vadd.f32 %v3661_v21, %v357_v29  ;;  %v394_v40 = vadd.f32 %v3661_v21, %v358_v30  ;;  %v3394_v57 = vld [vmem:[%s5166_s4 + $0x98] sm:$0xff]  ;;  %v3384_v26 = vld [vmem:[%s5166_s4 + $0x48] sm:$0xff]  ;;  %vm1914_vm8 = vcmask 1047559  }
  0x15   : > { %2270 = vmatpush.bf16.msra.mxu2 %v3396_v6  ;;  %v395_v44 = vadd.f32 %v3661_v21, %v359_v32  ;;  %v420_v45 = vmax.f32 %v388_v33, 0.0  ;;  %v421_v46 = vmax.f32 %v389_v34, 0.0  ;;  %v422_v47 = vmax.f32 %v390_v35, 0.0  ;;  %v3385_v6 = vld [vmem:[%s5166_s4 + $0x50] sm:$0xff] }
  0x16   : > { %2383 = vmatpush.bf16.msra.mxu3 %v3404_v22  ;;  %v423_v52 = vmax.f32 %v391_v37, 0.0  ;;  %v424_v53 = vmax.f32 %v392_v38, 0.0  ;;  %v425_v54 = vmax.f32 %v393_v39, 0.0  ;;  %v426_v55 = vmax.f32 %v394_v40, 0.0 }
  0x17   : > { %v427_v58 = vmax.f32 %v395_v44, 0.0  ;;  %v484_v59 = vadd.f32 %v452_v36, %v420_v45  ;;  %v485_v60 = vadd.f32 %v453_v41, %v421_v46  ;;  %v3702_v61 = vadd.f32 %v454_v42, %v422_v47 }
  0x18   : > { %3529 = vmatpush.bf16.msra.mxu1 %v3387_v27  ;;  %2089 = vmatpush.bf16.msra.mxu0 %v3387_v27  ;;  %v3704_v62 = vadd.f32 %v455_v43, %v423_v52  ;;  %v3706_v63 = vadd.f32 %v456_v48, %v424_v53  ;;  %v3708_v0 = vadd.f32 %v457_v49, %v425_v54  ;;  %v3383_v43 = vld [vmem:[%s5166_s4 + $0x40] sm:$0xff] }
  0x19   : > { %2271 = vmatpush.bf16.msra.mxu2 %v3395_v31  ;;  %v3710_v1 = vadd.f32 %v458_v50, %v426_v55  ;;  %v3712_v2 = vadd.f32 %v459_v56, %v427_v58  ;;  %v572_v3 = vrot.slane %v484_v59, 2  ;;  %v573_v4 = vrot.slane %v484_v59, 4 }
  0x1a   : > { %v574_v5 = vrot.slane %v484_v59, 6  ;;  %v575_v7 = vrot.slane %v485_v60, 2  ;;  %v576_v8 = vrot.slane %v485_v60, 4  ;;  %v577_v9 = vrot.slane %v485_v60, 6 }
  0x1b   : > { %v578_v10 = vrot.slane %v3702_v61, 2  ;;  %v579_v12 = vrot.slane %v3702_v61, 4  ;;  %v580_v13 = vrot.slane %v3702_v61, 6  ;;  %v581_v14 = vrot.slane %v3704_v62, 2 }
  0x1c   : > { %3530 = vmatpush.bf16.msra.mxu1 %v3386_v51  ;;  %2090 = vmatpush.bf16.msra.mxu0 %v3386_v51  ;;  %v582_v15 = vrot.slane %v3704_v62, 4  ;;  %v583_v17 = vrot.slane %v3704_v62, 6  ;;  %v584_v18 = vrot.slane %v3706_v63, 2  ;;  %v585_v19 = vrot.slane %v3706_v63, 4 }
  0x1d   : > { %2272 = vmatpush.bf16.msra.mxu2 %v3394_v57  ;;  %v586_v20 = vrot.slane %v3706_v63, 6  ;;  %v587_v22 = vrot.slane %v3708_v0, 2  ;;  %v588_v23 = vrot.slane %v3708_v0, 4  ;;  %v589_v24 = vrot.slane %v3708_v0, 6 }
  0x1e   : > { %v590_v25 = vrot.slane %v3710_v1, 2  ;;  %v591_v27 = vrot.slane %v3710_v1, 4  ;;  %v592_v28 = vrot.slane %v3710_v1, 6  ;;  %v593_v29 = vrot.slane %v3712_v2, 2 }
  0x1f   : > { %v594_v30 = vrot.slane %v3712_v2, 4  ;;  %v595_v31 = vrot.slane %v3712_v2, 6  ;;  %v1065_v32 = vsel %vm728_vm0, %v484_v59, -inf  ;;  %v1072_v33 = vsel %vm728_vm0, %v572_v3, -inf }
  0x20   : > { %3531 = vmatpush.bf16.msra.mxu1 %v3385_v6  ;;  %2091 = vmatpush.bf16.msra.mxu0 %v3385_v6  ;;  %v1079_v34 = vsel %vm728_vm0, %v573_v4, -inf  ;;  %v1066_v35 = vrot.slane %v1065_v32, 4  ;;  %v1073_v36 = vrot.slane %v1072_v33, 4  ;;  %v1086_v38 = vsel %vm728_vm0, %v574_v5, -inf }
  0x21   : > { %2273 = vmatpush.bf16.msra.mxu2 %v3393_v11  ;;  %v1080_v37 = vrot.slane %v1079_v34, 4  ;;  %v1087_v39 = vrot.slane %v1086_v38, 4  ;;  %v1093_v40 = vsel %vm728_vm0, %v485_v60, -inf  ;;  %v1100_v41 = vsel %vm728_vm0, %v575_v7, -inf }
  0x22   : > { %v1107_v42 = vsel %vm728_vm0, %v576_v8, -inf  ;;  %v1067_v44 = vmax.f32 %v1065_v32, %v1066_v35  ;;  %v1074_v45 = vmax.f32 %v1072_v33, %v1073_v36  ;;  %v1094_v47 = vrot.slane %v1093_v40, 4 }
  0x23   : > { %v1081_v46 = vmax.f32 %v1079_v34, %v1080_v37  ;;  %v1088_v48 = vmax.f32 %v1086_v38, %v1087_v39  ;;  %v1101_v49 = vrot.slane %v1100_v41, 4  ;;  %v1108_v50 = vrot.slane %v1107_v42, 4 }
  0x24   : > { %3532 = vmatpush.bf16.msra.mxu1 %v3384_v26  ;;  %2092 = vmatpush.bf16.msra.mxu0 %v3384_v26  ;;  %v1114_v51 = vsel %vm728_vm0, %v577_v9, -inf  ;;  %v1068_v52 = vrot.slane %v1067_v44, 2  ;;  %v1075_v53 = vrot.slane %v1074_v45, 2  ;;  %v1095_v55 = vmax.f32 %v1093_v40, %v1094_v47 }
  0x25   : > { %v1082_v54 = vrot.slane %v1081_v46, 2  ;;  %v1089_v56 = vrot.slane %v1088_v48, 2  ;;  %v1102_v57 = vmax.f32 %v1100_v41, %v1101_v49  ;;  %v1109_v58 = vmax.f32 %v1107_v42, %v1108_v50 }
  0x26   : > { %v1115_v59 = vrot.slane %v1114_v51, 4  ;;  %v1069_v60 = vmax.f32 %v1067_v44, %v1068_v52  ;;  %v1076_v3 = vmax.f32 %v1074_v45, %v1075_v53  ;;  %v1096_v5 = vrot.slane %v1095_v55, 2 }
  0x27   : > { %v1083_v4 = vmax.f32 %v1081_v46, %v1082_v54  ;;  %v1090_v6 = vmax.f32 %v1088_v48, %v1089_v56  ;;  %v1103_v7 = vrot.slane %v1102_v57, 2  ;;  %v1110_v8 = vrot.slane %v1109_v58, 2 }
  0x28   : > { %3533 = vmatpush.bf16.msra.mxu1 %v3383_v43  ;;  %2093 = vmatpush.bf16.msra.mxu0 %v3383_v43  ;;  %v1116_v11 = vmax.f32 %v1114_v51, %v1115_v59  ;;  %v1070_v26 = vrot.slane %v1069_v60, 1  ;;  %v1077_v9 = vrot.slane %v1076_v3, 1  ;;  %v1097_v33 = vmax.f32 %v1095_v55, %v1096_v5 }
  0x29   : > { %v1084_v32 = vrot.slane %v1083_v4, 1  ;;  %v1091_v34 = vrot.slane %v1090_v6, 1  ;;  %v1104_v35 = vmax.f32 %v1102_v57, %v1103_v7  ;;  %v1111_v36 = vmax.f32 %v1109_v58, %v1110_v8 }
  0x2a   : > { %v1117_v37 = vrot.slane %v1116_v11, 2  ;;  %v3752_v38 = vmax.f32 %v1069_v60, %v1070_v26  ;;  %v3754_v39 = vmax.f32 %v1076_v3, %v1077_v9  ;;  %v1098_v41 = vrot.slane %v1097_v33, 1 }
  0x2b   : > { %v3756_v40 = vmax.f32 %v1083_v4, %v1084_v32  ;;  %v3758_v42 = vmax.f32 %v1090_v6, %v1091_v34  ;;  %v1105_v43 = vrot.slane %v1104_v35, 1  ;;  %v1112_v44 = vrot.slane %v1111_v36, 1 }
  0x2c   : > { %v1118_v45 = vmax.f32 %v1116_v11, %v1117_v37  ;;  %v3760_v46 = vmax.f32 %v1097_v33, %v1098_v41  ;;  %v1121_v47 = vsel %vm728_vm0, %v3702_v61, -inf  ;;  %v1128_v48 = vsel %vm728_vm0, %v578_v10, -inf }
  0x2d   : > { %v1135_v49 = vsel %vm728_vm0, %v579_v12, -inf  ;;  %v3770_v50 = vmax.f32 %v1104_v35, %v1105_v43  ;;  %v3772_v51 = vmax.f32 %v1111_v36, %v1112_v44  ;;  %v1122_v53 = vrot.slane %v1121_v47, 4 }
  0x2e   : > { %v1119_v52 = vrot.slane %v1118_v45, 1  ;;  %v1129_v54 = vrot.slane %v1128_v48, 4  ;;  %v1136_v55 = vrot.slane %v1135_v49, 4  ;;  %v1142_v56 = vsel %vm728_vm0, %v580_v13, -inf }
  0x2f   : > { %v1149_v57 = vsel %vm728_vm0, %v3704_v62, -inf  ;;  %v1123_v58 = vmax.f32 %v1121_v47, %v1122_v53  ;;  %v1143_v59 = vrot.slane %v1142_v56, 4  ;;  %v1156_v4 = vsel %vm728_vm0, %v581_v14, -inf }
  0x30   : > { %v3779_v10 = vmax.f32 %v1118_v45, %v1119_v52  ;;  %v1150_v12 = vrot.slane %v1149_v57, 4  ;;  %v1130_v60 = vmax.f32 %v1128_v48, %v1129_v54  ;;  %v1137_v3 = vmax.f32 %v1135_v49, %v1136_v55 }
  0x31   : > { %v1163_v61 = vsel %vm728_vm0, %v582_v15, -inf  ;;  %v1124_v5 = vrot.slane %v1123_v58, 2  ;;  %v1144_v13 = vmax.f32 %v1142_v56, %v1143_v59  ;;  %v1157_v7 = vrot.slane %v1156_v4, 4 }
  0x32   : > { %v1151_v6 = vmax.f32 %v1149_v57, %v1150_v12  ;;  %v1131_v8 = vrot.slane %v1130_v60, 2  ;;  %v1138_v11 = vrot.slane %v1137_v3, 2  ;;  %v1164_v26 = vrot.slane %v1163_v61, 4 }
  0x33   : > { %v1170_v9 = vsel %vm728_vm0, %v583_v17, -inf  ;;  %v1125_v32 = vmax.f32 %v1123_v58, %v1124_v5  ;;  %v1145_v33 = vrot.slane %v1144_v13, 2  ;;  %v1158_v35 = vmax.f32 %v1156_v4, %v1157_v7 }
  0x34   : > { %v1152_v34 = vrot.slane %v1151_v6, 2  ;;  %v1132_v14 = vmax.f32 %v1130_v60, %v1131_v8  ;;  %v1139_v36 = vmax.f32 %v1137_v3, %v1138_v11  ;;  %v1165_v37 = vmax.f32 %v1163_v61, %v1164_v26 }
  0x35   : > { %v1171_v41 = vrot.slane %v1170_v9, 4  ;;  %v1126_v15 = vrot.slane %v1125_v32, 1  ;;  %v1146_v43 = vmax.f32 %v1144_v13, %v1145_v33  ;;  %v1159_v45 = vrot.slane %v1158_v35, 2 }
  0x36   : > { %v1153_v44 = vmax.f32 %v1151_v6, %v1152_v34  ;;  %v1133_v47 = vrot.slane %v1132_v14, 1  ;;  %v1140_v48 = vrot.slane %v1139_v36, 1  ;;  %v1166_v49 = vrot.slane %v1165_v37, 2 }
  0x37   : > { %v1172_v52 = vmax.f32 %v1170_v9, %v1171_v41  ;;  %v3790_v53 = vmax.f32 %v1125_v32, %v1126_v15  ;;  %v1147_v62 = vrot.slane %v1146_v43, 1  ;;  %v1160_v54 = vmax.f32 %v1158_v35, %v1159_v45 }
  0x38   : > { %v1154_v17 = vrot.slane %v1153_v44, 1  ;;  %v3792_v55 = vmax.f32 %v1132_v14, %v1133_v47  ;;  %v3794_v56 = vmax.f32 %v1139_v36, %v1140_v48  ;;  %v1167_v57 = vmax.f32 %v1165_v37, %v1166_v49 }
  0x39   : > { %v1173_v58 = vrot.slane %v1172_v52, 2  ;;  %v3796_v59 = vmax.f32 %v1146_v43, %v1147_v62  ;;  %v1161_v60 = vrot.slane %v1160_v54, 1  ;;  %v1177_v3 = vsel %vm728_vm0, %v3706_v63, -inf }
  0x3a   : > { %v3798_v12 = vmax.f32 %v1153_v44, %v1154_v17  ;;  %v1168_v4 = vrot.slane %v1167_v57, 1  ;;  %v1178_v5 = vrot.slane %v1177_v3, 4  ;;  %v1184_v13 = vsel %vm728_vm0, %v584_v18, -inf }
  0x3b   : > { %v1174_v61 = vmax.f32 %v1172_v52, %v1173_v58  ;;  %v3805_v6 = vmax.f32 %v1160_v54, %v1161_v60  ;;  %v1185_v7 = vrot.slane %v1184_v13, 4  ;;  %v1191_v8 = vsel %vm728_vm0, %v585_v19, -inf }
  0x3c   : > { %v1198_v11 = vsel %vm728_vm0, %v586_v20, -inf  ;;  %v3813_v26 = vmax.f32 %v1167_v57, %v1168_v4  ;;  %v1179_v32 = vmax.f32 %v1177_v3, %v1178_v5  ;;  %v1192_v33 = vrot.slane %v1191_v8, 4 }
  0x3d   : > { %v1175_v9 = vrot.slane %v1174_v61, 1  ;;  %v1186_v34 = vmax.f32 %v1184_v13, %v1185_v7  ;;  %v1199_v35 = vrot.slane %v1198_v11, 4  ;;  %v1205_v18 = vsel %vm728_vm0, %v3708_v0, -inf }
  0x3e   : > { %v1212_v14 = vsel %vm728_vm0, %v587_v22, -inf  ;;  %v1180_v19 = vrot.slane %v1179_v32, 2  ;;  %v1193_v63 = vmax.f32 %v1191_v8, %v1192_v33  ;;  %v1206_v37 = vrot.slane %v1205_v18, 4 }
  0x3f   : > { %v3820_v36 = vmax.f32 %v1174_v61, %v1175_v9  ;;  %v1187_v20 = vrot.slane %v1186_v34, 2  ;;  %v1200_v41 = vmax.f32 %v1198_v11, %v1199_v35  ;;  %v1213_v15 = vrot.slane %v1212_v14, 4 }
  0x40   : > { %v1219_v43 = vsel %vm728_vm0, %v588_v23, -inf  ;;  %v1181_v44 = vmax.f32 %v1179_v32, %v1180_v19  ;;  %v1194_v45 = vrot.slane %v1193_v63, 2  ;;  %v1207_v47 = vmax.f32 %v1205_v18, %v1206_v37 }
  0x41   : > { %v1220_v48 = vrot.slane %v1219_v43, 4  ;;  %v1188_v49 = vmax.f32 %v1186_v34, %v1187_v20  ;;  %v1201_v52 = vrot.slane %v1200_v41, 2  ;;  %v1214_v62 = vmax.f32 %v1212_v14, %v1213_v15 }
  0x42   : > { %v1226_v22 = vsel %vm728_vm0, %v589_v24, -inf  ;;  %v1182_v17 = vrot.slane %v1181_v44, 1  ;;  %v1195_v54 = vmax.f32 %v1193_v63, %v1194_v45  ;;  %v1208_v57 = vrot.slane %v1207_v47, 2 }
  0x43   : > { %v1221_v58 = vmax.f32 %v1219_v43, %v1220_v48  ;;  %v1189_v60 = vrot.slane %v1188_v49, 1  ;;  %v1202_v3 = vmax.f32 %v1200_v41, %v1201_v52  ;;  %v1215_v4 = vrot.slane %v1214_v62, 2 }
  0x44   : > { %v1227_v61 = vrot.slane %v1226_v22, 4  ;;  %v3828_v23 = vmax.f32 %v1181_v44, %v1182_v17  ;;  %v1196_v5 = vrot.slane %v1195_v54, 1  ;;  %v1209_v13 = vmax.f32 %v1207_v47, %v1208_v57 }
  0x45   : > { %v1222_v7 = vrot.slane %v1221_v58, 2  ;;  %v3830_v8 = vmax.f32 %v1188_v49, %v1189_v60  ;;  %v1203_v11 = vrot.slane %v1202_v3, 1  ;;  %v1216_v9 = vmax.f32 %v1214_v62, %v1215_v4 }
  0x46   : > { %v1228_v0 = vmax.f32 %v1226_v22, %v1227_v61  ;;  %v3832_v32 = vmax.f32 %v1195_v54, %v1196_v5  ;;  %v1210_v24 = vrot.slane %v1209_v13, 1  ;;  %v1233_v34 = vsel %vm728_vm0, %v3710_v1, -inf }
  0x47   : > { %v1223_v33 = vmax.f32 %v1221_v58, %v1222_v7  ;;  %v3836_v35 = vmax.f32 %v1202_v3, %v1203_v11  ;;  %v1217_v18 = vrot.slane %v1216_v9, 1  ;;  %v1234_v19 = vrot.slane %v1233_v34, 4 }
  0x48   : > { %v1229_v14 = vrot.slane %v1228_v0, 2  ;;  %v3838_v63 = vmax.f32 %v1209_v13, %v1210_v24  ;;  %v1240_v20 = vsel %vm728_vm0, %v590_v25, -inf  ;;  %v1247_v41 = vsel %vm728_vm0, %v591_v27, -inf }
  0x49   : > { %v1224_v37 = vrot.slane %v1223_v33, 1  ;;  %v3846_v15 = vmax.f32 %v1216_v9, %v1217_v18  ;;  %v1235_v44 = vmax.f32 %v1233_v34, %v1234_v19  ;;  %v1241_v45 = vrot.slane %v1240_v20, 4 }
  0x4a   : > { %v1230_v43 = vmax.f32 %v1228_v0, %v1229_v14  ;;  %v1248_v48 = vrot.slane %v1247_v41, 4  ;;  %v1254_v49 = vsel %vm728_vm0, %v592_v28, -inf  ;;  %v1261_v52 = vsel %vm728_vm0, %v3712_v2, -inf }
  0x4b   : > { %v3848_v47 = vmax.f32 %v1223_v33, %v1224_v37  ;;  %v1236_v62 = vrot.slane %v1235_v44, 2  ;;  %v1242_v22 = vmax.f32 %v1240_v20, %v1241_v45  ;;  %v1255_v17 = vrot.slane %v1254_v49, 4 }
  0x4c   : > { %v1231_v25 = vrot.slane %v1230_v43, 1  ;;  %v1249_v27 = vmax.f32 %v1247_v41, %v1248_v48  ;;  %v1262_v54 = vrot.slane %v1261_v52, 4  ;;  %v1268_v57 = vsel %vm728_vm0, %v593_v29, -inf }
  0x4d   : > { %v1275_v58 = vsel %vm728_vm0, %v594_v30, -inf  ;;  %v1237_v28 = vmax.f32 %v1235_v44, %v1236_v62  ;;  %v1243_v60 = vrot.slane %v1242_v22, 2  ;;  %v1256_v3 = vmax.f32 %v1254_v49, %v1255_v17 }
  0x4e   : > { %v3861_v1 = vmax.f32 %v1230_v43, %v1231_v25  ;;  %v1250_v4 = vrot.slane %v1249_v27, 2  ;;  %v1263_v61 = vmax.f32 %v1261_v52, %v1262_v54  ;;  %v1269_v5 = vrot.slane %v1268_v57, 4 }
  0x4f   : > { %v1276_v13 = vrot.slane %v1275_v58, 4  ;;  %v1238_v7 = vrot.slane %v1237_v28, 1  ;;  %v1244_v11 = vmax.f32 %v1242_v22, %v1243_v60  ;;  %v1257_v9 = vrot.slane %v1256_v3, 2  ;;  %v3392_v60 = vld [vmem:[%s5166_s4 + $0x88] sm:$0xff] }
  0x50   : > { %v1282_v29 = vsel %vm728_vm0, %v595_v31, -inf  ;;  %v1251_v0 = vmax.f32 %v1249_v27, %v1250_v4  ;;  %v1264_v24 = vrot.slane %v1263_v61, 2  ;;  %v1270_v33 = vmax.f32 %v1268_v57, %v1269_v5  ;;  %2274 = vmatpush.bf16.msra.mxu2 %v3392_v60 }
  0x51   : > { %v1277_v30 = vmax.f32 %v1275_v58, %v1276_v13  ;;  %v1239_v34 = vmax.f32 %v1237_v28, %v1238_v7  ;;  %v1245_v18 = vrot.slane %v1244_v11, 1  ;;  %v1258_v14 = vmax.f32 %v1256_v3, %v1257_v9  ;;  %v3382_v28 = vld [vmem:[%s5166_s4 + $0x38] sm:$0xff] }
  0x52   : > { %v1283_v19 = vrot.slane %v1282_v29, 4  ;;  %v1252_v37 = vrot.slane %v1251_v0, 1  ;;  %v1265_v20 = vmax.f32 %v1263_v61, %v1264_v24  ;;  %v1271_v41 = vrot.slane %v1270_v33, 2  ;;  %2163 = vmatpush.bf16.msrb.mxu1 %v3382_v28 }
  0x53   : > { %v1278_v43 = vrot.slane %v1277_v30, 2  ;;  %v1246_v44 = vmax.f32 %v1244_v11, %v1245_v18  ;;  %v1259_v45 = vrot.slane %v1258_v14, 1  ;;  %v3868_v22 = vsel %vm1625_vm1, %v3752_v38, -inf }
  0x54   : > { %v1284_v48 = vmax.f32 %v1282_v29, %v1283_v19  ;;  %v1253_v49 = vmax.f32 %v1251_v0, %v1252_v37  ;;  %v1266_v2 = vrot.slane %v1265_v20, 1  ;;  %v1272_v52 = vmax.f32 %v1270_v33, %v1271_v41  ;;  %v3391_v29 = vld [vmem:[%s5166_s4 + $0x80] sm:$0xff] }
  0x55   : > { %v1279_v31 = vmax.f32 %v1277_v30, %v1278_v43  ;;  %v1260_v25 = vmax.f32 %v1258_v14, %v1259_v45  ;;  %v3872_v17 = vsel %vm1625_vm1, %v3790_v53, -inf  ;;  %v3884_v3 = vsel %vm1625_vm1, %v3754_v39, -inf  ;;  %v3403_v39 = vld [vmem:[%s5166_s4 + $0xe0] sm:$0xff]  ;;  %2275 = vmatpush.bf16.msra.mxu2 %v3391_v29 }
  0x56   : > { %v1285_v62 = vrot.slane %v1284_v48, 2  ;;  %v1267_v27 = vmax.f32 %v1265_v20, %v1266_v2  ;;  %v1273_v54 = vrot.slane %v1272_v52, 1  ;;  %v1700_v58 = vmax.f32 %v3868_v22, %v3872_v17  ;;  %2384 = vmatpush.bf16.msra.mxu3 %v3403_v39 }
  0x57   : > { %v1280_v57 = vrot.slane %v1279_v31, 1  ;;  %v3888_v53 = vsel %vm1625_vm1, %v3792_v55, -inf  ;;  %v3892_v4 = vsel %vm1625_vm1, %v3756_v40, -inf  ;;  %v3898_v7 = vsel %vm1625_vm1, %v3794_v56, -inf  ;;  %v3381_v56 = vld [vmem:[%s5166_s4 + $0x30] sm:$0xff] }
  0x58   : > { %v1286_v38 = vmax.f32 %v1284_v48, %v1285_v62  ;;  %v1274_v61 = vmax.f32 %v1272_v52, %v1273_v54  ;;  %v1703_v13 = vmax.f32 %v3884_v3, %v3888_v53  ;;  %v1706_v40 = vmax.f32 %v3892_v4, %v3898_v7  ;;  %2164 = vmatpush.bf16.msrb.mxu1 %v3381_v56 }
  0x59   : > { %v1281_v5 = vmax.f32 %v1279_v31, %v1280_v57  ;;  %v3907_v11 = vsel %vm1625_vm1, %v3758_v42, -inf  ;;  %v3911_v9 = vsel %vm1625_vm1, %v3796_v59, -inf  ;;  %v3923_v24 = vsel %vm1625_vm1, %v3760_v46, -inf  ;;  %v3448_v57 = vld [vmem:[%s3641_s18] sm:$0xff]  }
  0x5a   : > { %v1287_v55 = vrot.slane %v1286_v38, 1  ;;  %v1709_v0 = vmax.f32 %v3907_v11, %v3911_v9  ;;  %v3927_v42 = vsel %vm1625_vm1, %v3798_v12, -inf  ;;  %v3931_v59 = vsel %vm1625_vm1, %v3770_v50, -inf  ;;  %v4014_v9 = vld [vmem:[%s3641_s18 + $0x50] sm:$0xff]  }
  0x5b   : > { %v1712_v30 = vmax.f32 %v3923_v24, %v3927_v42  ;;  %v3937_v18 = vsel %vm1625_vm1, %v3805_v6, -inf  ;;  %v3941_v46 = vsel %vm1625_vm1, %v3772_v51, -inf  ;;  %v3947_v50 = vsel %vm1625_vm1, %v3813_v26, -inf  ;;  %v4022_v42 = vld [vmem:[%s3641_s18 + $0x58] sm:$0xff]  }
  0x5c   : > { %v1288_v33 = vmax.f32 %v1286_v38, %v1287_v55  ;;  %v1715_v12 = vmax.f32 %v3931_v59, %v3937_v18  ;;  %v3951_v14 = vsel %vm1625_vm1, %v3779_v10, -inf  ;;  %v3955_v19 = vsel %vm1625_vm1, %v3820_v36, -inf }
  0x5d   : > { %v1718_v51 = vmax.f32 %v3941_v46, %v3947_v50  ;;  %v1721_v6 = vmax.f32 %v3951_v14, %v3955_v19  ;;  %v1722_v26 = vsel %vm1625_vm1, %v3828_v23, -inf  ;;  %v1723_v37 = vsel %vm1625_vm1, %v1239_v34, -inf  ;;  %v440_v46 = vld [vmem:[%s3656_s26] sm:$0xff]  ;;  %v442_v14 = vld [vmem:[%s3656_s26 + $0x10] sm:$0xff]  ;;  %v443_v19 = vld [vmem:[%s3656_s26 + $0x18] sm:$0xff] }
  0x5e   : > { %v1724_v20 = vmax.f32 %v1722_v26, %v1723_v37  ;;  %v1725_v10 = vsel %vm1625_vm1, %v3830_v8, -inf  ;;  %v1726_v36 = vsel %vm1625_vm1, %v1246_v44, -inf  ;;  %v1728_v41 = vsel %vm1625_vm1, %v3832_v32, -inf  ;;  %v4035_v50 = vld [vmem:[%s3641_s18 + $0x60] sm:$0xff]  }
  0x5f   : > { %v1727_v43 = vmax.f32 %v1725_v10, %v1726_v36  ;;  %v1729_v45 = vsel %vm1625_vm1, %v1253_v49, -inf  ;;  %v1731_v48 = vsel %vm1625_vm1, %v3836_v35, -inf  ;;  %v1732_v2 = vsel %vm1625_vm1, %v1260_v25, -inf }
  0x60   : > { %v1730_v23 = vmax.f32 %v1728_v41, %v1729_v45  ;;  %v1733_v34 = vmax.f32 %v1731_v48, %v1732_v2  ;;  %v1734_v52 = vsel %vm1625_vm1, %v3838_v63, -inf  ;;  %v1735_v8 = vsel %vm1625_vm1, %v1267_v27, -inf }
  0x61   : > { %v1736_v44 = vmax.f32 %v1734_v52, %v1735_v8  ;;  %v1737_v32 = vsel %vm1625_vm1, %v3846_v15, -inf  ;;  %v1738_v31 = vsel %vm1625_vm1, %v1274_v61, -inf  ;;  %v1740_v35 = vsel %vm1625_vm1, %v3848_v47, -inf  ;;  %v3511_v15 = vld [vmem:[%s3641_s18 + $0x8] sm:$0xff]  }
  0x62   : > { %v1739_v49 = vmax.f32 %v1737_v32, %v1738_v31  ;;  %v1741_v25 = vsel %vm1625_vm1, %v1281_v5, -inf  ;;  %v1743_v62 = vsel %vm1625_vm1, %v3861_v1, -inf  ;;  %v1744_v63 = vsel %vm1625_vm1, %v1288_v33, -inf }
  0x63   : > { %v1742_v54 = vmax.f32 %v1740_v35, %v1741_v25  ;;  %v1745_v27 = vmax.f32 %v1743_v62, %v1744_v63  ;;  %v3567_v28 = vmov 0.0   ;;  %v1930_v47 = vsel %vm1902_vm2, %v1703_v13, %v1700_v58 }
  0x64   : > { %1826 = vst [vmem:[#allocation2 + $0x40] sm:$0xff] %v3567_v28  ;;  %v1937_v1 = vsel %vm1902_vm2, %v1727_v43, %v1724_v20  ;;  %v1931_v60 = vsel %vm1904_vm3, %v1706_v40, %v1930_v47  ;;  %v3449_v4 = vunpack.c.l.bf16 %v3448_v57  ;;  %v3450_v61 = vunpack.c.h.bf16 %v3448_v57  ;;  %v4043_v20 = vld [vmem:[%s3641_s18 + $0x68] sm:$0xff]  }
  0x65   : > { %1827 = vst [vmem:[#allocation2 + $0x48] sm:$0x3] %v3567_v28  ;;  %v1938_v38 = vsel %vm1904_vm3, %v1730_v23, %v1937_v1  ;;  %v1932_v22 = vsel %vm1906_vm4, %v1709_v0, %v1931_v60  ;;  %v3453_v3 = vunpack.c.l.bf16 %v3511_v15  ;;  %v3454_v53 = vunpack.c.h.bf16 %v3511_v15 }
  0x66   : > { %1828 = vst [vmem:[#allocation2 + $0x50] sm:$0xff] %v3567_v28  ;;  %v1939_v17 = vsel %vm1906_vm4, %v1733_v34, %v1938_v38  ;;  %v1933_v58 = vsel %vm1908_vm5, %v1712_v30, %v1932_v22  ;;  %v340_v13 = vmul.f32 %v3651_v16, %v3449_v4  ;;  %v341_v7 = vmul.f32 %v3651_v16, %v3450_v61 }
  0x67   : > { %1829 = vst [vmem:[#allocation2 + $0x58] sm:$0x3] %v3567_v28  ;;  %v1940_v5 = vsel %vm1908_vm5, %v1736_v44, %v1939_v17  ;;  %v1934_v39 = vsel %vm1910_vm6, %v1715_v12, %v1933_v58  ;;  %v342_v40 = vmul.f32 %v3651_v16, %v3453_v3  ;;  %v343_v11 = vmul.f32 %v3651_v16, %v3454_v53  ;;  %v441_v12 = vld [vmem:[%s3656_s26 + $0x8] sm:$0xff] }
  0x68   : > { %1818 = vst [vmem:[#allocation2] sm:$0xff] %v3567_v28  ;;  %v1941_v55 = vsel %vm1910_vm6, %v1739_v49, %v1940_v5  ;;  %v1935_v56 = vsel %vm1912_vm7, %v1718_v51, %v1934_v39  ;;  %v376_v0 = vadd.f32 %v3661_v21, %v340_v13  ;;  %v377_v24 = vadd.f32 %v3661_v21, %v341_v7 }
  0x69   : > { %1819 = vst [vmem:[#allocation2 + $0x8] sm:$0x3] %v3567_v28  ;;  %v1942_v29 = vsel %vm1912_vm7, %v1742_v54, %v1941_v55  ;;  %v1936_v59 = vsel %vm1914_vm8, %v1721_v6, %v1935_v56  ;;  %v378_v30 = vadd.f32 %v3661_v21, %v342_v40  ;;  %v379_v18 = vadd.f32 %v3661_v21, %v343_v11 }
  0x6a   : > { %1820 = vst [vmem:[#allocation2 + $0x10] sm:$0xff] %v3567_v28  ;;  %v1943_v33 = vsel %vm1914_vm8, %v1745_v27, %v1942_v29  ;;  %v408_v51 = vmax.f32 %v376_v0, 0.0  ;;  %v409_v26 = vmax.f32 %v377_v24, 0.0  ;;  %v3489_v6 = vunpack.c.l.bf16 %v4014_v9 }
  0x6b   : > { %1821 = vst [vmem:[#allocation2 + $0x18] sm:$0x3] %v3567_v28  ;;  %v3490_v37 = vunpack.c.h.bf16 %v4014_v9  ;;  %v410_v10 = vmax.f32 %v378_v30, 0.0  ;;  %v411_v21 = vmax.f32 %v379_v18, 0.0  ;;  %v3493_v36 = vunpack.c.l.bf16 %v4022_v42 }
  0x6c   : > { %1977 = vst.msk [vmem:[#allocation2 + $0x41] sm:$0xff] %vm1625_vm1, %v1936_v59  ;;  %v3494_v41 = vunpack.c.h.bf16 %v4022_v42  ;;  %v472_v43 = vadd.f32 %v440_v46, %v408_v51  ;;  %v473_v45 = vadd.f32 %v441_v12, %v409_v26  ;;  %v3497_v48 = vunpack.c.l.bf16 %v4035_v50 }
  0x6d   : > { %1978 = vst.msk [vmem:[#allocation2 + $0x51] sm:$0xff] %vm1625_vm1, %v1943_v33  ;;  %v3498_v2 = vunpack.c.h.bf16 %v4035_v50  ;;  %v4052_v23 = vadd.f32 %v442_v14, %v410_v10  ;;  %v4054_v34 = vadd.f32 %v443_v19, %v411_v21  ;;  %v3501_v52 = vunpack.c.l.bf16 %v4043_v20 }
  0x6e   : > { %1822 = vst [vmem:[#allocation2 + $0x20] sm:$0xff] %v3567_v28  ;;  %v3502_v8 = vunpack.c.h.bf16 %v4043_v20  ;;  %v536_v44 = vrot.slane %v472_v43, 2  ;;  %v537_v32 = vrot.slane %v472_v43, 4  ;;  %v538_v31 = vrot.slane %v472_v43, 6 }
  0x6f   : > { %1823 = vst [vmem:[#allocation2 + $0x28] sm:$0x3] %v3567_v28  ;;  %v539_v35 = vrot.slane %v473_v45, 2  ;;  %v540_v49 = vrot.slane %v473_v45, 4  ;;  %v541_v25 = vrot.slane %v473_v45, 6  ;;  %v542_v62 = vrot.slane %v4052_v23, 2 }
  0x70   : > { %1824 = vst [vmem:[#allocation2 + $0x30] sm:$0xff] %v3567_v28  ;;  %v543_v63 = vrot.slane %v4052_v23, 4  ;;  %v544_v54 = vrot.slane %v4052_v23, 6  ;;  %v545_v27 = vrot.slane %v4054_v34, 2  ;;  %v546_v57 = vrot.slane %v4054_v34, 4 }
  0x71   : > { %1825 = vst [vmem:[#allocation2 + $0x38] sm:$0x3] %v3567_v28  ;;  %v547_v15 = vrot.slane %v4054_v34, 6  ;;  %v729_v1 = vsel %vm728_vm0, %v472_v43, -inf  ;;  %v736_v60 = vsel %vm728_vm0, %v536_v44, -inf  ;;  %v743_v38 = vsel %vm728_vm0, %v537_v32, -inf }
  0x72   : > { %1830 = vst [vmem:[#allocation2 + $0x60] sm:$0xff] %v3567_v28  ;;  %v4072_v4 = vmul.f32 %v3651_v16, %v3489_v6  ;;  %v730_v22 = vrot.slane %v729_v1, 4  ;;  %v737_v17 = vrot.slane %v736_v60, 4  ;;  %v744_v3 = vrot.slane %v743_v38, 4 }
  0x73   : > { %v2014_v47 = vld [vmem:[#allocation2 + $0x41] sm:$0xff]  ;;  %1831 = vst [vmem:[#allocation2 + $0x68] sm:$0x3] %v3567_v28  ;;  %v750_v53 = vsel %vm728_vm0, %v538_v31, -inf  ;;  %v757_v13 = vsel %vm728_vm0, %v473_v45, -inf  ;;  %v764_v7 = vsel %vm728_vm0, %v539_v35, -inf }
  0x74   : > { %v2015_v61 = vld [vmem:[#allocation2 + $0x51] sm:$0xff]  ;;  %1832 = vst [vmem:[#allocation2 + $0x70] sm:$0xff] %v3567_v28  ;;  %v751_v5 = vrot.slane %v750_v53, 4  ;;  %v731_v16 = vmax.f32 %v729_v1, %v730_v22  ;;  %v738_v39 = vmax.f32 %v736_v60, %v737_v17  ;;  %v745_v55 = vmax.f32 %v743_v38, %v744_v3 }
  0x75   : > { %v2020_v58 = vpack.c.bf16 %v2015_v61, %v2014_v47  ;;  %1833 = vst [vmem:[#allocation2 + $0x78] sm:$0x3] %v3567_v28  ;;  %v758_v40 = vrot.slane %v757_v13, 4  ;;  %v765_v56 = vrot.slane %v764_v7, 4  ;;  %v771_v29 = vsel %vm728_vm0, %v540_v49, -inf }
  0x76   : > { %1834 = vst [vmem:[#allocation2 + $0x80] sm:$0xff] %v3567_v28  ;;  %v752_v11 = vmax.f32 %v750_v53, %v751_v5  ;;  %v778_v0 = vsel %vm728_vm0, %v541_v25, -inf  ;;  %v732_v24 = vrot.slane %v731_v16, 2  ;;  %v739_v59 = vrot.slane %v738_v39, 2 }
  0x77   : > { %2104 = vmatmul.bf16.vlgmr.msra.gmra.mxu1 %v2020_v58  ;;  %1835 = vst [vmem:[#allocation2 + $0x88] sm:$0x3] %v3567_v28  ;;  %v746_v33 = vrot.slane %v745_v55, 2  ;;  %v759_v30 = vmax.f32 %v757_v13, %v758_v40  ;;  %v766_v46 = vmax.f32 %v764_v7, %v765_v56  ;;  %v772_v12 = vrot.slane %v771_v29, 4 }
  0x78   : > { %1836 = vst [vmem:[#allocation2 + $0x90] sm:$0xff] %v3567_v28  ;;  %v753_v18 = vrot.slane %v752_v11, 2  ;;  %v779_v51 = vrot.slane %v778_v0, 4  ;;  %v733_v26 = vmax.f32 %v731_v16, %v732_v24  ;;  %v740_v14 = vmax.f32 %v738_v39, %v739_v59 }
  0x79   : > { %1837 = vst [vmem:[#allocation2 + $0x98] sm:$0x3] %v3567_v28  ;;  %v747_v19 = vmax.f32 %v745_v55, %v746_v33  ;;  %v760_v6 = vrot.slane %v759_v30, 2  ;;  %v767_v21 = vrot.slane %v766_v46, 2  ;;  %v773_v43 = vmax.f32 %v771_v29, %v772_v12 }
  0x7a   : > { %v754_v10 = vmax.f32 %v752_v11, %v753_v18  ;;  %v780_v45 = vmax.f32 %v778_v0, %v779_v51  ;;  %v734_v44 = vrot.slane %v733_v26, 1  ;;  %v741_v32 = vrot.slane %v740_v14, 1 }
  0x7b   : > { %v748_v31 = vrot.slane %v747_v19, 1  ;;  %v761_v35 = vmax.f32 %v759_v30, %v760_v6  ;;  %v768_v25 = vmax.f32 %v766_v46, %v767_v21  ;;  %v774_v47 = vrot.slane %v773_v43, 2 }
  0x7c   : > { %v755_v49 = vrot.slane %v754_v10, 1  ;;  %v781_v28 = vrot.slane %v780_v45, 2  ;;  %v4085_v1 = vmax.f32 %v733_v26, %v734_v44  ;;  %v4087_v60 = vmax.f32 %v740_v14, %v741_v32 }
  0x7d   : > { %v4089_v38 = vmax.f32 %v747_v19, %v748_v31  ;;  %v762_v61 = vrot.slane %v761_v35, 1  ;;  %v769_v17 = vrot.slane %v768_v25, 1  ;;  %v775_v3 = vmax.f32 %v773_v43, %v774_v47  ;;  %v3380_v19 = vld [vmem:[%s5166_s4 + $0x28] sm:$0xff]  ;;  %v3401_v43 = vld [vmem:[%s5166_s4 + $0xd0] sm:$0xff] }
  0x7e   : > { %v4091_v22 = vmax.f32 %v754_v10, %v755_v49  ;;  %v782_v53 = vmax.f32 %v780_v45, %v781_v28  ;;  %v785_v5 = vsel %vm728_vm0, %v4052_v23, -inf  ;;  %v792_v13 = vsel %vm728_vm0, %v542_v62, -inf  ;;  %v3402_v23 = vld [vmem:[%s5166_s4 + $0xd8] sm:$0xff]  ;;  %v3413_v45 = vld [vmem:[%s5166_s4 + $0x130] sm:$0xff]  ;;  %2165 = vmatpush.bf16.msrb.mxu1 %v3380_v19 }
  0x7f   : > { %v4093_v58 = vmax.f32 %v761_v35, %v762_v61  ;;  %v799_v7 = vsel %vm728_vm0, %v543_v63, -inf  ;;  %v4103_v16 = vmax.f32 %v768_v25, %v769_v17  ;;  %v776_v39 = vrot.slane %v775_v3, 1  ;;  %2385 = vmatpush.bf16.msra.mxu3 %v3402_v23  ;;  %v3379_v35 = vld [vmem:[%s5166_s4 + $0x20] sm:$0xff] }
  0x80   : > { %v783_v55 = vrot.slane %v782_v53, 1  ;;  %v786_v40 = vrot.slane %v785_v5, 4  ;;  %v793_v11 = vrot.slane %v792_v13, 4  ;;  %v800_v56 = vrot.slane %v799_v7, 4 }
  0x81   : > { %v806_v29 = vsel %vm728_vm0, %v544_v54, -inf  ;;  %v813_v0 = vsel %vm728_vm0, %v4054_v34, -inf  ;;  %v4110_v24 = vmax.f32 %v775_v3, %v776_v39  ;;  %v820_v46 = vsel %vm728_vm0, %v545_v27, -inf  ;;  %v3414_v54 = vld [vmem:[%s5166_s4 + $0x138] sm:$0xff]  ;;  %v3400_v34 = vld [vmem:[%s5166_s4 + $0xc8] sm:$0xff] }
  0x82   : > { %v4112_v62 = vmax.f32 %v782_v53, %v783_v55  ;;  %v787_v59 = vmax.f32 %v785_v5, %v786_v40  ;;  %v807_v63 = vrot.slane %v806_v29, 4  ;;  %v794_v33 = vmax.f32 %v792_v13, %v793_v11  ;;  %2494 = vmatpush.bf16.msrb.mxu0 %v3414_v54  ;;  %2166 = vmatpush.bf16.msrb.mxu1 %v3379_v35 }
  0x83   : > { %v801_v30 = vmax.f32 %v799_v7, %v800_v56  ;;  %v814_v18 = vrot.slane %v813_v0, 4  ;;  %v821_v26 = vrot.slane %v820_v46, 4  ;;  %v827_v14 = vsel %vm728_vm0, %v546_v57, -inf  ;;  %2386 = vmatpush.bf16.msra.mxu3 %v3401_v43 }
  0x84   : > { %v788_v12 = vrot.slane %v787_v59, 2  ;;  %v808_v51 = vmax.f32 %v806_v29, %v807_v63  ;;  %v795_v27 = vrot.slane %v794_v33, 2  ;;  %v828_v21 = vrot.slane %v827_v14, 4 }
  0x85   : > { %v802_v6 = vrot.slane %v801_v30, 2  ;;  %v815_v10 = vmax.f32 %v813_v0, %v814_v18  ;;  %v822_v32 = vmax.f32 %v820_v46, %v821_v26  ;;  %v834_v31 = vsel %vm728_vm0, %v547_v15, -inf  ;;  %v3412_v15 = vld [vmem:[%s5166_s4 + $0x128] sm:$0xff] }
  0x86   : > { %v789_v44 = vmax.f32 %v787_v59, %v788_v12  ;;  %v809_v57 = vrot.slane %v808_v51, 2  ;;  %v796_v49 = vmax.f32 %v794_v33, %v795_v27  ;;  %v829_v28 = vmax.f32 %v827_v14, %v828_v21  ;;  %2495 = vmatpush.bf16.msrb.mxu0 %v3413_v45 }
  0x87   : > { %v803_v25 = vmax.f32 %v801_v30, %v802_v6  ;;  %v816_v47 = vrot.slane %v815_v10, 2  ;;  %v823_v3 = vrot.slane %v822_v32, 2  ;;  %v835_v53 = vrot.slane %v834_v31, 4  ;;  %2387 = vmatpush.bf16.msra.mxu3 %v3400_v34  ;;  %v4205_v34 = vld [vmem:[%s5164_s2] ss:$0 sm:$0xff] }
  0x88   : > { %v790_v61 = vrot.slane %v789_v44, 1  ;;  %v810_v17 = vmax.f32 %v808_v51, %v809_v57  ;;  %v797_v5 = vrot.slane %v796_v49, 1  ;;  %v830_v39 = vrot.slane %v829_v28, 2 }
  0x89   : > { %v804_v13 = vrot.slane %v803_v25, 1  ;;  %v817_v7 = vmax.f32 %v815_v10, %v816_v47  ;;  %v824_v11 = vmax.f32 %v822_v32, %v823_v3  ;;  %v836_v56 = vmax.f32 %v834_v31, %v835_v53  ;;  %v4176_v53 = vld [vmem:[%s5163_s1] ss:$0 sm:$0xff] }
  0x8a   : > { %v791_v55 = vmax.f32 %v789_v44, %v790_v61  ;;  %v811_v40 = vrot.slane %v810_v17, 1  ;;  %v798_v29 = vmax.f32 %v796_v49, %v797_v5  ;;  %v831_v63 = vmax.f32 %v829_v28, %v830_v39  ;;  %2496 = vmatpush.bf16.msrb.mxu0 %v3412_v15 }
  0x8b   : > { %v805_v0 = vmax.f32 %v803_v25, %v804_v13  ;;  %v818_v59 = vrot.slane %v817_v7, 1  ;;  %v825_v30 = vrot.slane %v824_v11, 1  ;;  %v837_v18 = vrot.slane %v836_v56, 2 }
  0x8c   : > { %v812_v33 = vmax.f32 %v810_v17, %v811_v40  ;;  %v1626_v46 = vsel %vm1625_vm1, %v4085_v1, -inf  ;;  %v832_v54 = vrot.slane %v831_v63, 1  ;;  %v1627_v12 = vsel %vm1625_vm1, %v791_v55, -inf  ;;  %v462_v55 = vld [vmem:[%s3656_s26 + $0xb0] sm:$0xff]  ;;  %v464_v40 = vld [vmem:[%s3656_s26 + $0xc0] sm:$0xff] }
  0x8d   : > { %v819_v23 = vmax.f32 %v817_v7, %v818_v59  ;;  %v1629_v51 = vsel %vm1625_vm1, %v4087_v60, -inf  ;;  %v826_v26 = vmax.f32 %v824_v11, %v825_v30  ;;  %v838_v14 = vmax.f32 %v836_v56, %v837_v18  ;;  %v466_v11 = vld [vmem:[%s3656_s26 + $0xd0] sm:$0xff]  ;;  %v461_v59 = vld [vmem:[%s3656_s26 + $0xa8] sm:$0xff] }
  0x8e   : > { %v1628_v19 = vmax.f32 %v1626_v46, %v1627_v12  ;;  %v1630_v27 = vsel %vm1625_vm1, %v798_v29, -inf  ;;  %v833_v6 = vmax.f32 %v831_v63, %v832_v54  ;;  %v1632_v21 = vsel %vm1625_vm1, %v4089_v38, -inf  ;;  %v463_v63 = vld [vmem:[%s3656_s26 + $0xb8] sm:$0xff] }
  0x8f   : > { %v1631_v10 = vmax.f32 %v1629_v51, %v1630_v27  ;;  %v1633_v1 = vsel %vm1625_vm1, %v805_v0, -inf  ;;  %v839_v43 = vrot.slane %v838_v14, 1  ;;  %v1635_v44 = vsel %vm1625_vm1, %v4091_v22, -inf  ;;  %v467_v54 = vld [vmem:[%s3656_s26 + $0xd8] sm:$0xff] }
  0x90   : > { %v1634_v45 = vmax.f32 %v1632_v21, %v1633_v1  ;;  %v1636_v60 = vsel %vm1625_vm1, %v812_v33, -inf  ;;  %v1638_v32 = vsel %vm1625_vm1, %v4093_v58, -inf  ;;  %v1639_v31 = vsel %vm1625_vm1, %v819_v23, -inf  ;;  %v465_v33 = vld [vmem:[%s3656_s26 + $0xc8] sm:$0xff] }
  0x91   : > { %v1637_v57 = vmax.f32 %v1635_v44, %v1636_v60  ;;  %v1641_v35 = vsel %vm1625_vm1, %v4103_v16, -inf  ;;  %v840_v49 = vmax.f32 %v838_v14, %v839_v43  ;;  %v1640_v38 = vmax.f32 %v1638_v32, %v1639_v31  ;;  %v2010_v31 = vld [vmem:[#allocation2 + $0x1] sm:$0xff] }
  0x92   : > { %v1642_v25 = vsel %vm1625_vm1, %v826_v26, -inf  ;;  %v1644_v47 = vsel %vm1625_vm1, %v4110_v24, -inf  ;;  %v1645_v22 = vsel %vm1625_vm1, %v833_v6, -inf  ;;  %v1647_v61 = vsel %vm1625_vm1, %v4112_v62, -inf }
  0x93   : > { %v1643_v28 = vmax.f32 %v1641_v35, %v1642_v25  ;;  %v1903_v58 = vsel %vm1902_vm2, %v1631_v10, %v1628_v19  ;;  %v1646_v17 = vmax.f32 %v1644_v47, %v1645_v22  ;;  %v1648_v3 = vsel %vm1625_vm1, %v840_v49, -inf  ;;  %v2192_v35 = vld [vmem:[#allocation2 + $0x2] sm:$0xff] }
  0x94   : > { %v1905_v16 = vsel %vm1904_vm3, %v1634_v45, %v1903_v58  ;;  %v361_v24 = vmul.f32 %v4176_v53, %v3490_v37  ;;  %v1649_v5 = vmax.f32 %v1647_v61, %v1648_v3  ;;  %v362_v13 = vmul.f32 %v4176_v53, %v3493_v36 }
  0x95   : > { %v1907_v62 = vsel %vm1906_vm4, %v1637_v57, %v1905_v16  ;;  %v363_v7 = vmul.f32 %v4176_v53, %v3494_v41  ;;  %v364_v9 = vmul.f32 %v4176_v53, %v3497_v48  ;;  %v365_v37 = vmul.f32 %v4176_v53, %v3498_v2  ;;  %v460_v2 = vld [vmem:[%s3656_s26 + $0xa0] sm:$0xff] }
  0x96   : > { %v1909_v39 = vsel %vm1908_vm5, %v1640_v38, %v1907_v62  ;;  %v366_v36 = vmul.f32 %v4176_v53, %v3501_v52  ;;  %v367_v41 = vmul.f32 %v4176_v53, %v3502_v8  ;;  %v396_v50 = vadd.f32 %v4205_v34, %v4072_v4 }
  0x97   : > { %v1911_v42 = vsel %vm1910_vm6, %v1643_v28, %v1909_v39  ;;  %v397_v48 = vadd.f32 %v4205_v34, %v361_v24  ;;  %v398_v20 = vadd.f32 %v4205_v34, %v362_v13  ;;  %v399_v8 = vadd.f32 %v4205_v34, %v363_v7 }
  0x98   : > { %v1913_v52 = vsel %vm1912_vm7, %v1646_v17, %v1911_v42  ;;  %v400_v15 = vadd.f32 %v4205_v34, %v364_v9  ;;  %v401_v4 = vadd.f32 %v4205_v34, %v365_v37  ;;  %v402_v29 = vadd.f32 %v4205_v34, %v366_v36 }
  0x99   : > { %v1915_v56 = vsel %vm1914_vm8, %v1649_v5, %v1913_v52  ;;  %v403_v0 = vadd.f32 %v4205_v34, %v367_v41  ;;  %v428_v30 = vmax.f32 %v396_v50, 0.0  ;;  %v429_v18 = vmax.f32 %v397_v48, 0.0 }
  0x9a   : > { %1974 = vst.msk [vmem:[#allocation2 + $0x11] sm:$0xff] %vm1625_vm1, %v1915_v56  ;;  %v430_v46 = vmax.f32 %v398_v20, 0.0  ;;  %v431_v23 = vmax.f32 %v399_v8, 0.0  ;;  %v432_v12 = vmax.f32 %v400_v15, 0.0  ;;  %v433_v51 = vmax.f32 %v401_v4, 0.0 }
  0x9b   : > { %v434_v26 = vmax.f32 %v402_v29, 0.0  ;;  %v435_v14 = vmax.f32 %v403_v0, 0.0  ;;  %v492_v19 = vadd.f32 %v460_v2, %v428_v30  ;;  %v493_v27 = vadd.f32 %v461_v59, %v429_v18 }
  0x9c   : > { %v4227_v6 = vadd.f32 %v462_v55, %v430_v46  ;;  %v4229_v10 = vadd.f32 %v463_v63, %v431_v23  ;;  %v4231_v21 = vadd.f32 %v464_v40, %v432_v12  ;;  %v4233_v1 = vadd.f32 %v465_v33, %v433_v51 }
  0x9d   : > { %v4235_v43 = vadd.f32 %v466_v11, %v434_v26  ;;  %v4237_v45 = vadd.f32 %v467_v54, %v435_v14  ;;  %v596_v44 = vrot.slane %v492_v19, 2  ;;  %v597_v60 = vrot.slane %v492_v19, 4 }
  0x9e   : > { %v598_v57 = vrot.slane %v492_v19, 6  ;;  %v599_v32 = vrot.slane %v493_v27, 2  ;;  %v600_v49 = vrot.slane %v493_v27, 4  ;;  %v601_v38 = vrot.slane %v493_v27, 6 }
  0x9f   : > { %v602_v25 = vrot.slane %v4227_v6, 2  ;;  %v603_v47 = vrot.slane %v4227_v6, 4  ;;  %v604_v28 = vrot.slane %v4227_v6, 6  ;;  %v605_v22 = vrot.slane %v4229_v10, 2 }
  0xa0   : > { %v606_v61 = vrot.slane %v4229_v10, 4  ;;  %v607_v58 = vrot.slane %v4229_v10, 6  ;;  %v608_v16 = vrot.slane %v4231_v21, 2  ;;  %v609_v24 = vrot.slane %v4231_v21, 4 }
  0xa1   : > { %v2011_v17 = vld [vmem:[#allocation2 + $0x11] sm:$0xff]  ;;  %v610_v5 = vrot.slane %v4231_v21, 6  ;;  %v611_v62 = vrot.slane %v4233_v1, 2  ;;  %v612_v39 = vrot.slane %v4233_v1, 4  ;;  %v613_v9 = vrot.slane %v4233_v1, 6 }
  0xa2   : > { %v2193_v3 = vld [vmem:[#allocation2 + $0x12] sm:$0xff]  ;;  %v2018_v13 = vpack.c.bf16 %v2011_v17, %v2010_v31  ;;  %v614_v37 = vrot.slane %v4235_v43, 2  ;;  %v615_v36 = vrot.slane %v4235_v43, 4  ;;  %v616_v42 = vrot.slane %v4235_v43, 6 }
  0xa3   : > { %v2200_v7 = vpack.c.bf16 %v2193_v3, %v2192_v35  ;;  %v617_v41 = vrot.slane %v4237_v45, 2  ;;  %v618_v50 = vrot.slane %v4237_v45, 4  ;;  %v619_v48 = vrot.slane %v4237_v45, 6 }
  0xa4   : > { %2094 = vmatmul.bf16.vlgmr.msra.gmra.mxu0 %v2018_v13  ;;  %v1289_v2 = vsel %vm728_vm0, %v492_v19, -inf  ;;  %v1296_v52 = vsel %vm728_vm0, %v596_v44, -inf  ;;  %v1303_v15 = vsel %vm728_vm0, %v597_v60, -inf  ;;  %v1310_v55 = vsel %vm728_vm0, %v598_v57, -inf }
  0xa5   : > { %2276 = vmatmul.bf16.vlgmr.msra.gmra.mxu2 %v2200_v7  ;;  %v1290_v20 = vrot.slane %v1289_v2, 4  ;;  %v1297_v8 = vrot.slane %v1296_v52, 4  ;;  %v1304_v40 = vrot.slane %v1303_v15, 4  ;;  %v1311_v11 = vrot.slane %v1310_v55, 4 }
  0xa6   : > { %v1317_v56 = vsel %vm728_vm0, %v493_v27, -inf  ;;  %v1324_v4 = vsel %vm728_vm0, %v599_v32, -inf  ;;  %v1331_v18 = vsel %vm728_vm0, %v600_v49, -inf  ;;  %v1338_v46 = vsel %vm728_vm0, %v601_v38, -inf }
  0xa7   : > { %v1291_v29 = vmax.f32 %v1289_v2, %v1290_v20  ;;  %v1298_v0 = vmax.f32 %v1296_v52, %v1297_v8  ;;  %v1318_v59 = vrot.slane %v1317_v56, 4  ;;  %v1325_v63 = vrot.slane %v1324_v4, 4 }
  0xa8   : > { %v1305_v33 = vmax.f32 %v1303_v15, %v1304_v40  ;;  %v1312_v30 = vmax.f32 %v1310_v55, %v1311_v11  ;;  %v1332_v19 = vrot.slane %v1331_v18, 4  ;;  %v1339_v27 = vrot.slane %v1338_v46, 4 }
  0xa9   : > { %v1292_v23 = vrot.slane %v1291_v29, 2  ;;  %v1299_v54 = vrot.slane %v1298_v0, 2  ;;  %v1319_v12 = vmax.f32 %v1317_v56, %v1318_v59  ;;  %v1326_v51 = vmax.f32 %v1324_v4, %v1325_v63 }
  0xaa   : > { %v1306_v26 = vrot.slane %v1305_v33, 2  ;;  %v1313_v14 = vrot.slane %v1312_v30, 2  ;;  %v1333_v17 = vmax.f32 %v1331_v18, %v1332_v19  ;;  %v1340_v3 = vmax.f32 %v1338_v46, %v1339_v27 }
  0xab   : > { %v1293_v44 = vmax.f32 %v1291_v29, %v1292_v23  ;;  %v1300_v60 = vmax.f32 %v1298_v0, %v1299_v54  ;;  %v1320_v57 = vrot.slane %v1319_v12, 2  ;;  %v1327_v32 = vrot.slane %v1326_v51, 2 }
  0xac   : > { %v1307_v31 = vmax.f32 %v1305_v33, %v1306_v26  ;;  %v1314_v35 = vmax.f32 %v1312_v30, %v1313_v14  ;;  %v1334_v20 = vrot.slane %v1333_v17, 2  ;;  %v1341_v8 = vrot.slane %v1340_v3, 2 }
  0xad   : > { %v1294_v13 = vrot.slane %v1293_v44, 1  ;;  %v1301_v49 = vrot.slane %v1300_v60, 1  ;;  %v1321_v7 = vmax.f32 %v1319_v12, %v1320_v57  ;;  %v1328_v38 = vmax.f32 %v1326_v51, %v1327_v32 }
  0xae   : > { %v1308_v2 = vrot.slane %v1307_v31, 1  ;;  %v1315_v52 = vrot.slane %v1314_v35, 1  ;;  %v1335_v29 = vmax.f32 %v1333_v17, %v1334_v20  ;;  %v1342_v0 = vmax.f32 %v1340_v3, %v1341_v8 }
  0xaf   : > { %v4265_v15 = vmax.f32 %v1293_v44, %v1294_v13  ;;  %v4267_v55 = vmax.f32 %v1300_v60, %v1301_v49  ;;  %v1322_v40 = vrot.slane %v1321_v7, 1  ;;  %v1329_v11 = vrot.slane %v1328_v38, 1 }
  0xb0   : > { %v4269_v56 = vmax.f32 %v1307_v31, %v1308_v2  ;;  %v4271_v4 = vmax.f32 %v1314_v35, %v1315_v52  ;;  %v1345_v33 = vsel %vm728_vm0, %v4227_v6, -inf  ;;  %v1352_v30 = vsel %vm728_vm0, %v602_v25, -inf }
  0xb1   : > { %v4273_v59 = vmax.f32 %v1321_v7, %v1322_v40  ;;  %v4275_v63 = vmax.f32 %v1328_v38, %v1329_v11  ;;  %v1336_v18 = vrot.slane %v1335_v29, 1  ;;  %v1343_v46 = vrot.slane %v1342_v0, 1 }
  0xb2   : > { %v1346_v23 = vrot.slane %v1345_v33, 4  ;;  %v1353_v54 = vrot.slane %v1352_v30, 4  ;;  %v1359_v12 = vsel %vm728_vm0, %v603_v47, -inf  ;;  %v1366_v51 = vsel %vm728_vm0, %v604_v28, -inf }
  0xb3   : > { %v1373_v26 = vsel %vm728_vm0, %v4229_v10, -inf  ;;  %v1380_v14 = vsel %vm728_vm0, %v605_v22, -inf  ;;  %v4293_v25 = vmax.f32 %v1335_v29, %v1336_v18  ;;  %v4295_v19 = vmax.f32 %v1342_v0, %v1343_v46 }
  0xb4   : > { %v1347_v27 = vmax.f32 %v1345_v33, %v1346_v23  ;;  %v1354_v44 = vmax.f32 %v1352_v30, %v1353_v54  ;;  %v1360_v60 = vrot.slane %v1359_v12, 4  ;;  %v1367_v57 = vrot.slane %v1366_v51, 4 }
  0xb5   : > { %v1374_v47 = vrot.slane %v1373_v26, 4  ;;  %v1381_v32 = vrot.slane %v1380_v14, 4  ;;  %v1387_v28 = vsel %vm728_vm0, %v606_v61, -inf  ;;  %v1394_v22 = vsel %vm728_vm0, %v607_v58, -inf }
  0xb6   : > { %v1348_v6 = vrot.slane %v1347_v27, 2  ;;  %v1355_v31 = vrot.slane %v1354_v44, 2  ;;  %v1361_v35 = vmax.f32 %v1359_v12, %v1360_v60  ;;  %v1368_v17 = vmax.f32 %v1366_v51, %v1367_v57 }
  0xb7   : > { %v1375_v3 = vmax.f32 %v1373_v26, %v1374_v47  ;;  %v1382_v13 = vmax.f32 %v1380_v14, %v1381_v32  ;;  %v1388_v38 = vrot.slane %v1387_v28, 4  ;;  %v1395_v2 = vrot.slane %v1394_v22, 4 }
  0xb8   : > { %v1349_v49 = vmax.f32 %v1347_v27, %v1348_v6  ;;  %v1356_v7 = vmax.f32 %v1354_v44, %v1355_v31  ;;  %v1362_v52 = vrot.slane %v1361_v35, 2  ;;  %v1369_v20 = vrot.slane %v1368_v17, 2 }
  0xb9   : > { %v1376_v8 = vrot.slane %v1375_v3, 2  ;;  %v1383_v40 = vrot.slane %v1382_v13, 2  ;;  %v1389_v0 = vmax.f32 %v1387_v28, %v1388_v38  ;;  %v1396_v61 = vmax.f32 %v1394_v22, %v1395_v2 }
  0xba   : > { %v1350_v11 = vrot.slane %v1349_v49, 1  ;;  %v1357_v29 = vrot.slane %v1356_v7, 1  ;;  %v1363_v33 = vmax.f32 %v1361_v35, %v1362_v52  ;;  %v1370_v10 = vmax.f32 %v1368_v17, %v1369_v20 }
  0xbb   : > { %v1377_v30 = vmax.f32 %v1375_v3, %v1376_v8  ;;  %v1384_v58 = vmax.f32 %v1382_v13, %v1383_v40  ;;  %v1390_v23 = vrot.slane %v1389_v0, 2  ;;  %v1397_v54 = vrot.slane %v1396_v61, 2 }
  0xbc   : > { %v4303_v18 = vmax.f32 %v1349_v49, %v1350_v11  ;;  %v4305_v46 = vmax.f32 %v1356_v7, %v1357_v29  ;;  %v1364_v12 = vrot.slane %v1363_v33, 1  ;;  %v1371_v51 = vrot.slane %v1370_v10, 1 }
  0xbd   : > { %v1378_v26 = vrot.slane %v1377_v30, 1  ;;  %v1385_v14 = vrot.slane %v1384_v58, 1  ;;  %v1391_v27 = vmax.f32 %v1389_v0, %v1390_v23  ;;  %v1398_v44 = vmax.f32 %v1396_v61, %v1397_v54 }
  0xbe   : > { %v1401_v60 = vsel %vm728_vm0, %v4231_v21, -inf  ;;  %v1408_v57 = vsel %vm728_vm0, %v608_v16, -inf  ;;  %v4312_v47 = vmax.f32 %v1363_v33, %v1364_v12  ;;  %v4314_v32 = vmax.f32 %v1370_v10, %v1371_v51 }
  0xbf   : > { %v4316_v6 = vmax.f32 %v1377_v30, %v1378_v26  ;;  %v4318_v31 = vmax.f32 %v1384_v58, %v1385_v14  ;;  %v1392_v28 = vrot.slane %v1391_v27, 1  ;;  %v1399_v22 = vrot.slane %v1398_v44, 1 }
  0xc0   : > { %v1402_v35 = vrot.slane %v1401_v60, 4  ;;  %v1409_v17 = vrot.slane %v1408_v57, 4  ;;  %v1415_v3 = vsel %vm728_vm0, %v609_v24, -inf  ;;  %v1422_v16 = vsel %vm728_vm0, %v610_v5, -inf }
  0xc1   : > { %v1429_v13 = vsel %vm728_vm0, %v4233_v1, -inf  ;;  %v1436_v49 = vsel %vm728_vm0, %v611_v62, -inf  ;;  %v4331_v7 = vmax.f32 %v1391_v27, %v1392_v28  ;;  %v4333_v38 = vmax.f32 %v1398_v44, %v1399_v22 }
  0xc2   : > { %v1403_v2 = vmax.f32 %v1401_v60, %v1402_v35  ;;  %v1410_v52 = vmax.f32 %v1408_v57, %v1409_v17  ;;  %v1416_v20 = vrot.slane %v1415_v3, 4  ;;  %v1423_v8 = vrot.slane %v1422_v16, 4 }
  0xc3   : > { %v1430_v24 = vrot.slane %v1429_v13, 4  ;;  %v1437_v40 = vrot.slane %v1436_v49, 4  ;;  %v1443_v5 = vsel %vm728_vm0, %v612_v39, -inf  ;;  %v1450_v62 = vsel %vm728_vm0, %v613_v9, -inf }
  0xc4   : > { %v1404_v21 = vrot.slane %v1403_v2, 2  ;;  %v1411_v11 = vrot.slane %v1410_v52, 2  ;;  %v1417_v29 = vmax.f32 %v1415_v3, %v1416_v20  ;;  %v1424_v0 = vmax.f32 %v1422_v16, %v1423_v8 }
  0xc5   : > { %v1431_v61 = vmax.f32 %v1429_v13, %v1430_v24  ;;  %v1438_v33 = vmax.f32 %v1436_v49, %v1437_v40  ;;  %v1444_v58 = vrot.slane %v1443_v5, 4  ;;  %v1451_v23 = vrot.slane %v1450_v62, 4 }
  0xc6   : > { %v1405_v10 = vmax.f32 %v1403_v2, %v1404_v21  ;;  %v1412_v30 = vmax.f32 %v1410_v52, %v1411_v11  ;;  %v1418_v54 = vrot.slane %v1417_v29, 2  ;;  %v1425_v12 = vrot.slane %v1424_v0, 2 }
  0xc7   : > { %v1432_v51 = vrot.slane %v1431_v61, 2  ;;  %v1439_v26 = vrot.slane %v1438_v33, 2  ;;  %v1445_v44 = vmax.f32 %v1443_v5, %v1444_v58  ;;  %v1452_v39 = vmax.f32 %v1450_v62, %v1451_v23 }
  0xc8   : > { %v1406_v14 = vrot.slane %v1405_v10, 1  ;;  %v1413_v27 = vrot.slane %v1412_v30, 1  ;;  %v1419_v60 = vmax.f32 %v1417_v29, %v1418_v54  ;;  %v1426_v1 = vmax.f32 %v1424_v0, %v1425_v12 }
  0xc9   : > { %v1433_v57 = vmax.f32 %v1431_v61, %v1432_v51  ;;  %v1440_v9 = vmax.f32 %v1438_v33, %v1439_v26  ;;  %v1446_v35 = vrot.slane %v1445_v44, 2  ;;  %v1453_v17 = vrot.slane %v1452_v39, 2 }
  0xca   : > { %v4341_v28 = vmax.f32 %v1405_v10, %v1406_v14  ;;  %v4343_v22 = vmax.f32 %v1412_v30, %v1413_v27  ;;  %v1420_v3 = vrot.slane %v1419_v60, 1  ;;  %v1427_v16 = vrot.slane %v1426_v1, 1 }
  0xcb   : > { %v1434_v13 = vrot.slane %v1433_v57, 1  ;;  %v1441_v49 = vrot.slane %v1440_v9, 1  ;;  %v1447_v2 = vmax.f32 %v1445_v44, %v1446_v35  ;;  %v1454_v52 = vmax.f32 %v1452_v39, %v1453_v17 }
  0xcc   : > { %v1457_v20 = vsel %vm728_vm0, %v4235_v43, -inf  ;;  %v1464_v8 = vsel %vm728_vm0, %v614_v37, -inf  ;;  %v4350_v24 = vmax.f32 %v1419_v60, %v1420_v3  ;;  %v4352_v40 = vmax.f32 %v1426_v1, %v1427_v16 }
  0xcd   : > { %v4354_v21 = vmax.f32 %v1433_v57, %v1434_v13  ;;  %v4356_v11 = vmax.f32 %v1440_v9, %v1441_v49  ;;  %v1448_v5 = vrot.slane %v1447_v2, 1  ;;  %v1455_v62 = vrot.slane %v1454_v52, 1 }
  0xce   : > { %v1458_v29 = vrot.slane %v1457_v20, 4  ;;  %v1465_v0 = vrot.slane %v1464_v8, 4  ;;  %v1471_v61 = vsel %vm728_vm0, %v615_v36, -inf  ;;  %v1478_v37 = vsel %vm728_vm0, %v616_v42, -inf }
  0xcf   : > { %v1485_v33 = vsel %vm728_vm0, %v4237_v45, -inf  ;;  %v1492_v10 = vsel %vm728_vm0, %v617_v41, -inf  ;;  %v4369_v30 = vmax.f32 %v1447_v2, %v1448_v5  ;;  %v4371_v58 = vmax.f32 %v1454_v52, %v1455_v62 }
  0xd0   : > { %v1459_v23 = vmax.f32 %v1457_v20, %v1458_v29  ;;  %v1466_v54 = vmax.f32 %v1464_v8, %v1465_v0  ;;  %v1472_v12 = vrot.slane %v1471_v61, 4  ;;  %v1479_v51 = vrot.slane %v1478_v37, 4 }
  0xd1   : > { %v1486_v36 = vrot.slane %v1485_v33, 4  ;;  %v1493_v26 = vrot.slane %v1492_v10, 4  ;;  %v1499_v42 = vsel %vm728_vm0, %v618_v50, -inf  ;;  %v1506_v41 = vsel %vm728_vm0, %v619_v48, -inf }
  0xd2   : > { %v1460_v43 = vrot.slane %v1459_v23, 2  ;;  %v1467_v14 = vrot.slane %v1466_v54, 2  ;;  %v1473_v27 = vmax.f32 %v1471_v61, %v1472_v12  ;;  %v1480_v44 = vmax.f32 %v1478_v37, %v1479_v51 }
  0xd3   : > { %v1487_v39 = vmax.f32 %v1485_v33, %v1486_v36  ;;  %v1494_v60 = vmax.f32 %v1492_v10, %v1493_v26  ;;  %v1500_v9 = vrot.slane %v1499_v42, 4  ;;  %v1507_v35 = vrot.slane %v1506_v41, 4  ;;  %v3430_v26 = vld [vmem:[%s5166_s4 + $0x1b8] sm:$0xff] }
  0xd4   : > { %v1461_v1 = vmax.f32 %v1459_v23, %v1460_v43  ;;  %v1468_v57 = vmax.f32 %v1466_v54, %v1467_v14  ;;  %v1474_v17 = vrot.slane %v1473_v27, 2  ;;  %v1481_v3 = vrot.slane %v1480_v44, 2  ;;  %v3378_v23 = vld [vmem:[%s5166_s4 + $0x18] sm:$0xff]  ;;  %v3399_v43 = vld [vmem:[%s5166_s4 + $0xc0] sm:$0xff]  ;;  %2721 = vmatpush.bf16.msrb.mxu2 %v3430_v26 }
  0xd5   : > { %v1488_v16 = vrot.slane %v1487_v39, 2  ;;  %v1495_v13 = vrot.slane %v1494_v60, 2  ;;  %v1501_v52 = vmax.f32 %v1499_v42, %v1500_v9  ;;  %v1508_v50 = vmax.f32 %v1506_v41, %v1507_v35  ;;  %v3411_v14 = vld [vmem:[%s5166_s4 + $0x120] sm:$0xff]  ;;  %2167 = vmatpush.bf16.msrb.mxu1 %v3378_v23  ;;  %2388 = vmatpush.bf16.msra.mxu3 %v3399_v43 }
  0xd6   : > { %v1462_v49 = vrot.slane %v1461_v1, 1  ;;  %v1469_v2 = vrot.slane %v1468_v57, 1  ;;  %v1475_v20 = vmax.f32 %v1473_v27, %v1474_v17  ;;  %v1482_v45 = vmax.f32 %v1480_v44, %v1481_v3  ;;  %2497 = vmatpush.bf16.msrb.mxu0 %v3411_v14  ;;  %v3514_v14 = vld [vmem:[%s3641_s18 + $0x20] sm:$0xff]  }
  0xd7   : > { %v1489_v8 = vmax.f32 %v1487_v39, %v1488_v16  ;;  %v1496_v48 = vmax.f32 %v1494_v60, %v1495_v13  ;;  %v1502_v29 = vrot.slane %v1501_v52, 2  ;;  %v1509_v0 = vrot.slane %v1508_v50, 2 }
  0xd8   : > { %v1463_v5 = vmax.f32 %v1461_v1, %v1462_v49  ;;  %v1470_v62 = vmax.f32 %v1468_v57, %v1469_v2  ;;  %v1476_v61 = vrot.slane %v1475_v20, 1  ;;  %v1483_v37 = vrot.slane %v1482_v45, 1 }
  0xd9   : > { %v1490_v33 = vrot.slane %v1489_v8, 1  ;;  %v1497_v10 = vrot.slane %v1496_v48, 1  ;;  %v1503_v54 = vmax.f32 %v1501_v52, %v1502_v29  ;;  %v1510_v12 = vmax.f32 %v1508_v50, %v1509_v0 }
  0xda   : > { %v4384_v51 = vsel %vm1625_vm1, %v4265_v15, -inf  ;;  %v4388_v36 = vsel %vm1625_vm1, %v4303_v18, -inf  ;;  %v1477_v42 = vmax.f32 %v1475_v20, %v1476_v61  ;;  %v1484_v41 = vmax.f32 %v1482_v45, %v1483_v37  ;;  %v3377_v18 = vld [vmem:[%s5166_s4 + $0x10] sm:$0xff] }
  0xdb   : > { %v1491_v15 = vmax.f32 %v1489_v8, %v1490_v33  ;;  %v1498_v27 = vmax.f32 %v1496_v48, %v1497_v10  ;;  %v1504_v44 = vrot.slane %v1503_v54, 1  ;;  %v1511_v39 = vrot.slane %v1510_v12, 1  ;;  %2168 = vmatpush.bf16.msrb.mxu1 %v3377_v18 }
  0xdc   : > { %v1748_v60 = vmax.f32 %v4384_v51, %v4388_v36  ;;  %v1749_v1 = vsel %vm1625_vm1, %v4267_v55, -inf  ;;  %v1750_v57 = vsel %vm1625_vm1, %v4305_v46, -inf  ;;  %v1752_v9 = vsel %vm1625_vm1, %v4269_v56, -inf  ;;  %v3513_v51 = vld [vmem:[%s3641_s18 + $0x18] sm:$0xff]  }
  0xdd   : > { %v1753_v35 = vsel %vm1625_vm1, %v4312_v47, -inf  ;;  %v1755_v17 = vsel %vm1625_vm1, %v4271_v4, -inf  ;;  %v1505_v3 = vmax.f32 %v1503_v54, %v1504_v44  ;;  %v1512_v16 = vmax.f32 %v1510_v12, %v1511_v39 }
  0xde   : > { %v1751_v13 = vmax.f32 %v1749_v1, %v1750_v57  ;;  %v1754_v49 = vmax.f32 %v1752_v9, %v1753_v35  ;;  %v1756_v55 = vsel %vm1625_vm1, %v4314_v32, -inf  ;;  %v1758_v46 = vsel %vm1625_vm1, %v4273_v59, -inf }
  0xdf   : > { %v1759_v56 = vsel %vm1625_vm1, %v4316_v6, -inf  ;;  %v1761_v47 = vsel %vm1625_vm1, %v4275_v63, -inf  ;;  %v1757_v2 = vmax.f32 %v1755_v17, %v1756_v55  ;;  %v1762_v52 = vsel %vm1625_vm1, %v4318_v31, -inf }
  0xe0   : > { %v1760_v4 = vmax.f32 %v1758_v46, %v1759_v56  ;;  %v1764_v50 = vsel %vm1625_vm1, %v4293_v25, -inf  ;;  %v1763_v20 = vmax.f32 %v1761_v47, %v1762_v52  ;;  %v1765_v32 = vsel %vm1625_vm1, %v4331_v7, -inf }
  0xe1   : > { %v1767_v59 = vsel %vm1625_vm1, %v4295_v19, -inf  ;;  %v1768_v6 = vsel %vm1625_vm1, %v4333_v38, -inf  ;;  %v1766_v63 = vmax.f32 %v1764_v50, %v1765_v32  ;;  %v1770_v8 = vsel %vm1625_vm1, %v4341_v28, -inf }
  0xe2   : > { %v1769_v45 = vmax.f32 %v1767_v59, %v1768_v6  ;;  %v1771_v31 = vsel %vm1625_vm1, %v1463_v5, -inf  ;;  %v1773_v25 = vsel %vm1625_vm1, %v4343_v22, -inf  ;;  %v1774_v7 = vsel %vm1625_vm1, %v1470_v62, -inf }
  0xe3   : > { %v1772_v48 = vmax.f32 %v1770_v8, %v1771_v31  ;;  %v1776_v19 = vsel %vm1625_vm1, %v4350_v24, -inf  ;;  %v1775_v29 = vmax.f32 %v1773_v25, %v1774_v7  ;;  %v1777_v38 = vsel %vm1625_vm1, %v1477_v42, -inf  ;;  %v444_v8 = vld [vmem:[%s3656_s26 + $0x20] sm:$0xff]  ;;  %v446_v31 = vld [vmem:[%s3656_s26 + $0x30] sm:$0xff] }
  0xe4   : > { %v1779_v0 = vsel %vm1625_vm1, %v4352_v40, -inf  ;;  %v1780_v28 = vsel %vm1625_vm1, %v1484_v41, -inf  ;;  %v1778_v5 = vmax.f32 %v1776_v19, %v1777_v38  ;;  %v1782_v37 = vsel %vm1625_vm1, %v4354_v21, -inf  ;;  %v3512_v40 = vld [vmem:[%s3641_s18 + $0x10] sm:$0xff]   ;;  %v445_v19 = vld [vmem:[%s3656_s26 + $0x28] sm:$0xff]  ;;  %v448_v38 = vld [vmem:[%s3656_s26 + $0x40] sm:$0xff] }
  0xe5   : > { %v1781_v61 = vmax.f32 %v1779_v0, %v1780_v28  ;;  %v1783_v22 = vsel %vm1625_vm1, %v1491_v15, -inf  ;;  %v1785_v24 = vsel %vm1625_vm1, %v4356_v11, -inf  ;;  %v1786_v33 = vsel %vm1625_vm1, %v1498_v27, -inf  ;;  %v3515_v27 = vld [vmem:[%s3641_s18 + $0x28] sm:$0xff]  }
  0xe6   : > { %v1784_v62 = vmax.f32 %v1782_v37, %v1783_v22  ;;  %v1788_v10 = vsel %vm1625_vm1, %v4369_v30, -inf  ;;  %v1787_v23 = vmax.f32 %v1785_v24, %v1786_v33  ;;  %v1789_v54 = vsel %vm1625_vm1, %v1505_v3, -inf  ;;  %v449_v37 = vld [vmem:[%s3656_s26 + $0x48] sm:$0xff]  ;;  %v450_v22 = vld [vmem:[%s3656_s26 + $0x50] sm:$0xff] }
  0xe7   : > { %v1791_v21 = vsel %vm1625_vm1, %v4371_v58, -inf  ;;  %v1792_v12 = vsel %vm1625_vm1, %v1512_v16, -inf  ;;  %v1790_v36 = vmax.f32 %v1788_v10, %v1789_v54  ;;  %v1944_v11 = vsel %vm1902_vm2, %v1751_v13, %v1748_v60 }
  0xe8   : > { %v1793_v26 = vmax.f32 %v1791_v21, %v1792_v12  ;;  %v1951_v43 = vsel %vm1902_vm2, %v1775_v29, %v1772_v48  ;;  %v1945_v30 = vsel %vm1904_vm3, %v1754_v49, %v1944_v11  ;;  %v3457_v41 = vunpack.c.l.bf16 %v3512_v40  ;;  %v447_v29 = vld [vmem:[%s3656_s26 + $0x38] sm:$0xff] }
  0xe9   : > { %v1952_v42 = vsel %vm1904_vm3, %v1778_v5, %v1951_v43  ;;  %v3458_v15 = vunpack.c.h.bf16 %v3512_v40  ;;  %v1946_v18 = vsel %vm1906_vm4, %v1757_v2, %v1945_v30  ;;  %v3461_v44 = vunpack.c.l.bf16 %v3513_v51  ;;  %v451_v40 = vld [vmem:[%s3656_s26 + $0x58] sm:$0xff] }
  0xea   : > { %v1953_v58 = vsel %vm1906_vm4, %v1781_v61, %v1952_v42  ;;  %v3462_v39 = vunpack.c.h.bf16 %v3513_v51  ;;  %v1947_v1 = vsel %vm1908_vm5, %v1760_v4, %v1946_v18  ;;  %v3465_v57 = vunpack.c.l.bf16 %v3514_v14 }
  0xeb   : > { %v1954_v60 = vsel %vm1908_vm5, %v1784_v62, %v1953_v58  ;;  %v3466_v9 = vunpack.c.h.bf16 %v3514_v14  ;;  %v1948_v35 = vsel %vm1910_vm6, %v1763_v20, %v1947_v1  ;;  %v3469_v3 = vunpack.c.l.bf16 %v3515_v27 }
  0xec   : > { %v1955_v17 = vsel %vm1910_vm6, %v1787_v23, %v1954_v60  ;;  %v3470_v16 = vunpack.c.h.bf16 %v3515_v27  ;;  %v1949_v13 = vsel %vm1912_vm7, %v1766_v63, %v1948_v35  ;;  %v344_v55 = vmul.f32 %v4176_v53, %v3457_v41 }
  0xed   : > { %v1956_v49 = vsel %vm1912_vm7, %v1790_v36, %v1955_v17  ;;  %v345_v46 = vmul.f32 %v4176_v53, %v3458_v15  ;;  %v1950_v56 = vsel %vm1914_vm8, %v1769_v45, %v1949_v13  ;;  %v346_v2 = vmul.f32 %v4176_v53, %v3461_v44 }
  0xee   : > { %v1957_v47 = vsel %vm1914_vm8, %v1793_v26, %v1956_v49  ;;  %v347_v4 = vmul.f32 %v4176_v53, %v3462_v39  ;;  %1979 = vst.msk [vmem:[#allocation2 + $0x61] sm:$0xff] %vm1625_vm1, %v1950_v56  ;;  %v348_v52 = vmul.f32 %v4176_v53, %v3465_v57  ;;  %v349_v50 = vmul.f32 %v4176_v53, %v3466_v9 }
  0xef   : > { %v350_v20 = vmul.f32 %v4176_v53, %v3469_v3  ;;  %v351_v32 = vmul.f32 %v4176_v53, %v3470_v16  ;;  %1980 = vst.msk [vmem:[#allocation2 + $0x71] sm:$0xff] %vm1625_vm1, %v1957_v47  ;;  %v380_v59 = vadd.f32 %v4205_v34, %v344_v55  ;;  %v381_v6 = vadd.f32 %v4205_v34, %v345_v46 }
  0xf0   : > { %v382_v63 = vadd.f32 %v4205_v34, %v346_v2  ;;  %v383_v45 = vadd.f32 %v4205_v34, %v347_v4  ;;  %v384_v48 = vadd.f32 %v4205_v34, %v348_v52  ;;  %v385_v25 = vadd.f32 %v4205_v34, %v349_v50 }
  0xf1   : > { %v386_v53 = vadd.f32 %v4205_v34, %v350_v20  ;;  %v387_v7 = vadd.f32 %v4205_v34, %v351_v32  ;;  %v412_v0 = vmax.f32 %v380_v59, 0.0  ;;  %v413_v28 = vmax.f32 %v381_v6, 0.0 }
  0xf2   : > { %v414_v5 = vmax.f32 %v382_v63, 0.0  ;;  %v415_v61 = vmax.f32 %v383_v45, 0.0  ;;  %v416_v62 = vmax.f32 %v384_v48, 0.0  ;;  %v417_v24 = vmax.f32 %v385_v25, 0.0 }
  0xf3   : > { %v418_v33 = vmax.f32 %v386_v53, 0.0  ;;  %v419_v10 = vmax.f32 %v387_v7, 0.0  ;;  %v476_v23 = vadd.f32 %v444_v8, %v412_v0  ;;  %v477_v54 = vadd.f32 %v445_v19, %v413_v28 }
  0xf4   : > { %v4500_v21 = vadd.f32 %v446_v31, %v414_v5  ;;  %v4502_v12 = vadd.f32 %v447_v29, %v415_v61  ;;  %v4504_v34 = vadd.f32 %v448_v38, %v416_v62  ;;  %v4506_v51 = vadd.f32 %v449_v37, %v417_v24 }
  0xf5   : > { %v4508_v36 = vadd.f32 %v450_v22, %v418_v33  ;;  %v2016_v26 = vld [vmem:[#allocation2 + $0x61] sm:$0xff]  ;;  %v4510_v11 = vadd.f32 %v451_v40, %v419_v10  ;;  %v548_v43 = vrot.slane %v476_v23, 2  ;;  %v549_v14 = vrot.slane %v476_v23, 4 }
  0xf6   : > { %v550_v30 = vrot.slane %v476_v23, 6  ;;  %v2017_v42 = vld [vmem:[#allocation2 + $0x71] sm:$0xff]  ;;  %v551_v41 = vrot.slane %v477_v54, 2  ;;  %v552_v15 = vrot.slane %v477_v54, 4  ;;  %v553_v27 = vrot.slane %v477_v54, 6 }
  0xf7   : > { %v554_v18 = vrot.slane %v4500_v21, 2  ;;  %v2021_v58 = vpack.c.bf16 %v2017_v42, %v2016_v26  ;;  %v555_v44 = vrot.slane %v4500_v21, 4  ;;  %v556_v39 = vrot.slane %v4500_v21, 6 }
  0xf8   : > { %v557_v1 = vrot.slane %v4502_v12, 2  ;;  %v558_v60 = vrot.slane %v4502_v12, 4  ;;  %v559_v57 = vrot.slane %v4502_v12, 6  ;;  %v560_v9 = vrot.slane %v4504_v34, 2 }
  0xf9   : > { %v561_v35 = vrot.slane %v4504_v34, 4  ;;  %2109 = vmatmul.bf16.gmra.mxu1 %v2021_v58  ;;  %v562_v17 = vrot.slane %v4504_v34, 6  ;;  %v563_v3 = vrot.slane %v4506_v51, 2  ;;  %v564_v16 = vrot.slane %v4506_v51, 4 }
  0xfa   : > { %v565_v13 = vrot.slane %v4506_v51, 6  ;;  %v566_v49 = vrot.slane %v4508_v36, 2  ;;  %v567_v55 = vrot.slane %v4508_v36, 4  ;;  %v568_v46 = vrot.slane %v4508_v36, 6 }
  0xfb   : > { %v569_v56 = vrot.slane %v4510_v11, 2  ;;  %v570_v47 = vrot.slane %v4510_v11, 4  ;;  %v841_v2 = vsel %vm728_vm0, %v476_v23, -inf  ;;  %v848_v4 = vsel %vm728_vm0, %v548_v43, -inf }
  0xfc   : > { %v855_v52 = vsel %vm728_vm0, %v549_v14, -inf  ;;  %v842_v50 = vrot.slane %v841_v2, 4  ;;  %v849_v20 = vrot.slane %v848_v4, 4  ;;  %v862_v59 = vsel %vm728_vm0, %v550_v30, -inf }
  0xfd   : > { %v856_v32 = vrot.slane %v855_v52, 4  ;;  %v863_v6 = vrot.slane %v862_v59, 4  ;;  %v869_v63 = vsel %vm728_vm0, %v477_v54, -inf  ;;  %v876_v45 = vsel %vm728_vm0, %v551_v41, -inf }
  0xfe   : > { %v883_v8 = vsel %vm728_vm0, %v552_v15, -inf  ;;  %v843_v31 = vmax.f32 %v841_v2, %v842_v50  ;;  %v850_v48 = vmax.f32 %v848_v4, %v849_v20  ;;  %v870_v53 = vrot.slane %v869_v63, 4 }
  0xff   : > { %v857_v25 = vmax.f32 %v855_v52, %v856_v32  ;;  %v864_v7 = vmax.f32 %v862_v59, %v863_v6  ;;  %v877_v19 = vrot.slane %v876_v45, 4  ;;  %v884_v29 = vrot.slane %v883_v8, 4 }
 0x100   : > { %v890_v38 = vsel %vm728_vm0, %v553_v27, -inf  ;;  %v844_v0 = vrot.slane %v843_v31, 2  ;;  %v851_v28 = vrot.slane %v850_v48, 2  ;;  %v871_v61 = vmax.f32 %v869_v63, %v870_v53 }
 0x101   : > { %v858_v5 = vrot.slane %v857_v25, 2  ;;  %v865_v37 = vrot.slane %v864_v7, 2  ;;  %v878_v22 = vmax.f32 %v876_v45, %v877_v19  ;;  %v885_v62 = vmax.f32 %v883_v8, %v884_v29 }
 0x102   : > { %v891_v24 = vrot.slane %v890_v38, 4  ;;  %v845_v33 = vmax.f32 %v843_v31, %v844_v0  ;;  %v852_v10 = vmax.f32 %v850_v48, %v851_v28  ;;  %v872_v23 = vrot.slane %v871_v61, 2 }
 0x103   : > { %v859_v40 = vmax.f32 %v857_v25, %v858_v5  ;;  %v866_v54 = vmax.f32 %v864_v7, %v865_v37  ;;  %v879_v26 = vrot.slane %v878_v22, 2  ;;  %v886_v43 = vrot.slane %v885_v62, 2 }
 0x104   : > { %v892_v14 = vmax.f32 %v890_v38, %v891_v24  ;;  %v846_v30 = vrot.slane %v845_v33, 1  ;;  %v853_v42 = vrot.slane %v852_v10, 1  ;;  %v873_v15 = vmax.f32 %v871_v61, %v872_v23 }
 0x105   : > { %v860_v41 = vrot.slane %v859_v40, 1  ;;  %v867_v27 = vrot.slane %v866_v54, 1  ;;  %v880_v58 = vmax.f32 %v878_v22, %v879_v26  ;;  %v887_v2 = vmax.f32 %v885_v62, %v886_v43 }
 0x106   : > { %v893_v4 = vrot.slane %v892_v14, 2  ;;  %v571_v52 = vrot.slane %v4510_v11, 6  ;;  %v4538_v50 = vmax.f32 %v845_v33, %v846_v30  ;;  %v4540_v20 = vmax.f32 %v852_v10, %v853_v42 }
 0x107   : > { %v874_v32 = vrot.slane %v873_v15, 1  ;;  %v4542_v59 = vmax.f32 %v859_v40, %v860_v41  ;;  %v881_v6 = vrot.slane %v880_v58, 1  ;;  %v888_v63 = vrot.slane %v887_v2, 1 }
 0x108   : > { %v894_v45 = vmax.f32 %v892_v14, %v893_v4  ;;  %v4544_v8 = vmax.f32 %v866_v54, %v867_v27  ;;  %v897_v31 = vsel %vm728_vm0, %v4500_v21, -inf  ;;  %v904_v48 = vsel %vm728_vm0, %v554_v18, -inf }
 0x109   : > { %v911_v25 = vsel %vm728_vm0, %v555_v44, -inf  ;;  %v4554_v53 = vmax.f32 %v873_v15, %v874_v32  ;;  %v4556_v7 = vmax.f32 %v880_v58, %v881_v6  ;;  %v4558_v19 = vmax.f32 %v887_v2, %v888_v63 }
 0x10a   : > { %v898_v29 = vrot.slane %v897_v31, 4  ;;  %v905_v38 = vrot.slane %v904_v48, 4  ;;  %v912_v0 = vrot.slane %v911_v25, 4  ;;  %v918_v28 = vsel %vm728_vm0, %v556_v39, -inf }
 0x10b   : > { %v925_v18 = vsel %vm728_vm0, %v4502_v12, -inf  ;;  %v895_v5 = vrot.slane %v894_v45, 1  ;;  %v919_v37 = vrot.slane %v918_v28, 4  ;;  %v932_v24 = vsel %vm728_vm0, %v557_v1, -inf }
 0x10c   : > { %v899_v61 = vmax.f32 %v897_v31, %v898_v29  ;;  %v926_v44 = vrot.slane %v925_v18, 4  ;;  %v906_v22 = vmax.f32 %v904_v48, %v905_v38  ;;  %v913_v62 = vmax.f32 %v911_v25, %v912_v0 }
 0x10d   : > { %v939_v33 = vsel %vm728_vm0, %v558_v60, -inf  ;;  %v920_v10 = vmax.f32 %v918_v28, %v919_v37  ;;  %v933_v40 = vrot.slane %v932_v24, 4  ;;  %v946_v43 = vsel %vm728_vm0, %v559_v57, -inf }
 0x10e   : > { %v900_v21 = vrot.slane %v899_v61, 2  ;;  %v927_v39 = vmax.f32 %v925_v18, %v926_v44  ;;  %v907_v23 = vrot.slane %v906_v22, 2  ;;  %v914_v54 = vrot.slane %v913_v62, 2 }
 0x10f   : > { %v940_v26 = vrot.slane %v939_v33, 4  ;;  %v921_v30 = vrot.slane %v920_v10, 2  ;;  %v934_v41 = vmax.f32 %v932_v24, %v933_v40  ;;  %v947_v58 = vrot.slane %v946_v43, 4 }
 0x110   : > { %v901_v14 = vmax.f32 %v899_v61, %v900_v21  ;;  %v928_v42 = vrot.slane %v927_v39, 2  ;;  %v908_v1 = vmax.f32 %v906_v22, %v907_v23  ;;  %v915_v15 = vmax.f32 %v913_v62, %v914_v54 }
 0x111   : > { %v941_v27 = vmax.f32 %v939_v33, %v940_v26  ;;  %v922_v2 = vmax.f32 %v920_v10, %v921_v30  ;;  %v935_v32 = vrot.slane %v934_v41, 2  ;;  %v948_v48 = vmax.f32 %v946_v43, %v947_v58 }
 0x112   : > { %v902_v60 = vrot.slane %v901_v14, 1  ;;  %v929_v4 = vmax.f32 %v927_v39, %v928_v42  ;;  %v909_v6 = vrot.slane %v908_v1, 1  ;;  %v916_v63 = vrot.slane %v915_v15, 1 }
 0x113   : > { %v942_v31 = vrot.slane %v941_v27, 2  ;;  %v4574_v25 = vmax.f32 %v894_v45, %v895_v5  ;;  %v923_v12 = vrot.slane %v922_v2, 1  ;;  %v936_v29 = vmax.f32 %v934_v41, %v935_v32 }
 0x114   : > { %v930_v57 = vrot.slane %v929_v4, 1  ;;  %v4576_v38 = vmax.f32 %v901_v14, %v902_v60  ;;  %v4578_v0 = vmax.f32 %v908_v1, %v909_v6  ;;  %v949_v18 = vrot.slane %v948_v48, 2 }
 0x115   : > { %v943_v28 = vmax.f32 %v941_v27, %v942_v31  ;;  %v4580_v61 = vmax.f32 %v915_v15, %v916_v63  ;;  %v4582_v37 = vmax.f32 %v922_v2, %v923_v12  ;;  %v937_v44 = vrot.slane %v936_v29, 1 }
 0x116   : > { %v953_v22 = vsel %vm728_vm0, %v4504_v34, -inf  ;;  %v950_v45 = vmax.f32 %v948_v48, %v949_v18  ;;  %v960_v24 = vsel %vm728_vm0, %v560_v9, -inf  ;;  %v4589_v33 = vmax.f32 %v929_v4, %v930_v57 }
 0x117   : > { %v944_v62 = vrot.slane %v943_v28, 1  ;;  %v954_v5 = vrot.slane %v953_v22, 4  ;;  %v961_v21 = vrot.slane %v960_v24, 4  ;;  %v967_v10 = vsel %vm728_vm0, %v561_v35, -inf }
 0x118   : > { %v974_v39 = vsel %vm728_vm0, %v562_v17, -inf  ;;  %v4597_v40 = vmax.f32 %v936_v29, %v937_v44  ;;  %v968_v26 = vrot.slane %v967_v10, 4  ;;  %v981_v9 = vsel %vm728_vm0, %v4506_v51, -inf }
 0x119   : > { %v4599_v23 = vmax.f32 %v943_v28, %v944_v62  ;;  %v955_v54 = vmax.f32 %v953_v22, %v954_v5  ;;  %v962_v43 = vmax.f32 %v960_v24, %v961_v21  ;;  %v975_v14 = vrot.slane %v974_v39, 4 }
 0x11a   : > { %v988_v30 = vsel %vm728_vm0, %v563_v3, -inf  ;;  %v951_v35 = vrot.slane %v950_v45, 1  ;;  %v969_v34 = vmax.f32 %v967_v10, %v968_v26  ;;  %v982_v41 = vrot.slane %v981_v9, 4 }
 0x11b   : > { %v956_v42 = vrot.slane %v955_v54, 2  ;;  %v963_v17 = vrot.slane %v962_v43, 2  ;;  %v976_v1 = vmax.f32 %v974_v39, %v975_v14  ;;  %v989_v15 = vrot.slane %v988_v30, 4 }
 0x11c   : > { %v995_v27 = vsel %vm728_vm0, %v564_v16, -inf  ;;  %v970_v60 = vrot.slane %v969_v34, 2  ;;  %v983_v2 = vmax.f32 %v981_v9, %v982_v41  ;;  %v1002_v3 = vsel %vm728_vm0, %v565_v13, -inf }
 0x11d   : > { %v957_v58 = vmax.f32 %v955_v54, %v956_v42  ;;  %v996_v4 = vrot.slane %v995_v27, 4  ;;  %v964_v32 = vmax.f32 %v962_v43, %v963_v17  ;;  %v977_v6 = vrot.slane %v976_v1, 2 }
 0x11e   : > { %v990_v63 = vmax.f32 %v988_v30, %v989_v15  ;;  %v971_v48 = vmax.f32 %v969_v34, %v970_v60  ;;  %v984_v12 = vrot.slane %v983_v2, 2  ;;  %v1003_v44 = vrot.slane %v1002_v3, 4 }
 0x11f   : > { %v958_v31 = vrot.slane %v957_v58, 1  ;;  %v997_v57 = vmax.f32 %v995_v27, %v996_v4  ;;  %v965_v29 = vrot.slane %v964_v32, 1  ;;  %v978_v28 = vmax.f32 %v976_v1, %v977_v6 }
 0x120   : > { %v991_v18 = vrot.slane %v990_v63, 2  ;;  %v4612_v16 = vmax.f32 %v950_v45, %v951_v35  ;;  %v972_v22 = vrot.slane %v971_v48, 1  ;;  %v985_v62 = vmax.f32 %v983_v2, %v984_v12 }
 0x121   : > { %v998_v5 = vrot.slane %v997_v57, 2  ;;  %v4614_v24 = vmax.f32 %v957_v58, %v958_v31  ;;  %v979_v21 = vrot.slane %v978_v28, 1  ;;  %v1004_v51 = vmax.f32 %v1002_v3, %v1003_v44 }
 0x122   : > { %v992_v10 = vmax.f32 %v990_v63, %v991_v18  ;;  %v4616_v39 = vmax.f32 %v964_v32, %v965_v29  ;;  %v986_v13 = vrot.slane %v985_v62, 1  ;;  %v1009_v26 = vsel %vm728_vm0, %v4508_v36, -inf }
 0x123   : > { %v999_v54 = vmax.f32 %v997_v57, %v998_v5  ;;  %v4620_v43 = vmax.f32 %v971_v48, %v972_v22  ;;  %v1005_v45 = vrot.slane %v1004_v51, 2  ;;  %v1010_v9 = vrot.slane %v1009_v26, 4 }
 0x124   : > { %v993_v14 = vrot.slane %v992_v10, 1  ;;  %v4622_v30 = vmax.f32 %v978_v28, %v979_v21  ;;  %v1016_v42 = vsel %vm728_vm0, %v566_v49, -inf  ;;  %v1023_v34 = vsel %vm728_vm0, %v567_v55, -inf }
 0x125   : > { %v1000_v35 = vrot.slane %v999_v54, 1  ;;  %v4630_v41 = vmax.f32 %v985_v62, %v986_v13  ;;  %v1006_v17 = vmax.f32 %v1004_v51, %v1005_v45  ;;  %v1011_v1 = vmax.f32 %v1009_v26, %v1010_v9 }
 0x126   : > { %v1017_v15 = vrot.slane %v1016_v42, 4  ;;  %v4632_v27 = vmax.f32 %v992_v10, %v993_v14  ;;  %v1024_v58 = vrot.slane %v1023_v34, 4  ;;  %v1030_v60 = vsel %vm728_vm0, %v568_v46, -inf }
 0x127   : > { %v1037_v2 = vsel %vm728_vm0, %v4510_v11, -inf  ;;  %v4639_v49 = vmax.f32 %v999_v54, %v1000_v35  ;;  %v1012_v4 = vrot.slane %v1011_v1, 2  ;;  %v1031_v55 = vrot.slane %v1030_v60, 4 }
 0x128   : > { %v1018_v32 = vmax.f32 %v1016_v42, %v1017_v15  ;;  %v1025_v6 = vmax.f32 %v1023_v34, %v1024_v58  ;;  %v1038_v63 = vrot.slane %v1037_v2, 4  ;;  %v1044_v3 = vsel %vm728_vm0, %v569_v56, -inf }
 0x129   : > { %v1051_v36 = vsel %vm728_vm0, %v570_v47, -inf  ;;  %v1007_v31 = vrot.slane %v1006_v17, 1  ;;  %v1013_v46 = vmax.f32 %v1011_v1, %v1012_v4  ;;  %v1032_v12 = vmax.f32 %v1030_v60, %v1031_v55 }
 0x12a   : > { %v1019_v48 = vrot.slane %v1018_v32, 2  ;;  %v1026_v57 = vrot.slane %v1025_v6, 2  ;;  %v1039_v29 = vmax.f32 %v1037_v2, %v1038_v63  ;;  %v1045_v28 = vrot.slane %v1044_v3, 4 }
 0x12b   : > { %v1052_v18 = vrot.slane %v1051_v36, 4  ;;  %v1014_v44 = vrot.slane %v1013_v46, 1  ;;  %v1033_v62 = vrot.slane %v1032_v12, 2  ;;  %v1058_v5 = vsel %vm728_vm0, %v571_v52, -inf }
 0x12c   : > { %v1020_v22 = vmax.f32 %v1018_v32, %v1019_v48  ;;  %v1027_v56 = vmax.f32 %v1025_v6, %v1026_v57  ;;  %v1040_v21 = vrot.slane %v1039_v29, 2  ;;  %v1046_v10 = vmax.f32 %v1044_v3, %v1045_v28  ;;  %v3376_v6 = vld [vmem:[%s5166_s4 + $0x8] sm:$0xff] }
 0x12d   : > { %v1053_v51 = vmax.f32 %v1051_v36, %v1052_v18  ;;  %v4650_v47 = vmax.f32 %v1006_v17, %v1007_v31  ;;  %v1034_v54 = vmax.f32 %v1032_v12, %v1033_v62  ;;  %v1059_v26 = vrot.slane %v1058_v5, 4  ;;  %v3410_v17 = vld [vmem:[%s5166_s4 + $0x118] sm:$0xff]  ;;  %2169 = vmatpush.bf16.msrb.mxu1 %v3376_v6  ;;  %v3428_v28 = vld [vmem:[%s5166_s4 + $0x1a8] sm:$0xff] }
 0x12e   : > { %v1021_v13 = vrot.slane %v1020_v22, 1  ;;  %v1028_v14 = vrot.slane %v1027_v56, 1  ;;  %v1041_v45 = vmax.f32 %v1039_v29, %v1040_v21  ;;  %v1047_v9 = vrot.slane %v1046_v10, 2  ;;  %2498 = vmatpush.bf16.msrb.mxu0 %v3410_v17  ;;  %v3375_v29 = vld [vmem:[%s5166_s4] sm:$0xff] }
 0x12f   : > { %v1054_v35 = vrot.slane %v1053_v51, 2  ;;  %v1015_v42 = vmax.f32 %v1013_v46, %v1014_v44  ;;  %v1035_v1 = vrot.slane %v1034_v54, 1  ;;  %v1060_v15 = vmax.f32 %v1058_v5, %v1059_v26 }
 0x130   : > { %v1022_v34 = vmax.f32 %v1020_v22, %v1021_v13  ;;  %v1042_v11 = vrot.slane %v1041_v45, 1  ;;  %v1048_v58 = vmax.f32 %v1046_v10, %v1047_v9  ;;  %v4654_v60 = vsel %vm1625_vm1, %v4538_v50, -inf  ;;  %v3429_v50 = vld [vmem:[%s5166_s4 + $0x1b0] sm:$0xff] }
 0x131   : > { %v1055_v52 = vmax.f32 %v1053_v51, %v1054_v35  ;;  %v1029_v2 = vmax.f32 %v1027_v56, %v1028_v14  ;;  %v1061_v4 = vrot.slane %v1060_v15, 2  ;;  %v4661_v32 = vsel %vm1625_vm1, %v4576_v38, -inf  ;;  %v3409_v38 = vld [vmem:[%s5166_s4 + $0x110] sm:$0xff]  ;;  %2722 = vmatpush.bf16.msrb.mxu2 %v3429_v50  ;;  %2170 = vmatpush.bf16.msrb.mxu1 %v3375_v29 }
 0x132   : > { %v4665_v55 = vsel %vm1625_vm1, %v4540_v20, -inf  ;;  %v1036_v63 = vmax.f32 %v1034_v54, %v1035_v1  ;;  %v1043_v3 = vmax.f32 %v1041_v45, %v1042_v11  ;;  %v1049_v36 = vrot.slane %v1048_v58, 1  ;;  %v3438_v20 = vld [vmem:[%s5166_s4 + $0x1f8] sm:$0xff]  ;;  %2499 = vmatpush.bf16.msrb.mxu0 %v3409_v38  ;;  %v3407_v1 = vld [vmem:[%s5166_s4 + $0x100] sm:$0xff]  ;;  %v4781_v50 = vld [vmem:[#allocation2 + $0x10] sm:$0xff] }
 0x133   : > { %v1056_v31 = vrot.slane %v1055_v52, 1  ;;  %v1062_v46 = vmax.f32 %v1060_v15, %v1061_v4  ;;  %v4681_v48 = vsel %vm1625_vm1, %v4578_v0, -inf  ;;  %v4685_v12 = vsel %vm1625_vm1, %v4542_v59, -inf  ;;  %2834 = vmatpush.bf16.msrb.mxu3 %v3438_v20  ;;  %v3524_v4 = vld [vmem:[%s3641_s18 + $0x70] sm:$0xff]  }
 0x134   : > { %v4689_v57 = vsel %vm1625_vm1, %v4580_v61, -inf  ;;  %v1050_v0 = vmax.f32 %v1048_v58, %v1049_v36  ;;  %v1652_v59 = vmax.f32 %v4654_v60, %v4661_v32  ;;  %v1655_v44 = vmax.f32 %v4665_v55, %v4681_v48  ;;  %v3422_v61 = vld [vmem:[%s5166_s4 + $0x178] sm:$0xff]  ;;  %v3437_v29 = vld [vmem:[%s5166_s4 + $0x1f0] sm:$0xff] }
 0x135   : > { %v1057_v18 = vmax.f32 %v1055_v52, %v1056_v31  ;;  %v1063_v22 = vrot.slane %v1062_v46, 1  ;;  %v1659_v62 = vsel %vm1625_vm1, %v4544_v8, -inf  ;;  %v1660_v5 = vsel %vm1625_vm1, %v4582_v37, -inf  ;;  %2723 = vmatpush.bf16.msrb.mxu2 %v3428_v28  ;;  %2607 = vmatpush.bf16.msra.mxu1 %v3422_v61  ;;  %v3421_v28 = vld [vmem:[%s5166_s4 + $0x170] sm:$0xff] }
 0x136   : > { %v4710_v56 = vsel %vm1625_vm1, %v4554_v53, -inf  ;;  %v1658_v21 = vmax.f32 %v4685_v12, %v4689_v57  ;;  %v4716_v10 = vsel %vm1625_vm1, %v4589_v33, -inf  ;;  %v4720_v51 = vsel %vm1625_vm1, %v4556_v7, -inf  ;;  %v3408_v53 = vld [vmem:[%s5166_s4 + $0x108] sm:$0xff] }
 0x137   : > { %v4724_v8 = vsel %vm1625_vm1, %v4597_v40, -inf  ;;  %v1064_v37 = vmax.f32 %v1062_v46, %v1063_v22  ;;  %v1661_v13 = vmax.f32 %v1659_v62, %v1660_v5  ;;  %v1664_v54 = vmax.f32 %v4710_v56, %v4716_v10  ;;  %2500 = vmatpush.bf16.msrb.mxu0 %v3408_v53  ;;  %v3557_v22 = vld [vmem:[%s5163_s1] ss:$0 sm:$0xff]  ;;  %2835 = vmatpush.bf16.msrb.mxu3 %v3437_v29  ;;  %v3420_v10 = vld [vmem:[%s5166_s4 + $0x168] sm:$0xff] }
 0x138   : > { %v4733_v33 = vsel %vm1625_vm1, %v4558_v19, -inf  ;;  %v4737_v7 = vsel %vm1625_vm1, %v4599_v23, -inf  ;;  %v4741_v40 = vsel %vm1625_vm1, %v4574_v25, -inf  ;;  %v4745_v26 = vsel %vm1625_vm1, %v4612_v16, -inf }
 0x139   : > { %v1674_v14 = vsel %vm1625_vm1, %v4614_v24, -inf  ;;  %v1667_v19 = vmax.f32 %v4720_v51, %v4724_v8  ;;  %v1670_v45 = vmax.f32 %v4733_v33, %v4737_v7  ;;  %v1675_v23 = vsel %vm1625_vm1, %v1015_v42, -inf  ;;  %2608 = vmatpush.bf16.msra.mxu1 %v3421_v28 }
 0x13a   : > { %v1677_v25 = vsel %vm1625_vm1, %v4616_v39, -inf  ;;  %v1673_v9 = vmax.f32 %v4741_v40, %v4745_v26  ;;  %v1678_v16 = vsel %vm1625_vm1, %v1022_v34, -inf  ;;  %v1680_v24 = vsel %vm1625_vm1, %v4620_v43, -inf  ;;  %v3558_v40 = vld [vmem:[%s5164_s2] ss:$0 sm:$0xff] }
 0x13b   : > { %v1681_v35 = vsel %vm1625_vm1, %v1029_v2, -inf  ;;  %v1676_v42 = vmax.f32 %v1674_v14, %v1675_v23  ;;  %v1679_v15 = vmax.f32 %v1677_v25, %v1678_v16  ;;  %v1683_v39 = vsel %vm1625_vm1, %v4622_v30, -inf  ;;  %2501 = vmatpush.bf16.msrb.mxu0 %v3407_v1  ;;  %v470_v16 = vld [vmem:[%s3656_s26 + $0xf0] sm:$0xff] }
 0x13c   : > { %v1684_v11 = vsel %vm1625_vm1, %v1036_v63, -inf  ;;  %v1682_v34 = vmax.f32 %v1680_v24, %v1681_v35  ;;  %v1686_v43 = vsel %vm1625_vm1, %v4630_v41, -inf  ;;  %v1687_v58 = vsel %vm1625_vm1, %v1043_v3, -inf  ;;  %v4831_v24 = vld [vmem:[#allocation2 + $0x42] sm:$0xff]  ;;  %v4833_v35 = vld [vmem:[#allocation2 + $0x52] sm:$0xff] }
 0x13d   : > { %v1689_v52 = vsel %vm1625_vm1, %v4632_v27, -inf  ;;  %v1685_v60 = vmax.f32 %v1683_v39, %v1684_v11  ;;  %v1690_v17 = vsel %vm1625_vm1, %v1050_v0, -inf  ;;  %v1692_v2 = vsel %vm1625_vm1, %v4639_v49, -inf  ;;  %v3525_v27 = vld [vmem:[%s3641_s18 + $0x78] sm:$0xff]   ;;  %v4786_v49 = vld [vmem:[#allocation2] sm:$0xff]  ;;  %2609 = vmatpush.bf16.msra.mxu1 %v3420_v10 }
 0x13e   : > { %v1693_v30 = vsel %vm1625_vm1, %v1057_v18, -inf  ;;  %v1688_v32 = vmax.f32 %v1686_v43, %v1687_v58  ;;  %v1691_v55 = vmax.f32 %v1689_v52, %v1690_v17  ;;  %v1695_v6 = vsel %vm1625_vm1, %v4650_v47, -inf  ;;  %v3427_v0 = vld [vmem:[%s5166_s4 + $0x1a0] sm:$0xff] }
 0x13f   : > { %v1696_v41 = vsel %vm1625_vm1, %v1064_v37, -inf  ;;  %v1694_v63 = vmax.f32 %v1692_v2, %v1693_v30  ;;  %v1916_v3 = vsel %vm1902_vm2, %v1655_v44, %v1652_v59  ;;  %v1923_v36 = vsel %vm1902_vm2, %v1679_v15, %v1676_v42  ;;  %2724 = vmatpush.bf16.msrb.mxu2 %v3427_v0  ;;  %v3426_v37 = vld [vmem:[%s5166_s4 + $0x198] sm:$0xff]  ;;  %v4838_v43 = vld [vmem:[#allocation2 + $0x60] sm:$0xff] }
 0x140   : > { %v1990_v31 = vpack.c.bf16 %v4781_v50, %v4786_v49  ;;  %v1917_v38 = vsel %vm1904_vm3, %v1658_v21, %v1916_v3  ;;  %v1924_v47 = vsel %vm1904_vm3, %v1682_v34, %v1923_v36  ;;  %v3505_v20 = vunpack.c.l.bf16 %v3524_v4  ;;  %v3436_v21 = vld [vmem:[%s5166_s4 + $0x1e8] sm:$0xff]  ;;  %v471_v15 = vld [vmem:[%s3656_s26 + $0xf8] sm:$0xff]  ;;  %v4836_v34 = vld [vmem:[#allocation2 + $0x50] sm:$0xff] }
 0x141   : > { %v3506_v46 = vunpack.c.h.bf16 %v3524_v4  ;;  %v1697_v48 = vmax.f32 %v1695_v6, %v1696_v41  ;;  %v1918_v12 = vsel %vm1906_vm4, %v1661_v13, %v1917_v38  ;;  %v1925_v57 = vsel %vm1906_vm4, %v1685_v60, %v1924_v47  ;;  %2836 = vmatpush.bf16.msrb.mxu3 %v3436_v21  ;;  %v4844_v60 = vld [vmem:[#allocation2 + $0x11] sm:$0xff] }
 0x142   : > { %2171 = vmatmul.bf16.vlgmr.msrb.gmra.mxu1 %v1990_v31  ;;  %v3509_v18 = vunpack.c.l.bf16 %v3525_v27  ;;  %v1919_v59 = vsel %vm1908_vm5, %v1664_v54, %v1918_v12  ;;  %v1926_v44 = vsel %vm1908_vm5, %v1688_v32, %v1925_v57  ;;  %v3510_v61 = vunpack.c.h.bf16 %v3525_v27  ;;  %v4852_v32 = vld [vmem:[#allocation2 + $0x40] sm:$0xff] }
 0x143   : > { %v368_v62 = vmul.f32 %v3557_v22, %v3505_v20  ;;  %v1920_v5 = vsel %vm1910_vm6, %v1667_v19, %v1919_v59  ;;  %v1927_v56 = vsel %vm1910_vm6, %v1691_v55, %v1926_v44  ;;  %v369_v51 = vmul.f32 %v3557_v22, %v3506_v46  ;;  %2725 = vmatpush.bf16.msrb.mxu2 %v3426_v37  ;;  %v4888_v44 = vld [vmem:[#allocation2 + $0x41] sm:$0xff] }
 0x144   : > { %v1921_v8 = vsel %vm1912_vm7, %v1670_v45, %v1920_v5  ;;  %v1928_v53 = vsel %vm1912_vm7, %v1694_v63, %v1927_v56  ;;  %v370_v13 = vmul.f32 %v3557_v22, %v3509_v18  ;;  %v371_v7 = vmul.f32 %v3557_v22, %v3510_v61  ;;  %v468_v45 = vld [vmem:[%s3656_s26 + $0xe0] sm:$0xff]  ;;  %v4895_v5 = vld [vmem:[#allocation2 + $0x72] sm:$0xff] }
 0x145   : > { %v1922_v54 = vsel %vm1914_vm8, %v1673_v9, %v1921_v8  ;;  %v1929_v33 = vsel %vm1914_vm8, %v1697_v48, %v1928_v53  ;;  %v404_v26 = vadd.f32 %v3558_v40, %v368_v62  ;;  %v405_v14 = vadd.f32 %v3558_v40, %v369_v51  ;;  %v469_v9 = vld [vmem:[%s3656_s26 + $0xe8] sm:$0xff]  ;;  %v3435_v8 = vld [vmem:[%s5166_s4 + $0x1e0] sm:$0xff]  ;;  %v4910_v53 = vld [vmem:[%s5166_s4 + $0x238] sm:$0xff] }
 0x146   : > { %1975 = vst.msk [vmem:[#allocation2 + $0x21] sm:$0xff] %vm1625_vm1, %v1922_v54  ;;  %v406_v19 = vadd.f32 %v3558_v40, %v370_v13  ;;  %v407_v23 = vadd.f32 %v3558_v40, %v371_v7  ;;  %v4848_v17 = vpack.c.bf16 %v4833_v35, %v4831_v24  ;;  %v4893_v62 = vld [vmem:[#allocation2 + $0x62] sm:$0xff]  ;;  %v3425_v7 = vld [vmem:[%s5166_s4 + $0x190] sm:$0xff]  ;;  %v4925_v40 = vpack.c.bf16 %v4836_v34, %v4852_v32 }
 0x147   : > { %1976 = vst.msk [vmem:[#allocation2 + $0x31] sm:$0xff] %vm1625_vm1, %v1929_v33  ;;  %v436_v25 = vmax.f32 %v404_v26, 0.0  ;;  %v437_v1 = vmax.f32 %v405_v14, 0.0  ;;  %v4914_v37 = vpack.c.bf16 %v4895_v5, %v4893_v62  ;;  %v3419_v13 = vld [vmem:[%s5166_s4 + $0x160] sm:$0xff]  ;;  %2837 = vmatpush.bf16.msrb.mxu3 %v3435_v8  ;;  %2947 = vmatpush.bf16.msra.mxu0 %v4910_v53 }
 0x148   : > { %v438_v42 = vmax.f32 %v406_v19, 0.0  ;;  %v439_v39 = vmax.f32 %v407_v23, 0.0  ;;  %v4937_v23 = vld [vmem:[%s5166_s4 + $0x230] sm:$0xff]  ;;  %2610 = vmatpush.bf16.msra.mxu1 %v3419_v13  ;;  %2726 = vmatpush.bf16.msrb.mxu2 %v3425_v7 }
 0x149   : > { %v500_v11 = vadd.f32 %v468_v45, %v436_v25  ;;  %v4840_v58 = vadd.f32 %v469_v9, %v437_v1  ;;  %v3434_v45 = vld [vmem:[%s5166_s4 + $0x1d8] sm:$0xff] }
 0x14a   : > { %v4842_v52 = vadd.f32 %v470_v16, %v438_v42  ;;  %v4850_v2 = vadd.f32 %v471_v15, %v439_v39  ;;  %v3418_v42 = vld [vmem:[%s5166_s4 + $0x158] sm:$0xff]  ;;  %v3424_v15 = vld [vmem:[%s5166_s4 + $0x188] sm:$0xff] }
 0x14b   : > { %v620_v30 = vrot.slane %v500_v11, 2  ;;  %v621_v4 = vrot.slane %v500_v11, 4  ;;  %v622_v55 = vrot.slane %v500_v11, 6  ;;  %v623_v6 = vrot.slane %v4840_v58, 2  ;;  %2838 = vmatpush.bf16.msrb.mxu3 %v3434_v45  ;;  %2948 = vmatpush.bf16.msra.mxu0 %v4937_v23 }
 0x14c   : > { %v624_v41 = vrot.slane %v4840_v58, 4  ;;  %v625_v27 = vrot.slane %v4840_v58, 6  ;;  %v626_v38 = vrot.slane %v4842_v52, 2  ;;  %v627_v47 = vrot.slane %v4842_v52, 4  ;;  %2611 = vmatpush.bf16.msra.mxu1 %v3418_v42  ;;  %2727 = vmatpush.bf16.msrb.mxu2 %v3424_v15 }
 0x14d   : > { %v4857_v63 = vld [vmem:[#allocation2 + $0x21] sm:$0xff]  ;;  %v628_v20 = vrot.slane %v4842_v52, 6  ;;  %v629_v28 = vrot.slane %v4850_v2, 2  ;;  %v630_v0 = vrot.slane %v4850_v2, 4  ;;  %v631_v61 = vrot.slane %v4850_v2, 6 }
 0x14e   : > { %v2306_v3 = vld [vmem:[#allocation2 + $0x20] sm:$0xff]  ;;  %v4866_v46 = vld [vmem:[#allocation2 + $0x31] sm:$0xff]  ;;  %v2426_v29 = vpack.c.bf16 %v4857_v63, %v4844_v60  ;;  %v1513_v56 = vsel %vm728_vm0, %v500_v11, -inf  ;;  %v1520_v21 = vsel %vm728_vm0, %v620_v30, -inf  ;;  %v1527_v10 = vsel %vm728_vm0, %v621_v4, -inf }
 0x14f   : > { %v4859_v36 = vld [vmem:[#allocation2 + $0x22] sm:$0xff]  ;;  %v2313_v48 = vpack.c.bf16 %v2306_v3, %v4781_v50  ;;  %v4869_v12 = vld [vmem:[#allocation2 + $0x32] sm:$0xff]  ;;  %v4879_v18 = vpack.c.bf16 %v4866_v46, %v4857_v63  ;;  %v1514_v54 = vrot.slane %v1513_v56, 4  ;;  %v1521_v33 = vrot.slane %v1520_v21, 4 }
 0x150   : > { %v4871_v57 = vld [vmem:[#allocation2 + $0x30] sm:$0xff]  ;;  %v4883_v59 = vpack.c.bf16 %v4869_v12, %v4859_v36  ;;  %v1528_v26 = vrot.slane %v1527_v10, 4  ;;  %v1534_v14 = vsel %vm728_vm0, %v622_v55, -inf  ;;  %v1541_v19 = vsel %vm728_vm0, %v4840_v58, -inf }
 0x151   : > { %v4886_v50 = vpack.c.bf16 %v4871_v57, %v2306_v3  ;;  %2389 = vmatmul.bf16.vlgmr.msra.gmra.mxu3 %v2313_v48  ;;  %v2314_v22 = vpack.c.bf16 %v4852_v32, %v4871_v57  ;;  %2099 = vmatmul.bf16.gmra.mxu0 %v4879_v18  ;;  %v1515_v25 = vmax.f32 %v1513_v56, %v1514_v54  ;;  %v1535_v16 = vrot.slane %v1534_v14, 4 }
 0x152   : > { %2281 = vmatmul.bf16.gmra.mxu2 %v4883_v59  ;;  %v1522_v9 = vmax.f32 %v1520_v21, %v1521_v33  ;;  %v1542_v1 = vrot.slane %v1541_v19, 4  ;;  %v1529_v39 = vmax.f32 %v1527_v10, %v1528_v26  ;;  %v1548_v11 = vsel %vm728_vm0, %v623_v6, -inf  ;;  %v3423_v6 = vld [vmem:[%s5166_s4 + $0x180] sm:$0xff] }
 0x153   : > { %2176 = vmatmul.bf16.gmra.mxu1 %v4886_v50  ;;  %v1555_v58 = vsel %vm728_vm0, %v624_v41, -inf  ;;  %v1562_v30 = vsel %vm728_vm0, %v625_v27, -inf  ;;  %v1516_v4 = vrot.slane %v1515_v25, 2  ;;  %v1536_v3 = vmax.f32 %v1534_v14, %v1535_v16  ;;  %2728 = vmatpush.bf16.msrb.mxu2 %v3423_v6 }
 0x154   : > { %v1523_v55 = vrot.slane %v1522_v9, 2  ;;  %v1543_v48 = vmax.f32 %v1541_v19, %v1542_v1  ;;  %v1530_v56 = vrot.slane %v1529_v39, 2  ;;  %v1549_v21 = vrot.slane %v1548_v11, 4 }
 0x155   : > { %v1556_v8 = vrot.slane %v1555_v58, 4  ;;  %v1563_v13 = vrot.slane %v1562_v30, 4  ;;  %v1517_v54 = vmax.f32 %v1515_v25, %v1516_v4  ;;  %v1537_v10 = vrot.slane %v1536_v3, 2 }
 0x156   : > { %v1524_v33 = vmax.f32 %v1522_v9, %v1523_v55  ;;  %v1544_v7 = vrot.slane %v1543_v48, 2  ;;  %v1531_v41 = vmax.f32 %v1529_v39, %v1530_v56  ;;  %v1550_v27 = vmax.f32 %v1548_v11, %v1549_v21 }
 0x157   : > { %v1557_v26 = vmax.f32 %v1555_v58, %v1556_v8  ;;  %v1569_v14 = vsel %vm728_vm0, %v4842_v52, -inf  ;;  %v1518_v19 = vrot.slane %v1517_v54, 1  ;;  %v1538_v16 = vmax.f32 %v1536_v3, %v1537_v10  ;;  %3534 = vmatpush.bf16.msra.mxu2 %v4910_v53 }
 0x158   : > { %v1525_v45 = vrot.slane %v1524_v33, 1  ;;  %v1545_v1 = vmax.f32 %v1543_v48, %v1544_v7  ;;  %v1532_v25 = vrot.slane %v1531_v41, 1  ;;  %v1551_v9 = vrot.slane %v1550_v27, 2 }
 0x159   : > { %v1558_v4 = vrot.slane %v1557_v26, 2  ;;  %v1564_v55 = vmax.f32 %v1562_v30, %v1563_v13  ;;  %v4954_v42 = vmax.f32 %v1517_v54, %v1518_v19  ;;  %v1539_v51 = vrot.slane %v1538_v16, 1  ;;  %v3433_v19 = vld [vmem:[%s5166_s4 + $0x1d0] sm:$0xff] }
 0x15a   : > { %v4956_v15 = vmax.f32 %v1524_v33, %v1525_v45  ;;  %v1546_v31 = vrot.slane %v1545_v1, 1  ;;  %v4958_v39 = vmax.f32 %v1531_v41, %v1532_v25  ;;  %v1552_v11 = vmax.f32 %v1550_v27, %v1551_v9  ;;  %v3444_v45 = vld [vmem:[%s5166_s4 + $0x228] sm:$0xff]  ;;  %2839 = vmatpush.bf16.msrb.mxu3 %v3433_v19 }
 0x15b   : > { %v1559_v58 = vmax.f32 %v1557_v26, %v1558_v4  ;;  %v1565_v56 = vrot.slane %v1564_v55, 2  ;;  %v4960_v21 = vmax.f32 %v1538_v16, %v1539_v51  ;;  %v1570_v48 = vrot.slane %v1569_v14, 4  ;;  %3535 = vmatpush.bf16.msra.mxu2 %v4937_v23  ;;  %2949 = vmatpush.bf16.msra.mxu0 %v3444_v45 }
 0x15c   : > { %v4962_v3 = vmax.f32 %v1545_v1, %v1546_v31  ;;  %v1576_v30 = vsel %vm728_vm0, %v626_v38, -inf  ;;  %v1553_v8 = vrot.slane %v1552_v11, 1  ;;  %v1583_v7 = vsel %vm728_vm0, %v627_v47, -inf }
 0x15d   : > { %v1560_v13 = vrot.slane %v1559_v58, 1  ;;  %v1566_v54 = vmax.f32 %v1564_v55, %v1565_v56  ;;  %v1577_v33 = vrot.slane %v1576_v30, 4  ;;  %v1571_v10 = vmax.f32 %v1569_v14, %v1570_v48 }
 0x15e   : > { %v1590_v31 = vsel %vm728_vm0, %v628_v20, -inf  ;;  %v1597_v51 = vsel %vm728_vm0, %v4850_v2, -inf  ;;  %v4979_v38 = vmax.f32 %v1552_v11, %v1553_v8  ;;  %v1584_v47 = vrot.slane %v1583_v7, 4  ;;  %v3432_v11 = vld [vmem:[%s5166_s4 + $0x1c8] sm:$0xff] }
 0x15f   : > { %v4981_v53 = vmax.f32 %v1559_v58, %v1560_v13  ;;  %v1567_v6 = vrot.slane %v1566_v54, 1  ;;  %v1578_v41 = vmax.f32 %v1576_v30, %v1577_v33  ;;  %v1572_v52 = vrot.slane %v1571_v10, 2  ;;  %v3443_v58 = vld [vmem:[%s5166_s4 + $0x220] sm:$0xff]  ;;  %3536 = vmatpush.bf16.msra.mxu2 %v3444_v45  ;;  %2840 = vmatpush.bf16.msrb.mxu3 %v3432_v11 }
 0x160   : > { %v1591_v20 = vrot.slane %v1590_v31, 4  ;;  %v1598_v27 = vrot.slane %v1597_v51, 4  ;;  %v1611_v60 = vsel %vm728_vm0, %v630_v0, -inf  ;;  %v1618_v23 = vsel %vm728_vm0, %v631_v61, -inf  ;;  %v3416_v61 = vld [vmem:[%s5166_s4 + $0x148] sm:$0xff]  ;;  %2950 = vmatpush.bf16.msra.mxu0 %v3443_v58 }
 0x161   : > { %2394 = vmatmul.bf16.gmra.mxu3 %v2314_v22  ;;  %2502 = vmatmul.bf16.vlgmr.msrb.gmra.mxu0 %v2426_v29  ;;  %v4988_v32 = vmax.f32 %v1566_v54, %v1567_v6  ;;  %v1579_v57 = vrot.slane %v1578_v41, 2  ;;  %v1604_v22 = vsel %vm728_vm0, %v629_v28, -inf  ;;  %v1573_v63 = vmax.f32 %v1571_v10, %v1572_v52  ;;  %v3417_v28 = vld [vmem:[%s5166_s4 + $0x150] sm:$0xff] }
 0x162   : > { %2286 = vmatmul.bf16.gmra.mxu2 %v4848_v17  ;;  %v1585_v29 = vmax.f32 %v1583_v7, %v1584_v47  ;;  %v1592_v26 = vmax.f32 %v1590_v31, %v1591_v20  ;;  %v1599_v14 = vmax.f32 %v1597_v51, %v1598_v27  ;;  %v1605_v0 = vrot.slane %v1604_v22, 4  ;;  %2612 = vmatpush.bf16.msra.mxu1 %v3417_v28  ;;  %v3431_v20 = vld [vmem:[%s5166_s4 + $0x1c0] sm:$0xff] }
 0x163   : > { %2181 = vmatmul.bf16.gmra.mxu1 %v4925_v40  ;;  %v1580_v16 = vmax.f32 %v1578_v41, %v1579_v57  ;;  %v1612_v1 = vrot.slane %v1611_v60, 4  ;;  %v1574_v25 = vrot.slane %v1573_v63, 1  ;;  %v1619_v2 = vrot.slane %v1618_v23, 4  ;;  %3537 = vmatpush.bf16.msra.mxu2 %v3443_v58 }
 0x164   : > { %v1586_v9 = vrot.slane %v1585_v29, 2  ;;  %v1593_v4 = vrot.slane %v1592_v26, 2  ;;  %v1600_v55 = vrot.slane %v1599_v14, 2  ;;  %v1606_v48 = vmax.f32 %v1604_v22, %v1605_v0  ;;  %2841 = vmatpush.bf16.msrb.mxu3 %v3431_v20 }
 0x165   : > { %v1581_v56 = vrot.slane %v1580_v16, 1  ;;  %v1613_v30 = vmax.f32 %v1611_v60, %v1612_v1  ;;  %v1575_v8 = vmax.f32 %v1573_v63, %v1574_v25  ;;  %v1620_v51 = vmax.f32 %v1618_v23, %v1619_v2 }
 0x166   : > { %v1587_v13 = vmax.f32 %v1585_v29, %v1586_v9  ;;  %v1594_v54 = vmax.f32 %v1592_v26, %v1593_v4  ;;  %v1601_v33 = vmax.f32 %v1599_v14, %v1600_v55  ;;  %v1607_v7 = vrot.slane %v1606_v48, 2  ;;  %2613 = vmatpush.bf16.msra.mxu1 %v3416_v61 }
 0x167   : > { %v1582_v10 = vmax.f32 %v1580_v16, %v1581_v56  ;;  %v1614_v31 = vrot.slane %v1613_v30, 2  ;;  %v1794_v47 = vsel %vm1625_vm1, %v4954_v42, -inf  ;;  %v1621_v22 = vrot.slane %v1620_v51, 2 }
 0x168   : > { %v1588_v6 = vrot.slane %v1587_v13, 1  ;;  %v1595_v41 = vrot.slane %v1594_v54, 1  ;;  %v1602_v52 = vrot.slane %v1601_v33, 1  ;;  %v1608_v27 = vmax.f32 %v1606_v48, %v1607_v7 }
 0x169   : > { %v1615_v57 = vmax.f32 %v1613_v30, %v1614_v31  ;;  %v1795_v60 = vsel %vm1625_vm1, %v1575_v8, -inf  ;;  %v1622_v42 = vmax.f32 %v1620_v51, %v1621_v22  ;;  %v1797_v28 = vsel %vm1625_vm1, %v4956_v15, -inf  ;;  %v3415_v51 = vld [vmem:[%s5166_s4 + $0x140] sm:$0xff] }
 0x16a   : > { %v1589_v63 = vmax.f32 %v1587_v13, %v1588_v6  ;;  %v1596_v29 = vmax.f32 %v1594_v54, %v1595_v41  ;;  %v1603_v26 = vmax.f32 %v1601_v33, %v1602_v52  ;;  %v1796_v14 = vmax.f32 %v1794_v47, %v1795_v60  ;;  %v3441_v41 = vld [vmem:[%s5166_s4 + $0x210] sm:$0xff]  ;;  %2614 = vmatpush.bf16.msra.mxu1 %v3415_v51  ;;  %v2423_v22 = vld [vmem:[#allocation2 + $0x61] sm:$0xff] }
 0x16b   : > { %v1609_v19 = vrot.slane %v1608_v27, 1  ;;  %v1616_v45 = vrot.slane %v1615_v57, 1  ;;  %v1798_v16 = vsel %vm1625_vm1, %v1582_v10, -inf  ;;  %v1800_v0 = vsel %vm1625_vm1, %v4958_v39, -inf  ;;  %v2311_v10 = vld [vmem:[#allocation2 + $0x70] sm:$0xff]  ;;  %v3439_v60 = vld [vmem:[%s5166_s4 + $0x200] sm:$0xff] }
 0x16c   : > { %v1801_v1 = vsel %vm1625_vm1, %v1589_v63, -inf  ;;  %v1803_v23 = vsel %vm1625_vm1, %v4960_v21, -inf  ;;  %v1623_v4 = vrot.slane %v1622_v42, 1  ;;  %v1799_v55 = vmax.f32 %v1797_v28, %v1798_v16 }
 0x16d   : > { %v1610_v25 = vmax.f32 %v1608_v27, %v1609_v19  ;;  %v1617_v9 = vmax.f32 %v1615_v57, %v1616_v45  ;;  %v1802_v11 = vmax.f32 %v1800_v0, %v1801_v1  ;;  %v1804_v58 = vsel %vm1625_vm1, %v1596_v29, -inf  ;;  %v3440_v27 = vld [vmem:[%s5166_s4 + $0x208] sm:$0xff]  ;;  %v2422_v57 = vld [vmem:[#allocation2 + $0x51] sm:$0xff]  ;;  %v5082_v0 = vpop.f32.mrf.mxu1 }
 0x16e   : > { %v1806_v15 = vsel %vm1625_vm1, %v4962_v3, -inf  ;;  %v1807_v56 = vsel %vm1625_vm1, %v1603_v26, -inf  ;;  %v5169_v39 = vpack.c.bf16 %v4838_v43, %v4836_v34  ;;  %v1624_v48 = vmax.f32 %v1622_v42, %v1623_v4  ;;  %v2531_v29 = vld [vmem:[#allocation2 + $0x12] sm:$0xff] }
 0x16f   : > { %v1805_v30 = vmax.f32 %v1803_v23, %v1804_v58  ;;  %v1808_v21 = vmax.f32 %v1806_v15, %v1807_v56  ;;  %v1809_v2 = vsel %vm1625_vm1, %v4979_v38, -inf  ;;  %v5170_v61 = vpack.c.bf16 %v4888_v44, %v4866_v46  ;;  %v3442_v46 = vld [vmem:[%s5166_s4 + $0x218] sm:$0xff] }
 0x170   : > { %v1810_v3 = vsel %vm1625_vm1, %v1610_v25, -inf  ;;  %v1812_v8 = vsel %vm1625_vm1, %v4981_v53, -inf  ;;  %v1813_v34 = vsel %vm1625_vm1, %v1617_v9, -inf  ;;  %v1815_v13 = vsel %vm1625_vm1, %v4988_v32, -inf  ;;  %2951 = vmatpush.bf16.msra.mxu0 %v3442_v46  ;;  %3538 = vmatpush.bf16.msra.mxu2 %v3442_v46  ;;  %v2424_v45 = vld [vmem:[#allocation2 + $0x71] sm:$0xff] }
 0x171   : > { %2399 = vmatmul.bf16.gmra.mxu3 %v5169_v39  ;;  %2507 = vmatmul.bf16.gmra.mxu0 %v5170_v61  ;;  %v1811_v54 = vmax.f32 %v1809_v2, %v1810_v3  ;;  %v1816_v33 = vsel %vm1625_vm1, %v1624_v48, -inf  ;;  %v1958_v38 = vsel %vm1902_vm2, %v1799_v55, %v1796_v14  ;;  %v1814_v7 = vmax.f32 %v1812_v8, %v1813_v34  ;;  %v2878_v25 = vld [vmem:[#allocation2 + $0x92] sm:$0xff] }
 0x172   : > { %2291 = vmatmul.bf16.gmra.mxu2 %v4914_v37  ;;  %v1959_v31 = vsel %vm1904_vm3, %v1802_v11, %v1958_v38  ;;  %v1993_v53 = vpack.c.bf16 %v2311_v10, %v4838_v43  ;;  %v1817_v32 = vmax.f32 %v1815_v13, %v1816_v33  ;;  %v2428_v63 = vpack.c.bf16 %v2423_v22, %v2422_v57  ;;  %v2765_v9 = vld [vmem:[#allocation2 + $0x91] sm:$0xff] }
 0x173   : > { %v1960_v6 = vsel %vm1906_vm4, %v1805_v30, %v1959_v31  ;;  %v2539_v19 = vpack.c.bf16 %v4859_v36, %v2531_v29  ;;  %v2540_v16 = vpack.c.bf16 %v4831_v24, %v4869_v12  ;;  %v2541_v36 = vpack.c.bf16 %v4893_v62, %v4833_v35  ;;  %v2277_v62 = vpop.f32.mrf.mxu2 }
 0x174   : > { %v1961_v52 = vsel %vm1908_vm5, %v1808_v21, %v1960_v6  ;;  %2186 = vmatmul.bf16.gmra.mxu1 %v1993_v53  ;;  %2952 = vmatpush.bf16.msra.mxu0 %v3441_v41  ;;  %v2768_v12 = vpack.c.bf16 %v2424_v45, %v2423_v22 }
 0x175   : > { %v1962_v47 = vsel %vm1910_vm6, %v1811_v54, %v1961_v52  ;;  %3539 = vmatpush.bf16.msra.mxu2 %v3441_v41  ;;  %v5085_v1 = vpop.f32.mrf.mxu1 }
 0x176   : > { %v1963_v43 = vsel %vm1912_vm7, %v1814_v7, %v1962_v47 }
 0x177   : > { %v1964_v20 = vsel %vm1914_vm8, %v1817_v32, %v1963_v43 }
 0x178   : > { %1981 = vst.msk [vmem:[#allocation2 + $0x81] sm:$0xff] %vm1625_vm1, %v1964_v20  ;;  %2953 = vmatpush.bf16.msra.mxu0 %v3440_v27 }
 0x179   : > { %3540 = vmatpush.bf16.msra.mxu2 %v3440_v27 }
 0x17c   : > { %2954 = vmatpush.bf16.msra.mxu0 %v3439_v60 }
 0x17d   : > { %3541 = vmatpush.bf16.msra.mxu2 %v3439_v60 }
 0x17f   : > { %v2312_v26 = vld [vmem:[#allocation2 + $0x80] sm:$0xff] }
 0x180   : > { %v2316_v14 = vpack.c.bf16 %v2312_v26, %v2311_v10  ;;  %v2425_v42 = vld [vmem:[#allocation2 + $0x81] sm:$0xff]  ;;  %v2656_v24 = vpack.c.bf16 %v4786_v49, %v2312_v26 }
 0x181   : > { %2512 = vmatmul.bf16.gmra.mxu0 %v2428_v63  ;;  %v2429_v28 = vpack.c.bf16 %v2425_v42, %v2424_v45  ;;  %v2769_v55 = vpack.c.bf16 %v2765_v9, %v2425_v42 }
 0x182   : > { %2729 = vmatmul.bf16.vlgmr.msrb.gmra.mxu2 %v4886_v50  ;;  %2404 = vmatmul.bf16.gmra.mxu3 %v2316_v14  ;;  %v2767_v50 = vpack.c.bf16 %v2422_v57, %v4888_v44 }
 0x184   : > { %2615 = vmatmul.bf16.vlgmr.msra.gmra.mxu1 %v2539_v19 }
 0x191   : > { %2517 = vmatmul.bf16.gmra.mxu0 %v2429_v28 }
 0x192   : > { %2734 = vmatmul.bf16.gmra.mxu2 %v4925_v40  ;;  %2842 = vmatmul.bf16.vlgmr.msrb.gmra.mxu3 %v4879_v18  ;;  %v5090_v40 = vpop.f32.mrf.mxu1  ;;  %v2877_v18 = vld [vmem:[#allocation2 + $0x82] sm:$0xff] }
 0x193   : > { %v2542_v44 = vpack.c.bf16 %v2877_v18, %v4895_v5  ;;  %v2882_v35 = vpack.c.bf16 %v2878_v25, %v2877_v18  ;;  %v2279_v5 = vpop.f32.mrf.mxu2 }
 0x194   : > { %2620 = vmatmul.bf16.gmra.mxu1 %v2540_v16 }
 0x19a   : > { %v2112_v23 = vpop.f32.mrf.mxu1 }
 0x1a1   : > { %2955 = vmatmul.bf16.vlgmr.msra.gmra.mxu0 %v4883_v59  ;;  %v2095_v59 = vpop.f32.mrf.mxu0 }
 0x1a2   : > { %2739 = vmatmul.bf16.gmra.mxu2 %v1993_v53  ;;  %2847 = vmatmul.bf16.gmra.mxu3 %v2767_v50 }
 0x1a4   : > { %2625 = vmatmul.bf16.gmra.mxu1 %v2541_v36 }
 0x1b1   : > { %2960 = vmatmul.bf16.gmra.mxu0 %v4848_v17  ;;  %v2097_v17 = vpop.f32.mrf.mxu0 }
 0x1b2   : > { %2744 = vmatmul.bf16.gmra.mxu2 %v2656_v24  ;;  %2852 = vmatmul.bf16.gmra.mxu3 %v2768_v12 }
 0x1b4   : > { %2630 = vmatmul.bf16.gmra.mxu1 %v2542_v44 }
 0x1bf   : > { %v2172_v4 = vpop.f32.mrf.mxu1 }
 0x1c0   : > { %v2173_v11 = vadd.f32 %v2172_v4, %v2095_v59 }
 0x1c1   : > { %2965 = vmatmul.bf16.gmra.mxu0 %v4914_v37 }
 0x1c2   : > { %2970 = vmatmul.bf16.vlgmr.msra.gmra.mxu2 %v2882_v35  ;;  %v2297_v49 = vadd.f32 %v2277_v62, %v2173_v11  ;;  %2857 = vmatmul.bf16.gmra.mxu3 %v2769_v55  ;;  %v5122_v11 = vld [vmem:[%s5167_s5] ss:$0 sm:$0xff] }
 0x1c7   : > { %v2174_v58 = vpop.f32.mrf.mxu1 }
 0x1c8   : > { %v2175_v15 = vadd.f32 %v2174_v58, %v2097_v17 }
 0x1ca   : > { %v2298_v56 = vadd.f32 %v2279_v5, %v2175_v15 }
 0x1ce   : > { %v2100_v39 = vpop.f32.mrf.mxu0 }
 0x1d0   : > { %v2177_v48 = vpop.f32.mrf.mxu1 }
 0x1d1   : > { %v2178_v30 = vadd.f32 %v2177_v48, %v2100_v39 }
 0x1d4   : > { %v2390_v21 = vpop.f32.mrf.mxu3 }
 0x1d5   : > { %v2282_v2 = vpop.f32.mrf.mxu2  ;;  %v2410_v42 = vadd.f32 %v2390_v21, %v2297_v49 }
 0x1d6   : > { %v2299_v61 = vadd.f32 %v2282_v2, %v2178_v30  ;;  %v2102_v3 = vpop.f32.mrf.mxu0 }
 0x1d8   : > { %v2179_v8 = vpop.f32.mrf.mxu1 }
 0x1d9   : > { %v2180_v34 = vadd.f32 %v2179_v8, %v2102_v3 }
 0x1dc   : > { %v2392_v13 = vpop.f32.mrf.mxu3 }
 0x1dd   : > { %v2284_v54 = vpop.f32.mrf.mxu2  ;;  %v2411_v18 = vadd.f32 %v2392_v13, %v2298_v56 }
 0x1de   : > { %v2300_v37 = vadd.f32 %v2284_v54, %v2180_v34  ;;  %v2503_v33 = vpop.f32.mrf.mxu0 }
 0x1df   : > { %v2523_v50 = vadd.f32 %v2503_v33, %v2410_v42 }
 0x1e0   : > { %v2182_v38 = vpop.f32.mrf.mxu1 }
 0x1e1   : > { %v2183_v2 = vadd.f32 %v2182_v38, %v5082_v0 }
 0x1e4   : > { %v2395_v10 = vpop.f32.mrf.mxu3 }
 0x1e5   : > { %v2287_v46 = vpop.f32.mrf.mxu2  ;;  %v2412_v55 = vadd.f32 %v2395_v10, %v2299_v61 }
 0x1e6   : > { %v2505_v7 = vpop.f32.mrf.mxu0  ;;  %v2301_v33 = vadd.f32 %v2287_v46, %v2183_v2 }
 0x1e7   : > { %v2524_v25 = vadd.f32 %v2505_v7, %v2411_v18 }
 0x1e8   : > { %v5096_v31 = vpop.f32.mrf.mxu1 }
 0x1ec   : > { %v2397_v53 = vpop.f32.mrf.mxu3 }
 0x1ed   : > { %v5098_v51 = vpop.f32.mrf.mxu2  ;;  %v2413_v21 = vadd.f32 %v2397_v53, %v2300_v37  ;;  %v2185_v37 = vadd.f32 %v5096_v31, %v5085_v1 }
 0x1ee   : > { %v2508_v32 = vpop.f32.mrf.mxu0 }
 0x1ef   : > { %v2525_v5 = vadd.f32 %v2508_v32, %v2412_v55 }
 0x1f1   : > { %v5100_v6 = vpop.f32.mrf.mxu1 }
 0x1f2   : > { %v2188_v46 = vadd.f32 %v5100_v6, %v5090_v40 }
 0x1f4   : > { %v2400_v41 = vpop.f32.mrf.mxu3 }
 0x1f5   : > { %v5102_v52 = vpop.f32.mrf.mxu2 }
 0x1f6   : > { %v2510_v47 = vpop.f32.mrf.mxu0  ;;  %v2303_v31 = vadd.f32 %v5102_v52, %v2188_v46 }
 0x1f7   : > { %v2526_v54 = vadd.f32 %v2510_v47, %v2413_v21  ;;  %v2302_v47 = vadd.f32 %v5098_v51, %v2185_v37 }
 0x1f9   : > { %v2189_v43 = vpop.f32.mrf.mxu1 }
 0x1fa   : > { %v2190_v20 = vadd.f32 %v2189_v43, %v2112_v23 }
 0x1fc   : > { %v5104_v27 = vpop.f32.mrf.mxu3 }
 0x1fd   : > { %v2294_v57 = vpop.f32.mrf.mxu2  ;;  %v2415_v1 = vadd.f32 %v5104_v27, %v2302_v47 }
 0x1fe   : > { %v5106_v22 = vadd.f32 %v2294_v57, %v2190_v20  ;;  %v2513_v60 = vpop.f32.mrf.mxu0  ;;  %v2414_v20 = vadd.f32 %v2400_v41, %v2301_v33 }
 0x201   : > { %v2616_v63 = vpop.f32.mrf.mxu1 }
 0x202   : > { %v2636_v24 = vadd.f32 %v2616_v63, %v2523_v50 }
 0x205   : > { %v2730_v29 = vpop.f32.mrf.mxu2  ;;  %v5108_v26 = vpop.f32.mrf.mxu3 }
 0x206   : > { %v5110_v14 = vpop.f32.mrf.mxu0  ;;  %v2750_v59 = vadd.f32 %v2730_v29, %v2636_v24  ;;  %v2527_v29 = vadd.f32 %v2513_v60, %v2414_v20  ;;  %v2416_v40 = vadd.f32 %v5108_v26, %v2303_v31 }
 0x207   : > { %v2528_v51 = vadd.f32 %v5110_v14, %v2415_v1 }
 0x209   : > { %v2618_v19 = vpop.f32.mrf.mxu1 }
 0x20a   : > { %v2637_v35 = vadd.f32 %v2618_v19, %v2524_v25 }
 0x20d   : > { %v2732_v45 = vpop.f32.mrf.mxu2  ;;  %v5112_v28 = vpop.f32.mrf.mxu3 }
 0x20e   : > { %v5114_v16 = vpop.f32.mrf.mxu0  ;;  %v2751_v15 = vadd.f32 %v2732_v45, %v2637_v35  ;;  %v2417_v14 = vadd.f32 %v5112_v28, %v5106_v22 }
 0x20f   : > { %v2529_v27 = vadd.f32 %v5114_v16, %v2416_v40 }
 0x211   : > { %v2621_v36 = vpop.f32.mrf.mxu1 }
 0x212   : > { %v2638_v48 = vadd.f32 %v2621_v36, %v2525_v5 }
 0x215   : > { %v2735_v12 = vpop.f32.mrf.mxu2  ;;  %v2843_v44 = vpop.f32.mrf.mxu3 }
 0x216   : > { %v5116_v23 = vpop.f32.mrf.mxu0  ;;  %v2863_v9 = vadd.f32 %v2843_v44, %v2750_v59  ;;  %v2752_v13 = vadd.f32 %v2735_v12, %v2638_v48 }
 0x219   : > { %v2623_v62 = vpop.f32.mrf.mxu1 }
 0x21a   : > { %v2639_v32 = vadd.f32 %v2623_v62, %v2526_v54 }
 0x21d   : > { %v2737_v4 = vpop.f32.mrf.mxu2  ;;  %v2845_v49 = vpop.f32.mrf.mxu3 }
 0x21e   : > { %v2956_v17 = vpop.f32.mrf.mxu0  ;;  %v2864_v39 = vadd.f32 %v2845_v49, %v2751_v15  ;;  %v2753_v57 = vadd.f32 %v2737_v4, %v2639_v32 }
 0x21f   : > { %v2976_v58 = vadd.f32 %v2956_v17, %v2863_v9  ;;  %v2530_v17 = vadd.f32 %v5116_v23, %v2417_v14 }
 0x221   : > { %v2988_v56 = vadd.f32 %v5122_v11, %v2976_v58  ;;  %v2626_v61 = vpop.f32.mrf.mxu1 }
 0x222   : > { %v2640_v41 = vadd.f32 %v2626_v61, %v2527_v29 }
 0x223   : > { %2996 = vst [vmem:[%s5127_s23] sm:$0xff] %v2988_v56 }
 0x225   : > { %v2740_v30 = vpop.f32.mrf.mxu2  ;;  %v2848_v3 = vpop.f32.mrf.mxu3 }
 0x226   : > { %v2958_v8 = vpop.f32.mrf.mxu0  ;;  %v2865_v7 = vadd.f32 %v2848_v3, %v2752_v13  ;;  %v2754_v60 = vadd.f32 %v2740_v30, %v2640_v41 }
 0x227   : > { %v2977_v34 = vadd.f32 %v2958_v8, %v2864_v39 }
 0x229   : > { %v2989_v10 = vadd.f32 %v5122_v11, %v2977_v34  ;;  %v2628_v63 = vpop.f32.mrf.mxu1 }
 0x22a   : > { %v2641_v44 = vadd.f32 %v2628_v63, %v2528_v51 }
 0x22b   : > { %2997 = vst [vmem:[%s5127_s23 + $0x8] sm:$0xff] %v2989_v10 }
 0x22d   : > { %v2742_v43 = vpop.f32.mrf.mxu2  ;;  %v2850_v53 = vpop.f32.mrf.mxu3 }
 0x22e   : > { %v2961_v0 = vpop.f32.mrf.mxu0  ;;  %v2866_v45 = vadd.f32 %v2850_v53, %v2753_v57  ;;  %v2755_v35 = vadd.f32 %v2742_v43, %v2641_v44 }
 0x22f   : > { %v2978_v38 = vadd.f32 %v2961_v0, %v2865_v7 }
 0x231   : > { %v2990_v19 = vadd.f32 %v5122_v11, %v2978_v38  ;;  %v2631_v12 = vpop.f32.mrf.mxu1 }
 0x232   : > { %v2642_v62 = vadd.f32 %v2631_v12, %v2529_v27 }
 0x233   : > { %2998 = vst [vmem:[%s5127_s23 + $0x10] sm:$0xff] %v2990_v19 }
 0x235   : > { %v2745_v42 = vpop.f32.mrf.mxu2  ;;  %v2853_v50 = vpop.f32.mrf.mxu3 }
 0x236   : > { %v2963_v36 = vpop.f32.mrf.mxu0  ;;  %v2867_v18 = vadd.f32 %v2853_v50, %v2754_v60  ;;  %v2756_v55 = vadd.f32 %v2745_v42, %v2642_v62 }
 0x237   : > { %v2979_v24 = vadd.f32 %v2963_v36, %v2866_v45 }
 0x239   : > { %v2991_v6 = vadd.f32 %v5122_v11, %v2979_v24  ;;  %v2633_v49 = vpop.f32.mrf.mxu1 }
 0x23a   : > { %v2643_v39 = vadd.f32 %v2633_v49, %v2530_v17 }
 0x23b   : > { %2999 = vst [vmem:[%s5127_s23 + $0x18] sm:$0xff] %v2991_v6 }
 0x23d   : > { %v2747_v59 = vpop.f32.mrf.mxu2  ;;  %v2855_v25 = vpop.f32.mrf.mxu3 }
 0x23e   : > { %v2966_v52 = vpop.f32.mrf.mxu0  ;;  %v2868_v4 = vadd.f32 %v2855_v25, %v2755_v35  ;;  %v2757_v28 = vadd.f32 %v2747_v59, %v2643_v39 }
 0x23f   : > { %v2980_v9 = vadd.f32 %v2966_v52, %v2867_v18 }
 0x241   : > { %v2992_v26 = vadd.f32 %v5122_v11, %v2980_v9 }
 0x243   : > { %3000 = vst [vmem:[%s5127_s23 + $0x20] sm:$0xff] %v2992_v26 }
 0x245   : > { %v2971_v58 = vpop.f32.mrf.mxu2  ;;  %v2858_v16 = vpop.f32.mrf.mxu3 }
 0x246   : > { %v2968_v15 = vpop.f32.mrf.mxu0  ;;  %v2869_v56 = vadd.f32 %v2858_v16, %v2756_v55 }
 0x247   : > { %v2981_v5 = vadd.f32 %v2968_v15, %v2868_v4 }
 0x248   : > { %v2982_v30 = vadd.f32 %v2971_v58, %v2869_v56 }
 0x249   : > { %v2993_v48 = vadd.f32 %v5122_v11, %v2981_v5 }
 0x24a   : > { %v2994_v22 = vadd.f32 %v5122_v11, %v2982_v30 }
 0x24b   : > { %3001 = vst [vmem:[%s5127_s23 + $0x28] sm:$0xff] %v2993_v48 }
 0x24c   : > { %3002 = vst [vmem:[%s5127_s23 + $0x30] sm:$0xff] %v2994_v22 }
 0x24d   : > { %v2860_v21 = vpop.f32.mrf.mxu3  ;;  %v2973_v61 = vpop.f32.mrf.mxu2 }
 0x24e   : > { %v2870_v2 = vadd.f32 %v2860_v21, %v2757_v28 }
 0x250   : > { %v2983_v3 = vadd.f32 %v2973_v61, %v2870_v2 }
 0x252   : > { %v2995_v23 = vadd.f32 %v5122_v11, %v2983_v3 }
 0x254   : > { %3003 = vst [vmem:[%s5127_s23 + $0x38] sm:$0xff] %v2995_v23 }
 0x255 PF: > { %s16_s21 = sadd.s32 1, %s3565_s21  }
 0x256   : > { %p13_p4 = scmp.ge.s32.totalorder %s16_s21, 4  }
 0x258   :  { %15 = sbr.rel (!%p13_p4) target bundleno = 1 (0x1), region = 79 }

// kernel: basic_block_forward.3
= control target key start
LH: loop header
LB: loop body
LE: loop exit
PB: predicated region body
PF: predicated region fallthrough
CT: control target
= control target key end

     0   :  { %s3142_s12 = smov 0   ;;  %s4190_s0 = inlined_call_operand.vmem [shape: f32[2,16,16,4], index: 0, kind: input, shape index: {}]   ;;  %s4191_s1 = inlined_call_operand.vmem [shape: bf16[1152,128], index: 1, kind: input, shape index: {}]   ;;  %s4192_s2 = inlined_call_operand.vmem [shape: bf16[2,256,4], index: 2, kind: output, shape index: {0}]   ;;  %s4193_s3 = inlined_call_operand.vmem [shape: f32[2,2,4], index: 3, kind: output, shape index: {1}]  }
   0x1 LB: > { %s2700_s13 = sadd.s32 4294967295, %s3117_s12   ;;  %p2704_p0 = scmp.ge.s32.totalorder %s3117_s12, 1  ;;  %s3117_s12 = sphi %s3142_s12, %s14_s12  }
   0x2   : > { %p140_p1 = scmp.lt.s32.totalorder %s3117_s12, 3 }
   0x4   : > { %p141_p2 = pnand %p2704_p0, %p140_p1 }
   0x6   : > { %144 = sbr.rel (%p141_p2) target bundleno = 883 (0x373), region = 28 }
   0xb   : > { %v3017_v0 = vld [vmem:[%s4191_s1 + $0x78] sm:$0xff]  ;;  %p168_p3 = scmp.lt.s32.totalorder %s2700_s13, 1  ;;  %v3119_v1 = vmov 0.0   ;;  %v3016_v2 = vld [vmem:[%s4191_s1 + $0x70] sm:$0xff]  ;;  %vm269_vm0 = vcmask 31744   ;;  %v3015_v3 = vld [vmem:[%s4191_s1 + $0x68] sm:$0xff] }
   0xc   : > { %226 = vst [vmem:[#allocation2 + $0x60] sm:$0xff] %v3119_v1  ;;  %3074 = vmatpush.bf16.msra.mxu1 %v3017_v0  ;;  %3075 = vmatpush.bf16.msra.mxu2 %v3017_v0  ;;  %v3014_v6 = vld [vmem:[%s4191_s1 + $0x60] sm:$0xff]  ;;  %v3013_v7 = vld [vmem:[%s4191_s1 + $0x58] sm:$0xff]  ;;  %v3012_v8 = vld [vmem:[%s4191_s1 + $0x50] sm:$0xff]  ;;  %vm2368_vm1 = vcmask 27648   ;;  %vm2510_vm2 = vcmask 24576  }
   0xd   : > { %s4221_s13 = smov (!%p168_p3, %s2700_s13), 1  ;;  %227 = vst [vmem:[#allocation2 + $0x68] sm:$0xff] %v3119_v1  ;;  %3076 = vmatpush.bf16.msra.mxu3 %v3017_v0  ;;  %478 = vmatpush.bf16.msra.mxu0 %v3017_v0  ;;  %v3011_v9 = vld [vmem:[%s4191_s1 + $0x48] sm:$0xff]  ;;  %v3010_v10 = vld [vmem:[%s4191_s1 + $0x40] sm:$0xff]  ;;  %v3025_v16 = vld [vmem:[%s4191_s1 + $0xb8] sm:$0xff] }
   0xe   : > { %228 = vst [vmem:[#allocation2 + $0x70] sm:$0x3] %v3119_v1  ;;  %s3000_s18 = sshll.u32 %s4221_s13, 8  ;;  %v3033_v18 = vld [vmem:[%s4191_s1 + $0xf8] sm:$0xff]  ;;  %v3024_v21 = vld [vmem:[%s4191_s1 + $0xb0] sm:$0xff]  ;;  %v3023_v25 = vld [vmem:[%s4191_s1 + $0xa8] sm:$0xff] }
   0xf   : > { %214 = vst [vmem:[#allocation2] sm:$0xff] %v3119_v1  ;;  %s3166_s21 = scalar_lea.vmem %s4190_s0, %s3000_s18  ;;  %v3009_v19 = vld [vmem:[%s4191_s1 + $0x38] sm:$0xff]  ;;  %v3032_v22 = vld [vmem:[%s4191_s1 + $0xf0] sm:$0xff]  ;;  %v3031_v26 = vld [vmem:[%s4191_s1 + $0xe8] sm:$0xff]  ;;  %s2709_s20 = sshll.u32 %s4221_s13, 1 }
  0x10   : > { %215 = vst [vmem:[#allocation2 + $0x8] sm:$0xff] %v3119_v1  ;;  %3077 = vmatpush.bf16.msra.mxu1 %v3016_v2  ;;  %3078 = vmatpush.bf16.msra.mxu2 %v3016_v2  ;;  %v188_v4 = vld [vmem:[%s3166_s21 + $0x30] sm:$0xff]  ;;  %v189_v5 = vld [vmem:[%s3166_s21 + $0x38] sm:$0xff]  ;;  %v3007_v29 = vld [vmem:[%s4191_s1 + $0x28] sm:$0xff]  ;;  %s4063_s24 = scalar_lea.vmem %s4193_s3, %s2709_s20 }
  0x11   : > { %216 = vst [vmem:[#allocation2 + $0x10] sm:$0x3] %v3119_v1  ;;  %3079 = vmatpush.bf16.msra.mxu3 %v3016_v2  ;;  %479 = vmatpush.bf16.msra.mxu0 %v3016_v2  ;;  %v3041_v20 = vld [vmem:[%s4191_s1 + $0x138] sm:$0xff]  ;;  %v3008_v23 = vld [vmem:[%s4191_s1 + $0x30] sm:$0xff]  ;;  %v3022_v31 = vld [vmem:[%s4191_s1 + $0xa0] sm:$0xff] }
  0x12   : > { %276 = vst.msk [vmem:[#allocation2 + $0x61] sm:$0xff] %vm269_vm0, %v188_v4  ;;  %v196_v24 = vld [vmem:[%s3166_s21 + $0x70] sm:$0xff]  ;;  %v197_v28 = vld [vmem:[%s3166_s21 + $0x78] sm:$0xff]  ;;  %v3030_v32 = vld [vmem:[%s4191_s1 + $0xe0] sm:$0xff] }
  0x13   : > { %277 = vst.msk [vmem:[#allocation2 + $0x69] sm:$0xff] %vm269_vm0, %v189_v5  ;;  %v3040_v27 = vld [vmem:[%s4191_s1 + $0x130] sm:$0xff]  ;;  %v205_v33 = vld [vmem:[%s3166_s21 + $0xb8] sm:$0xff]  ;;  %v3039_v34 = vld [vmem:[%s4191_s1 + $0x128] sm:$0xff] }
  0x14   : > { %217 = vst [vmem:[#allocation2 + $0x18] sm:$0xff] %v3119_v1  ;;  %3080 = vmatpush.bf16.msra.mxu1 %v3015_v3  ;;  %3081 = vmatpush.bf16.msra.mxu2 %v3015_v3  ;;  %v204_v30 = vld [vmem:[%s3166_s21 + $0xb0] sm:$0xff]  ;;  %v3006_v35 = vld [vmem:[%s4191_s1 + $0x20] sm:$0xff]  ;;  %v191_v37 = vld [vmem:[%s3166_s21 + $0x48] sm:$0xff] }
  0x15   : > { %218 = vst [vmem:[#allocation2 + $0x20] sm:$0xff] %v3119_v1  ;;  %3082 = vmatpush.bf16.msra.mxu3 %v3015_v3  ;;  %480 = vmatpush.bf16.msra.mxu0 %v3015_v3  ;;  %v190_v36 = vld [vmem:[%s3166_s21 + $0x40] sm:$0xff]  ;;  %v199_v39 = vld [vmem:[%s3166_s21 + $0x88] sm:$0xff]  ;;  %v192_v48 = vld [vmem:[%s3166_s21 + $0x50] sm:$0xff] }
  0x16   : > { %219 = vst [vmem:[#allocation2 + $0x28] sm:$0x3] %v3119_v1  ;;  %v198_v38 = vld [vmem:[%s3166_s21 + $0x80] sm:$0xff]  ;;  %v207_v41 = vld [vmem:[%s3166_s21 + $0xc8] sm:$0xff]  ;;  %v193_v50 = vld [vmem:[%s3166_s21 + $0x58] sm:$0xff] }
  0x17   : > { %220 = vst [vmem:[#allocation2 + $0x30] sm:$0xff] %v3119_v1  ;;  %v366_v14 = vld [vmem:[#allocation2 + $0x1] sm:$0xff]  ;;  %v200_v53 = vld [vmem:[%s3166_s21 + $0x90] sm:$0xff]  ;;  %v201_v55 = vld [vmem:[%s3166_s21 + $0x98] sm:$0xff] }
  0x18   : > { %221 = vst [vmem:[#allocation2 + $0x38] sm:$0xff] %v3119_v1  ;;  %3083 = vmatpush.bf16.msra.mxu1 %v3014_v6  ;;  %3084 = vmatpush.bf16.msra.mxu2 %v3014_v6  ;;  %v367_v15 = vld [vmem:[#allocation2 + $0x9] sm:$0xff]  ;;  %v206_v40 = vld [vmem:[%s3166_s21 + $0xc0] sm:$0xff]  ;;  %v3021_v58 = vld [vmem:[%s4191_s1 + $0x98] sm:$0xff] }
  0x19   : > { %222 = vst [vmem:[#allocation2 + $0x40] sm:$0x3] %v3119_v1  ;;  %3085 = vmatpush.bf16.msra.mxu3 %v3014_v6  ;;  %481 = vmatpush.bf16.msra.mxu0 %v3014_v6  ;;  %v374_v11 = vld [vmem:[#allocation2 + $0x61] sm:$0xff]  ;;  %v398_v17 = vpack.c.bf16 %v367_v15, %v366_v14  ;;  %v208_v57 = vld [vmem:[%s3166_s21 + $0xd0] sm:$0xff]  ;;  %v3029_v59 = vld [vmem:[%s4191_s1 + $0xd8] sm:$0xff] }
  0x1a   : > { %223 = vst [vmem:[#allocation2 + $0x48] sm:$0xff] %v3119_v1  ;;  %v375_v12 = vld [vmem:[#allocation2 + $0x69] sm:$0xff]  ;;  %v182_v43 = vld [vmem:[%s3166_s21] sm:$0xff]  ;;  %v209_v60 = vld [vmem:[%s3166_s21 + $0xd8] sm:$0xff] }
  0x1b   : > { %224 = vst [vmem:[#allocation2 + $0x50] sm:$0xff] %v3119_v1  ;;  %v3212_v13 = vpack.c.bf16 %v375_v12, %v374_v11  ;;  %v183_v45 = vld [vmem:[%s3166_s21 + $0x8] sm:$0xff]  ;;  %v3038_v61 = vld [vmem:[%s4191_s1 + $0x120] sm:$0xff]  ;;  %v3005_v62 = vld [vmem:[%s4191_s1 + $0x18] sm:$0xff] }
  0x1c   : > { %225 = vst [vmem:[#allocation2 + $0x58] sm:$0x3] %v3119_v1  ;;  %3086 = vmatpush.bf16.msra.mxu1 %v3013_v7  ;;  %3087 = vmatpush.bf16.msra.mxu2 %v3013_v7  ;;  %v184_v63 = vld [vmem:[%s3166_s21 + $0x10] sm:$0xff]  ;;  %v3037_v3 = vld [vmem:[%s4191_s1 + $0x118] sm:$0xff]  ;;  %v194_v6 = vld [vmem:[%s3166_s21 + $0x60] sm:$0xff] }
  0x1d   : > { %229 = vst [vmem:[#allocation2 + $0x78] sm:$0xff] %v3119_v1  ;;  %3088 = vmatpush.bf16.msra.mxu3 %v3013_v7  ;;  %482 = vmatpush.bf16.msra.mxu0 %v3013_v7  ;;  %v3020_v0 = vld [vmem:[%s4191_s1 + $0x90] sm:$0xff]  ;;  %v203_v14 = vld [vmem:[%s3166_s21 + $0xa8] sm:$0xff]  ;;  %v210_v15 = vld [vmem:[%s3166_s21 + $0xe0] sm:$0xff] }
  0x1e   : > { %230 = vst [vmem:[#allocation2 + $0x80] sm:$0xff] %v3119_v1  ;;  %v3028_v2 = vld [vmem:[%s4191_s1 + $0xd0] sm:$0xff] }
  0x1f   : > { %231 = vst [vmem:[#allocation2 + $0x88] sm:$0x3] %v3119_v1  ;;  %v3004_v5 = vld [vmem:[%s4191_s1 + $0x10] sm:$0xff] }
  0x20   : > { %232 = vst [vmem:[#allocation2 + $0x90] sm:$0xff] %v3119_v1  ;;  %3089 = vmatpush.bf16.msra.mxu1 %v3012_v8  ;;  %3090 = vmatpush.bf16.msra.mxu2 %v3012_v8 }
  0x21   : > { %233 = vst [vmem:[#allocation2 + $0x98] sm:$0xff] %v3119_v1  ;;  %3091 = vmatpush.bf16.msra.mxu3 %v3012_v8  ;;  %483 = vmatpush.bf16.msra.mxu0 %v3012_v8  ;;  %v195_v8 = vld [vmem:[%s3166_s21 + $0x68] sm:$0xff] }
  0x22   : > { %234 = vst [vmem:[#allocation2 + $0xa0] sm:$0x3] %v3119_v1 }
  0x23   : > { %235 = vst [vmem:[#allocation2 + $0xa8] sm:$0xff] %v3119_v1 }
  0x24   : > { %236 = vst [vmem:[#allocation2 + $0xb0] sm:$0xff] %v3119_v1  ;;  %3092 = vmatpush.bf16.msra.mxu1 %v3011_v9  ;;  %3093 = vmatpush.bf16.msra.mxu2 %v3011_v9 }
  0x25   : > { %237 = vst [vmem:[#allocation2 + $0xb8] sm:$0x3] %v3119_v1  ;;  %3094 = vmatpush.bf16.msra.mxu3 %v3011_v9  ;;  %484 = vmatpush.bf16.msra.mxu0 %v3011_v9 }
  0x26   : > { %238 = vst [vmem:[#allocation2 + $0xc0] sm:$0xff] %v3119_v1 }
  0x27   : > { %239 = vst [vmem:[#allocation2 + $0xc8] sm:$0xff] %v3119_v1 }
  0x28   : > { %240 = vst [vmem:[#allocation2 + $0xd0] sm:$0x3] %v3119_v1  ;;  %3095 = vmatpush.bf16.msra.mxu1 %v3010_v10  ;;  %3096 = vmatpush.bf16.msra.mxu2 %v3010_v10 }
  0x29   : > { %241 = vst [vmem:[#allocation2 + $0xd8] sm:$0xff] %v3119_v1  ;;  %3097 = vmatpush.bf16.msra.mxu3 %v3010_v10  ;;  %485 = vmatpush.bf16.msra.mxu0 %v3010_v10  ;;  %v202_v10 = vld [vmem:[%s3166_s21 + $0xa0] sm:$0xff] }
  0x2a   : > { %242 = vst [vmem:[#allocation2 + $0xe0] sm:$0xff] %v3119_v1 }
  0x2b   : > { %243 = vst [vmem:[#allocation2 + $0xe8] sm:$0x3] %v3119_v1  ;;  %506 = vmatmul.bf16.vlgmr.msra.gmra.mxu1 %v3212_v13 }
  0x2c   : > { %244 = vst [vmem:[#allocation2 + $0xf0] sm:$0xff] %v3119_v1  ;;  %816 = vmatpush.bf16.msrb.mxu2 %v3025_v16  ;;  %486 = vmatmul.bf16.vlgmr.msra.gmra.mxu0 %v398_v17 }
  0x2d   : > { %245 = vst [vmem:[#allocation2 + $0xf8] sm:$0xff] %v3119_v1  ;;  %1049 = vmatpush.bf16.msrb.mxu3 %v3033_v18  ;;  %615 = vmatpush.bf16.msrb.mxu1 %v3009_v19  ;;  %v211_v18 = vld [vmem:[%s3166_s21 + $0xe8] sm:$0xff] }
  0x2e   : > { %246 = vst [vmem:[#allocation2 + $0x100] sm:$0x3] %v3119_v1  ;;  %1282 = vmatpush.bf16.msrb.mxu0 %v3041_v20  ;;  %v186_v20 = vld [vmem:[%s3166_s21 + $0x20] sm:$0xff] }
  0x2f   : > { %247 = vst [vmem:[#allocation2 + $0x108] sm:$0xff] %v3119_v1 }
  0x30   : > { %248 = vst [vmem:[#allocation2 + $0x110] sm:$0xff] %v3119_v1  ;;  %817 = vmatpush.bf16.msrb.mxu2 %v3024_v21 }
  0x31   : > { %249 = vst [vmem:[#allocation2 + $0x118] sm:$0x3] %v3119_v1  ;;  %1050 = vmatpush.bf16.msrb.mxu3 %v3032_v22  ;;  %616 = vmatpush.bf16.msrb.mxu1 %v3008_v23  ;;  %v187_v23 = vld [vmem:[%s3166_s21 + $0x28] sm:$0xff] }
  0x32   : > { %250 = vst [vmem:[#allocation2 + $0x120] sm:$0xff] %v3119_v1  ;;  %1283 = vmatpush.bf16.msrb.mxu0 %v3040_v27  ;;  %v3019_v27 = vld [vmem:[%s4191_s1 + $0x88] sm:$0xff] }
  0x33   : > { %251 = vst [vmem:[#allocation2 + $0x128] sm:$0xff] %v3119_v1 }
  0x34   : > { %252 = vst [vmem:[#allocation2 + $0x130] sm:$0x3] %v3119_v1  ;;  %818 = vmatpush.bf16.msrb.mxu2 %v3023_v25 }
  0x35   : > { %253 = vst [vmem:[#allocation2 + $0x138] sm:$0xff] %v3119_v1  ;;  %1051 = vmatpush.bf16.msrb.mxu3 %v3031_v26  ;;  %617 = vmatpush.bf16.msrb.mxu1 %v3007_v29 }
  0x36   : > { %254 = vst [vmem:[#allocation2 + $0x140] sm:$0xff] %v3119_v1  ;;  %1284 = vmatpush.bf16.msrb.mxu0 %v3039_v34  ;;  %v3035_v34 = vld [vmem:[%s4191_s1 + $0x108] sm:$0xff] }
  0x37   : > { %255 = vst [vmem:[#allocation2 + $0x148] sm:$0x3] %v3119_v1 }
  0x38   : > { %256 = vst [vmem:[#allocation2 + $0x150] sm:$0xff] %v3119_v1  ;;  %819 = vmatpush.bf16.msrb.mxu2 %v3022_v31  ;;  %v3003_v31 = vld [vmem:[%s4191_s1 + $0x8] sm:$0xff] }
  0x39   : > { %257 = vst [vmem:[#allocation2 + $0x158] sm:$0xff] %v3119_v1  ;;  %1052 = vmatpush.bf16.msrb.mxu3 %v3030_v32  ;;  %618 = vmatpush.bf16.msrb.mxu1 %v3006_v35  ;;  %v3018_v32 = vld [vmem:[%s4191_s1 + $0x80] sm:$0xff] }
  0x3a   : > { %258 = vst [vmem:[#allocation2 + $0x160] sm:$0x3] %v3119_v1  ;;  %1285 = vmatpush.bf16.msrb.mxu0 %v3038_v61 }
  0x3b   : > { %259 = vst [vmem:[#allocation2 + $0x168] sm:$0xff] %v3119_v1 }
  0x3c   : > { %260 = vst [vmem:[#allocation2 + $0x170] sm:$0xff] %v3119_v1  ;;  %820 = vmatpush.bf16.msrb.mxu2 %v3021_v58 }
  0x3d   : > { %261 = vst [vmem:[#allocation2 + $0x178] sm:$0x3] %v3119_v1  ;;  %1053 = vmatpush.bf16.msrb.mxu3 %v3029_v59  ;;  %619 = vmatpush.bf16.msrb.mxu1 %v3005_v62  ;;  %v3120_v62 = vmov 0.0|0.0  }
  0x3e   : > { %262 = vst [vmem:[#allocation2 + $0x180] sm:$0xff] %v3119_v1  ;;  %1286 = vmatpush.bf16.msrb.mxu0 %v3037_v3 }
  0x3f   : > { %263 = vst [vmem:[#allocation2 + $0x188] sm:$0xff] %v3119_v1 }
  0x40   : > { %264 = vst [vmem:[#allocation2 + $0x190] sm:$0x3] %v3119_v1  ;;  %821 = vmatpush.bf16.msrb.mxu2 %v3020_v0  ;;  %v705_v0 = vld [vmem:[#allocation2 + $0xa] sm:$0xff] }
  0x41   : > { %265 = vst [vmem:[#allocation2 + $0x198] sm:$0xff] %v3119_v1  ;;  %1054 = vmatpush.bf16.msrb.mxu3 %v3028_v2  ;;  %620 = vmatpush.bf16.msrb.mxu1 %v3004_v5  ;;  %v3056_v5 = vld [vmem:[%s4191_s1 + $0x1b0] sm:$0xff] }
  0x42   : > { %266 = vst [vmem:[#allocation2 + $0x1a0] sm:$0xff] %v3119_v1 }
  0x43   : > { %267 = vst [vmem:[#allocation2 + $0x1a8] sm:$0x3] %v3119_v1  ;;  %v185_v1 = vld [vmem:[%s3166_s21 + $0x18] sm:$0xff] }
  0x44   : > { %284 = vst.msk [vmem:[#allocation2 + $0xc1] sm:$0xff] %vm269_vm0, %v196_v24  ;;  %822 = vmatpush.bf16.msrb.mxu2 %v3019_v27  ;;  %v3071_v27 = vld [vmem:[%s4191_s1 + $0x228] sm:$0xff] }
  0x45   : > { %285 = vst.msk [vmem:[#allocation2 + $0xc9] sm:$0xff] %vm269_vm0, %v197_v28  ;;  %v3027_v28 = vld [vmem:[%s4191_s1 + $0xc8] sm:$0xff]  ;;  %621 = vmatpush.bf16.msrb.mxu1 %v3003_v31 }
  0x46   : > { %292 = vst.msk [vmem:[#allocation2 + $0x121] sm:$0xff] %vm269_vm0, %v204_v30  ;;  %v3036_v30 = vld [vmem:[%s4191_s1 + $0x110] sm:$0xff]  ;;  %1055 = vmatpush.bf16.msrb.mxu3 %v3027_v28  ;;  %v944_v31 = vld [vmem:[#allocation2 + $0x68] sm:$0xff] }
  0x47   : > { %293 = vst.msk [vmem:[#allocation2 + $0x129] sm:$0xff] %vm269_vm0, %v205_v33  ;;  %1287 = vmatpush.bf16.msrb.mxu0 %v3036_v30  ;;  %v3026_v33 = vld [vmem:[%s4191_s1 + $0xc0] sm:$0xff] }
  0x48   : > { %278 = vst.msk [vmem:[#allocation2 + $0x79] sm:$0xff] %vm269_vm0, %v190_v36  ;;  %v3002_v36 = vld [vmem:[%s4191_s1] sm:$0xff]  ;;  %823 = vmatpush.bf16.msrb.mxu2 %v3018_v32 }
  0x49   : > { %279 = vst.msk [vmem:[#allocation2 + $0x81] sm:$0xff] %vm269_vm0, %v191_v37  ;;  %622 = vmatpush.bf16.msrb.mxu1 %v3002_v36  ;;  %v943_v30 = vld [vmem:[#allocation2 + $0x60] sm:$0xff] }
  0x4a   : > { %286 = vst.msk [vmem:[#allocation2 + $0xd9] sm:$0xff] %vm269_vm0, %v198_v38  ;;  %1056 = vmatpush.bf16.msrb.mxu3 %v3026_v33 }
  0x4b   : > { %v382_v42 = vld [vmem:[#allocation2 + $0xc1] sm:$0xff]  ;;  %287 = vst.msk [vmem:[#allocation2 + $0xe1] sm:$0xff] %vm269_vm0, %v199_v39  ;;  %1288 = vmatpush.bf16.msrb.mxu0 %v3035_v34  ;;  %v3475_v34 = vpack.c.bf16 %v944_v31, %v943_v30 }
  0x4c   : > { %v383_v44 = vld [vmem:[#allocation2 + $0xc9] sm:$0xff]  ;;  %294 = vst.msk [vmem:[#allocation2 + $0x139] sm:$0xff] %vm269_vm0, %v206_v40  ;;  %v3034_v39 = vld [vmem:[%s4191_s1 + $0x100] sm:$0xff] }
  0x4d   : > { %v3309_v46 = vpack.c.bf16 %v383_v44, %v382_v42  ;;  %v390_v47 = vld [vmem:[#allocation2 + $0x121] sm:$0xff]  ;;  %295 = vst.msk [vmem:[#allocation2 + $0x141] sm:$0xff] %vm269_vm0, %v207_v41 }
  0x4e   : > { %v391_v49 = vld [vmem:[#allocation2 + $0x129] sm:$0xff]  ;;  %270 = vst.msk [vmem:[#allocation2 + $0x19] sm:$0xff] %vm269_vm0, %v182_v43  ;;  %v951_v31 = vld [vmem:[#allocation2 + $0xc0] sm:$0xff] }
  0x4f   : > { %526 = vmatmul.bf16.vlgmr.msra.gmra.mxu2 %v3309_v46  ;;  %v410_v51 = vpack.c.bf16 %v391_v49, %v390_v47  ;;  %v376_v52 = vld [vmem:[#allocation2 + $0x79] sm:$0xff]  ;;  %271 = vst.msk [vmem:[#allocation2 + $0x21] sm:$0xff] %vm269_vm0, %v183_v45  ;;  %1289 = vmatpush.bf16.msrb.mxu0 %v3034_v39 }
  0x50   : > { %v377_v54 = vld [vmem:[#allocation2 + $0x81] sm:$0xff]  ;;  %280 = vst.msk [vmem:[#allocation2 + $0x91] sm:$0xff] %vm269_vm0, %v192_v48  ;;  %v3057_v48 = vld [vmem:[%s4191_s1 + $0x1b8] sm:$0xff] }
  0x51   : > { %546 = vmatmul.bf16.vlgmr.msra.gmra.mxu3 %v410_v51  ;;  %v3320_v56 = vpack.c.bf16 %v377_v54, %v376_v52  ;;  %281 = vst.msk [vmem:[#allocation2 + $0x99] sm:$0xff] %vm269_vm0, %v193_v50  ;;  %v384_v11 = vld [vmem:[#allocation2 + $0xd9] sm:$0xff]  ;;  %1749 = vmatpush.bf16.msra.mxu2 %v3057_v48 }
  0x52   : > { %288 = vst.msk [vmem:[#allocation2 + $0xf1] sm:$0xff] %vm269_vm0, %v200_v53  ;;  %v385_v12 = vld [vmem:[#allocation2 + $0xe1] sm:$0xff]  ;;  %v3065_v49 = vld [vmem:[%s4191_s1 + $0x1f8] sm:$0xff] }
  0x53   : > { %511 = vmatmul.bf16.gmra.mxu1 %v3320_v56  ;;  %289 = vst.msk [vmem:[#allocation2 + $0xf9] sm:$0xff] %vm269_vm0, %v201_v55  ;;  %v392_v16 = vld [vmem:[#allocation2 + $0x139] sm:$0xff]  ;;  %v3370_v19 = vpack.c.bf16 %v385_v12, %v384_v11  ;;  %1982 = vmatpush.bf16.msra.mxu3 %v3065_v49 }
  0x54   : > { %296 = vst.msk [vmem:[#allocation2 + $0x151] sm:$0xff] %vm269_vm0, %v208_v57  ;;  %v393_v17 = vld [vmem:[#allocation2 + $0x141] sm:$0xff]  ;;  %v3049_v50 = vld [vmem:[%s4191_s1 + $0x178] sm:$0xff] }
  0x55   : > { %v368_v4 = vld [vmem:[#allocation2 + $0x19] sm:$0xff]  ;;  %297 = vst.msk [vmem:[#allocation2 + $0x159] sm:$0xff] %vm269_vm0, %v209_v60  ;;  %v411_v24 = vpack.c.bf16 %v393_v17, %v392_v16  ;;  %1515 = vmatpush.bf16.msra.mxu1 %v3049_v50  ;;  %1750 = vmatpush.bf16.msra.mxu2 %v3056_v5 }
  0x56   : > { %v369_v7 = vld [vmem:[#allocation2 + $0x21] sm:$0xff]  ;;  %272 = vst.msk [vmem:[#allocation2 + $0x31] sm:$0xff] %vm269_vm0, %v184_v63  ;;  %v3073_v53 = vld [vmem:[%s4191_s1 + $0x238] sm:$0xff] }
  0x57   : > { %v3359_v9 = vpack.c.bf16 %v369_v7, %v368_v4  ;;  %273 = vst.msk [vmem:[#allocation2 + $0x39] sm:$0xff] %vm269_vm0, %v185_v1  ;;  %v378_v21 = vld [vmem:[#allocation2 + $0x91] sm:$0xff]  ;;  %2215 = vmatpush.bf16.msra.mxu0 %v3073_v53  ;;  %v704_v63 = vld [vmem:[#allocation2 + $0x2] sm:$0xff]  ;;  %v714_v53 = vld [vmem:[#allocation2 + $0x7a] sm:$0xff] }
  0x58   : > { %282 = vst.msk [vmem:[#allocation2 + $0xa9] sm:$0xff] %vm269_vm0, %v194_v6  ;;  %v379_v22 = vld [vmem:[#allocation2 + $0x99] sm:$0xff]  ;;  %v736_v3 = vpack.c.bf16 %v705_v0, %v704_v63  ;;  %v3064_v6 = vld [vmem:[%s4191_s1 + $0x1f0] sm:$0xff] }
  0x59   : > { %491 = vmatmul.bf16.gmra.mxu0 %v3359_v9  ;;  %283 = vst.msk [vmem:[#allocation2 + $0xb1] sm:$0xff] %vm269_vm0, %v195_v8  ;;  %v3379_v25 = vpack.c.bf16 %v379_v22, %v378_v21  ;;  %v386_v37 = vld [vmem:[#allocation2 + $0xf1] sm:$0xff]  ;;  %v938_v2 = vld [vmem:[#allocation2 + $0x20] sm:$0xff]  ;;  %1983 = vmatpush.bf16.msra.mxu3 %v3064_v6 }
  0x5a   : > { %290 = vst.msk [vmem:[#allocation2 + $0x109] sm:$0xff] %vm269_vm0, %v202_v10  ;;  %v387_v38 = vld [vmem:[#allocation2 + $0xf9] sm:$0xff]  ;;  %v3048_v7 = vld [vmem:[%s4191_s1 + $0x170] sm:$0xff]  ;;  %v707_v10 = vld [vmem:[#allocation2 + $0x22] sm:$0xff] }
  0x5b   : > { %291 = vst.msk [vmem:[#allocation2 + $0x111] sm:$0xff] %vm269_vm0, %v203_v14  ;;  %v394_v40 = vld [vmem:[#allocation2 + $0x151] sm:$0xff]  ;;  %v3413_v42 = vpack.c.bf16 %v387_v38, %v386_v37  ;;  %1516 = vmatpush.bf16.msra.mxu1 %v3048_v7  ;;  %v712_v37 = vld [vmem:[#allocation2 + $0x62] sm:$0xff]  ;;  %v717_v5 = vld [vmem:[#allocation2 + $0x9a] sm:$0xff] }
  0x5c   : > { %298 = vst.msk [vmem:[#allocation2 + $0x169] sm:$0xff] %vm269_vm0, %v210_v15  ;;  %v395_v41 = vld [vmem:[#allocation2 + $0x159] sm:$0xff]  ;;  %v3072_v8 = vld [vmem:[%s4191_s1 + $0x230] sm:$0xff] }
  0x5d   : > { %299 = vst.msk [vmem:[#allocation2 + $0x171] sm:$0xff] %vm269_vm0, %v211_v18  ;;  %v370_v26 = vld [vmem:[#allocation2 + $0x31] sm:$0xff]  ;;  %v412_v45 = vpack.c.bf16 %v395_v41, %v394_v40  ;;  %2216 = vmatpush.bf16.msra.mxu0 %v3072_v8  ;;  %v946_v39 = vld [vmem:[#allocation2 + $0x80] sm:$0xff] }
  0x5e   : > { %274 = vst.msk [vmem:[#allocation2 + $0x49] sm:$0xff] %vm269_vm0, %v186_v20  ;;  %v371_v29 = vld [vmem:[#allocation2 + $0x39] sm:$0xff]  ;;  %v939_v11 = vld [vmem:[#allocation2 + $0x30] sm:$0xff] }
  0x5f   : > { %531 = vmatmul.bf16.gmra.mxu2 %v3370_v19  ;;  %275 = vst.msk [vmem:[#allocation2 + $0x51] sm:$0xff] %vm269_vm0, %v187_v23  ;;  %v3404_v35 = vpack.c.bf16 %v371_v29, %v370_v26  ;;  %v380_v43 = vld [vmem:[#allocation2 + $0xa9] sm:$0xff]  ;;  %v937_v1 = vld [vmem:[#allocation2 + $0x18] sm:$0xff]  ;;  %v3046_v50 = vld [vmem:[%s4191_s1 + $0x160] sm:$0xff] }
  0x60   : > { %v381_v44 = vld [vmem:[#allocation2 + $0xb1] sm:$0xff]  ;;  %v969_v4 = vpack.c.bf16 %v938_v2, %v937_v1  ;;  %v709_v17 = vld [vmem:[#allocation2 + $0x3a] sm:$0xff]  ;;  %v3055_v23 = vld [vmem:[%s4191_s1 + $0x1a8] sm:$0xff] }
  0x61   : > { %551 = vmatmul.bf16.gmra.mxu3 %v411_v24  ;;  %v3416_v47 = vpack.c.bf16 %v381_v44, %v380_v43  ;;  %v388_v55 = vld [vmem:[#allocation2 + $0x109] sm:$0xff]  ;;  %v940_v12 = vld [vmem:[#allocation2 + $0x38] sm:$0xff]  ;;  %1751 = vmatpush.bf16.msra.mxu2 %v3055_v23 }
  0x62   : > { %v389_v57 = vld [vmem:[#allocation2 + $0x111] sm:$0xff]  ;;  %v3450_v15 = vpack.c.bf16 %v940_v12, %v939_v11  ;;  %v3063_v24 = vld [vmem:[%s4191_s1 + $0x1e8] sm:$0xff]  ;;  %2217 = vmatpush.bf16.msra.mxu0 %v3071_v27 }
  0x63   : > { %516 = vmatmul.bf16.gmra.mxu1 %v3379_v25  ;;  %v396_v58 = vld [vmem:[#allocation2 + $0x169] sm:$0xff]  ;;  %v3431_v60 = vpack.c.bf16 %v389_v57, %v388_v55  ;;  %v708_v16 = vld [vmem:[#allocation2 + $0x32] sm:$0xff]  ;;  %1984 = vmatpush.bf16.msra.mxu3 %v3063_v24 }
  0x64   : > { %v397_v59 = vld [vmem:[#allocation2 + $0x171] sm:$0xff]  ;;  %v3455_v21 = vpack.c.bf16 %v709_v17, %v708_v16  ;;  %v3047_v26 = vld [vmem:[%s4191_s1 + $0x168] sm:$0xff] }
  0x65   : > { %v372_v51 = vld [vmem:[#allocation2 + $0x49] sm:$0xff]  ;;  %v413_v61 = vpack.c.bf16 %v397_v59, %v396_v58  ;;  %1517 = vmatpush.bf16.msra.mxu1 %v3047_v26  ;;  %v945_v38 = vld [vmem:[#allocation2 + $0x78] sm:$0xff] }
  0x66   : > { %v373_v52 = vld [vmem:[#allocation2 + $0x51] sm:$0xff]  ;;  %v941_v18 = vld [vmem:[#allocation2 + $0x48] sm:$0xff]  ;;  %v973_v43 = vpack.c.bf16 %v946_v39, %v945_v38 }
  0x67   : > { %v401_v54 = vpack.c.bf16 %v373_v52, %v372_v51  ;;  %v942_v20 = vld [vmem:[#allocation2 + $0x50] sm:$0xff]  ;;  %v3070_v51 = vld [vmem:[%s4191_s1 + $0x220] sm:$0xff]  ;;  %v948_v59 = vld [vmem:[#allocation2 + $0x98] sm:$0xff] }
  0x68   : > { %v971_v22 = vpack.c.bf16 %v942_v20, %v941_v18  ;;  %v710_v28 = vld [vmem:[#allocation2 + $0x4a] sm:$0xff]  ;;  %v711_v29 = vld [vmem:[#allocation2 + $0x52] sm:$0xff]  ;;  %2218 = vmatpush.bf16.msra.mxu0 %v3070_v51  ;;  %v720_v51 = vld [vmem:[#allocation2 + $0xc2] sm:$0xff] }
  0x69   : > { %496 = vmatmul.bf16.gmra.mxu0 %v3404_v35  ;;  %v3471_v32 = vpack.c.bf16 %v711_v29, %v710_v28  ;;  %1518 = vmatpush.bf16.msra.mxu1 %v3046_v50  ;;  %v947_v58 = vld [vmem:[#allocation2 + $0x90] sm:$0xff]  ;;  %v949_v8 = vld [vmem:[#allocation2 + $0xa8] sm:$0xff]  ;;  %v3061_v18 = vld [vmem:[%s4191_s1 + $0x1d8] sm:$0xff] }
  0x6a   : > { %v974_v63 = vpack.c.bf16 %v948_v59, %v947_v58  ;;  %v3045_v23 = vld [vmem:[%s4191_s1 + $0x158] sm:$0xff]  ;;  %v718_v27 = vld [vmem:[#allocation2 + $0xaa] sm:$0xff] }
  0x6b   : > { %v3069_v24 = vld [vmem:[%s4191_s1 + $0x218] sm:$0xff] }
  0x6c   : > { %2219 = vmatpush.bf16.msra.mxu0 %v3069_v24  ;;  %v719_v28 = vld [vmem:[#allocation2 + $0xb2] sm:$0xff] }
  0x6d   : > { %1519 = vmatpush.bf16.msra.mxu1 %v3045_v23  ;;  %v3060_v23 = vld [vmem:[%s4191_s1 + $0x1d0] sm:$0xff] }
  0x6f   : > { %536 = vmatmul.bf16.gmra.mxu2 %v3413_v42 }
  0x71   : > { %556 = vmatmul.bf16.gmra.mxu3 %v412_v45  ;;  %v3054_v45 = vld [vmem:[%s4191_s1 + $0x1a0] sm:$0xff] }
  0x72   : > { %1752 = vmatpush.bf16.msra.mxu2 %v3054_v45 }
  0x73   : > { %521 = vmatmul.bf16.gmra.mxu1 %v3416_v47 }
  0x79   : > { %501 = vmatmul.bf16.gmra.mxu0 %v401_v54 }
  0x7f   : > { %541 = vmatmul.bf16.gmra.mxu2 %v3431_v60 }
  0x81   : > { %561 = vmatmul.bf16.gmra.mxu3 %v413_v61 }
  0x83   : > { %623 = vmatmul.bf16.vlgmr.msrb.gmra.mxu1 %v3120_v62 }
  0x89   : > { %1290 = vmatmul.bf16.vlgmr.msrb.gmra.mxu0 %v3359_v9  ;;  %v706_v9 = vld [vmem:[#allocation2 + $0x1a] sm:$0xff] }
  0x8a   : > { %v3448_v14 = vpack.c.bf16 %v707_v10, %v706_v9  ;;  %v950_v9 = vld [vmem:[#allocation2 + $0xb0] sm:$0xff] }
  0x8b   : > { %v975_v12 = vpack.c.bf16 %v950_v9, %v949_v8 }
  0x8f   : > { %824 = vmatmul.bf16.vlgmr.msrb.gmra.mxu2 %v736_v3 }
  0x91   : > { %1057 = vmatmul.bf16.vlgmr.msrb.gmra.mxu3 %v969_v4 }
  0x93   : > { %628 = vmatmul.bf16.gmra.mxu1 %v969_v4  ;;  %v716_v4 = vld [vmem:[#allocation2 + $0x92] sm:$0xff] }
  0x94   : > { %v3535_v10 = vpack.c.bf16 %v717_v5, %v716_v4  ;;  %v954_v4 = vld [vmem:[#allocation2 + $0xe0] sm:$0xff] }
  0x99   : > { %1295 = vmatmul.bf16.gmra.mxu0 %v3404_v35 }
  0x9f   : > { %829 = vmatmul.bf16.gmra.mxu2 %v3448_v14 }
  0xa1   : > { %1062 = vmatmul.bf16.gmra.mxu3 %v3450_v15 }
  0xa3   : > { %633 = vmatmul.bf16.gmra.mxu1 %v3450_v15 }
  0xa8   : > { %v3473_v33 = vpop.f32.mrf.mxu1 }
  0xa9   : > { %1300 = vmatmul.bf16.gmra.mxu0 %v401_v54  ;;  %v3479_v35 = vpop.f32.mrf.mxu0  ;;  %v715_v54 = vld [vmem:[#allocation2 + $0x82] sm:$0xff] }
  0xaa   : > { %v3515_v61 = vpack.c.bf16 %v715_v54, %v714_v53  ;;  %v721_v53 = vld [vmem:[#allocation2 + $0xca] sm:$0xff] }
  0xab   : > { %v3586_v5 = vpack.c.bf16 %v721_v53, %v720_v51  ;;  %v722_v51 = vld [vmem:[#allocation2 + $0xda] sm:$0xff]  ;;  %v723_v53 = vld [vmem:[#allocation2 + $0xe2] sm:$0xff] }
  0xaf   : > { %834 = vmatmul.bf16.gmra.mxu2 %v3455_v21 }
  0xb0   : > { %v3482_v36 = vpop.f32.mrf.mxu1 }
  0xb1   : > { %1067 = vmatmul.bf16.gmra.mxu3 %v971_v22  ;;  %v3487_v41 = vpop.f32.mrf.mxu0 }
  0xb3   : > { %638 = vmatmul.bf16.gmra.mxu1 %v971_v22 }
  0xb9   : > { %1305 = vmatmul.bf16.gmra.mxu0 %v3212_v13  ;;  %v713_v13 = vld [vmem:[#allocation2 + $0x6a] sm:$0xff] }
  0xba   : > { %v3485_v40 = vpack.c.bf16 %v713_v13, %v712_v37  ;;  %v952_v37 = vld [vmem:[#allocation2 + $0xc8] sm:$0xff]  ;;  %v3567_v13 = vpack.c.bf16 %v719_v28, %v718_v27 }
  0xbb   : > { %v3571_v39 = vpack.c.bf16 %v952_v37, %v951_v31 }
  0xbf   : > { %839 = vmatmul.bf16.gmra.mxu2 %v3471_v32 }
  0xc1   : > { %1072 = vmatmul.bf16.gmra.mxu3 %v3475_v34 }
  0xc3   : > { %643 = vmatmul.bf16.gmra.mxu1 %v3475_v34 }
  0xc9   : > { %1310 = vmatmul.bf16.gmra.mxu0 %v3320_v56  ;;  %v3062_v56 = vld [vmem:[%s4191_s1 + $0x1e0] sm:$0xff] }
  0xca   : > { %1985 = vmatpush.bf16.msra.mxu3 %v3062_v56 }
  0xce   : > { %1986 = vmatpush.bf16.msra.mxu3 %v3061_v18 }
  0xcf   : > { %844 = vmatmul.bf16.gmra.mxu2 %v3485_v40 }
  0xd0   : > { %v3490_v44 = vpop.f32.mrf.mxu1 }
  0xd1   : > { %1077 = vmatmul.bf16.gmra.mxu3 %v973_v43 }
  0xd2   : > { %v3498_v48 = vpop.f32.mrf.mxu2  ;;  %1987 = vmatpush.bf16.msra.mxu3 %v3060_v23 }
  0xd3   : > { %648 = vmatmul.bf16.gmra.mxu1 %v973_v43 }
  0xd4   : > { %v3500_v49 = vpop.f32.mrf.mxu3 }
  0xd6   : > { %v3508_v52 = vpop.f32.mrf.mxu0 }
  0xd8   : > { %v3510_v55 = vpop.f32.mrf.mxu1 }
  0xd9   : > { %1315 = vmatmul.bf16.gmra.mxu0 %v3379_v25 }
  0xda   : > { %v3513_v57 = vpop.f32.mrf.mxu2 }
  0xdc   : > { %v3517_v62 = vpop.f32.mrf.mxu3 }
  0xde   : > { %v3519_v0 = vpop.f32.mrf.mxu0 }
  0xdf   : > { %849 = vmatmul.bf16.gmra.mxu2 %v3515_v61 }
  0xe0   : > { %v3522_v1 = vpop.f32.mrf.mxu1 }
  0xe1   : > { %1082 = vmatmul.bf16.gmra.mxu3 %v974_v63 }
  0xe2   : > { %v3524_v2 = vpop.f32.mrf.mxu2 }
  0xe3   : > { %653 = vmatmul.bf16.gmra.mxu1 %v974_v63  ;;  %v953_v63 = vld [vmem:[#allocation2 + $0xd8] sm:$0xff] }
  0xe4   : > { %v3526_v25 = vpop.f32.mrf.mxu3  ;;  %v977_v9 = vpack.c.bf16 %v954_v4, %v953_v63 }
  0xe6   : > { %v3528_v3 = vpop.f32.mrf.mxu0 }
  0xe8   : > { %v3530_v6 = vpop.f32.mrf.mxu1 }
  0xe9   : > { %1320 = vmatmul.bf16.gmra.mxu0 %v3416_v47  ;;  %v3053_v47 = vld [vmem:[%s4191_s1 + $0x198] sm:$0xff] }
  0xea   : > { %v3533_v7 = vpop.f32.mrf.mxu2  ;;  %1753 = vmatpush.bf16.msra.mxu2 %v3053_v47 }
  0xec   : > { %v3537_v11 = vpop.f32.mrf.mxu3 }
  0xee   : > { %v3539_v16 = vpop.f32.mrf.mxu0 }
  0xef   : > { %854 = vmatmul.bf16.gmra.mxu2 %v3535_v10 }
  0xf0   : > { %v3542_v17 = vpop.f32.mrf.mxu1 }
  0xf1   : > { %1087 = vmatmul.bf16.gmra.mxu3 %v975_v12 }
  0xf2   : > { %v3550_v20 = vpop.f32.mrf.mxu2 }
  0xf3   : > { %658 = vmatmul.bf16.gmra.mxu1 %v975_v12 }
  0xf4   : > { %v3552_v22 = vpop.f32.mrf.mxu3 }
  0xf6   : > { %v3560_v26 = vpop.f32.mrf.mxu0 }
  0xf8   : > { %v3562_v29 = vpop.f32.mrf.mxu1 }
  0xf9   : > { %1325 = vmatmul.bf16.gmra.mxu0 %v3309_v46 }
  0xfa   : > { %v3565_v30 = vpop.f32.mrf.mxu2 }
  0xfc   : > { %v3569_v38 = vpop.f32.mrf.mxu3 }
  0xfe   : > { %v3573_v43 = vpop.f32.mrf.mxu0 }
  0xff   : > { %859 = vmatmul.bf16.gmra.mxu2 %v3567_v13 }
 0x100   : > { %v624_v45 = vpop.f32.mrf.mxu1 }
 0x101   : > { %1092 = vmatmul.bf16.gmra.mxu3 %v3571_v39  ;;  %v625_v18 = vadd.f32 %v624_v45, %v3479_v35  ;;  %v3044_v35 = vld [vmem:[%s4191_s1 + $0x150] sm:$0xff] }
 0x102   : > { %v3577_v56 = vpop.f32.mrf.mxu2  ;;  %1520 = vmatpush.bf16.msra.mxu1 %v3044_v35 }
 0x103   : > { %663 = vmatmul.bf16.gmra.mxu1 %v3571_v39 }
 0x104   : > { %v3580_v46 = vpop.f32.mrf.mxu3 }
 0x106   : > { %v1291_v50 = vpop.f32.mrf.mxu0 }
 0x108   : > { %v626_v54 = vpop.f32.mrf.mxu1 }
 0x109   : > { %1330 = vmatmul.bf16.gmra.mxu0 %v3370_v19  ;;  %v627_v58 = vadd.f32 %v626_v54, %v3487_v41  ;;  %v3052_v41 = vld [vmem:[%s4191_s1 + $0x190] sm:$0xff] }
 0x10a   : > { %v3584_v59 = vpop.f32.mrf.mxu2  ;;  %1754 = vmatpush.bf16.msra.mxu2 %v3052_v41  ;;  %v3609_v41 = vpack.c.bf16 %v723_v53, %v722_v51 }
 0x10c   : > { %v3588_v8 = vpop.f32.mrf.mxu3 }
 0x10e   : > { %v1293_v12 = vpop.f32.mrf.mxu0 }
 0x10f   : > { %864 = vmatmul.bf16.gmra.mxu2 %v3586_v5 }
 0x110   : > { %v629_v47 = vpop.f32.mrf.mxu1 }
 0x111   : > { %1097 = vmatmul.bf16.gmra.mxu3 %v977_v9  ;;  %v630_v19 = vadd.f32 %v629_v47, %v3508_v52  ;;  %v3068_v52 = vld [vmem:[%s4191_s1 + $0x210] sm:$0xff]  ;;  %v956_v47 = vld [vmem:[#allocation2 + $0xf8] sm:$0xff] }
 0x112   : > { %v825_v24 = vpop.f32.mrf.mxu2  ;;  %2220 = vmatpush.bf16.msra.mxu0 %v3068_v52 }
 0x113   : > { %v905_v27 = vadd.f32 %v825_v24, %v625_v18  ;;  %668 = vmatmul.bf16.gmra.mxu1 %v977_v9  ;;  %v955_v9 = vld [vmem:[#allocation2 + $0xf0] sm:$0xff] }
 0x114   : > { %v1058_v28 = vpop.f32.mrf.mxu3 }
 0x115   : > { %v1138_v31 = vadd.f32 %v1058_v28, %v905_v27  ;;  %v3611_v27 = vpack.c.bf16 %v956_v47, %v955_v9 }
 0x116   : > { %v1296_v37 = vpop.f32.mrf.mxu0 }
 0x117   : > { %v3605_v45 = vadd.f32 %v1291_v50, %v1138_v31 }
 0x118   : > { %v631_v54 = vpop.f32.mrf.mxu1 }
 0x119   : > { %1335 = vmatmul.bf16.gmra.mxu0 %v3413_v42  ;;  %v632_v63 = vadd.f32 %v631_v54, %v3519_v0  ;;  %v724_v54 = vld [vmem:[#allocation2 + $0xf2] sm:$0xff] }
 0x11a   : > { %v827_v4 = vpop.f32.mrf.mxu2 }
 0x11b   : > { %v906_v18 = vadd.f32 %v827_v4, %v627_v58  ;;  %v725_v4 = vld [vmem:[#allocation2 + $0xfa] sm:$0xff] }
 0x11c   : > { %v1060_v23 = vpop.f32.mrf.mxu3 }
 0x11d   : > { %v1139_v24 = vadd.f32 %v1060_v23, %v906_v18  ;;  %v957_v18 = vld [vmem:[#allocation2 + $0x108] sm:$0xff]  ;;  %v958_v23 = vld [vmem:[#allocation2 + $0x110] sm:$0xff] }
 0x11e   : > { %v1298_v28 = vpop.f32.mrf.mxu0 }
 0x11f   : > { %869 = vmatmul.bf16.gmra.mxu2 %v3609_v41  ;;  %v3614_v50 = vadd.f32 %v1293_v12, %v1139_v24  ;;  %v3623_v24 = vpack.c.bf16 %v725_v4, %v724_v54  ;;  %v1192_v54 = vld [vmem:[#allocation2 + $0x121] sm:$0xff]  ;;  %v1193_v4 = vld [vmem:[#allocation2 + $0x129] sm:$0xff] }
 0x120   : > { %v634_v31 = vpop.f32.mrf.mxu1 }
 0x121   : > { %1102 = vmatmul.bf16.gmra.mxu3 %v3611_v27  ;;  %v635_v42 = vadd.f32 %v634_v31, %v3528_v3 }
 0x122   : > { %v830_v0 = vpop.f32.mrf.mxu2 }
 0x123   : > { %v907_v35 = vadd.f32 %v830_v0, %v630_v19  ;;  %673 = vmatmul.bf16.gmra.mxu1 %v3611_v27  ;;  %v979_v0 = vpack.c.bf16 %v958_v23, %v957_v18  ;;  %v3635_v18 = vpack.c.bf16 %v1193_v4, %v1192_v54  ;;  %v3067_v23 = vld [vmem:[%s4191_s1 + $0x208] sm:$0xff] }
 0x124   : > { %v1063_v58 = vpop.f32.mrf.mxu3  ;;  %2221 = vmatpush.bf16.msra.mxu0 %v3067_v23 }
 0x125   : > { %v1140_v52 = vadd.f32 %v1063_v58, %v907_v35  ;;  %4200 = vst [vmem:[#allocation5_spill] sm:$0xff] %v3635_v18 }
 0x126   : > { %v1301_v51 = vpop.f32.mrf.mxu0 }
 0x127   : > { %v3619_v53 = vadd.f32 %v1296_v37, %v1140_v52 }
 0x128   : > { %v636_v9 = vpop.f32.mrf.mxu1 }
 0x129   : > { %4198 = vst [vmem:[#allocation3_spill] sm:$0xff] %v3619_v53  ;;  %1340 = vmatmul.bf16.gmra.mxu0 %v3431_v60  ;;  %v637_v12 = vadd.f32 %v636_v9, %v3539_v16  ;;  %v3051_v16 = vld [vmem:[%s4191_s1 + $0x188] sm:$0xff] }
 0x12a   : > { %v832_v47 = vpop.f32.mrf.mxu2  ;;  %1755 = vmatpush.bf16.msra.mxu2 %v3051_v16 }
 0x12b   : > { %v908_v3 = vadd.f32 %v832_v47, %v632_v63  ;;  %v3059_v63 = vld [vmem:[%s4191_s1 + $0x1c8] sm:$0xff] }
 0x12c   : > { %v1065_v19 = vpop.f32.mrf.mxu3  ;;  %1988 = vmatpush.bf16.msra.mxu3 %v3059_v63  ;;  %v959_v63 = vld [vmem:[#allocation2 + $0x120] sm:$0xff] }
 0x12d   : > { %v1141_v31 = vadd.f32 %v1065_v19, %v908_v3 }
 0x12e   : > { %v1303_v35 = vpop.f32.mrf.mxu0 }
 0x12f   : > { %874 = vmatmul.bf16.gmra.mxu2 %v3623_v24  ;;  %v3626_v37 = vadd.f32 %v1298_v28, %v1141_v31  ;;  %v727_v31 = vld [vmem:[#allocation2 + $0x112] sm:$0xff] }
 0x130   : > { %v639_v58 = vpop.f32.mrf.mxu1 }
 0x131   : > { %4199 = vst [vmem:[#allocation4_spill] sm:$0xff] %v3626_v37  ;;  %1107 = vmatmul.bf16.gmra.mxu3 %v979_v0  ;;  %v640_v60 = vadd.f32 %v639_v58, %v3560_v26  ;;  %v3043_v26 = vld [vmem:[%s4191_s1 + $0x148] sm:$0xff] }
 0x132   : > { %v835_v52 = vpop.f32.mrf.mxu2  ;;  %1521 = vmatpush.bf16.msra.mxu1 %v3043_v26 }
 0x133   : > { %v909_v9 = vadd.f32 %v835_v52, %v635_v42  ;;  %678 = vmatmul.bf16.gmra.mxu1 %v979_v0  ;;  %v726_v42 = vld [vmem:[#allocation2 + $0x10a] sm:$0xff] }
 0x134   : > { %v1068_v28 = vpop.f32.mrf.mxu3  ;;  %v960_v52 = vld [vmem:[#allocation2 + $0x128] sm:$0xff]  ;;  %v3647_v4 = vpack.c.bf16 %v727_v31, %v726_v42 }
 0x135   : > { %v1142_v47 = vadd.f32 %v1068_v28, %v909_v9  ;;  %v3649_v37 = vpack.c.bf16 %v960_v52, %v959_v63  ;;  %v728_v52 = vld [vmem:[#allocation2 + $0x122] sm:$0xff] }
 0x136   : > { %v1306_v3 = vpop.f32.mrf.mxu0  ;;  %4202 = vst [vmem:[#allocation7_spill] sm:$0xff] %v3647_v4 }
 0x137   : > { %v3643_v19 = vadd.f32 %v1301_v51, %v1142_v47  ;;  %4203 = vst [vmem:[#allocation8_spill] sm:$0xff] %v3649_v37 }
 0x138   : > { %v641_v0 = vpop.f32.mrf.mxu1 }
 0x139   : > { %4201 = vst [vmem:[#allocation6_spill] sm:$0xff] %v3643_v19  ;;  %1345 = vmatmul.bf16.gmra.mxu0 %v3635_v18  ;;  %v642_v58 = vadd.f32 %v641_v0, %v3573_v43  ;;  %v1194_v43 = vld [vmem:[#allocation2 + $0x139] sm:$0xff]  ;;  %v1195_v0 = vld [vmem:[#allocation2 + $0x141] sm:$0xff] }
 0x13a   : > { %v837_v16 = vpop.f32.mrf.mxu2  ;;  %v1214_v31 = vpack.c.bf16 %v1195_v0, %v1194_v43  ;;  %v3050_v0 = vld [vmem:[%s4191_s1 + $0x180] sm:$0xff] }
 0x13b   : > { %v910_v54 = vadd.f32 %v837_v16, %v637_v12  ;;  %1756 = vmatpush.bf16.msra.mxu2 %v3050_v0 }
 0x13c   : > { %v1070_v9 = vpop.f32.mrf.mxu3 }
 0x13d   : > { %v1143_v28 = vadd.f32 %v1070_v9, %v910_v54  ;;  %v729_v54 = vld [vmem:[#allocation2 + $0x12a] sm:$0xff] }
 0x13e   : > { %v1308_v26 = vpop.f32.mrf.mxu0  ;;  %v3658_v53 = vpack.c.bf16 %v729_v54, %v728_v52  ;;  %v212_v54 = vld [vmem:[%s3166_s21 + $0xf0] sm:$0xff] }
 0x13f   : > { %879 = vmatmul.bf16.gmra.mxu2 %v3647_v4  ;;  %v3652_v51 = vadd.f32 %v1303_v35, %v1143_v28  ;;  %v961_v28 = vld [vmem:[#allocation2 + $0x138] sm:$0xff]  ;;  %300 = vst.msk [vmem:[#allocation2 + $0x181] sm:$0xff] %vm269_vm0, %v212_v54 }
 0x140   : > { %v644_v47 = vpop.f32.mrf.mxu1 }
 0x141   : > { %4204 = vst [vmem:[#allocation9_spill] sm:$0xff] %v3652_v51  ;;  %1112 = vmatmul.bf16.gmra.mxu3 %v3649_v37  ;;  %v962_v51 = vld [vmem:[#allocation2 + $0x140] sm:$0xff]  ;;  %v645_v43 = vadd.f32 %v644_v47, %v3473_v33 }
 0x142   : > { %v840_v23 = vpop.f32.mrf.mxu2 }
 0x143   : > { %v911_v18 = vadd.f32 %v840_v23, %v640_v60  ;;  %683 = vmatmul.bf16.gmra.mxu1 %v3649_v37  ;;  %v981_v23 = vpack.c.bf16 %v962_v51, %v961_v28  ;;  %v1197_v51 = vld [vmem:[#allocation2 + $0x159] sm:$0xff] }
 0x144   : > { %v1073_v12 = vpop.f32.mrf.mxu3 }
 0x145   : > { %v1144_v42 = vadd.f32 %v1073_v12, %v911_v18 }
 0x146   : > { %v1311_v16 = vpop.f32.mrf.mxu0 }
 0x147   : > { %v3656_v63 = vadd.f32 %v1306_v3, %v1144_v42  ;;  %v3042_v42 = vld [vmem:[%s4191_s1 + $0x140] sm:$0xff] }
 0x148   : > { %v646_v9 = vpop.f32.mrf.mxu1  ;;  %1522 = vmatpush.bf16.msra.mxu1 %v3042_v42 }
 0x149   : > { %1350 = vmatmul.bf16.gmra.mxu0 %v1214_v31  ;;  %v3066_v31 = vld [vmem:[%s4191_s1 + $0x200] sm:$0xff]  ;;  %v647_v0 = vadd.f32 %v646_v9, %v3482_v36  ;;  %v1198_v9 = vld [vmem:[#allocation2 + $0x169] sm:$0xff] }
 0x14a   : > { %v842_v35 = vpop.f32.mrf.mxu2  ;;  %2222 = vmatpush.bf16.msra.mxu0 %v3066_v31 }
 0x14b   : > { %v912_v19 = vadd.f32 %v842_v35, %v642_v58  ;;  %v213_v35 = vld [vmem:[%s3166_s21 + $0xf8] sm:$0xff]  ;;  %s3001_s21 = sshll.u32 %s4221_s13, 7 }
 0x14c   : > { %v1075_v4 = vpop.f32.mrf.mxu3  ;;  %301 = vst.msk [vmem:[#allocation2 + $0x189] sm:$0xff] %vm269_vm0, %v213_v35  ;;  %s3784_s19 = scalar_lea.vmem %s4192_s2, %s3001_s21 }
 0x14d   : > { %v1145_v60 = vadd.f32 %v1075_v4, %v912_v19  ;;  %v3058_v19 = vld [vmem:[%s4191_s1 + $0x1c0] sm:$0xff]  ;;  %v1196_v4 = vld [vmem:[#allocation2 + $0x151] sm:$0xff] }
 0x14e   : > { %v1313_v37 = vpop.f32.mrf.mxu0  ;;  %1989 = vmatpush.bf16.msra.mxu3 %v3058_v19  ;;  %v1215_v47 = vpack.c.bf16 %v1197_v51, %v1196_v4  ;;  %v964_v4 = vld [vmem:[#allocation2 + $0x158] sm:$0xff] }
 0x14f   : > { %884 = vmatmul.bf16.gmra.mxu2 %v3658_v53  ;;  %v3661_v18 = vadd.f32 %v1308_v26, %v1145_v60  ;;  %v730_v60 = vld [vmem:[#allocation2 + $0x13a] sm:$0xff] }
 0x150   : > { %v649_v3 = vpop.f32.mrf.mxu1 }
 0x151   : > { %4205 = vst [vmem:[#allocation10_spill] sm:$0xff] %v3661_v18  ;;  %1117 = vmatmul.bf16.gmra.mxu3 %v981_v23  ;;  %v650_v35 = vadd.f32 %v649_v3, %v3490_v44  ;;  %v965_v44 = vld [vmem:[#allocation2 + $0x168] sm:$0xff]  ;;  %v966_v3 = vld [vmem:[#allocation2 + $0x170] sm:$0xff] }
 0x152   : > { %v845_v58 = vpop.f32.mrf.mxu2 }
 0x153   : > { %v913_v12 = vadd.f32 %v845_v58, %v645_v43  ;;  %688 = vmatmul.bf16.gmra.mxu1 %v981_v23  ;;  %v731_v23 = vld [vmem:[#allocation2 + $0x142] sm:$0xff]  ;;  %v963_v58 = vld [vmem:[#allocation2 + $0x150] sm:$0xff] }
 0x154   : > { %v1078_v26 = vpop.f32.mrf.mxu3  ;;  %v982_v31 = vpack.c.bf16 %v964_v4, %v963_v58  ;;  %v732_v58 = vld [vmem:[#allocation2 + $0x152] sm:$0xff]  ;;  %v733_v4 = vld [vmem:[#allocation2 + $0x15a] sm:$0xff] }
 0x155   : > { %v1146_v33 = vadd.f32 %v1078_v26, %v913_v12  ;;  %v3683_v12 = vpack.c.bf16 %v731_v23, %v730_v60  ;;  %v3692_v18 = vpack.c.bf16 %v733_v4, %v732_v58 }
 0x156   : > { %v1316_v52 = vpop.f32.mrf.mxu0 }
 0x157   : > { %v3679_v28 = vadd.f32 %v1311_v16, %v1146_v33 }
 0x158   : > { %v651_v43 = vpop.f32.mrf.mxu1 }
 0x159   : > { %4206 = vst [vmem:[#allocation11_spill] sm:$0xff] %v3679_v28  ;;  %1355 = vmatmul.bf16.gmra.mxu0 %v1215_v47  ;;  %v1199_v47 = vld [vmem:[#allocation2 + $0x171] sm:$0xff] }
 0x15a   : > { %v847_v19 = vpop.f32.mrf.mxu2  ;;  %v1216_v23 = vpack.c.bf16 %v1199_v47, %v1198_v9 }
 0x15b   : > { %v914_v51 = vadd.f32 %v847_v19, %v647_v0 }
 0x15c   : > { %v1080_v26 = vpop.f32.mrf.mxu3 }
 0x15d   : > { %v1147_v42 = vadd.f32 %v1080_v26, %v914_v51 }
 0x15e   : > { %v1318_v54 = vpop.f32.mrf.mxu0 }
 0x15f   : > { %889 = vmatmul.bf16.gmra.mxu2 %v3683_v12  ;;  %v3686_v16 = vadd.f32 %v1313_v37, %v1147_v42  ;;  %v652_v37 = vadd.f32 %v651_v43, %v3510_v55  ;;  %v1200_v43 = vld [vmem:[#allocation2 + $0x181] sm:$0xff] }
 0x160   : > { %v654_v33 = vpop.f32.mrf.mxu1 }
 0x161   : > { %4207 = vst [vmem:[#allocation12_spill] sm:$0xff] %v3686_v16  ;;  %1122 = vmatmul.bf16.gmra.mxu3 %v982_v31  ;;  %v655_v47 = vadd.f32 %v654_v33, %v3522_v1  ;;  %v967_v1 = vld [vmem:[#allocation2 + $0x180] sm:$0xff]  ;;  %v968_v33 = vld [vmem:[#allocation2 + $0x188] sm:$0xff] }
 0x162   : > { %v850_v36 = vpop.f32.mrf.mxu2 }
 0x163   : > { %v915_v28 = vadd.f32 %v850_v36, %v650_v35  ;;  %693 = vmatmul.bf16.gmra.mxu1 %v982_v31  ;;  %v983_v36 = vpack.c.bf16 %v966_v3, %v965_v44  ;;  %v735_v44 = vld [vmem:[#allocation2 + $0x172] sm:$0xff] }
 0x164   : > { %v1083_v0 = vpop.f32.mrf.mxu3 }
 0x165   : > { %v1148_v60 = vadd.f32 %v1083_v0, %v915_v28  ;;  %v1201_v0 = vld [vmem:[#allocation2 + $0x189] sm:$0xff] }
 0x166   : > { %v1321_v19 = vpop.f32.mrf.mxu0  ;;  %v1217_v4 = vpack.c.bf16 %v1201_v0, %v1200_v43 }
 0x167   : > { %v3689_v51 = vadd.f32 %v1316_v52, %v1148_v60 }
 0x168   : > { %v656_v26 = vpop.f32.mrf.mxu1 }
 0x169   : > { %1360 = vmatmul.bf16.gmra.mxu0 %v1216_v23 }
 0x16a   : > { %v852_v42 = vpop.f32.mrf.mxu2 }
 0x16b   : > { %v916_v16 = vadd.f32 %v852_v42, %v652_v37  ;;  %v734_v42 = vld [vmem:[#allocation2 + $0x16a] sm:$0xff] }
 0x16c   : > { %v1085_v35 = vpop.f32.mrf.mxu3 }
 0x16d   : > { %v1149_v31 = vadd.f32 %v1085_v35, %v916_v16 }
 0x16e   : > { %v1323_v28 = vpop.f32.mrf.mxu0 }
 0x16f   : > { %894 = vmatmul.bf16.gmra.mxu2 %v3692_v18  ;;  %v3695_v52 = vadd.f32 %v1318_v54, %v1149_v31  ;;  %v657_v54 = vadd.f32 %v656_v26, %v3530_v6 }
 0x170   : > { %v659_v9 = vpop.f32.mrf.mxu1 }
 0x171   : > { %4208 = vst [vmem:[#allocation13_spill] sm:$0xff] %v3695_v52  ;;  %1127 = vmatmul.bf16.gmra.mxu3 %v983_v36  ;;  %v3701_v52 = vpack.c.bf16 %v735_v44, %v734_v42  ;;  %v660_v0 = vadd.f32 %v659_v9, %v3542_v17  ;;  %v1405_v9 = vld [vmem:[#allocation2 + $0x32] sm:$0xff] }
 0x172   : > { %v855_v55 = vpop.f32.mrf.mxu2 }
 0x173   : > { %v917_v60 = vadd.f32 %v855_v55, %v655_v47  ;;  %698 = vmatmul.bf16.gmra.mxu1 %v983_v36  ;;  %v984_v55 = vpack.c.bf16 %v968_v33, %v967_v1  ;;  %v1871_v1 = vld [vmem:[#allocation2 + $0x39] sm:$0xff] }
 0x174   : > { %v1088_v23 = vpop.f32.mrf.mxu3 }
 0x175   : > { %v1150_v58 = vadd.f32 %v1088_v23, %v917_v60 }
 0x176   : > { %v1326_v37 = vpop.f32.mrf.mxu0 }
 0x177   : > { %v3698_v16 = vadd.f32 %v1321_v19, %v1150_v58 }
 0x178   : > { %v661_v3 = vpop.f32.mrf.mxu1 }
 0x179   : > { %1365 = vmatmul.bf16.gmra.mxu0 %v1217_v4 }
 0x17a   : > { %v857_v35 = vpop.f32.mrf.mxu2 }
 0x17b   : > { %v918_v31 = vadd.f32 %v857_v35, %v657_v54  ;;  %v662_v54 = vadd.f32 %v661_v3, %v3562_v29  ;;  %v1870_v35 = vld [vmem:[#allocation2 + $0x31] sm:$0xff] }
 0x17c   : > { %v1090_v47 = vpop.f32.mrf.mxu3 }
 0x17d   : > { %v1151_v36 = vadd.f32 %v1090_v47, %v918_v31  ;;  %v1406_v31 = vld [vmem:[#allocation2 + $0x3a] sm:$0xff] }
 0x17e   : > { %v1328_v60 = vpop.f32.mrf.mxu0 }
 0x17f   : > { %899 = vmatmul.bf16.gmra.mxu2 %v3701_v52  ;;  %v3704_v19 = vadd.f32 %v1323_v28, %v1151_v36  ;;  %v1902_v36 = vpack.c.bf16 %v1871_v1, %v1870_v35  ;;  %v1872_v1 = vld [vmem:[#allocation2 + $0x49] sm:$0xff] }
 0x180   : > { %v664_v43 = vpop.f32.mrf.mxu1 }
 0x181   : > { %1132 = vmatmul.bf16.gmra.mxu3 %v984_v55  ;;  %v1436_v55 = vpack.c.bf16 %v1406_v31, %v1405_v9  ;;  %v665_v29 = vadd.f32 %v664_v43, %v3498_v48 }
 0x182   : > { %v860_v6 = vpop.f32.mrf.mxu2 }
 0x183   : > { %v919_v26 = vadd.f32 %v860_v6, %v660_v0  ;;  %1523 = vmatmul.bf16.vlgmr.msra.gmra.mxu1 %v3448_v14 }
 0x184   : > { %v1093_v23 = vpop.f32.mrf.mxu3 }
 0x185   : > { %v1152_v58 = vadd.f32 %v1093_v23, %v919_v26 }
 0x186   : > { %v1331_v4 = vpop.f32.mrf.mxu0 }
 0x187   : > { %v3708_v42 = vadd.f32 %v1326_v37, %v1152_v58 }
 0x188   : > { %v666_v44 = vpop.f32.mrf.mxu1 }
 0x189   : > { %2223 = vmatmul.bf16.vlgmr.msra.gmra.mxu0 %v3455_v21 }
 0x18a   : > { %v862_v28 = vpop.f32.mrf.mxu2 }
 0x18b   : > { %v920_v33 = vadd.f32 %v862_v28, %v662_v54  ;;  %v1639_v54 = vld [vmem:[#allocation2 + $0x48] sm:$0xff]  ;;  %v1640_v28 = vld [vmem:[#allocation2 + $0x50] sm:$0xff] }
 0x18c   : > { %v1095_v17 = vpop.f32.mrf.mxu3  ;;  %v1670_v43 = vpack.c.bf16 %v1640_v28, %v1639_v54  ;;  %v1874_v28 = vld [vmem:[#allocation2 + $0x61] sm:$0xff] }
 0x18d   : > { %v1153_v47 = vadd.f32 %v1095_v17, %v920_v33  ;;  %v1873_v33 = vld [vmem:[#allocation2 + $0x51] sm:$0xff] }
 0x18e   : > { %v1333_v14 = vpop.f32.mrf.mxu0  ;;  %v1903_v31 = vpack.c.bf16 %v1873_v33, %v1872_v1  ;;  %v1410_v1 = vld [vmem:[#allocation2 + $0x6a] sm:$0xff] }
 0x18f   : > { %1757 = vmatmul.bf16.vlgmr.msra.gmra.mxu2 %v3450_v15  ;;  %v3713_v37 = vadd.f32 %v1328_v60, %v1153_v47  ;;  %v667_v15 = vadd.f32 %v666_v44, %v3513_v57 }
 0x190   : > { %v669_v0 = vpop.f32.mrf.mxu1 }
 0x191   : > { %1990 = vmatmul.bf16.vlgmr.msra.gmra.mxu3 %v1902_v36 }
 0x192   : > { %v865_v21 = vpop.f32.mrf.mxu2 }
 0x193   : > { %v921_v3 = vadd.f32 %v865_v21, %v665_v29  ;;  %1528 = vmatmul.bf16.gmra.mxu1 %v1436_v55  ;;  %v670_v55 = vadd.f32 %v669_v0, %v3524_v2  ;;  %v1409_v0 = vld [vmem:[#allocation2 + $0x62] sm:$0xff] }
 0x194   : > { %v1098_v6 = vpop.f32.mrf.mxu3 }
 0x195   : > { %v1154_v26 = vadd.f32 %v1098_v6, %v921_v3 }
 0x196   : > { %v1336_v23 = vpop.f32.mrf.mxu0 }
 0x197   : > { %v3716_v58 = vadd.f32 %v1331_v4, %v1154_v26 }
 0x198   : > { %v671_v35 = vpop.f32.mrf.mxu1 }
 0x199   : > { %2228 = vmatmul.bf16.gmra.mxu0 %v3471_v32  ;;  %v672_v54 = vadd.f32 %v671_v35, %v3533_v7 }
 0x19a   : > { %v867_v60 = vpop.f32.mrf.mxu2 }
 0x19b   : > { %v922_v48 = vadd.f32 %v867_v60, %v667_v15  ;;  %v1875_v15 = vld [vmem:[#allocation2 + $0x69] sm:$0xff] }
 0x19c   : > { %v1100_v17 = vpop.f32.mrf.mxu3 }
 0x19d   : > { %v1155_v9 = vadd.f32 %v1100_v17, %v922_v48  ;;  %v1904_v48 = vpack.c.bf16 %v1875_v15, %v1874_v28  ;;  %v1411_v15 = vld [vmem:[#allocation2 + $0x7a] sm:$0xff] }
 0x19e   : > { %v1338_v47 = vpop.f32.mrf.mxu0 }
 0x19f   : > { %1762 = vmatmul.bf16.gmra.mxu2 %v1670_v43  ;;  %v3720_v36 = vadd.f32 %v1333_v14, %v1155_v9  ;;  %v1438_v43 = vpack.c.bf16 %v1410_v1, %v1409_v0 }
 0x1a0   : > { %v674_v4 = vpop.f32.mrf.mxu1 }
 0x1a1   : > { %1995 = vmatmul.bf16.gmra.mxu3 %v1903_v31  ;;  %v675_v7 = vadd.f32 %v674_v4, %v3550_v20 }
 0x1a2   : > { %v870_v29 = vpop.f32.mrf.mxu2 }
 0x1a3   : > { %v923_v57 = vadd.f32 %v870_v29, %v670_v55  ;;  %1533 = vmatmul.bf16.gmra.mxu1 %v3471_v32 }
 0x1a4   : > { %v1103_v44 = vpop.f32.mrf.mxu3 }
 0x1a5   : > { %v1156_v21 = vadd.f32 %v1103_v44, %v923_v57  ;;  %v1643_v57 = vld [vmem:[#allocation2 + $0x78] sm:$0xff]  ;;  %v1644_v44 = vld [vmem:[#allocation2 + $0x80] sm:$0xff] }
 0x1a6   : > { %v1341_v3 = vpop.f32.mrf.mxu0  ;;  %v1672_v4 = vpack.c.bf16 %v1644_v44, %v1643_v57 }
 0x1a7   : > { %v3724_v6 = vadd.f32 %v1336_v23, %v1156_v21 }
 0x1a8   : > { %v676_v26 = vpop.f32.mrf.mxu1 }
 0x1a9   : > { %2233 = vmatmul.bf16.gmra.mxu0 %v3485_v40 }
 0x1aa   : > { %v872_v14 = vpop.f32.mrf.mxu2 }
 0x1ab   : > { %v924_v60 = vadd.f32 %v872_v14, %v672_v54  ;;  %v1876_v54 = vld [vmem:[#allocation2 + $0x79] sm:$0xff]  ;;  %v1877_v14 = vld [vmem:[#allocation2 + $0x81] sm:$0xff] }
 0x1ac   : > { %v1105_v2 = vpop.f32.mrf.mxu3  ;;  %v1905_v0 = vpack.c.bf16 %v1877_v14, %v1876_v54  ;;  %v1413_v14 = vld [vmem:[#allocation2 + $0x92] sm:$0xff] }
 0x1ad   : > { %v1157_v33 = vadd.f32 %v1105_v2, %v924_v60  ;;  %v1412_v60 = vld [vmem:[#allocation2 + $0x82] sm:$0xff] }
 0x1ae   : > { %v1343_v32 = vpop.f32.mrf.mxu0 }
 0x1af   : > { %1767 = vmatmul.bf16.gmra.mxu2 %v3475_v34  ;;  %v3729_v23 = vadd.f32 %v1338_v47, %v1157_v33  ;;  %v677_v34 = vadd.f32 %v676_v26, %v3565_v30 }
 0x1b0   : > { %v679_v17 = vpop.f32.mrf.mxu1 }
 0x1b1   : > { %2000 = vmatmul.bf16.gmra.mxu3 %v1904_v48  ;;  %v680_v30 = vadd.f32 %v679_v17, %v3577_v56 }
 0x1b2   : > { %v875_v40 = vpop.f32.mrf.mxu2 }
 0x1b3   : > { %v925_v35 = vadd.f32 %v875_v40, %v675_v7  ;;  %1538 = vmatmul.bf16.gmra.mxu1 %v1438_v43 }
 0x1b4   : > { %v1108_v9 = vpop.f32.mrf.mxu3 }
 0x1b5   : > { %v1158_v31 = vadd.f32 %v1108_v9, %v925_v35  ;;  %v1645_v9 = vld [vmem:[#allocation2 + $0x90] sm:$0xff] }
 0x1b6   : > { %v1346_v55 = vpop.f32.mrf.mxu0 }
 0x1b7   : > { %v3732_v29 = vadd.f32 %v1341_v3, %v1158_v31  ;;  %v1439_v3 = vpack.c.bf16 %v1412_v60, %v1411_v15  ;;  %v1646_v31 = vld [vmem:[#allocation2 + $0x98] sm:$0xff] }
 0x1b8   : > { %v681_v21 = vpop.f32.mrf.mxu1  ;;  %v1673_v17 = vpack.c.bf16 %v1646_v31, %v1645_v9  ;;  %v1880_v31 = vld [vmem:[#allocation2 + $0xa9] sm:$0xff] }
 0x1b9   : > { %2238 = vmatmul.bf16.gmra.mxu0 %v3515_v61  ;;  %v682_v44 = vadd.f32 %v681_v21, %v3584_v59 }
 0x1ba   : > { %v877_v47 = vpop.f32.mrf.mxu2 }
 0x1bb   : > { %v926_v20 = vadd.f32 %v877_v47, %v677_v34  ;;  %v1878_v34 = vld [vmem:[#allocation2 + $0x91] sm:$0xff]  ;;  %v1879_v47 = vld [vmem:[#allocation2 + $0x99] sm:$0xff] }
 0x1bc   : > { %v1110_v28 = vpop.f32.mrf.mxu3 }
 0x1bd   : > { %v1159_v2 = vadd.f32 %v1110_v28, %v926_v20  ;;  %v1414_v20 = vld [vmem:[#allocation2 + $0x9a] sm:$0xff]  ;;  %v1906_v28 = vpack.c.bf16 %v1879_v47, %v1878_v34 }
 0x1be   : > { %v1348_v1 = vpop.f32.mrf.mxu0 }
 0x1bf   : > { %1772 = vmatmul.bf16.gmra.mxu2 %v1672_v4  ;;  %v3736_v33 = vadd.f32 %v1343_v32, %v1159_v2 }
 0x1c0   : > { %v684_v48 = vpop.f32.mrf.mxu1 }
 0x1c1   : > { %2005 = vmatmul.bf16.gmra.mxu3 %v1905_v0  ;;  %v685_v59 = vadd.f32 %v684_v48, %v3500_v49 }
 0x1c2   : > { %v880_v61 = vpop.f32.mrf.mxu2 }
 0x1c3   : > { %v927_v26 = vadd.f32 %v880_v61, %v680_v30  ;;  %1543 = vmatmul.bf16.gmra.mxu1 %v1439_v3 }
 0x1c4   : > { %v1113_v43 = vpop.f32.mrf.mxu3 }
 0x1c5   : > { %v1160_v7 = vadd.f32 %v1113_v43, %v927_v26  ;;  %v1647_v26 = vld [vmem:[#allocation2 + $0xa8] sm:$0xff]  ;;  %v1648_v43 = vld [vmem:[#allocation2 + $0xb0] sm:$0xff] }
 0x1c6   : > { %v1351_v40 = vpop.f32.mrf.mxu0  ;;  %v1674_v48 = vpack.c.bf16 %v1648_v43, %v1647_v26 }
 0x1c7   : > { %v3739_v35 = vadd.f32 %v1346_v55, %v1160_v7  ;;  %v1440_v55 = vpack.c.bf16 %v1414_v20, %v1413_v14 }
 0x1c8   : > { %v686_v57 = vpop.f32.mrf.mxu1 }
 0x1c9   : > { %2243 = vmatmul.bf16.gmra.mxu0 %v3535_v10  ;;  %v687_v9 = vadd.f32 %v686_v57, %v3517_v62 }
 0x1ca   : > { %v882_v32 = vpop.f32.mrf.mxu2 }
 0x1cb   : > { %v928_v56 = vadd.f32 %v882_v32, %v682_v44  ;;  %v1881_v44 = vld [vmem:[#allocation2 + $0xb1] sm:$0xff] }
 0x1cc   : > { %v1115_v54 = vpop.f32.mrf.mxu3  ;;  %v1907_v47 = vpack.c.bf16 %v1881_v44, %v1880_v31 }
 0x1cd   : > { %v1161_v4 = vadd.f32 %v1115_v54, %v928_v56 }
 0x1ce   : > { %v1353_v15 = vpop.f32.mrf.mxu0 }
 0x1cf   : > { %1777 = vmatmul.bf16.gmra.mxu2 %v1673_v17  ;;  %v3743_v60 = vadd.f32 %v1348_v1, %v1161_v4 }
 0x1d0   : > { %v689_v2 = vpop.f32.mrf.mxu1 }
 0x1d1   : > { %2010 = vmatmul.bf16.gmra.mxu3 %v1906_v28  ;;  %v690_v54 = vadd.f32 %v689_v2, %v3526_v25  ;;  %v1417_v2 = vld [vmem:[#allocation2 + $0xc2] sm:$0xff] }
 0x1d2   : > { %v885_v10 = vpop.f32.mrf.mxu2 }
 0x1d3   : > { %v929_v21 = vadd.f32 %v885_v10, %v685_v59  ;;  %1548 = vmatmul.bf16.gmra.mxu1 %v1440_v55  ;;  %v1882_v10 = vld [vmem:[#allocation2 + $0xc1] sm:$0xff] }
 0x1d4   : > { %v1118_v0 = vpop.f32.mrf.mxu3 }
 0x1d5   : > { %v1162_v3 = vadd.f32 %v1118_v0, %v929_v21  ;;  %v1883_v21 = vld [vmem:[#allocation2 + $0xc9] sm:$0xff] }
 0x1d6   : > { %v1356_v30 = vpop.f32.mrf.mxu0  ;;  %v1908_v43 = vpack.c.bf16 %v1883_v21, %v1882_v10 }
 0x1d7   : > { %v3746_v61 = vadd.f32 %v1351_v40, %v1162_v3  ;;  %v1418_v3 = vld [vmem:[#allocation2 + $0xca] sm:$0xff] }
 0x1d8   : > { %v691_v7 = vpop.f32.mrf.mxu1 }
 0x1d9   : > { %2248 = vmatmul.bf16.gmra.mxu0 %v3567_v13  ;;  %v692_v59 = vadd.f32 %v691_v7, %v3537_v11 }
 0x1da   : > { %v887_v1 = vpop.f32.mrf.mxu2 }
 0x1db   : > { %v930_v49 = vadd.f32 %v887_v1, %v687_v9  ;;  %v1442_v9 = vpack.c.bf16 %v1418_v3, %v1417_v2 }
 0x1dc   : > { %v1120_v32 = vpop.f32.mrf.mxu3 }
 0x1dd   : > { %v1163_v34 = vadd.f32 %v1120_v32, %v930_v49  ;;  %v1651_v32 = vld [vmem:[#allocation2 + $0xd8] sm:$0xff] }
 0x1de   : > { %v1358_v56 = vpop.f32.mrf.mxu0 }
 0x1df   : > { %1782 = vmatmul.bf16.gmra.mxu2 %v1674_v48  ;;  %v3750_v17 = vadd.f32 %v1353_v15, %v1163_v34  ;;  %v1652_v34 = vld [vmem:[#allocation2 + $0xe0] sm:$0xff] }
 0x1e0   : > { %v694_v40 = vpop.f32.mrf.mxu1 }
 0x1e1   : > { %2015 = vmatmul.bf16.gmra.mxu3 %v1907_v47  ;;  %v695_v11 = vadd.f32 %v694_v40, %v3552_v22  ;;  %v1676_v40 = vpack.c.bf16 %v1652_v34, %v1651_v32 }
 0x1e2   : > { %v890_v14 = vpop.f32.mrf.mxu2 }
 0x1e3   : > { %v931_v62 = vadd.f32 %v890_v14, %v690_v54  ;;  %1553 = vmatmul.bf16.gmra.mxu1 %v3567_v13  ;;  %v1884_v54 = vld [vmem:[#allocation2 + $0xd9] sm:$0xff]  ;;  %v1885_v14 = vld [vmem:[#allocation2 + $0xe1] sm:$0xff] }
 0x1e4   : > { %v1123_v57 = vpop.f32.mrf.mxu3 }
 0x1e5   : > { %v1164_v20 = vadd.f32 %v1123_v57, %v931_v62 }
 0x1e6   : > { %v1361_v4 = vpop.f32.mrf.mxu0 }
 0x1e7   : > { %v3754_v28 = vadd.f32 %v1356_v30, %v1164_v20  ;;  %v1909_v20 = vpack.c.bf16 %v1885_v14, %v1884_v54  ;;  %v1656_v14 = vld [vmem:[#allocation2 + $0x110] sm:$0xff] }
 0x1e8   : > { %v696_v55 = vpop.f32.mrf.mxu1 }
 0x1e9   : > { %2253 = vmatmul.bf16.gmra.mxu0 %v3586_v5 }
 0x1ea   : > { %v892_v15 = vpop.f32.mrf.mxu2 }
 0x1eb   : > { %v932_v0 = vadd.f32 %v892_v15, %v692_v59 }
 0x1ec   : > { %v1125_v25 = vpop.f32.mrf.mxu3 }
 0x1ed   : > { %v1165_v26 = vadd.f32 %v1125_v25, %v932_v0 }
 0x1ee   : > { %v1363_v13 = vpop.f32.mrf.mxu0 }
 0x1ef   : > { %1787 = vmatmul.bf16.gmra.mxu2 %v3571_v39  ;;  %v3759_v30 = vadd.f32 %v1358_v56, %v1165_v26  ;;  %v697_v39 = vadd.f32 %v696_v55, %v3569_v38 }
 0x1f0   : > { %v699_v1 = vpop.f32.mrf.mxu1 }
 0x1f1   : > { %2020 = vmatmul.bf16.gmra.mxu3 %v1908_v43  ;;  %v700_v10 = vadd.f32 %v699_v1, %v3580_v46  ;;  %v1421_v1 = vld [vmem:[#allocation2 + $0xf2] sm:$0xff] }
 0x1f2   : > { %v895_v5 = vpop.f32.mrf.mxu2 }
 0x1f3   : > { %v933_v7 = vadd.f32 %v895_v5, %v695_v11  ;;  %1558 = vmatmul.bf16.gmra.mxu1 %v1442_v9  ;;  %v1887_v9 = vld [vmem:[#allocation2 + $0xf9] sm:$0xff] }
 0x1f4   : > { %v1128_v31 = vpop.f32.mrf.mxu3  ;;  %v1422_v5 = vld [vmem:[#allocation2 + $0xfa] sm:$0xff] }
 0x1f5   : > { %v1166_v44 = vadd.f32 %v1128_v31, %v933_v7 }
 0x1f6   : > { %v1366_v49 = vpop.f32.mrf.mxu0 }
 0x1f7   : > { %v3762_v48 = vadd.f32 %v1361_v4, %v1166_v44  ;;  %v1444_v44 = vpack.c.bf16 %v1422_v5, %v1421_v1 }
 0x1f8   : > { %v701_v47 = vpop.f32.mrf.mxu1 }
 0x1f9   : > { %2258 = vmatmul.bf16.gmra.mxu0 %v3609_v41  ;;  %v702_v26 = vadd.f32 %v701_v47, %v3588_v8 }
 0x1fa   : > { %v897_v56 = vpop.f32.mrf.mxu2 }
 0x1fb   : > { %v934_v22 = vadd.f32 %v897_v56, %v697_v39 }
 0x1fc   : > { %v1130_v62 = vpop.f32.mrf.mxu3 }
 0x1fd   : > { %v1167_v57 = vadd.f32 %v1130_v62, %v934_v22  ;;  %v4209_v62 = vld [vmem:[#allocation7_spill] sm:$0xff] }
 0x1fe   : > { %v1368_v59 = vpop.f32.mrf.mxu0 }
 0x1ff   : > { %1792 = vmatmul.bf16.gmra.mxu2 %v1676_v40  ;;  %v3766_v15 = vadd.f32 %v1363_v13, %v1167_v57  ;;  %v1886_v13 = vld [vmem:[#allocation2 + $0xf1] sm:$0xff] }
 0x200   : > { %v1524_v4 = vpop.f32.mrf.mxu1 }
 0x201   : > { %2025 = vmatmul.bf16.gmra.mxu3 %v1909_v20  ;;  %v1604_v8 = vadd.f32 %v1524_v4, %v3605_v45  ;;  %v1888_v20 = vld [vmem:[#allocation2 + $0x109] sm:$0xff] }
 0x202   : > { %v900_v21 = vpop.f32.mrf.mxu2 }
 0x203   : > { %v935_v38 = vadd.f32 %v900_v21, %v700_v10  ;;  %1563 = vmatmul.bf16.gmra.mxu1 %v3609_v41  ;;  %v1910_v41 = vpack.c.bf16 %v1887_v9, %v1886_v13 }
 0x204   : > { %v1133_v55 = vpop.f32.mrf.mxu3 }
 0x205   : > { %v1168_v0 = vadd.f32 %v1133_v55, %v935_v38 }
 0x206   : > { %v2224_v25 = vpop.f32.mrf.mxu0 }
 0x207   : > { %v3770_v2 = vadd.f32 %v1366_v49, %v1168_v0 }
 0x208   : > { %v1526_v3 = vpop.f32.mrf.mxu1 }
 0x209   : > { %2263 = vmatmul.bf16.gmra.mxu0 %v3623_v24  ;;  %v1605_v40 = vadd.f32 %v1526_v3, %v3614_v50  ;;  %v4210_v3 = vld [vmem:[#allocation3_spill] sm:$0xff] }
 0x20a   : > { %v902_v43 = vpop.f32.mrf.mxu2 }
 0x20b   : > { %v936_v11 = vadd.f32 %v902_v43, %v702_v26 }
 0x20c   : > { %v1135_v46 = vpop.f32.mrf.mxu3 }
 0x20d   : > { %v1169_v7 = vadd.f32 %v1135_v46, %v936_v11 }
 0x20e   : > { %v2226_v31 = vpop.f32.mrf.mxu0 }
 0x20f   : > { %1797 = vmatmul.bf16.gmra.mxu2 %v3611_v27  ;;  %v3775_v49 = vadd.f32 %v1368_v59, %v1169_v7  ;;  %v1655_v27 = vld [vmem:[#allocation2 + $0x108] sm:$0xff]  ;;  %v1889_v59 = vld [vmem:[#allocation2 + $0x111] sm:$0xff] }
 0x210   : > { %v1529_v32 = vpop.f32.mrf.mxu1  ;;  %v1678_v10 = vpack.c.bf16 %v1656_v14, %v1655_v27  ;;  %v1911_v55 = vpack.c.bf16 %v1889_v59, %v1888_v20  ;;  %v4212_v14 = vld [vmem:[#allocation8_spill] sm:$0xff] }
 0x211   : > { %2030 = vmatmul.bf16.gmra.mxu3 %v1910_v41  ;;  %v1606_v43 = vadd.f32 %v1529_v32, %v4210_v3 }
 0x212   : > { %v1758_v24 = vpop.f32.mrf.mxu2 }
 0x213   : > { %v1838_v34 = vadd.f32 %v1758_v24, %v1604_v8  ;;  %1568 = vmatmul.bf16.gmra.mxu1 %v1444_v44 }
 0x214   : > { %v1991_v47 = vpop.f32.mrf.mxu3 }
 0x215   : > { %v2071_v39 = vadd.f32 %v1991_v47, %v1838_v34  ;;  %v1425_v34 = vld [vmem:[#allocation2 + $0x122] sm:$0xff]  ;;  %v1426_v47 = vld [vmem:[#allocation2 + $0x12a] sm:$0xff] }
 0x216   : > { %v2229_v56 = vpop.f32.mrf.mxu0 }
 0x217   : > { %v3779_v54 = vadd.f32 %v2224_v25, %v2071_v39 }
 0x218   : > { %v1531_v45 = vpop.f32.mrf.mxu1 }
 0x219   : > { %v2336_v22 = vpack.c.bf16 %v3779_v54, %v3779_v54  ;;  %2268 = vmatmul.bf16.gmra.mxu0 %v4209_v62 }
 0x21a   : > { %v1760_v57 = vpop.f32.mrf.mxu2 }
 0x21b   : > { %2369 = vst.msk [vmem:[%s3784_s19] sm:$0xf] %vm2368_vm1, %v2336_v22  ;;  %v1839_v4 = vadd.f32 %v1760_v57, %v1605_v40  ;;  %v1446_v22 = vpack.c.bf16 %v1426_v47, %v1425_v34  ;;  %v4214_v57 = vld [vmem:[#allocation5_spill] sm:$0xff] }
 0x21c   : > { %v1993_v21 = vpop.f32.mrf.mxu3 }
 0x21d   : > { %v2072_v38 = vadd.f32 %v1993_v21, %v1839_v4 }
 0x21e   : > { %v2231_v0 = vpop.f32.mrf.mxu0 }
 0x21f   : > { %v3792_v25 = vadd.f32 %v2226_v31, %v2072_v38  ;;  %1802 = vmatmul.bf16.gmra.mxu2 %v1678_v10  ;;  %v4211_v31 = vld [vmem:[#allocation4_spill] sm:$0xff] }
 0x220   : > { %v1534_v26 = vpop.f32.mrf.mxu1  ;;  %v1607_v44 = vadd.f32 %v1531_v45, %v4211_v31  ;;  %v1427_v31 = vld [vmem:[#allocation2 + $0x13a] sm:$0xff] }
 0x221   : > { %v2337_v50 = vpack.c.bf16 %v3792_v25, %v3792_v25  ;;  %2035 = vmatmul.bf16.gmra.mxu3 %v1911_v55  ;;  %v1659_v55 = vld [vmem:[#allocation2 + $0x138] sm:$0xff] }
 0x222   : > { %v1763_v13 = vpop.f32.mrf.mxu2 }
 0x223   : > { %2370 = vst.msk [vmem:[%s3784_s19 + $0x4] sm:$0xf] %vm2368_vm1, %v2337_v50  ;;  %v1840_v9 = vadd.f32 %v1763_v13, %v1606_v43  ;;  %1573 = vmatmul.bf16.gmra.mxu1 %v4209_v62 }
 0x224   : > { %v1996_v11 = vpop.f32.mrf.mxu3 }
 0x225   : > { %v2073_v46 = vadd.f32 %v1996_v11, %v1840_v9  ;;  %v1892_v9 = vld [vmem:[#allocation2 + $0x139] sm:$0xff]  ;;  %v1893_v11 = vld [vmem:[#allocation2 + $0x141] sm:$0xff] }
 0x226   : > { %v2234_v1 = vpop.f32.mrf.mxu0 }
 0x227   : > { %v3800_v5 = vadd.f32 %v2229_v56, %v2073_v46 }
 0x228   : > { %v1536_v7 = vpop.f32.mrf.mxu1 }
 0x229   : > { %v2338_v41 = vpack.c.bf16 %v3800_v5, %v3800_v5  ;;  %2273 = vmatmul.bf16.gmra.mxu0 %v3658_v53  ;;  %v4213_v53 = vld [vmem:[#allocation6_spill] sm:$0xff] }
 0x22a   : > { %v1765_v32 = vpop.f32.mrf.mxu2  ;;  %v1608_v62 = vadd.f32 %v1534_v26, %v4213_v53  ;;  %v4215_v26 = vld [vmem:[#allocation9_spill] sm:$0xff] }
 0x22b   : > { %2371 = vst.msk [vmem:[%s3784_s19 + $0x8] sm:$0xf] %vm2368_vm1, %v2338_v41  ;;  %v1841_v8 = vadd.f32 %v1765_v32, %v1607_v44  ;;  %v1609_v43 = vadd.f32 %v1536_v7, %v4215_v26  ;;  %v1428_v44 = vld [vmem:[#allocation2 + $0x142] sm:$0xff] }
 0x22c   : > { %v1998_v24 = vpop.f32.mrf.mxu3  ;;  %v1447_v7 = vpack.c.bf16 %v1428_v44, %v1427_v31  ;;  %v4217_v31 = vld [vmem:[#allocation11_spill] sm:$0xff] }
 0x22d   : > { %v2074_v39 = vadd.f32 %v1998_v24, %v1841_v8  ;;  %v1913_v8 = vpack.c.bf16 %v1893_v11, %v1892_v9 }
 0x22e   : > { %v2236_v27 = vpop.f32.mrf.mxu0 }
 0x22f   : > { %v3808_v56 = vadd.f32 %v2231_v0, %v2074_v39  ;;  %1807 = vmatmul.bf16.gmra.mxu2 %v4212_v14  ;;  %v1660_v0 = vld [vmem:[#allocation2 + $0x140] sm:$0xff] }
 0x230   : > { %v1539_v40 = vpop.f32.mrf.mxu1  ;;  %v1680_v41 = vpack.c.bf16 %v1660_v0, %v1659_v55  ;;  %v1894_v55 = vld [vmem:[#allocation2 + $0x151] sm:$0xff]  ;;  %v1895_v0 = vld [vmem:[#allocation2 + $0x159] sm:$0xff] }
 0x231   : > { %v2339_v45 = vpack.c.bf16 %v3808_v56, %v3808_v56  ;;  %2040 = vmatmul.bf16.gmra.mxu3 %v4214_v57  ;;  %v1610_v39 = vadd.f32 %v1539_v40, %v3656_v63  ;;  %v1661_v57 = vld [vmem:[#allocation2 + $0x150] sm:$0xff]  ;;  %v1914_v11 = vpack.c.bf16 %v1895_v0, %v1894_v55 }
 0x232   : > { %v1768_v20 = vpop.f32.mrf.mxu2  ;;  %v1432_v0 = vld [vmem:[#allocation2 + $0x172] sm:$0xff] }
 0x233   : > { %2372 = vst.msk [vmem:[%s3784_s19 + $0xc] sm:$0xf] %vm2368_vm1, %v2339_v45  ;;  %v1842_v59 = vadd.f32 %v1768_v20, %v1608_v62  ;;  %1578 = vmatmul.bf16.gmra.mxu1 %v1446_v22  ;;  %v1662_v20 = vld [vmem:[#allocation2 + $0x158] sm:$0xff] }
 0x234   : > { %v2001_v4 = vpop.f32.mrf.mxu3  ;;  %v1681_v26 = vpack.c.bf16 %v1662_v20, %v1661_v57  ;;  %v4218_v57 = vld [vmem:[#allocation12_spill] sm:$0xff] }
 0x235   : > { %v2075_v10 = vadd.f32 %v2001_v4, %v1842_v59 }
 0x236   : > { %v2239_v21 = vpop.f32.mrf.mxu0 }
 0x237   : > { %v3817_v38 = vadd.f32 %v2234_v1, %v2075_v10  ;;  %v4216_v10 = vld [vmem:[#allocation10_spill] sm:$0xff] }
 0x238   : > { %v1541_v50 = vpop.f32.mrf.mxu1 }
 0x239   : > { %v2340_v3 = vpack.c.bf16 %v3817_v38, %v3817_v38  ;;  %2278 = vmatmul.bf16.gmra.mxu0 %v3683_v12  ;;  %v1611_v63 = vadd.f32 %v1541_v50, %v4216_v10  ;;  %v1897_v10 = vld [vmem:[#allocation2 + $0x171] sm:$0xff] }
 0x23a   : > { %v1770_v13 = vpop.f32.mrf.mxu2 }
 0x23b   : > { %2373 = vst.msk [vmem:[%s3784_s19 + $0x10] sm:$0xf] %vm2368_vm1, %v2340_v3  ;;  %v1843_v46 = vadd.f32 %v1770_v13, %v1609_v43  ;;  %v1429_v43 = vld [vmem:[#allocation2 + $0x152] sm:$0xff]  ;;  %v1430_v13 = vld [vmem:[#allocation2 + $0x15a] sm:$0xff] }
 0x23c   : > { %v2003_v1 = vpop.f32.mrf.mxu3  ;;  %v1448_v50 = vpack.c.bf16 %v1430_v13, %v1429_v43 }
 0x23d   : > { %v2076_v32 = vadd.f32 %v2003_v1, %v1843_v46 }
 0x23e   : > { %v2241_v24 = vpop.f32.mrf.mxu0 }
 0x23f   : > { %v3825_v34 = vadd.f32 %v2236_v27, %v2076_v32  ;;  %1812 = vmatmul.bf16.gmra.mxu2 %v1680_v41 }
 0x240   : > { %v1544_v47 = vpop.f32.mrf.mxu1 }
 0x241   : > { %v2341_v12 = vpack.c.bf16 %v3825_v34, %v3825_v34  ;;  %2045 = vmatmul.bf16.gmra.mxu3 %v1913_v8  ;;  %v1612_v44 = vadd.f32 %v1544_v47, %v4217_v31 }
 0x242   : > { %v1773_v14 = vpop.f32.mrf.mxu2 }
 0x243   : > { %2374 = vst.msk [vmem:[%s3784_s19 + $0x14] sm:$0xf] %vm2368_vm1, %v2341_v12  ;;  %v1844_v22 = vadd.f32 %v1773_v14, %v1610_v39  ;;  %1583 = vmatmul.bf16.gmra.mxu1 %v1447_v7  ;;  %v1663_v14 = vld [vmem:[#allocation2 + $0x168] sm:$0xff] }
 0x244   : > { %v2006_v45 = vpop.f32.mrf.mxu3 }
 0x245   : > { %v2077_v53 = vadd.f32 %v2006_v45, %v1844_v22  ;;  %v1664_v22 = vld [vmem:[#allocation2 + $0x170] sm:$0xff] }
 0x246   : > { %v2244_v62 = vpop.f32.mrf.mxu0 }
 0x247   : > { %v3832_v27 = vadd.f32 %v2239_v21, %v2077_v53 }
 0x248   : > { %v1546_v59 = vpop.f32.mrf.mxu1 }
 0x249   : > { %v2342_v4 = vpack.c.bf16 %v3832_v27, %v3832_v27  ;;  %2283 = vmatmul.bf16.gmra.mxu0 %v3692_v18  ;;  %v1613_v47 = vadd.f32 %v1546_v59, %v4218_v57 }
 0x24a   : > { %v1775_v40 = vpop.f32.mrf.mxu2 }
 0x24b   : > { %2375 = vst.msk [vmem:[%s3784_s19 + $0x18] sm:$0xf] %vm2368_vm1, %v2342_v4  ;;  %v1845_v3 = vadd.f32 %v1775_v40, %v1611_v63  ;;  %v1896_v4 = vld [vmem:[#allocation2 + $0x169] sm:$0xff]  ;;  %v1682_v40 = vpack.c.bf16 %v1664_v22, %v1663_v14 }
 0x24c   : > { %v2008_v21 = vpop.f32.mrf.mxu3  ;;  %v1666_v14 = vld [vmem:[#allocation2 + $0x188] sm:$0xff] }
 0x24d   : > { %v2078_v9 = vadd.f32 %v2008_v21, %v1845_v3 }
 0x24e   : > { %v2246_v46 = vpop.f32.mrf.mxu0 }
 0x24f   : > { %v3840_v41 = vadd.f32 %v2241_v24, %v2078_v9  ;;  %1817 = vmatmul.bf16.gmra.mxu2 %v1681_v26  ;;  %v1915_v26 = vpack.c.bf16 %v1897_v10, %v1896_v4 }
 0x250   : > { %v1549_v1 = vpop.f32.mrf.mxu1 }
 0x251   : > { %v2343_v18 = vpack.c.bf16 %v3840_v41, %v3840_v41  ;;  %2050 = vmatmul.bf16.gmra.mxu3 %v1914_v11  ;;  %v1614_v9 = vadd.f32 %v1549_v1, %v3689_v51  ;;  %v4219_v1 = vld [vmem:[#allocation13_spill] sm:$0xff] }
 0x252   : > { %v1778_v32 = vpop.f32.mrf.mxu2 }
 0x253   : > { %2376 = vst.msk [vmem:[%s3784_s19 + $0x1c] sm:$0xf] %vm2368_vm1, %v2343_v18  ;;  %v1846_v8 = vadd.f32 %v1778_v32, %v1612_v44  ;;  %1588 = vmatmul.bf16.gmra.mxu1 %v1448_v50  ;;  %v2131_v50 = vld [vmem:[#allocation2 + $0x182] sm:$0xff]  ;;  %v2132_v18 = vld [vmem:[#allocation2 + $0x18a] sm:$0xff] }
 0x254   : > { %v2011_v7 = vpop.f32.mrf.mxu3  ;;  %v2149_v32 = vpack.c.bf16 %v2132_v18, %v2131_v50 }
 0x255   : > { %v2079_v12 = vadd.f32 %v2011_v7, %v1846_v8 }
 0x256   : > { %v2249_v39 = vpop.f32.mrf.mxu0 }
 0x257   : > { %v3847_v24 = vadd.f32 %v2244_v62, %v2079_v12  ;;  %v1431_v62 = vld [vmem:[#allocation2 + $0x16a] sm:$0xff]  ;;  %v1665_v12 = vld [vmem:[#allocation2 + $0x180] sm:$0xff] }
 0x258   : > { %v1551_v45 = vpop.f32.mrf.mxu1  ;;  %v1449_v59 = vpack.c.bf16 %v1432_v0, %v1431_v62  ;;  %v1683_v10 = vpack.c.bf16 %v1666_v14, %v1665_v12  ;;  %v1900_v12 = vld [vmem:[#allocation2 + $0x199] sm:$0xff]  ;;  %v1901_v14 = vld [vmem:[#allocation2 + $0x1a1] sm:$0xff] }
 0x259   : > { %v2344_v53 = vpack.c.bf16 %v3847_v24, %v3847_v24  ;;  %2288 = vmatmul.bf16.gmra.mxu0 %v3701_v52 }
 0x25a   : > { %v1780_v20 = vpop.f32.mrf.mxu2 }
 0x25b   : > { %2377 = vst.msk [vmem:[%s3784_s19 + $0x20] sm:$0xf] %vm2368_vm1, %v2344_v53  ;;  %v1847_v63 = vadd.f32 %v1780_v20, %v1613_v47  ;;  %v1615_v53 = vadd.f32 %v1551_v45, %v4219_v1  ;;  %v1898_v47 = vld [vmem:[#allocation2 + $0x181] sm:$0xff]  ;;  %v1899_v20 = vld [vmem:[#allocation2 + $0x189] sm:$0xff] }
 0x25c   : > { %v2013_v55 = vpop.f32.mrf.mxu3 }
 0x25d   : > { %v2080_v3 = vadd.f32 %v2013_v55, %v1847_v63 }
 0x25e   : > { %v2251_v21 = vpop.f32.mrf.mxu0 }
 0x25f   : > { %v3855_v43 = vadd.f32 %v2246_v46, %v2080_v3  ;;  %1822 = vmatmul.bf16.gmra.mxu2 %v1682_v40  ;;  %v1916_v40 = vpack.c.bf16 %v1899_v20, %v1898_v47 }
 0x260   : > { %v1554_v13 = vpop.f32.mrf.mxu1 }
 0x261   : > { %v2345_v52 = vpack.c.bf16 %v3855_v43, %v3855_v43  ;;  %2055 = vmatmul.bf16.gmra.mxu3 %v1915_v26  ;;  %v1616_v3 = vadd.f32 %v1554_v13, %v3698_v16 }
 0x262   : > { %v1783_v11 = vpop.f32.mrf.mxu2 }
 0x263   : > { %2378 = vst.msk [vmem:[%s3784_s19 + $0x24] sm:$0xf] %vm2368_vm1, %v2345_v52  ;;  %v1848_v31 = vadd.f32 %v1783_v11, %v1614_v9  ;;  %1593 = vmatmul.bf16.gmra.mxu1 %v1449_v59  ;;  %v2133_v59 = vld [vmem:[#allocation2 + $0x19a] sm:$0xff]  ;;  %v2134_v52 = vld [vmem:[#allocation2 + $0x1a2] sm:$0xff] }
 0x264   : > { %v2016_v44 = vpop.f32.mrf.mxu3 }
 0x265   : > { %v2081_v46 = vadd.f32 %v2016_v44, %v1848_v31 }
 0x266   : > { %v2254_v8 = vpop.f32.mrf.mxu0 }
 0x267   : > { %v3862_v7 = vadd.f32 %v2249_v39, %v2081_v46 }
 0x268   : > { %v1556_v22 = vpop.f32.mrf.mxu1 }
 0x269   : > { %v2346_v51 = vpack.c.bf16 %v3862_v7, %v3862_v7  ;;  %2293 = vmatmul.bf16.gmra.mxu0 %v2149_v32  ;;  %v1617_v16 = vadd.f32 %v1556_v22, %v3704_v19 }
 0x26a   : > { %v1785_v57 = vpop.f32.mrf.mxu2 }
 0x26b   : > { %2379 = vst.msk [vmem:[%s3784_s19 + $0x28] sm:$0xf] %vm2368_vm1, %v2346_v51  ;;  %v1849_v4 = vadd.f32 %v1785_v57, %v1615_v53  ;;  %v3110_v51 = vld [vmem:[#allocation2] sm:$0xff] }
 0x26c   : > { %v2018_v63 = vpop.f32.mrf.mxu3  ;;  %v1684_v1 = vpack.c.bf16 %v3110_v51, %v3110_v51 }
 0x26d   : > { %v2082_v39 = vadd.f32 %v2018_v63, %v1849_v4 }
 0x26e   : > { %v2256_v55 = vpop.f32.mrf.mxu0 }
 0x26f   : > { %v3869_v62 = vadd.f32 %v2251_v21, %v2082_v39  ;;  %1827 = vmatmul.bf16.gmra.mxu2 %v1683_v10  ;;  %v2150_v21 = vpack.c.bf16 %v2134_v52, %v2133_v59 }
 0x270   : > { %v1559_v0 = vpop.f32.mrf.mxu1 }
 0x271   : > { %v2347_v45 = vpack.c.bf16 %v3869_v62, %v3869_v62  ;;  %2060 = vmatmul.bf16.gmra.mxu3 %v1916_v40  ;;  %v1618_v22 = vadd.f32 %v1559_v0, %v3708_v42 }
 0x272   : > { %v1788_v26 = vpop.f32.mrf.mxu2 }
 0x273   : > { %2380 = vst.msk [vmem:[%s3784_s19 + $0x2c] sm:$0xf] %vm2368_vm1, %v2347_v45  ;;  %v1850_v9 = vadd.f32 %v1788_v26, %v1616_v3  ;;  %1598 = vmatmul.bf16.gmra.mxu1 %v2149_v32 }
 0x274   : > { %v2021_v11 = vpop.f32.mrf.mxu3 }
 0x275   : > { %v2083_v50 = vadd.f32 %v2021_v11, %v1850_v9 }
 0x276   : > { %v2259_v18 = vpop.f32.mrf.mxu0 }
 0x277   : > { %v3876_v31 = vadd.f32 %v2254_v8, %v2083_v50  ;;  %v1917_v8 = vpack.c.bf16 %v1901_v14, %v1900_v12 }
 0x278   : > { %v1561_v44 = vpop.f32.mrf.mxu1 }
 0x279   : > { %v2348_v46 = vpack.c.bf16 %v3876_v31, %v3876_v31  ;;  %2298 = vmatmul.bf16.gmra.mxu0 %v2150_v21  ;;  %v1619_v59 = vadd.f32 %v1561_v44, %v3713_v37 }
 0x27a   : > { %v1790_v13 = vpop.f32.mrf.mxu2 }
 0x27b   : > { %2381 = vst.msk [vmem:[%s3784_s19 + $0x30] sm:$0xf] %vm2368_vm1, %v2348_v46  ;;  %v1851_v32 = vadd.f32 %v1790_v13, %v1617_v16 }
 0x27c   : > { %v2023_v53 = vpop.f32.mrf.mxu3 }
 0x27d   : > { %v2084_v57 = vadd.f32 %v2023_v53, %v1851_v32 }
 0x27e   : > { %v2261_v47 = vpop.f32.mrf.mxu0 }
 0x27f   : > { %v3883_v20 = vadd.f32 %v2256_v55, %v2084_v57  ;;  %1832 = vmatmul.bf16.gmra.mxu2 %v1684_v1 }
 0x280   : > { %v1564_v4 = vpop.f32.mrf.mxu1 }
 0x281   : > { %v2349_v19 = vpack.c.bf16 %v3883_v20, %v3883_v20  ;;  %2065 = vmatmul.bf16.gmra.mxu3 %v1917_v8  ;;  %v1620_v46 = vadd.f32 %v1564_v4, %v3716_v58 }
 0x282   : > { %v1793_v10 = vpop.f32.mrf.mxu2 }
 0x283   : > { %2382 = vst.msk [vmem:[%s3784_s19 + $0x34] sm:$0xf] %vm2368_vm1, %v2349_v19  ;;  %v1852_v63 = vadd.f32 %v1793_v10, %v1618_v22 }
 0x284   : > { %v2026_v39 = vpop.f32.mrf.mxu3 }
 0x285   : > { %v2085_v40 = vadd.f32 %v2026_v39, %v1852_v63 }
 0x286   : > { %v2264_v45 = vpop.f32.mrf.mxu0 }
 0x287   : > { %v3890_v3 = vadd.f32 %v2259_v18, %v2085_v40 }
 0x288   : > { %v1566_v55 = vpop.f32.mrf.mxu1 }
 0x289   : > { %v2350_v26 = vpack.c.bf16 %v3890_v3, %v3890_v3  ;;  %v1621_v1 = vadd.f32 %v1566_v55, %v3720_v36 }
 0x28a   : > { %v1795_v52 = vpop.f32.mrf.mxu2 }
 0x28b   : > { %2383 = vst.msk [vmem:[%s3784_s19 + $0x38] sm:$0xf] %vm2368_vm1, %v2350_v26  ;;  %v1853_v42 = vadd.f32 %v1795_v52, %v1619_v59 }
 0x28c   : > { %v2028_v0 = vpop.f32.mrf.mxu3 }
 0x28d   : > { %v2086_v9 = vadd.f32 %v2028_v0, %v1853_v42 }
 0x28e   : > { %v2266_v11 = vpop.f32.mrf.mxu0 }
 0x28f   : > { %v3897_v50 = vadd.f32 %v2261_v47, %v2086_v9 }
 0x290   : > { %v1569_v21 = vpop.f32.mrf.mxu1 }
 0x291   : > { %v2351_v18 = vpack.c.bf16 %v3897_v50, %v3897_v50  ;;  %v1622_v10 = vadd.f32 %v1569_v21, %v3724_v6 }
 0x292   : > { %v1798_v16 = vpop.f32.mrf.mxu2 }
 0x293   : > { %2384 = vst.msk [vmem:[%s3784_s19 + $0x3c] sm:$0xf] %vm2368_vm1, %v2351_v18  ;;  %v1854_v37 = vadd.f32 %v1798_v16, %v1620_v46 }
 0x294   : > { %v2031_v44 = vpop.f32.mrf.mxu3 }
 0x295   : > { %v2087_v13 = vadd.f32 %v2031_v44, %v1854_v37 }
 0x296   : > { %v2269_v12 = vpop.f32.mrf.mxu0 }
 0x297   : > { %v3904_v14 = vadd.f32 %v2264_v45, %v2087_v13 }
 0x298   : > { %v1571_v32 = vpop.f32.mrf.mxu1 }
 0x299   : > { %v2352_v51 = vpack.c.bf16 %v3904_v14, %v3904_v14  ;;  %v1623_v52 = vadd.f32 %v1571_v32, %v3729_v23 }
 0x29a   : > { %v1800_v53 = vpop.f32.mrf.mxu2 }
 0x29b   : > { %2385 = vst.msk [vmem:[%s3784_s19 + $0x40] sm:$0xf] %vm2368_vm1, %v2352_v51  ;;  %v1855_v58 = vadd.f32 %v1800_v53, %v1621_v1 }
 0x29c   : > { %v2033_v57 = vpop.f32.mrf.mxu3 }
 0x29d   : > { %v2088_v8 = vadd.f32 %v2033_v57, %v1855_v58  ;;  %v2402_v57 = vsel %vm269_vm0, %v3792_v25, 0.0 }
 0x29e   : > { %v2271_v47 = vpop.f32.mrf.mxu0 }
 0x29f   : > { %v3911_v4 = vadd.f32 %v2266_v11, %v2088_v8 }
 0x2a0   : > { %v1574_v19 = vpop.f32.mrf.mxu1 }
 0x2a1   : > { %v2353_v22 = vpack.c.bf16 %v3911_v4, %v3911_v4  ;;  %v1624_v16 = vadd.f32 %v1574_v19, %v3732_v29  ;;  %v2404_v19 = vsel %vm269_vm0, %v3800_v5, 0.0 }
 0x2a2   : > { %v1803_v63 = vpop.f32.mrf.mxu2 }
 0x2a3   : > { %2386 = vst.msk [vmem:[%s3784_s19 + $0x44] sm:$0xf] %vm2368_vm1, %v2353_v22  ;;  %v1856_v36 = vadd.f32 %v1803_v63, %v1622_v10 }
 0x2a4   : > { %v2036_v39 = vpop.f32.mrf.mxu3 }
 0x2a5   : > { %v2089_v40 = vadd.f32 %v2036_v39, %v1856_v36 }
 0x2a6   : > { %v2274_v45 = vpop.f32.mrf.mxu0 }
 0x2a7   : > { %v3918_v55 = vadd.f32 %v2269_v12, %v2089_v40 }
 0x2a8   : > { %v1576_v26 = vpop.f32.mrf.mxu1 }
 0x2a9   : > { %v2354_v59 = vpack.c.bf16 %v3918_v55, %v3918_v55  ;;  %v1625_v53 = vadd.f32 %v1576_v26, %v3736_v33  ;;  %v2406_v33 = vsel %vm269_vm0, %v3808_v56, 0.0 }
 0x2aa   : > { %v1805_v42 = vpop.f32.mrf.mxu2 }
 0x2ab   : > { %2387 = vst.msk [vmem:[%s3784_s19 + $0x48] sm:$0xf] %vm2368_vm1, %v2354_v59  ;;  %v1857_v6 = vadd.f32 %v1805_v42, %v1623_v52 }
 0x2ac   : > { %v2038_v0 = vpop.f32.mrf.mxu3 }
 0x2ad   : > { %v2090_v9 = vadd.f32 %v2038_v0, %v1857_v6  ;;  %v2410_v6 = vsel %vm269_vm0, %v3825_v34, 0.0 }
 0x2ae   : > { %v2276_v11 = vpop.f32.mrf.mxu0 }
 0x2af   : > { %v3925_v21 = vadd.f32 %v2271_v47, %v2090_v9  ;;  %v2401_v47 = vsel %vm269_vm0, %v3779_v54, 0.0 }
 0x2b0   : > { %v1579_v18 = vpop.f32.mrf.mxu1  ;;  %v2403_v10 = vadd.f32 %v2402_v57, %v2401_v47 }
 0x2b1   : > { %v2355_v46 = vpack.c.bf16 %v3925_v21, %v3925_v21  ;;  %v1626_v59 = vadd.f32 %v1579_v18, %v3739_v35 }
 0x2b2   : > { %v1808_v37 = vpop.f32.mrf.mxu2  ;;  %v2405_v39 = vadd.f32 %v2404_v19, %v2403_v10 }
 0x2b3   : > { %2388 = vst.msk [vmem:[%s3784_s19 + $0x4c] sm:$0xf] %vm2368_vm1, %v2355_v46  ;;  %v1858_v23 = vadd.f32 %v1808_v37, %v1624_v16  ;;  %v2412_v46 = vsel %vm269_vm0, %v3832_v27, 0.0 }
 0x2b4   : > { %v2041_v44 = vpop.f32.mrf.mxu3  ;;  %v2407_v52 = vadd.f32 %v2406_v33, %v2405_v39 }
 0x2b5   : > { %v2091_v13 = vadd.f32 %v2041_v44, %v1858_v23  ;;  %v2414_v23 = vsel %vm269_vm0, %v3840_v41, 0.0 }
 0x2b6   : > { %v2279_v12 = vpop.f32.mrf.mxu0 }
 0x2b7   : > { %v3932_v32 = vadd.f32 %v2274_v45, %v2091_v13  ;;  %v2408_v45 = vsel %vm269_vm0, %v3817_v38, 0.0  ;;  %v2416_v13 = vsel %vm269_vm0, %v3847_v24, 0.0 }
 0x2b8   : > { %v1581_v51 = vpop.f32.mrf.mxu1  ;;  %v2409_v9 = vadd.f32 %v2408_v45, %v2407_v52  ;;  %v2424_v45 = vsel %vm269_vm0, %v3876_v31, 0.0 }
 0x2b9   : > { %v2356_v1 = vpack.c.bf16 %v3932_v32, %v3932_v32 }
 0x2ba   : > { %v1810_v58 = vpop.f32.mrf.mxu2  ;;  %v2411_v37 = vadd.f32 %v2410_v6, %v2409_v9 }
 0x2bb   : > { %2389 = vst.msk [vmem:[%s3784_s19 + $0x50] sm:$0xf] %vm2368_vm1, %v2356_v1  ;;  %v1859_v29 = vadd.f32 %v1810_v58, %v1625_v53  ;;  %v1627_v53 = vadd.f32 %v1581_v51, %v3743_v60  ;;  %v2422_v60 = vsel %vm269_vm0, %v3869_v62, 0.0 }
 0x2bc   : > { %v2043_v8 = vpop.f32.mrf.mxu3  ;;  %v2413_v18 = vadd.f32 %v2412_v46, %v2411_v37 }
 0x2bd   : > { %v2092_v22 = vadd.f32 %v2043_v8, %v1859_v29  ;;  %v2418_v8 = vsel %vm269_vm0, %v3855_v43, 0.0 }
 0x2be   : > { %v2281_v63 = vpop.f32.mrf.mxu0  ;;  %v2415_v58 = vadd.f32 %v2414_v23, %v2413_v18 }
 0x2bf   : > { %v3947_v36 = vadd.f32 %v2276_v11, %v2092_v22  ;;  %v2420_v22 = vsel %vm269_vm0, %v3862_v7, 0.0 }
 0x2c0   : > { %v1584_v40 = vpop.f32.mrf.mxu1  ;;  %v2417_v47 = vadd.f32 %v2416_v13, %v2415_v58  ;;  %v2432_v13 = vsel %vm269_vm0, %v3904_v14, 0.0 }
 0x2c1   : > { %v2357_v26 = vpack.c.bf16 %v3947_v36, %v3947_v36 }
 0x2c2   : > { %v1813_v42 = vpop.f32.mrf.mxu2  ;;  %v2419_v33 = vadd.f32 %v2418_v8, %v2417_v47  ;;  %v2434_v8 = vsel %vm269_vm0, %v3911_v4, 0.0 }
 0x2c3   : > { %2390 = vst.msk [vmem:[%s3784_s19 + $0x54] sm:$0xf] %vm2368_vm1, %v2357_v26  ;;  %v1860_v0 = vadd.f32 %v1813_v42, %v1626_v59  ;;  %v1628_v59 = vadd.f32 %v1584_v40, %v3746_v61  ;;  %v2430_v61 = vsel %vm269_vm0, %v3897_v50, 0.0 }
 0x2c4   : > { %v2046_v11 = vpop.f32.mrf.mxu3  ;;  %v2421_v39 = vadd.f32 %v2420_v22, %v2419_v33  ;;  %v2436_v22 = vsel %vm269_vm0, %v3918_v55, 0.0 }
 0x2c5   : > { %v2093_v16 = vadd.f32 %v2046_v11, %v1860_v0  ;;  %v2426_v0 = vsel %vm269_vm0, %v3883_v20, 0.0 }
 0x2c6   : > { %v2284_v44 = vpop.f32.mrf.mxu0  ;;  %v2423_v52 = vadd.f32 %v2422_v60, %v2421_v39 }
 0x2c7   : > { %v3962_v35 = vadd.f32 %v2279_v12, %v2093_v16  ;;  %v2428_v16 = vsel %vm269_vm0, %v3890_v3, 0.0 }
 0x2c8   : > { %v1586_v29 = vpop.f32.mrf.mxu1 }
 0x2c9   : > { %v2358_v1 = vpack.c.bf16 %v3962_v35, %v3962_v35 }
 0x2ca   : > { %v1815_v57 = vpop.f32.mrf.mxu2 }
 0x2cb   : > { %2391 = vst.msk [vmem:[%s3784_s19 + $0x58] sm:$0xf] %vm2368_vm1, %v2358_v1  ;;  %v1861_v12 = vadd.f32 %v1815_v57, %v1627_v53  ;;  %v1629_v53 = vadd.f32 %v1586_v29, %v3750_v17  ;;  %v2438_v17 = vsel %vm269_vm0, %v3925_v21, 0.0 }
 0x2cc   : > { %v2048_v19 = vpop.f32.mrf.mxu3 }
 0x2cd   : > { %v2094_v10 = vadd.f32 %v2048_v19, %v1861_v12 }
 0x2ce   : > { %v2286_v6 = vpop.f32.mrf.mxu0 }
 0x2cf   : > { %v3977_v51 = vadd.f32 %v2281_v63, %v2094_v10  ;;  %v2425_v63 = vadd.f32 %v2424_v45, %v2423_v52  ;;  %v2440_v45 = vsel %vm269_vm0, %v3932_v32, 0.0 }
 0x2d0   : > { %v1589_v46 = vpop.f32.mrf.mxu1 }
 0x2d1   : > { %v2359_v26 = vpack.c.bf16 %v3977_v51, %v3977_v51  ;;  %v2427_v23 = vadd.f32 %v2426_v0, %v2425_v63  ;;  %v2442_v0 = vsel %vm269_vm0, %v3947_v36, 0.0 }
 0x2d2   : > { %v1818_v42 = vpop.f32.mrf.mxu2 }
 0x2d3   : > { %2392 = vst.msk [vmem:[%s3784_s19 + $0x5c] sm:$0xf] %vm2368_vm1, %v2359_v26  ;;  %v1862_v9 = vadd.f32 %v1818_v42, %v1628_v59  ;;  %v2429_v18 = vadd.f32 %v2428_v16, %v2427_v23  ;;  %v1630_v59 = vadd.f32 %v1589_v46, %v3754_v28  ;;  %v2446_v28 = vsel %vm269_vm0, %v3977_v51, 0.0 }
 0x2d4   : > { %v2051_v11 = vpop.f32.mrf.mxu3 }
 0x2d5   : > { %v2095_v37 = vadd.f32 %v2051_v11, %v1862_v9  ;;  %v2431_v58 = vadd.f32 %v2430_v61, %v2429_v18  ;;  %v2444_v11 = vsel %vm269_vm0, %v3962_v35, 0.0 }
 0x2d6   : > { %v2289_v19 = vpop.f32.mrf.mxu0 }
 0x2d7   : > { %v3992_v40 = vadd.f32 %v2284_v44, %v2095_v37  ;;  %v2433_v47 = vadd.f32 %v2432_v13, %v2431_v58 }
 0x2d8   : > { %v1591_v60 = vpop.f32.mrf.mxu1 }
 0x2d9   : > { %v2360_v1 = vpack.c.bf16 %v3992_v40, %v3992_v40  ;;  %v2435_v33 = vadd.f32 %v2434_v8, %v2433_v47  ;;  %v2448_v13 = vsel %vm269_vm0, %v3992_v40, 0.0 }
 0x2da   : > { %v1820_v57 = vpop.f32.mrf.mxu2 }
 0x2db   : > { %2393 = vst.msk [vmem:[%s3784_s19 + $0x60] sm:$0xf] %vm2368_vm1, %v2360_v1  ;;  %v1863_v12 = vadd.f32 %v1820_v57, %v1629_v53  ;;  %v2437_v39 = vadd.f32 %v2436_v22, %v2435_v33  ;;  %v1631_v53 = vadd.f32 %v1591_v60, %v3759_v30 }
 0x2dc   : > { %v2053_v44 = vpop.f32.mrf.mxu3 }
 0x2dd   : > { %v2096_v10 = vadd.f32 %v2053_v44, %v1863_v12  ;;  %v2439_v52 = vadd.f32 %v2438_v17, %v2437_v39 }
 0x2de   : > { %v2291_v23 = vpop.f32.mrf.mxu0 }
 0x2df   : > { %v4007_v29 = vadd.f32 %v2286_v6, %v2096_v10  ;;  %v2441_v63 = vadd.f32 %v2440_v45, %v2439_v52 }
 0x2e0   : > { %v1594_v18 = vpop.f32.mrf.mxu1 }
 0x2e1   : > { %v2361_v26 = vpack.c.bf16 %v4007_v29, %v4007_v29  ;;  %v2443_v37 = vadd.f32 %v2442_v0, %v2441_v63  ;;  %v2450_v8 = vsel %vm269_vm0, %v4007_v29, 0.0  ;;  %v1632_v45 = vadd.f32 %v1594_v18, %v3762_v48 }
 0x2e2   : > { %v1823_v42 = vpop.f32.mrf.mxu2 }
 0x2e3   : > { %2394 = vst.msk [vmem:[%s3784_s19 + $0x64] sm:$0xf] %vm2368_vm1, %v2361_v26  ;;  %v1864_v9 = vadd.f32 %v1823_v42, %v1630_v59  ;;  %v2445_v61 = vadd.f32 %v2444_v11, %v2443_v37 }
 0x2e4   : > { %v2056_v6 = vpop.f32.mrf.mxu3 }
 0x2e5   : > { %v2097_v16 = vadd.f32 %v2056_v6, %v1864_v9  ;;  %v2447_v58 = vadd.f32 %v2446_v28, %v2445_v61 }
 0x2e6   : > { %v2294_v30 = vpop.f32.mrf.mxu0 }
 0x2e7   : > { %v4022_v46 = vadd.f32 %v2289_v19, %v2097_v16  ;;  %v2449_v47 = vadd.f32 %v2448_v13, %v2447_v58 }
 0x2e8   : > { %v1596_v52 = vpop.f32.mrf.mxu1 }
 0x2e9   : > { %v2362_v1 = vpack.c.bf16 %v4022_v46, %v4022_v46  ;;  %v2452_v19 = vsel %vm269_vm0, %v4022_v46, 0.0  ;;  %v2451_v10 = vadd.f32 %v2450_v8, %v2449_v47  ;;  %v1633_v16 = vadd.f32 %v1596_v52, %v3766_v15 }
 0x2ea   : > { %v1825_v57 = vpop.f32.mrf.mxu2 }
 0x2eb   : > { %2395 = vst.msk [vmem:[%s3784_s19 + $0x68] sm:$0xf] %vm2368_vm1, %v2362_v1  ;;  %v1865_v12 = vadd.f32 %v1825_v57, %v1631_v53  ;;  %v2453_v17 = vadd.f32 %v2452_v19, %v2451_v10 }
 0x2ec   : > { %v2058_v44 = vpop.f32.mrf.mxu3 }
 0x2ed   : > { %v2098_v22 = vadd.f32 %v2058_v44, %v1865_v12 }
 0x2ef   : > { %v4035_v33 = vadd.f32 %v2291_v23, %v2098_v22  ;;  %v2296_v23 = vpop.f32.mrf.mxu0 }
 0x2f0   : > { %v1599_v18 = vpop.f32.mrf.mxu1 }
 0x2f1   : > { %v2363_v60 = vpack.c.bf16 %v4035_v33, %v4035_v33  ;;  %v2454_v39 = vsel %vm269_vm0, %v4035_v33, 0.0  ;;  %v1634_v57 = vadd.f32 %v1599_v18, %v3770_v2 }
 0x2f2   : > { %v2455_v26 = vadd.f32 %v2454_v39, %v2453_v17  ;;  %v1828_v59 = vpop.f32.mrf.mxu2  ;;  %v3121_v17 = vmov 256.0  }
 0x2f3   : > { %2396 = vst.msk [vmem:[%s3784_s19 + $0x6c] sm:$0xf] %vm2368_vm1, %v2363_v60  ;;  %v1866_v42 = vadd.f32 %v1828_v59, %v1632_v45  ;;  %3108 = vrcp.f32 %v3121_v17 }
 0x2f4   : > { %v2061_v0 = vpop.f32.mrf.mxu3 }
 0x2f5   : > { %v2099_v9 = vadd.f32 %v2061_v0, %v1866_v42 }
 0x2f7   : > { %v2332_v63 = vadd.f32 %v2294_v30, %v2099_v9  ;;  %v2299_v47 = vpop.f32.mrf.mxu0 }
 0x2f8   : > { %v1601_v22 = vpop.f32.mrf.mxu1 }
 0x2f9   : > { %v2364_v6 = vpack.c.bf16 %v2332_v63, %v2332_v63  ;;  %v2456_v11 = vsel %vm269_vm0, %v2332_v63, 0.0  ;;  %v1635_v39 = vadd.f32 %v1601_v22, %v3775_v49  ;;  %v3109_v42 = vpop.eup %3108 }
 0x2fa   : > { %v2457_v37 = vadd.f32 %v2456_v11, %v2455_v26  ;;  %v1830_v28 = vpop.f32.mrf.mxu2  ;;  %vm2475_vm3 = vweird.f32 %v3109_v42 }
 0x2fb   : > { %2397 = vst.msk [vmem:[%s3784_s19 + $0x70] sm:$0xf] %vm2368_vm1, %v2364_v6  ;;  %v1867_v48 = vadd.f32 %v1830_v28, %v1633_v16  ;;  %v2471_v16 = vmul.f32 256.0, %v3109_v42 }
 0x2fc   : > { %v2063_v61 = vpop.f32.mrf.mxu3 }
 0x2fd   : > { %v2100_v13 = vadd.f32 %v2063_v61, %v1867_v48  ;;  %v2472_v49 = vsub.f32 1.0, %v2471_v16 }
 0x2ff   : > { %v2333_v1 = vadd.f32 %v2296_v23, %v2100_v13  ;;  %v2301_v0 = vpop.f32.mrf.mxu0  ;;  %v2473_v61 = vmul.f32 %v3109_v42, %v2472_v49 }
 0x301   : > { %v2365_v53 = vpack.c.bf16 %v2333_v1, %v2333_v1  ;;  %v2458_v58 = vsel %vm269_vm0, %v2333_v1, 0.0 }
 0x302   : > { %v2459_v8 = vadd.f32 %v2458_v58, %v2457_v37  ;;  %v1833_v12 = vpop.f32.mrf.mxu2 }
 0x303   : > { %2398 = vst.msk [vmem:[%s3784_s19 + $0x74] sm:$0xf] %vm2368_vm1, %v2365_v53  ;;  %v1868_v15 = vadd.f32 %v1833_v12, %v1634_v57  ;;  %v2474_v53 = vadd.f32 %v3109_v42, %v2473_v61 }
 0x304   : > { %v2066_v44 = vpop.f32.mrf.mxu3 }
 0x305   : > { %v2101_v19 = vadd.f32 %v2066_v44, %v1868_v15  ;;  %v2476_v57 = vsel %vm2475_vm3, %v3109_v42, %v2474_v53 }
 0x307   : > { %v2334_v10 = vadd.f32 %v2299_v47, %v2101_v19 }
 0x309   : > { %v2366_v30 = vpack.c.bf16 %v2334_v10, %v2334_v10  ;;  %v2460_v60 = vsel %vm269_vm0, %v2334_v10, 0.0 }
 0x30a   : > { %v2461_v2 = vadd.f32 %v2460_v60, %v2459_v8  ;;  %v1835_v45 = vpop.f32.mrf.mxu2 }
 0x30b   : > { %2399 = vst.msk [vmem:[%s3784_s19 + $0x78] sm:$0xf] %vm2368_vm1, %v2366_v30  ;;  %v1869_v26 = vadd.f32 %v1835_v45, %v1635_v39 }
 0x30c   : > { %v2068_v59 = vpop.f32.mrf.mxu3 }
 0x30d   : > { %v2102_v52 = vadd.f32 %v2068_v59, %v1869_v26 }
 0x30f   : > { %v2335_v9 = vadd.f32 %v2301_v0, %v2102_v52 }
 0x311   : > { %v2367_v6 = vpack.c.bf16 %v2335_v9, %v2335_v9  ;;  %v2462_v11 = vsel %vm269_vm0, %v2335_v9, 0.0 }
 0x312   : > { %v2463_v37 = vadd.f32 %v2462_v11, %v2461_v2 }
 0x313   : > { %2400 = vst.msk [vmem:[%s3784_s19 + $0x7c] sm:$0xf] %vm2368_vm1, %v2367_v6 }
 0x314   : > { %v2464_v23 = vrot.slane %v2463_v37, 4 }
 0x316   : > { %v2465_v28 = vadd.f32 %v2464_v23, %v2463_v37 }
 0x318   : > { %v2466_v48 = vrot.slane %v2465_v28, 2 }
 0x31a   : > { %v2467_v18 = vadd.f32 %v2466_v48, %v2465_v28 }
 0x31c   : > { %v2468_v13 = vrot.slane %v2467_v18, 1 }
 0x31e   : > { %v2469_v58 = vadd.f32 %v2468_v13, %v2467_v18 }
 0x320   : > { %2511 = vst.msk [vmem:[%s4063_s24] sm:$0x1] %vm2510_vm2, %v2469_v58  ;;  %v4067_v8 = vmul.f32 %v2476_v57, %v2469_v58 }
 0x322   : > { %v4071_v12 = vsub.f32 %v4022_v46, %v4067_v8  ;;  %v4075_v15 = vsub.f32 %v4035_v33, %v4067_v8  ;;  %v4078_v47 = vsub.f32 %v2332_v63, %v4067_v8  ;;  %v4081_v44 = vsub.f32 %v2333_v1, %v4067_v8 }
 0x323   : > { %v4084_v19 = vsub.f32 %v2334_v10, %v4067_v8  ;;  %v4087_v22 = vsub.f32 %v2335_v9, %v4067_v8  ;;  %v2478_v46 = vsub.f32 %v3779_v54, %v4067_v8  ;;  %v2479_v17 = vsub.f32 %v3792_v25, %v4067_v8 }
 0x324   : > { %v2480_v33 = vsub.f32 %v3800_v5, %v4067_v8  ;;  %v2481_v63 = vsub.f32 %v3808_v56, %v4067_v8  ;;  %v2482_v10 = vsub.f32 %v3817_v38, %v4067_v8  ;;  %v2483_v39 = vsub.f32 %v3825_v34, %v4067_v8 }
 0x325   : > { %v2512_v1 = vmul.f32 %v2478_v46, %v2478_v46  ;;  %v2513_v30 = vmul.f32 %v2479_v17, %v2479_v17  ;;  %v2484_v5 = vsub.f32 %v3832_v27, %v4067_v8  ;;  %v2485_v38 = vsub.f32 %v3840_v41, %v4067_v8 }
 0x326   : > { %v2514_v60 = vmul.f32 %v2480_v33, %v2480_v33  ;;  %v2515_v2 = vmul.f32 %v2481_v63, %v2481_v63  ;;  %v2516_v26 = vmul.f32 %v2482_v10, %v2482_v10  ;;  %v2517_v52 = vmul.f32 %v2483_v39, %v2483_v39 }
 0x327   : > { %v2544_v54 = vsel %vm269_vm0, %v2512_v1, 0.0  ;;  %v2545_v25 = vsel %vm269_vm0, %v2513_v30, 0.0  ;;  %v2486_v0 = vsub.f32 %v3847_v24, %v4067_v8  ;;  %v2518_v9 = vmul.f32 %v2484_v5, %v2484_v5 }
 0x328   : > { %v2546_v45 = vadd.f32 %v2545_v25, %v2544_v54  ;;  %v2547_v56 = vsel %vm269_vm0, %v2514_v60, 0.0  ;;  %v2549_v42 = vsel %vm269_vm0, %v2515_v2, 0.0  ;;  %v2551_v6 = vsel %vm269_vm0, %v2516_v26, 0.0 }
 0x329   : > { %v2487_v27 = vsub.f32 %v3855_v43, %v4067_v8  ;;  %v2519_v16 = vmul.f32 %v2485_v38, %v2485_v38  ;;  %v2553_v37 = vsel %vm269_vm0, %v2517_v52, 0.0  ;;  %v2488_v41 = vsub.f32 %v3862_v7, %v4067_v8 }
 0x32a   : > { %v2548_v59 = vadd.f32 %v2547_v56, %v2546_v45  ;;  %v2520_v49 = vmul.f32 %v2486_v0, %v2486_v0  ;;  %v2555_v28 = vsel %vm269_vm0, %v2518_v9, 0.0  ;;  %v2489_v24 = vsub.f32 %v3869_v62, %v4067_v8 }
 0x32b   : > { %v2521_v61 = vmul.f32 %v2487_v27, %v2487_v27  ;;  %v2557_v18 = vsel %vm269_vm0, %v2519_v16, 0.0  ;;  %v2490_v43 = vsub.f32 %v3876_v31, %v4067_v8  ;;  %v2522_v53 = vmul.f32 %v2488_v41, %v2488_v41 }
 0x32c   : > { %v2550_v34 = vadd.f32 %v2549_v42, %v2548_v59  ;;  %v2559_v58 = vsel %vm269_vm0, %v2520_v49, 0.0  ;;  %v2491_v7 = vsub.f32 %v3883_v20, %v4067_v8  ;;  %v2523_v46 = vmul.f32 %v2489_v24, %v2489_v24 }
 0x32d   : > { %v2561_v17 = vsel %vm269_vm0, %v2521_v61, 0.0  ;;  %v2492_v62 = vsub.f32 %v3890_v3, %v4067_v8  ;;  %v2524_v63 = vmul.f32 %v2490_v43, %v2490_v43  ;;  %v2563_v1 = vsel %vm269_vm0, %v2522_v53, 0.0 }
 0x32e   : > { %v2552_v11 = vadd.f32 %v2551_v6, %v2550_v34  ;;  %v2493_v31 = vsub.f32 %v3897_v50, %v4067_v8  ;;  %v2525_v10 = vmul.f32 %v2491_v7, %v2491_v7  ;;  %v2565_v60 = vsel %vm269_vm0, %v2523_v46, 0.0 }
 0x32f   : > { %v2494_v20 = vsub.f32 %v3904_v14, %v4067_v8  ;;  %v2526_v2 = vmul.f32 %v2492_v62, %v2492_v62  ;;  %v2567_v54 = vsel %vm269_vm0, %v2524_v63, 0.0  ;;  %v2495_v3 = vsub.f32 %v3911_v4, %v4067_v8 }
 0x330   : > { %v2554_v23 = vadd.f32 %v2553_v37, %v2552_v11  ;;  %v2527_v45 = vmul.f32 %v2493_v31, %v2493_v31  ;;  %v2569_v5 = vsel %vm269_vm0, %v2525_v10, 0.0  ;;  %v2496_v50 = vsub.f32 %v3918_v55, %v4067_v8 }
 0x331   : > { %v2528_v56 = vmul.f32 %v2494_v20, %v2494_v20  ;;  %v2571_v59 = vsel %vm269_vm0, %v2526_v2, 0.0  ;;  %v2497_v14 = vsub.f32 %v3925_v21, %v4067_v8  ;;  %v2529_v52 = vmul.f32 %v2495_v3, %v2495_v3 }
 0x332   : > { %v2556_v48 = vadd.f32 %v2555_v28, %v2554_v23  ;;  %v2573_v42 = vsel %vm269_vm0, %v2527_v45, 0.0  ;;  %v2498_v4 = vsub.f32 %v3932_v32, %v4067_v8  ;;  %v2530_v0 = vmul.f32 %v2496_v50, %v2496_v50 }
 0x333   : > { %v2575_v9 = vsel %vm269_vm0, %v2528_v56, 0.0  ;;  %v2499_v55 = vsub.f32 %v3947_v36, %v4067_v8  ;;  %v2531_v11 = vmul.f32 %v2497_v14, %v2497_v14  ;;  %v2577_v27 = vsel %vm269_vm0, %v2529_v52, 0.0 }
 0x334   : > { %v2558_v13 = vadd.f32 %v2557_v18, %v2556_v48  ;;  %v2500_v21 = vsub.f32 %v3962_v35, %v4067_v8  ;;  %v2532_v37 = vmul.f32 %v2498_v4, %v2498_v4  ;;  %v2579_v23 = vsel %vm269_vm0, %v2530_v0, 0.0 }
 0x335   : > { %v2501_v32 = vsub.f32 %v3977_v51, %v4067_v8  ;;  %v2533_v49 = vmul.f32 %v2499_v55, %v2499_v55  ;;  %v2581_v28 = vsel %vm269_vm0, %v2531_v11, 0.0  ;;  %v2502_v36 = vsub.f32 %v3992_v40, %v4067_v8 }
 0x336   : > { %v2560_v57 = vadd.f32 %v2559_v58, %v2558_v13  ;;  %v2534_v24 = vmul.f32 %v2500_v21, %v2500_v21  ;;  %v2583_v61 = vsel %vm269_vm0, %v2532_v37, 0.0  ;;  %v2503_v35 = vsub.f32 %v4007_v29, %v4067_v8 }
 0x337   : > { %v2535_v13 = vmul.f32 %v2501_v32, %v2501_v32  ;;  %v2585_v43 = vsel %vm269_vm0, %v2533_v49, 0.0  ;;  %v2536_v58 = vmul.f32 %v2502_v36, %v2502_v36  ;;  %v2538_v40 = vmul.f32 %v4071_v12, %v4071_v12 }
 0x338   : > { %v2562_v33 = vadd.f32 %v2561_v17, %v2560_v57  ;;  %v2587_v51 = vsel %vm269_vm0, %v2534_v24, 0.0  ;;  %v2537_v7 = vmul.f32 %v2503_v35, %v2503_v35  ;;  %v2539_v29 = vmul.f32 %v4075_v15, %v4075_v15 }
 0x339   : > { %v2589_v46 = vsel %vm269_vm0, %v2535_v13, 0.0  ;;  %v2541_v10 = vmul.f32 %v4081_v44, %v4081_v44  ;;  %v2543_v2 = vmul.f32 %v4087_v22, %v4087_v22 }
 0x33a   : > { %v2564_v30 = vadd.f32 %v2563_v1, %v2562_v33  ;;  %v2591_v33 = vsel %vm269_vm0, %v2536_v58, 0.0  ;;  %v2593_v8 = vsel %vm269_vm0, %v2537_v7, 0.0  ;;  %v2540_v1 = vmul.f32 %v4078_v47, %v4078_v47 }
 0x33b   : > { %v2597_v12 = vsel %vm269_vm0, %v2539_v29, 0.0  ;;  %v2601_v47 = vsel %vm269_vm0, %v2541_v10, 0.0  ;;  %v2605_v44 = vsel %vm269_vm0, %v2543_v2, 0.0 }
 0x33c   : > { %v2566_v39 = vadd.f32 %v2565_v60, %v2564_v30  ;;  %v2595_v30 = vsel %vm269_vm0, %v2538_v40, 0.0  ;;  %v2599_v15 = vsel %vm269_vm0, %v2540_v1, 0.0 }
 0x33e   : > { %v2568_v25 = vadd.f32 %v2567_v54, %v2566_v39  ;;  %v2542_v39 = vmul.f32 %v4084_v19, %v4084_v19 }
 0x340   : > { %v2570_v26 = vadd.f32 %v2569_v5, %v2568_v25  ;;  %v2603_v25 = vsel %vm269_vm0, %v2542_v39, 0.0 }
 0x342   : > { %v2572_v38 = vadd.f32 %v2571_v59, %v2570_v26 }
 0x344   : > { %v2574_v34 = vadd.f32 %v2573_v42, %v2572_v38 }
 0x346   : > { %v2576_v6 = vadd.f32 %v2575_v9, %v2574_v34 }
 0x348   : > { %v2578_v16 = vadd.f32 %v2577_v27, %v2576_v6 }
 0x34a   : > { %v2580_v41 = vadd.f32 %v2579_v23, %v2578_v16 }
 0x34c   : > { %v2582_v48 = vadd.f32 %v2581_v28, %v2580_v41 }
 0x34e   : > { %v2584_v18 = vadd.f32 %v2583_v61, %v2582_v48 }
 0x350   : > { %v2586_v53 = vadd.f32 %v2585_v43, %v2584_v18 }
 0x352   : > { %v2588_v57 = vadd.f32 %v2587_v51, %v2586_v53 }
 0x354   : > { %v2590_v17 = vadd.f32 %v2589_v46, %v2588_v57 }
 0x356   : > { %v2592_v62 = vadd.f32 %v2591_v33, %v2590_v17 }
 0x358   : > { %v2594_v63 = vadd.f32 %v2593_v8, %v2592_v62 }
 0x35a   : > { %v2596_v31 = vadd.f32 %v2595_v30, %v2594_v63 }
 0x35c   : > { %v2598_v60 = vadd.f32 %v2597_v12, %v2596_v31 }
 0x35e   : > { %v2600_v20 = vadd.f32 %v2599_v15, %v2598_v60 }
 0x360   : > { %v2602_v54 = vadd.f32 %v2601_v47, %v2600_v20 }
 0x362   : > { %v2604_v3 = vadd.f32 %v2603_v25, %v2602_v54 }
 0x364   : > { %v2606_v45 = vadd.f32 %v2605_v44, %v2604_v3 }
 0x366   : > { %v2607_v5 = vrot.slane %v2606_v45, 4 }
 0x368   : > { %v2608_v26 = vadd.f32 %v2607_v5, %v2606_v45 }
 0x36a   : > { %v2609_v50 = vrot.slane %v2608_v26, 2 }
 0x36c   : > { %v2610_v19 = vadd.f32 %v2609_v50, %v2608_v26 }
 0x36e   : > { %v2611_v56 = vrot.slane %v2610_v19, 1 }
 0x370   : > { %v2612_v59 = vadd.f32 %v2611_v56, %v2610_v19 }
 0x372   : > { %2613 = vst.msk [vmem:[%s4063_s24 + $0x1] sm:$0x1] %vm2510_vm2, %v2612_v59 }
 0x373 PF: > { %s14_s12 = sadd.s32 1, %s3117_s12  }
 0x374   : > { %p11_p4 = scmp.ge.s32.totalorder %s14_s12, 4  }
 0x376   :  { %13 = sbr.rel (!%p11_p4) target bundleno = 1 (0x1), region = 72 }

// kernel: basic_block_forward.4
= control target key start
LH: loop header
LB: loop body
LE: loop exit
PB: predicated region body
PF: predicated region fallthrough
CT: control target
= control target key end

     0   :  { %s3425_s18 = smov 0   ;;  %s4513_s0 = inlined_call_operand.vmem [shape: bf16[2,256,4], index: 0, kind: input, shape index: {}]   ;;  %s4514_s1 = inlined_call_operand.vmem [shape: f32[1,4], index: 1, kind: input, shape index: {}]   ;;  %s4515_s2 = inlined_call_operand.vmem [shape: f32[1,4], index: 2, kind: input, shape index: {}]   ;;  %s4516_s3 = inlined_call_operand.vmem [shape: bf16[1152,128], index: 3, kind: input, shape index: {}]   ;;  %s4517_s4 = inlined_call_operand.vmem [shape: bf16[2,256,4], index: 4, kind: output, shape index: {0}]   ;;  %s4518_s5 = inlined_call_operand.vmem [shape: f32[2,2,4], index: 5, kind: output, shape index: {1}]  }
   0x1 LB: > { %s2890_s19 = sadd.s32 4294967295, %s3390_s18   ;;  %p2894_p0 = scmp.ge.s32.totalorder %s3390_s18, 1  ;;  %s3390_s18 = sphi %s3425_s18, %s16_s18  }
   0x2   : > { %p190_p1 = scmp.lt.s32.totalorder %s3390_s18, 3 }
   0x4   : > { %p191_p2 = pnand %p2894_p0, %p190_p1 }
   0x6   : > { %194 = sbr.rel (%p191_p2) target bundleno = 883 (0x373), region = 36 }
   0xb   : > { %v3207_v0 = vld [vmem:[%s4516_s3 + $0x78] sm:$0xff]  ;;  %p222_p3 = scmp.lt.s32.totalorder %s2890_s19, 1  ;;  %v3392_v1 = vmov 0.0   ;;  %v3206_v2 = vld [vmem:[%s4516_s3 + $0x70] sm:$0xff]  ;;  %v3455_v3 = vld [vmem:[%s4514_s1] ss:$0 sm:$0xff] }
   0xc   : > { %416 = vst [vmem:[#allocation2 + $0x60] sm:$0xff] %v3392_v1  ;;  %3343 = vmatpush.bf16.msra.mxu1 %v3207_v0  ;;  %3344 = vmatpush.bf16.msra.mxu2 %v3207_v0  ;;  %v3205_v4 = vld [vmem:[%s4516_s3 + $0x68] sm:$0xff]  ;;  %v3466_v8 = vld [vmem:[%s4515_s2] ss:$0 sm:$0xff]  ;;  %vm459_vm0 = vcmask 31744   ;;  %v3203_v16 = vld [vmem:[%s4516_s3 + $0x58] sm:$0xff] }
   0xd   : > { %s4534_s19 = smov (!%p222_p3, %s2890_s19), 1  ;;  %417 = vst [vmem:[#allocation2 + $0x68] sm:$0xff] %v3392_v1  ;;  %3345 = vmatpush.bf16.msra.mxu3 %v3207_v0  ;;  %668 = vmatpush.bf16.msra.mxu0 %v3207_v0  ;;  %v3204_v11 = vld [vmem:[%s4516_s3 + $0x60] sm:$0xff]  ;;  %v3202_v17 = vld [vmem:[%s4516_s3 + $0x50] sm:$0xff]  ;;  %v3201_v18 = vld [vmem:[%s4516_s3 + $0x48] sm:$0xff]  ;;  %vm2558_vm1 = vcmask 27648  }
   0xe   : > { %s3190_s24 = sshll.u32 %s4534_s19, 7  ;;  %418 = vst [vmem:[#allocation2 + $0x70] sm:$0x3] %v3392_v1  ;;  %v3200_v19 = vld [vmem:[%s4516_s3 + $0x40] sm:$0xff]  ;;  %v3215_v27 = vld [vmem:[%s4516_s3 + $0xb8] sm:$0xff]  ;;  %v3214_v34 = vld [vmem:[%s4516_s3 + $0xb0] sm:$0xff] }
   0xf   : > { %s3450_s27 = scalar_lea.vmem %s4513_s0, %s3190_s24  ;;  %404 = vst [vmem:[#allocation2] sm:$0xff] %v3392_v1  ;;  %v3223_v29 = vld [vmem:[%s4516_s3 + $0xf8] sm:$0xff]  ;;  %v3222_v36 = vld [vmem:[%s4516_s3 + $0xf0] sm:$0xff]  ;;  %s4110_s30 = scalar_lea.vmem %s4517_s4, %s3190_s24  ;;  %vm2700_vm2 = vcmask 24576  }
  0x10   : > { %3346 = vmatpush.bf16.msra.mxu1 %v3206_v2  ;;  %3347 = vmatpush.bf16.msra.mxu2 %v3206_v2  ;;  %v3330_v5 = vld [vmem:[%s3450_s27 + $0x18] sm:$0xff]   ;;  %405 = vst [vmem:[#allocation2 + $0x8] sm:$0xff] %v3392_v1  ;;  %v3198_v37 = vld [vmem:[%s4516_s3 + $0x30] sm:$0xff]  ;;  %v3331_v39 = vld [vmem:[%s3450_s27 + $0x20] sm:$0xff]   ;;  %s2899_s24 = sshll.u32 %s4534_s19, 1 }
  0x11   : > { %3348 = vmatpush.bf16.msra.mxu3 %v3206_v2  ;;  %669 = vmatpush.bf16.msra.mxu0 %v3206_v2  ;;  %v3278_v6 = vunpack.c.l.bf16 %v3330_v5  ;;  %v3279_v7 = vunpack.c.h.bf16 %v3330_v5  ;;  %406 = vst [vmem:[#allocation2 + $0x10] sm:$0x3] %v3392_v1  ;;  %v3334_v23 = vld [vmem:[%s3450_s27 + $0x38] sm:$0xff]   ;;  %v3335_v41 = vld [vmem:[%s3450_s27 + $0x40] sm:$0xff]   ;;  %v3282_v44 = vunpack.c.l.bf16 %v3331_v39  ;;  %v3283_v45 = vunpack.c.h.bf16 %v3331_v39  ;;  %v3332_v63 = vld [vmem:[%s3450_s27 + $0x28] sm:$0xff]   ;;  %s4386_s8 = scalar_lea.vmem %s4518_s5, %s2899_s24 }
  0x12   : > { %407 = vst [vmem:[#allocation2 + $0x18] sm:$0xff] %v3392_v1  ;;  %v3338_v24 = vld [vmem:[%s3450_s27 + $0x58] sm:$0xff]   ;;  %v3294_v31 = vunpack.c.l.bf16 %v3334_v23  ;;  %v3295_v33 = vunpack.c.h.bf16 %v3334_v23  ;;  %v3339_v46 = vld [vmem:[%s3450_s27 + $0x60] sm:$0xff]   ;;  %v3298_v48 = vunpack.c.l.bf16 %v3335_v41  ;;  %v3299_v50 = vunpack.c.h.bf16 %v3335_v41  ;;  %v3336_v0 = vld [vmem:[%s3450_s27 + $0x48] sm:$0xff]  }
  0x13   : > { %v310_v9 = vmul.f32 %v3455_v3, %v3278_v6  ;;  %v311_v10 = vmul.f32 %v3455_v3, %v3279_v7  ;;  %408 = vst [vmem:[#allocation2 + $0x20] sm:$0xff] %v3392_v1  ;;  %v3199_v30 = vld [vmem:[%s4516_s3 + $0x38] sm:$0xff]  ;;  %v3310_v35 = vunpack.c.l.bf16 %v3338_v24  ;;  %v3311_v38 = vunpack.c.h.bf16 %v3338_v24  ;;  %v3265_v54 = vld [vmem:[%s3450_s27] sm:$0xff]   ;;  %v3340_v7 = vld [vmem:[%s3450_s27 + $0x68] sm:$0xff]  }
  0x14   : > { %3349 = vmatpush.bf16.msra.mxu1 %v3205_v4  ;;  %3350 = vmatpush.bf16.msra.mxu2 %v3205_v4  ;;  %409 = vst [vmem:[#allocation2 + $0x28] sm:$0x3] %v3392_v1  ;;  %v3231_v32 = vld [vmem:[%s4516_s3 + $0x138] sm:$0xff]  ;;  %v318_v40 = vmul.f32 %v3455_v3, %v3294_v31  ;;  %v319_v42 = vmul.f32 %v3455_v3, %v3295_v33  ;;  %v3314_v52 = vunpack.c.l.bf16 %v3339_v46  ;;  %v3315_v53 = vunpack.c.h.bf16 %v3339_v46  ;;  %v3197_v23 = vld [vmem:[%s4516_s3 + $0x28] sm:$0xff]  ;;  %v3220_v31 = vld [vmem:[%s4516_s3 + $0xe0] sm:$0xff] }
  0x15   : > { %3351 = vmatpush.bf16.msra.mxu3 %v3205_v4  ;;  %670 = vmatpush.bf16.msra.mxu0 %v3205_v4  ;;  %v346_v12 = vadd.f32 %v3466_v8, %v310_v9  ;;  %v347_v13 = vadd.f32 %v3466_v8, %v311_v10  ;;  %410 = vst [vmem:[#allocation2 + $0x30] sm:$0xff] %v3392_v1  ;;  %v3266_v62 = vunpack.c.l.bf16 %v3265_v54  ;;  %v3267_v6 = vunpack.c.h.bf16 %v3265_v54  ;;  %v3229_v33 = vld [vmem:[%s4516_s3 + $0x128] sm:$0xff] }
  0x16   : > { %411 = vst [vmem:[#allocation2 + $0x38] sm:$0xff] %v3392_v1  ;;  %v326_v43 = vmul.f32 %v3455_v3, %v3310_v35  ;;  %v327_v47 = vmul.f32 %v3455_v3, %v3311_v38  ;;  %v354_v49 = vadd.f32 %v3466_v8, %v318_v40  ;;  %v355_v51 = vadd.f32 %v3466_v8, %v319_v42 }
  0x17   : > { %v378_v14 = vmax.f32 %v346_v12, 0.0  ;;  %v379_v15 = vmax.f32 %v347_v13, 0.0  ;;  %412 = vst [vmem:[#allocation2 + $0x40] sm:$0x3] %v3392_v1  ;;  %v556_v25 = vld [vmem:[#allocation2 + $0x1] sm:$0xff]  ;;  %v312_v56 = vmul.f32 %v3455_v3, %v3282_v44  ;;  %v313_v57 = vmul.f32 %v3455_v3, %v3283_v45 }
  0x18   : > { %3352 = vmatpush.bf16.msra.mxu1 %v3204_v11  ;;  %3353 = vmatpush.bf16.msra.mxu2 %v3204_v11  ;;  %413 = vst [vmem:[#allocation2 + $0x48] sm:$0xff] %v3392_v1  ;;  %v557_v26 = vld [vmem:[#allocation2 + $0x9] sm:$0xff]  ;;  %v362_v55 = vadd.f32 %v3466_v8, %v326_v43  ;;  %v363_v58 = vadd.f32 %v3466_v8, %v327_v47  ;;  %v386_v60 = vmax.f32 %v354_v49, 0.0  ;;  %v387_v2 = vmax.f32 %v355_v51, 0.0 }
  0x19   : > { %3354 = vmatpush.bf16.msra.mxu3 %v3204_v11  ;;  %671 = vmatpush.bf16.msra.mxu0 %v3204_v11  ;;  %466 = vst.msk [vmem:[#allocation2 + $0x61] sm:$0xff] %vm459_vm0, %v378_v14  ;;  %v588_v28 = vpack.c.bf16 %v557_v26, %v556_v25  ;;  %v320_v59 = vmul.f32 %v3455_v3, %v3298_v48  ;;  %v3286_v12 = vunpack.c.l.bf16 %v3332_v63  ;;  %v3303_v24 = vunpack.c.h.bf16 %v3336_v0  ;;  %v3328_v26 = vld [vmem:[%s3450_s27 + $0x8] sm:$0xff]  }
  0x1a   : > { %467 = vst.msk [vmem:[#allocation2 + $0x69] sm:$0xff] %vm459_vm0, %v379_v15  ;;  %v321_v61 = vmul.f32 %v3455_v3, %v3299_v50  ;;  %v328_v4 = vmul.f32 %v3455_v3, %v3314_v52  ;;  %v329_v5 = vmul.f32 %v3455_v3, %v3315_v53  ;;  %v394_v9 = vmax.f32 %v362_v55, 0.0  ;;  %v3213_v15 = vld [vmem:[%s4516_s3 + $0xa8] sm:$0xff] }
  0x1b   : > { %414 = vst [vmem:[#allocation2 + $0x50] sm:$0xff] %v3392_v1  ;;  %v348_v10 = vadd.f32 %v3466_v8, %v312_v56  ;;  %v349_v11 = vadd.f32 %v3466_v8, %v313_v57  ;;  %v395_v13 = vmax.f32 %v363_v58, 0.0  ;;  %v356_v14 = vadd.f32 %v3466_v8, %v320_v59 }
  0x1c   : > { %3355 = vmatpush.bf16.msra.mxu1 %v3203_v16  ;;  %3356 = vmatpush.bf16.msra.mxu2 %v3203_v16  ;;  %415 = vst [vmem:[#allocation2 + $0x58] sm:$0x3] %v3392_v1  ;;  %v3318_v25 = vunpack.c.l.bf16 %v3340_v7  ;;  %v314_v35 = vmul.f32 %v3455_v3, %v3286_v12  ;;  %v3270_v40 = vunpack.c.l.bf16 %v3328_v26  ;;  %v323_v42 = vmul.f32 %v3455_v3, %v3303_v24  ;;  %v3337_v12 = vld [vmem:[%s3450_s27 + $0x50] sm:$0xff]  }
  0x1d   : > { %3357 = vmatpush.bf16.msra.mxu3 %v3203_v16  ;;  %672 = vmatpush.bf16.msra.mxu0 %v3203_v16  ;;  %419 = vst [vmem:[#allocation2 + $0x78] sm:$0xff] %v3392_v1  ;;  %v3221_v16 = vld [vmem:[%s4516_s3 + $0xe8] sm:$0xff]  ;;  %v3271_v44 = vunpack.c.h.bf16 %v3328_v26 }
  0x1e   : > { %420 = vst [vmem:[#allocation2 + $0x80] sm:$0xff] %v3392_v1  ;;  %v330_v43 = vmul.f32 %v3455_v3, %v3318_v25  ;;  %v350_v48 = vadd.f32 %v3466_v8, %v314_v35  ;;  %v306_v53 = vmul.f32 %v3455_v3, %v3270_v40  ;;  %v359_v55 = vadd.f32 %v3466_v8, %v323_v42  ;;  %v3329_v25 = vld [vmem:[%s3450_s27 + $0x10] sm:$0xff]  }
  0x1f   : > { %421 = vst [vmem:[#allocation2 + $0x88] sm:$0x3] %v3392_v1  ;;  %v307_v57 = vmul.f32 %v3455_v3, %v3271_v44  ;;  %v3218_v42 = vld [vmem:[%s4516_s3 + $0xd0] sm:$0xff] }
  0x20   : > { %3358 = vmatpush.bf16.msra.mxu1 %v3202_v17  ;;  %3359 = vmatpush.bf16.msra.mxu2 %v3202_v17  ;;  %422 = vst [vmem:[#allocation2 + $0x90] sm:$0xff] %v3392_v1  ;;  %v564_v20 = vld [vmem:[#allocation2 + $0x61] sm:$0xff]  ;;  %v366_v56 = vadd.f32 %v3466_v8, %v330_v43  ;;  %v3227_v43 = vld [vmem:[%s4516_s3 + $0x118] sm:$0xff] }
  0x21   : > { %3360 = vmatpush.bf16.msra.mxu3 %v3202_v17  ;;  %673 = vmatpush.bf16.msra.mxu0 %v3202_v17  ;;  %423 = vst [vmem:[#allocation2 + $0x98] sm:$0xff] %v3392_v1  ;;  %v565_v21 = vld [vmem:[#allocation2 + $0x69] sm:$0xff] }
  0x22   : > { %424 = vst [vmem:[#allocation2 + $0xa0] sm:$0x3] %v3392_v1  ;;  %v3509_v22 = vpack.c.bf16 %v565_v21, %v564_v20  ;;  %v3230_v17 = vld [vmem:[%s4516_s3 + $0x130] sm:$0xff]  ;;  %v357_v20 = vadd.f32 %v3466_v8, %v321_v61  ;;  %v304_v21 = vmul.f32 %v3455_v3, %v3266_v62  ;;  %v382_v61 = vmax.f32 %v350_v48, 0.0 }
  0x23   : > { %425 = vst [vmem:[#allocation2 + $0xa8] sm:$0xff] %v3392_v1  ;;  %v3194_v48 = vld [vmem:[%s4516_s3 + $0x10] sm:$0xff] }
  0x24   : > { %3361 = vmatpush.bf16.msra.mxu1 %v3201_v18  ;;  %3362 = vmatpush.bf16.msra.mxu2 %v3201_v18  ;;  %426 = vst [vmem:[#allocation2 + $0xb0] sm:$0xff] %v3392_v1  ;;  %v340_v41 = vadd.f32 %v3466_v8, %v304_v21  ;;  %v389_v45 = vmax.f32 %v357_v20, 0.0  ;;  %v3307_v21 = vunpack.c.h.bf16 %v3337_v12 }
  0x25   : > { %3363 = vmatpush.bf16.msra.mxu3 %v3201_v18  ;;  %674 = vmatpush.bf16.msra.mxu0 %v3201_v18  ;;  %427 = vst [vmem:[#allocation2 + $0xb8] sm:$0x3] %v3392_v1  ;;  %v3287_v18 = vunpack.c.h.bf16 %v3332_v63 }
  0x26   : > { %428 = vst [vmem:[#allocation2 + $0xc0] sm:$0xff] %v3392_v1  ;;  %v372_v54 = vmax.f32 %v340_v41, 0.0  ;;  %v3274_v41 = vunpack.c.l.bf16 %v3329_v25 }
  0x27   : > { %429 = vst [vmem:[#allocation2 + $0xc8] sm:$0xff] %v3392_v1  ;;  %v315_v38 = vmul.f32 %v3455_v3, %v3287_v18  ;;  %v3341_v18 = vld [vmem:[%s3450_s27 + $0x70] sm:$0xff]  }
  0x28   : > { %3364 = vmatpush.bf16.msra.mxu1 %v3200_v19  ;;  %3365 = vmatpush.bf16.msra.mxu2 %v3200_v19  ;;  %430 = vst [vmem:[#allocation2 + $0xd0] sm:$0x3] %v3392_v1  ;;  %v3323_v24 = vunpack.c.h.bf16 %v3341_v18 }
  0x29   : > { %3366 = vmatpush.bf16.msra.mxu3 %v3200_v19  ;;  %675 = vmatpush.bf16.msra.mxu0 %v3200_v19  ;;  %431 = vst [vmem:[#allocation2 + $0xd8] sm:$0xff] %v3392_v1  ;;  %v3302_v19 = vunpack.c.l.bf16 %v3336_v0  ;;  %v351_v51 = vadd.f32 %v3466_v8, %v315_v38  ;;  %v3210_v38 = vld [vmem:[%s4516_s3 + $0x90] sm:$0xff] }
  0x2a   : > { %432 = vst [vmem:[#allocation2 + $0xe0] sm:$0xff] %v3392_v1 }
  0x2b   : > { %696 = vmatmul.bf16.vlgmr.msra.gmra.mxu1 %v3509_v22  ;;  %433 = vst [vmem:[#allocation2 + $0xe8] sm:$0x3] %v3392_v1  ;;  %v322_v39 = vmul.f32 %v3455_v3, %v3302_v19 }
  0x2c   : > { %434 = vst [vmem:[#allocation2 + $0xf0] sm:$0xff] %v3392_v1  ;;  %1006 = vmatpush.bf16.msrb.mxu2 %v3215_v27  ;;  %676 = vmatmul.bf16.vlgmr.msra.gmra.mxu0 %v588_v28  ;;  %v364_v27 = vadd.f32 %v3466_v8, %v328_v4  ;;  %v365_v28 = vadd.f32 %v3466_v8, %v329_v5 }
  0x2d   : > { %435 = vst [vmem:[#allocation2 + $0xf8] sm:$0xff] %v3392_v1  ;;  %1239 = vmatpush.bf16.msrb.mxu3 %v3223_v29  ;;  %805 = vmatpush.bf16.msrb.mxu1 %v3199_v30  ;;  %v305_v29 = vmul.f32 %v3455_v3, %v3267_v6  ;;  %v3212_v30 = vld [vmem:[%s4516_s3 + $0xa0] sm:$0xff]  ;;  %v358_v52 = vadd.f32 %v3466_v8, %v322_v39 }
  0x2e   : > { %436 = vst [vmem:[#allocation2 + $0x100] sm:$0x3] %v3392_v1  ;;  %1472 = vmatpush.bf16.msrb.mxu0 %v3231_v32  ;;  %v380_v32 = vmax.f32 %v348_v10, 0.0  ;;  %v396_v47 = vmax.f32 %v364_v27, 0.0  ;;  %v397_v50 = vmax.f32 %v365_v28, 0.0  ;;  %v3645_v5 = vadd.f32 %v3466_v8, %v306_v53  ;;  %v3211_v27 = vld [vmem:[%s4516_s3 + $0x98] sm:$0xff] }
  0x2f   : > { %437 = vst [vmem:[#allocation2 + $0x108] sm:$0xff] %v3392_v1  ;;  %v341_v46 = vadd.f32 %v3466_v8, %v305_v29  ;;  %v390_v4 = vmax.f32 %v358_v52, 0.0  ;;  %v343_v10 = vadd.f32 %v3466_v8, %v307_v57  ;;  %v3219_v29 = vld [vmem:[%s4516_s3 + $0xd8] sm:$0xff]  ;;  %v308_v57 = vmul.f32 %v3455_v3, %v3274_v41 }
  0x30   : > { %438 = vst [vmem:[#allocation2 + $0x110] sm:$0xff] %v3392_v1  ;;  %1007 = vmatpush.bf16.msrb.mxu2 %v3214_v34  ;;  %v3196_v34 = vld [vmem:[%s4516_s3 + $0x20] sm:$0xff]  ;;  %v374_v28 = vmax.f32 %v3645_v5, 0.0 }
  0x31   : > { %439 = vst [vmem:[#allocation2 + $0x118] sm:$0x3] %v3392_v1  ;;  %1240 = vmatpush.bf16.msrb.mxu3 %v3222_v36  ;;  %806 = vmatpush.bf16.msrb.mxu1 %v3198_v37  ;;  %v3319_v36 = vunpack.c.h.bf16 %v3340_v7  ;;  %v388_v37 = vmax.f32 %v356_v14, 0.0  ;;  %v373_v59 = vmax.f32 %v341_v46, 0.0  ;;  %v391_v7 = vmax.f32 %v359_v55, 0.0 }
  0x32   : > { %440 = vst [vmem:[#allocation2 + $0x120] sm:$0xff] %v3392_v1  ;;  %1473 = vmatpush.bf16.msrb.mxu0 %v3230_v17  ;;  %v3306_v17 = vunpack.c.l.bf16 %v3337_v12  ;;  %v3209_v12 = vld [vmem:[%s4516_s3 + $0x88] sm:$0xff] }
  0x33   : > { %441 = vst [vmem:[#allocation2 + $0x128] sm:$0xff] %v3392_v1  ;;  %v331_v49 = vmul.f32 %v3455_v3, %v3319_v36  ;;  %v333_v36 = vmul.f32 %v3455_v3, %v3323_v24 }
  0x34   : > { %442 = vst [vmem:[#allocation2 + $0x130] sm:$0x3] %v3392_v1  ;;  %1008 = vmatpush.bf16.msrb.mxu2 %v3213_v15 }
  0x35   : > { %443 = vst [vmem:[#allocation2 + $0x138] sm:$0xff] %v3392_v1  ;;  %1241 = vmatpush.bf16.msrb.mxu3 %v3221_v16  ;;  %807 = vmatpush.bf16.msrb.mxu1 %v3197_v23  ;;  %v367_v62 = vadd.f32 %v3466_v8, %v331_v49  ;;  %v3322_v23 = vunpack.c.l.bf16 %v3341_v18  ;;  %v3216_v18 = vld [vmem:[%s4516_s3 + $0xc0] sm:$0xff] }
  0x36   : > { %444 = vst [vmem:[#allocation2 + $0x140] sm:$0xff] %v3392_v1  ;;  %1474 = vmatpush.bf16.msrb.mxu0 %v3229_v33  ;;  %v324_v33 = vmul.f32 %v3455_v3, %v3306_v17  ;;  %v3208_v17 = vld [vmem:[%s4516_s3 + $0x80] sm:$0xff] }
  0x37   : > { %445 = vst [vmem:[#allocation2 + $0x148] sm:$0x3] %v3392_v1  ;;  %v399_v20 = vmax.f32 %v367_v62, 0.0  ;;  %v332_v35 = vmul.f32 %v3455_v3, %v3322_v23 }
  0x38   : > { %446 = vst [vmem:[#allocation2 + $0x150] sm:$0xff] %v3392_v1  ;;  %1009 = vmatpush.bf16.msrb.mxu2 %v3212_v30  ;;  %v360_v44 = vadd.f32 %v3466_v8, %v324_v33  ;;  %v3247_v33 = vld [vmem:[%s4516_s3 + $0x1b8] sm:$0xff] }
  0x39   : > { %447 = vst [vmem:[#allocation2 + $0x158] sm:$0xff] %v3392_v1  ;;  %1242 = vmatpush.bf16.msrb.mxu3 %v3220_v31  ;;  %808 = vmatpush.bf16.msrb.mxu1 %v3196_v34  ;;  %v325_v34 = vmul.f32 %v3455_v3, %v3307_v21  ;;  %v368_v46 = vadd.f32 %v3466_v8, %v332_v35  ;;  %v3192_v21 = vld [vmem:[%s4516_s3] sm:$0xff]  ;;  %v3239_v35 = vld [vmem:[%s4516_s3 + $0x178] sm:$0xff] }
  0x3a   : > { %448 = vst [vmem:[#allocation2 + $0x160] sm:$0x3] %v3392_v1  ;;  %v392_v53 = vmax.f32 %v360_v44, 0.0 }
  0x3b   : > { %449 = vst [vmem:[#allocation2 + $0x168] sm:$0xff] %v3392_v1 }
  0x3c   : > { %450 = vst [vmem:[#allocation2 + $0x170] sm:$0xff] %v3392_v1  ;;  %1010 = vmatpush.bf16.msrb.mxu2 %v3211_v27 }
  0x3d   : > { %451 = vst [vmem:[#allocation2 + $0x178] sm:$0x3] %v3392_v1  ;;  %1243 = vmatpush.bf16.msrb.mxu3 %v3219_v29 }
  0x3e   : > { %452 = vst [vmem:[#allocation2 + $0x180] sm:$0xff] %v3392_v1 }
  0x3f   : > { %453 = vst [vmem:[#allocation2 + $0x188] sm:$0xff] %v3392_v1 }
  0x40   : > { %454 = vst [vmem:[#allocation2 + $0x190] sm:$0x3] %v3392_v1  ;;  %1011 = vmatpush.bf16.msrb.mxu2 %v3210_v38  ;;  %v3263_v38 = vld [vmem:[%s4516_s3 + $0x238] sm:$0xff] }
  0x41   : > { %455 = vst [vmem:[#allocation2 + $0x198] sm:$0xff] %v3392_v1  ;;  %1244 = vmatpush.bf16.msrb.mxu3 %v3218_v42 }
  0x42   : > { %456 = vst [vmem:[#allocation2 + $0x1a0] sm:$0xff] %v3392_v1 }
  0x43   : > { %457 = vst [vmem:[#allocation2 + $0x1a8] sm:$0x3] %v3392_v1  ;;  %v381_v1 = vmax.f32 %v349_v11, 0.0  ;;  %v3333_v11 = vld [vmem:[%s3450_s27 + $0x30] sm:$0xff]  }
  0x44   : > { %474 = vst.msk [vmem:[#allocation2 + $0xc1] sm:$0xff] %vm459_vm0, %v386_v60  ;;  %v3290_v15 = vunpack.c.l.bf16 %v3333_v11  ;;  %v3291_v16 = vunpack.c.h.bf16 %v3333_v11  ;;  %1012 = vmatpush.bf16.msrb.mxu2 %v3209_v12 }
  0x45   : > { %475 = vst.msk [vmem:[#allocation2 + $0xc9] sm:$0xff] %vm459_vm0, %v387_v2  ;;  %v383_v2 = vmax.f32 %v351_v51, 0.0  ;;  %v369_v51 = vadd.f32 %v3466_v8, %v333_v36 }
  0x46   : > { %482 = vst.msk [vmem:[#allocation2 + $0x121] sm:$0xff] %vm459_vm0, %v394_v9  ;;  %v398_v9 = vmax.f32 %v366_v56, 0.0  ;;  %v316_v30 = vmul.f32 %v3455_v3, %v3290_v15  ;;  %v317_v31 = vmul.f32 %v3455_v3, %v3291_v16  ;;  %v3226_v15 = vld [vmem:[%s4516_s3 + $0x110] sm:$0xff]  ;;  %v3193_v16 = vld [vmem:[%s4516_s3 + $0x8] sm:$0xff] }
  0x47   : > { %483 = vst.msk [vmem:[#allocation2 + $0x129] sm:$0xff] %vm459_vm0, %v395_v13  ;;  %v401_v62 = vmax.f32 %v369_v51, 0.0 }
  0x48   : > { %468 = vst.msk [vmem:[#allocation2 + $0x79] sm:$0xff] %vm459_vm0, %v380_v32  ;;  %v3228_v32 = vld [vmem:[%s4516_s3 + $0x120] sm:$0xff]  ;;  %v352_v39 = vadd.f32 %v3466_v8, %v316_v30  ;;  %v353_v40 = vadd.f32 %v3466_v8, %v317_v31  ;;  %1013 = vmatpush.bf16.msrb.mxu2 %v3208_v17 }
  0x49   : > { %469 = vst.msk [vmem:[#allocation2 + $0x81] sm:$0xff] %vm459_vm0, %v381_v1  ;;  %v3195_v1 = vld [vmem:[%s4516_s3 + $0x18] sm:$0xff]  ;;  %1475 = vmatpush.bf16.msrb.mxu0 %v3228_v32 }
  0x4a   : > { %476 = vst.msk [vmem:[#allocation2 + $0xd9] sm:$0xff] %vm459_vm0, %v388_v37  ;;  %v375_v37 = vmax.f32 %v343_v10, 0.0  ;;  %809 = vmatpush.bf16.msrb.mxu1 %v3195_v1  ;;  %v384_v49 = vmax.f32 %v352_v39, 0.0 }
  0x4b   : > { %v572_v58 = vld [vmem:[#allocation2 + $0xc1] sm:$0xff]  ;;  %477 = vst.msk [vmem:[#allocation2 + $0xe1] sm:$0xff] %vm459_vm0, %v389_v45  ;;  %v361_v45 = vadd.f32 %v3466_v8, %v325_v34  ;;  %v3255_v34 = vld [vmem:[%s4516_s3 + $0x1f8] sm:$0xff] }
  0x4c   : > { %v573_v60 = vld [vmem:[#allocation2 + $0xc9] sm:$0xff]  ;;  %484 = vst.msk [vmem:[#allocation2 + $0x139] sm:$0xff] %vm459_vm0, %v396_v47 }
  0x4d   : > { %v596_v63 = vpack.c.bf16 %v573_v60, %v572_v58  ;;  %v580_v0 = vld [vmem:[#allocation2 + $0x121] sm:$0xff]  ;;  %485 = vst.msk [vmem:[#allocation2 + $0x141] sm:$0xff] %vm459_vm0, %v397_v50  ;;  %v385_v50 = vmax.f32 %v353_v40, 0.0  ;;  %v393_v56 = vmax.f32 %v361_v45, 0.0  ;;  %1476 = vmatpush.bf16.msrb.mxu0 %v3227_v43  ;;  %v400_v60 = vmax.f32 %v368_v46, 0.0 }
  0x4e   : > { %v581_v6 = vld [vmem:[#allocation2 + $0x129] sm:$0xff]  ;;  %460 = vst.msk [vmem:[#allocation2 + $0x19] sm:$0xff] %vm459_vm0, %v372_v54  ;;  %v3275_v54 = vunpack.c.h.bf16 %v3329_v25  ;;  %810 = vmatpush.bf16.msrb.mxu1 %v3194_v48  ;;  %v3224_v25 = vld [vmem:[%s4516_s3 + $0x100] sm:$0xff]  ;;  %v3393_v46 = vmov 0.0|0.0  }
  0x4f   : > { %716 = vmatmul.bf16.vlgmr.msra.gmra.mxu2 %v596_v63  ;;  %v600_v13 = vpack.c.bf16 %v581_v6, %v580_v0  ;;  %v566_v14 = vld [vmem:[#allocation2 + $0x79] sm:$0xff]  ;;  %461 = vst.msk [vmem:[#allocation2 + $0x21] sm:$0xff] %vm459_vm0, %v373_v59  ;;  %v344_v63 = vadd.f32 %v3466_v8, %v308_v57  ;;  %v895_v48 = vld [vmem:[#allocation2 + $0xa] sm:$0xff] }
  0x50   : > { %v567_v19 = vld [vmem:[#allocation2 + $0x81] sm:$0xff]  ;;  %470 = vst.msk [vmem:[#allocation2 + $0x91] sm:$0xff] %vm459_vm0, %v382_v61  ;;  %v309_v61 = vmul.f32 %v3455_v3, %v3275_v54  ;;  %1939 = vmatpush.bf16.msra.mxu2 %v3247_v33  ;;  %v3254_v54 = vld [vmem:[%s4516_s3 + $0x1f0] sm:$0xff] }
  0x51   : > { %736 = vmatmul.bf16.vlgmr.msra.gmra.mxu3 %v600_v13  ;;  %v3655_v26 = vpack.c.bf16 %v567_v19, %v566_v14  ;;  %471 = vst.msk [vmem:[#allocation2 + $0x99] sm:$0xff] %vm459_vm0, %v383_v2  ;;  %v574_v58 = vld [vmem:[#allocation2 + $0xd9] sm:$0xff]  ;;  %v376_v6 = vmax.f32 %v344_v63, 0.0  ;;  %v3217_v13 = vld [vmem:[%s4516_s3 + $0xc8] sm:$0xff]  ;;  %1477 = vmatpush.bf16.msrb.mxu0 %v3226_v15 }
  0x52   : > { %478 = vst.msk [vmem:[#allocation2 + $0xf1] sm:$0xff] %vm459_vm0, %v390_v4  ;;  %v575_v59 = vld [vmem:[#allocation2 + $0xe1] sm:$0xff]  ;;  %v345_v4 = vadd.f32 %v3466_v8, %v309_v61  ;;  %1245 = vmatpush.bf16.msrb.mxu3 %v3217_v13  ;;  %811 = vmatpush.bf16.msrb.mxu1 %v3193_v16 }
  0x53   : > { %701 = vmatmul.bf16.gmra.mxu1 %v3655_v26  ;;  %479 = vst.msk [vmem:[#allocation2 + $0xf9] sm:$0xff] %vm459_vm0, %v391_v7  ;;  %v582_v0 = vld [vmem:[#allocation2 + $0x139] sm:$0xff]  ;;  %v3712_v5 = vpack.c.bf16 %v575_v59, %v574_v58  ;;  %v3225_v19 = vld [vmem:[%s4516_s3 + $0x108] sm:$0xff] }
  0x54   : > { %486 = vst.msk [vmem:[#allocation2 + $0x151] sm:$0xff] %vm459_vm0, %v398_v9  ;;  %v583_v2 = vld [vmem:[#allocation2 + $0x141] sm:$0xff]  ;;  %v377_v9 = vmax.f32 %v345_v4, 0.0 }
  0x55   : > { %v558_v47 = vld [vmem:[#allocation2 + $0x19] sm:$0xff]  ;;  %487 = vst.msk [vmem:[#allocation2 + $0x159] sm:$0xff] %vm459_vm0, %v399_v20  ;;  %v601_v10 = vpack.c.bf16 %v583_v2, %v582_v0  ;;  %1478 = vmatpush.bf16.msrb.mxu0 %v3225_v19  ;;  %v1134_v15 = vld [vmem:[#allocation2 + $0x68] sm:$0xff] }
  0x56   : > { %v559_v52 = vld [vmem:[#allocation2 + $0x21] sm:$0xff]  ;;  %462 = vst.msk [vmem:[#allocation2 + $0x31] sm:$0xff] %vm459_vm0, %v374_v28  ;;  %1246 = vmatpush.bf16.msrb.mxu3 %v3216_v18  ;;  %812 = vmatpush.bf16.msrb.mxu1 %v3192_v21 }
  0x57   : > { %v3701_v55 = vpack.c.bf16 %v559_v52, %v558_v47  ;;  %463 = vst.msk [vmem:[#allocation2 + $0x39] sm:$0xff] %vm459_vm0, %v375_v37  ;;  %v568_v3 = vld [vmem:[#allocation2 + $0x91] sm:$0xff]  ;;  %v894_v47 = vld [vmem:[#allocation2 + $0x2] sm:$0xff]  ;;  %v896_v57 = vld [vmem:[#allocation2 + $0x1a] sm:$0xff] }
  0x58   : > { %472 = vst.msk [vmem:[#allocation2 + $0xa9] sm:$0xff] %vm459_vm0, %v384_v49  ;;  %v569_v7 = vld [vmem:[#allocation2 + $0x99] sm:$0xff]  ;;  %v926_v51 = vpack.c.bf16 %v895_v48, %v894_v47  ;;  %v897_v58 = vld [vmem:[#allocation2 + $0x22] sm:$0xff] }
  0x59   : > { %681 = vmatmul.bf16.gmra.mxu0 %v3701_v55  ;;  %473 = vst.msk [vmem:[#allocation2 + $0xb1] sm:$0xff] %vm459_vm0, %v385_v50  ;;  %v3719_v11 = vpack.c.bf16 %v569_v7, %v568_v3  ;;  %v576_v23 = vld [vmem:[#allocation2 + $0xf1] sm:$0xff]  ;;  %v1128_v50 = vld [vmem:[#allocation2 + $0x20] sm:$0xff]  ;;  %v3788_v61 = vpack.c.bf16 %v897_v58, %v896_v57  ;;  %v3245_v7 = vld [vmem:[%s4516_s3 + $0x1a8] sm:$0xff] }
  0x5a   : > { %480 = vst.msk [vmem:[#allocation2 + $0x109] sm:$0xff] %vm459_vm0, %v392_v53  ;;  %v577_v24 = vld [vmem:[#allocation2 + $0xf9] sm:$0xff]  ;;  %1479 = vmatpush.bf16.msrb.mxu0 %v3224_v25  ;;  %2172 = vmatpush.bf16.msra.mxu3 %v3255_v34  ;;  %v3246_v53 = vld [vmem:[%s4516_s3 + $0x1b0] sm:$0xff]  ;;  %v902_v21 = vld [vmem:[#allocation2 + $0x62] sm:$0xff] }
  0x5b   : > { %481 = vst.msk [vmem:[#allocation2 + $0x111] sm:$0xff] %vm459_vm0, %v393_v56  ;;  %v584_v27 = vld [vmem:[#allocation2 + $0x151] sm:$0xff]  ;;  %v3753_v29 = vpack.c.bf16 %v577_v24, %v576_v23  ;;  %1705 = vmatpush.bf16.msra.mxu1 %v3239_v35  ;;  %1940 = vmatpush.bf16.msra.mxu2 %v3246_v53  ;;  %v1136_v24 = vld [vmem:[#allocation2 + $0x80] sm:$0xff] }
  0x5c   : > { %488 = vst.msk [vmem:[#allocation2 + $0x169] sm:$0xff] %vm459_vm0, %v400_v60  ;;  %v585_v28 = vld [vmem:[#allocation2 + $0x159] sm:$0xff]  ;;  %v3238_v56 = vld [vmem:[%s4516_s3 + $0x170] sm:$0xff] }
  0x5d   : > { %489 = vst.msk [vmem:[#allocation2 + $0x171] sm:$0xff] %vm459_vm0, %v401_v62  ;;  %v560_v8 = vld [vmem:[#allocation2 + $0x31] sm:$0xff]  ;;  %v602_v32 = vpack.c.bf16 %v585_v28, %v584_v27  ;;  %v3236_v34 = vld [vmem:[%s4516_s3 + $0x160] sm:$0xff] }
  0x5e   : > { %464 = vst.msk [vmem:[#allocation2 + $0x49] sm:$0xff] %vm459_vm0, %v376_v6  ;;  %v561_v14 = vld [vmem:[#allocation2 + $0x39] sm:$0xff]  ;;  %2405 = vmatpush.bf16.msra.mxu0 %v3263_v38  ;;  %2173 = vmatpush.bf16.msra.mxu3 %v3254_v54  ;;  %v1129_v59 = vld [vmem:[#allocation2 + $0x30] sm:$0xff]  ;;  %v905_v38 = vld [vmem:[#allocation2 + $0x82] sm:$0xff] }
  0x5f   : > { %721 = vmatmul.bf16.gmra.mxu2 %v3712_v5  ;;  %465 = vst.msk [vmem:[#allocation2 + $0x51] sm:$0xff] %vm459_vm0, %v377_v9  ;;  %v3744_v20 = vpack.c.bf16 %v561_v14, %v560_v8  ;;  %v570_v30 = vld [vmem:[#allocation2 + $0xa9] sm:$0xff]  ;;  %v1127_v49 = vld [vmem:[#allocation2 + $0x18] sm:$0xff]  ;;  %1706 = vmatpush.bf16.msra.mxu1 %v3238_v56  ;;  %v1133_v14 = vld [vmem:[#allocation2 + $0x60] sm:$0xff] }
  0x60   : > { %v571_v31 = vld [vmem:[#allocation2 + $0xb1] sm:$0xff]  ;;  %v1159_v52 = vpack.c.bf16 %v1128_v50, %v1127_v49  ;;  %v899_v0 = vld [vmem:[#allocation2 + $0x3a] sm:$0xff]  ;;  %v3253_v9 = vld [vmem:[%s4516_s3 + $0x1e8] sm:$0xff]  ;;  %1941 = vmatpush.bf16.msra.mxu2 %v3245_v7  ;;  %v1162_v18 = vpack.c.bf16 %v1134_v15, %v1133_v14 }
  0x61   : > { %741 = vmatmul.bf16.gmra.mxu3 %v601_v10  ;;  %v3756_v1 = vpack.c.bf16 %v571_v31, %v570_v30  ;;  %v578_v40 = vld [vmem:[#allocation2 + $0x109] sm:$0xff]  ;;  %v1130_v60 = vld [vmem:[#allocation2 + $0x38] sm:$0xff]  ;;  %v3244_v31 = vld [vmem:[%s4516_s3 + $0x1a0] sm:$0xff] }
  0x62   : > { %v579_v41 = vld [vmem:[#allocation2 + $0x111] sm:$0xff]  ;;  %v3790_v62 = vpack.c.bf16 %v1130_v60, %v1129_v59  ;;  %2174 = vmatpush.bf16.msra.mxu3 %v3253_v9  ;;  %v3237_v10 = vld [vmem:[%s4516_s3 + $0x168] sm:$0xff]  ;;  %v3260_v35 = vld [vmem:[%s4516_s3 + $0x220] sm:$0xff] }
  0x63   : > { %706 = vmatmul.bf16.gmra.mxu1 %v3719_v11  ;;  %v586_v42 = vld [vmem:[#allocation2 + $0x169] sm:$0xff]  ;;  %v3771_v44 = vpack.c.bf16 %v579_v41, %v578_v40  ;;  %v898_v63 = vld [vmem:[#allocation2 + $0x32] sm:$0xff] }
  0x64   : > { %v587_v43 = vld [vmem:[#allocation2 + $0x171] sm:$0xff]  ;;  %v3795_v6 = vpack.c.bf16 %v899_v0, %v898_v63  ;;  %v3261_v8 = vld [vmem:[%s4516_s3 + $0x228] sm:$0xff]  ;;  %1707 = vmatpush.bf16.msra.mxu1 %v3237_v10  ;;  %1942 = vmatpush.bf16.msra.mxu2 %v3244_v31 }
  0x65   : > { %v562_v36 = vld [vmem:[#allocation2 + $0x49] sm:$0xff]  ;;  %v603_v45 = vpack.c.bf16 %v587_v43, %v586_v42  ;;  %v1138_v42 = vld [vmem:[#allocation2 + $0x98] sm:$0xff] }
  0x66   : > { %v563_v37 = vld [vmem:[#allocation2 + $0x51] sm:$0xff]  ;;  %v1131_v2 = vld [vmem:[#allocation2 + $0x48] sm:$0xff] }
  0x67   : > { %v591_v39 = vpack.c.bf16 %v563_v37, %v562_v36  ;;  %v1132_v4 = vld [vmem:[#allocation2 + $0x50] sm:$0xff]  ;;  %v904_v37 = vld [vmem:[#allocation2 + $0x7a] sm:$0xff]  ;;  %v1139_v56 = vld [vmem:[#allocation2 + $0xa8] sm:$0xff] }
  0x68   : > { %v1161_v3 = vpack.c.bf16 %v1132_v4, %v1131_v2  ;;  %v900_v12 = vld [vmem:[#allocation2 + $0x4a] sm:$0xff]  ;;  %v901_v13 = vld [vmem:[#allocation2 + $0x52] sm:$0xff]  ;;  %1708 = vmatpush.bf16.msra.mxu1 %v3236_v34  ;;  %v3851_v43 = vpack.c.bf16 %v905_v38, %v904_v37  ;;  %v1374_v4 = vld [vmem:[#allocation2 + $0xc1] sm:$0xff] }
  0x69   : > { %686 = vmatmul.bf16.gmra.mxu0 %v3744_v20  ;;  %v3811_v16 = vpack.c.bf16 %v901_v13, %v900_v12  ;;  %v903_v23 = vld [vmem:[#allocation2 + $0x6a] sm:$0xff]  ;;  %v3251_v0 = vld [vmem:[%s4516_s3 + $0x1d8] sm:$0xff]  ;;  %v910_v38 = vld [vmem:[#allocation2 + $0xc2] sm:$0xff] }
  0x6a   : > { %v3821_v25 = vpack.c.bf16 %v903_v23, %v902_v21  ;;  %v1137_v41 = vld [vmem:[#allocation2 + $0x90] sm:$0xff]  ;;  %v3235_v10 = vld [vmem:[%s4516_s3 + $0x158] sm:$0xff]  ;;  %v1141_v21 = vld [vmem:[#allocation2 + $0xc0] sm:$0xff] }
  0x6b   : > { %v908_v13 = vld [vmem:[#allocation2 + $0xaa] sm:$0xff]  ;;  %v909_v14 = vld [vmem:[#allocation2 + $0xb2] sm:$0xff] }
  0x6c   : > { %1709 = vmatpush.bf16.msra.mxu1 %v3235_v10  ;;  %v1142_v23 = vld [vmem:[#allocation2 + $0xc8] sm:$0xff] }
  0x6f   : > { %726 = vmatmul.bf16.gmra.mxu2 %v3753_v29 }
  0x71   : > { %746 = vmatmul.bf16.gmra.mxu3 %v602_v32 }
  0x73   : > { %711 = vmatmul.bf16.gmra.mxu1 %v3756_v1 }
  0x79   : > { %691 = vmatmul.bf16.gmra.mxu0 %v591_v39 }
  0x7f   : > { %731 = vmatmul.bf16.gmra.mxu2 %v3771_v44 }
  0x81   : > { %751 = vmatmul.bf16.gmra.mxu3 %v603_v45 }
  0x83   : > { %813 = vmatmul.bf16.vlgmr.msrb.gmra.mxu1 %v3393_v46  ;;  %v1164_v46 = vpack.c.bf16 %v1138_v42, %v1137_v41  ;;  %v911_v41 = vld [vmem:[#allocation2 + $0xca] sm:$0xff] }
  0x89   : > { %1480 = vmatmul.bf16.vlgmr.msrb.gmra.mxu0 %v3701_v55  ;;  %v3262_v55 = vld [vmem:[%s4516_s3 + $0x230] sm:$0xff] }
  0x8a   : > { %2406 = vmatpush.bf16.msra.mxu0 %v3262_v55  ;;  %v1140_v55 = vld [vmem:[#allocation2 + $0xb0] sm:$0xff] }
  0x8b   : > { %v1165_v59 = vpack.c.bf16 %v1140_v55, %v1139_v56  ;;  %v1144_v56 = vld [vmem:[#allocation2 + $0xe0] sm:$0xff]  ;;  %v3917_v55 = vpack.c.bf16 %v911_v41, %v910_v38 }
  0x8e   : > { %2407 = vmatpush.bf16.msra.mxu0 %v3261_v8  ;;  %v3259_v8 = vld [vmem:[%s4516_s3 + $0x218] sm:$0xff] }
  0x8f   : > { %1014 = vmatmul.bf16.vlgmr.msrb.gmra.mxu2 %v926_v51  ;;  %v906_v51 = vld [vmem:[#allocation2 + $0x92] sm:$0xff] }
  0x91   : > { %1247 = vmatmul.bf16.vlgmr.msrb.gmra.mxu3 %v1159_v52 }
  0x92   : > { %2408 = vmatpush.bf16.msra.mxu0 %v3260_v35 }
  0x93   : > { %818 = vmatmul.bf16.gmra.mxu1 %v1159_v52  ;;  %v907_v52 = vld [vmem:[#allocation2 + $0x9a] sm:$0xff] }
  0x94   : > { %v3871_v57 = vpack.c.bf16 %v907_v52, %v906_v51  ;;  %v1143_v52 = vld [vmem:[#allocation2 + $0xd8] sm:$0xff] }
  0x96   : > { %2409 = vmatpush.bf16.msra.mxu0 %v3259_v8 }
  0x99   : > { %1485 = vmatmul.bf16.gmra.mxu0 %v3744_v20 }
  0x9f   : > { %1019 = vmatmul.bf16.gmra.mxu2 %v3788_v61 }
  0xa1   : > { %1252 = vmatmul.bf16.gmra.mxu3 %v3790_v62 }
  0xa3   : > { %823 = vmatmul.bf16.gmra.mxu1 %v3790_v62 }
  0xa8   : > { %v3813_v17 = vpop.f32.mrf.mxu1 }
  0xa9   : > { %1490 = vmatmul.bf16.gmra.mxu0 %v591_v39  ;;  %v3816_v19 = vpop.f32.mrf.mxu0 }
  0xaf   : > { %1024 = vmatmul.bf16.gmra.mxu2 %v3795_v6 }
  0xb0   : > { %v3818_v20 = vpop.f32.mrf.mxu1 }
  0xb1   : > { %1257 = vmatmul.bf16.gmra.mxu3 %v1161_v3  ;;  %v3823_v27 = vpop.f32.mrf.mxu0 }
  0xb3   : > { %828 = vmatmul.bf16.gmra.mxu1 %v1161_v3  ;;  %v1375_v3 = vld [vmem:[#allocation2 + $0xc9] sm:$0xff] }
  0xb4   : > { %v1399_v9 = vpack.c.bf16 %v1375_v3, %v1374_v4 }
  0xb9   : > { %1495 = vmatmul.bf16.gmra.mxu0 %v3509_v22  ;;  %v1135_v22 = vld [vmem:[#allocation2 + $0x78] sm:$0xff] }
  0xba   : > { %v1163_v28 = vpack.c.bf16 %v1136_v24, %v1135_v22  ;;  %v3902_v22 = vpack.c.bf16 %v909_v14, %v908_v13 }
  0xbf   : > { %1029 = vmatmul.bf16.gmra.mxu2 %v3811_v16 }
  0xc1   : > { %1262 = vmatmul.bf16.gmra.mxu3 %v1162_v18 }
  0xc3   : > { %833 = vmatmul.bf16.gmra.mxu1 %v1162_v18 }
  0xc9   : > { %1500 = vmatmul.bf16.gmra.mxu0 %v3655_v26  ;;  %v3252_v26 = vld [vmem:[%s4516_s3 + $0x1e0] sm:$0xff] }
  0xca   : > { %2175 = vmatpush.bf16.msra.mxu3 %v3252_v26 }
  0xce   : > { %2176 = vmatpush.bf16.msra.mxu3 %v3251_v0 }
  0xcf   : > { %1034 = vmatmul.bf16.gmra.mxu2 %v3821_v25 }
  0xd0   : > { %v3826_v30 = vpop.f32.mrf.mxu1 }
  0xd1   : > { %1267 = vmatmul.bf16.gmra.mxu3 %v1163_v28 }
  0xd2   : > { %v3834_v32 = vpop.f32.mrf.mxu2 }
  0xd3   : > { %838 = vmatmul.bf16.gmra.mxu1 %v1163_v28  ;;  %v1166_v28 = vpack.c.bf16 %v1142_v23, %v1141_v21 }
  0xd4   : > { %v3836_v33 = vpop.f32.mrf.mxu3 }
  0xd6   : > { %v3844_v36 = vpop.f32.mrf.mxu0 }
  0xd8   : > { %v3846_v39 = vpop.f32.mrf.mxu1 }
  0xd9   : > { %1505 = vmatmul.bf16.gmra.mxu0 %v3719_v11 }
  0xda   : > { %v3849_v40 = vpop.f32.mrf.mxu2 }
  0xdc   : > { %v3853_v45 = vpop.f32.mrf.mxu3 }
  0xde   : > { %v3855_v47 = vpop.f32.mrf.mxu0 }
  0xdf   : > { %1039 = vmatmul.bf16.gmra.mxu2 %v3851_v43 }
  0xe0   : > { %v3858_v48 = vpop.f32.mrf.mxu1 }
  0xe1   : > { %1272 = vmatmul.bf16.gmra.mxu3 %v1164_v46 }
  0xe2   : > { %v3860_v49 = vpop.f32.mrf.mxu2 }
  0xe3   : > { %843 = vmatmul.bf16.gmra.mxu1 %v1164_v46 }
  0xe4   : > { %v3862_v11 = vpop.f32.mrf.mxu3 }
  0xe6   : > { %v3864_v50 = vpop.f32.mrf.mxu0 }
  0xe8   : > { %v3866_v53 = vpop.f32.mrf.mxu1 }
  0xe9   : > { %1510 = vmatmul.bf16.gmra.mxu0 %v3756_v1  ;;  %v3243_v1 = vld [vmem:[%s4516_s3 + $0x198] sm:$0xff] }
  0xea   : > { %v3869_v54 = vpop.f32.mrf.mxu2  ;;  %1943 = vmatpush.bf16.msra.mxu2 %v3243_v1  ;;  %v1167_v1 = vpack.c.bf16 %v1144_v56, %v1143_v52  ;;  %v1145_v52 = vld [vmem:[#allocation2 + $0xf0] sm:$0xff]  ;;  %v1146_v56 = vld [vmem:[#allocation2 + $0xf8] sm:$0xff] }
  0xec   : > { %v3873_v58 = vpop.f32.mrf.mxu3 }
  0xee   : > { %v3875_v60 = vpop.f32.mrf.mxu0 }
  0xef   : > { %1044 = vmatmul.bf16.gmra.mxu2 %v3871_v57 }
  0xf0   : > { %v3878_v63 = vpop.f32.mrf.mxu1 }
  0xf1   : > { %1277 = vmatmul.bf16.gmra.mxu3 %v1165_v59 }
  0xf2   : > { %v3886_v2 = vpop.f32.mrf.mxu2 }
  0xf3   : > { %848 = vmatmul.bf16.gmra.mxu1 %v1165_v59 }
  0xf4   : > { %v3888_v7 = vpop.f32.mrf.mxu3 }
  0xf6   : > { %v3896_v12 = vpop.f32.mrf.mxu0 }
  0xf8   : > { %v3898_v15 = vpop.f32.mrf.mxu1 }
  0xf9   : > { %1515 = vmatmul.bf16.gmra.mxu0 %v1399_v9  ;;  %v3250_v9 = vld [vmem:[%s4516_s3 + $0x1d0] sm:$0xff] }
  0xfa   : > { %v3900_v18 = vpop.f32.mrf.mxu2  ;;  %2177 = vmatpush.bf16.msra.mxu3 %v3250_v9  ;;  %v3942_v9 = vpack.c.bf16 %v1146_v56, %v1145_v52  ;;  %v1147_v52 = vld [vmem:[#allocation2 + $0x108] sm:$0xff]  ;;  %v1148_v56 = vld [vmem:[#allocation2 + $0x110] sm:$0xff] }
  0xfc   : > { %v3904_v24 = vpop.f32.mrf.mxu3 }
  0xfe   : > { %v3906_v31 = vpop.f32.mrf.mxu0 }
  0xff   : > { %1049 = vmatmul.bf16.gmra.mxu2 %v3902_v22 }
 0x100   : > { %v814_v26 = vpop.f32.mrf.mxu1 }
 0x101   : > { %1282 = vmatmul.bf16.gmra.mxu3 %v1166_v28  ;;  %v815_v3 = vadd.f32 %v814_v26, %v3816_v19  ;;  %v3234_v19 = vld [vmem:[%s4516_s3 + $0x150] sm:$0xff]  ;;  %v913_v26 = vld [vmem:[#allocation2 + $0xe2] sm:$0xff] }
 0x102   : > { %v3909_v34 = vpop.f32.mrf.mxu2  ;;  %1710 = vmatpush.bf16.msra.mxu1 %v3234_v19 }
 0x103   : > { %853 = vmatmul.bf16.gmra.mxu1 %v1166_v28  ;;  %v912_v28 = vld [vmem:[#allocation2 + $0xda] sm:$0xff] }
 0x104   : > { %v3911_v35 = vpop.f32.mrf.mxu3 }
 0x106   : > { %v1481_v37 = vpop.f32.mrf.mxu0 }
 0x108   : > { %v816_v42 = vpop.f32.mrf.mxu1 }
 0x109   : > { %1520 = vmatmul.bf16.gmra.mxu0 %v3712_v5  ;;  %v817_v46 = vadd.f32 %v816_v42, %v3823_v27  ;;  %v3242_v27 = vld [vmem:[%s4516_s3 + $0x190] sm:$0xff] }
 0x10a   : > { %v3915_v51 = vpop.f32.mrf.mxu2  ;;  %1944 = vmatpush.bf16.msra.mxu2 %v3242_v27 }
 0x10c   : > { %v3919_v59 = vpop.f32.mrf.mxu3 }
 0x10e   : > { %v1483_v0 = vpop.f32.mrf.mxu0 }
 0x10f   : > { %1054 = vmatmul.bf16.gmra.mxu2 %v3917_v55 }
 0x110   : > { %v819_v4 = vpop.f32.mrf.mxu1 }
 0x111   : > { %1287 = vmatmul.bf16.gmra.mxu3 %v1167_v1  ;;  %v820_v5 = vadd.f32 %v819_v4, %v3844_v36  ;;  %v3258_v36 = vld [vmem:[%s4516_s3 + $0x210] sm:$0xff]  ;;  %v3940_v4 = vpack.c.bf16 %v913_v26, %v912_v28  ;;  %v915_v26 = vld [vmem:[#allocation2 + $0xfa] sm:$0xff] }
 0x112   : > { %v1015_v10 = vpop.f32.mrf.mxu2  ;;  %2410 = vmatpush.bf16.msra.mxu0 %v3258_v36  ;;  %v914_v28 = vld [vmem:[#allocation2 + $0xf2] sm:$0xff] }
 0x113   : > { %v1095_v8 = vadd.f32 %v1015_v10, %v815_v3  ;;  %858 = vmatmul.bf16.gmra.mxu1 %v1167_v1 }
 0x114   : > { %v1248_v13 = vpop.f32.mrf.mxu3 }
 0x115   : > { %v1328_v14 = vadd.f32 %v1248_v13, %v1095_v8 }
 0x116   : > { %v1486_v21 = vpop.f32.mrf.mxu0 }
 0x117   : > { %v3936_v23 = vadd.f32 %v1481_v37, %v1328_v14 }
 0x118   : > { %v821_v38 = vpop.f32.mrf.mxu1 }
 0x119   : > { %1525 = vmatmul.bf16.gmra.mxu0 %v3753_v29  ;;  %v822_v41 = vadd.f32 %v821_v38, %v3855_v47 }
 0x11a   : > { %v1017_v42 = vpop.f32.mrf.mxu2 }
 0x11b   : > { %v1096_v1 = vadd.f32 %v1017_v42, %v817_v46 }
 0x11c   : > { %v1250_v3 = vpop.f32.mrf.mxu3 }
 0x11d   : > { %v1329_v27 = vadd.f32 %v1250_v3, %v1096_v1  ;;  %v3954_v1 = vpack.c.bf16 %v915_v26, %v914_v28 }
 0x11e   : > { %v1488_v10 = vpop.f32.mrf.mxu0 }
 0x11f   : > { %1059 = vmatmul.bf16.gmra.mxu2 %v3940_v4  ;;  %v3945_v37 = vadd.f32 %v1483_v0, %v1329_v27  ;;  %v1169_v27 = vpack.c.bf16 %v1148_v56, %v1147_v52 }
 0x120   : > { %v824_v8 = vpop.f32.mrf.mxu1 }
 0x121   : > { %1292 = vmatmul.bf16.gmra.mxu3 %v3942_v9  ;;  %v825_v29 = vadd.f32 %v824_v8, %v3864_v50 }
 0x122   : > { %v1020_v47 = vpop.f32.mrf.mxu2 }
 0x123   : > { %v1097_v13 = vadd.f32 %v1020_v47, %v820_v5  ;;  %863 = vmatmul.bf16.gmra.mxu1 %v3942_v9 }
 0x124   : > { %v1253_v46 = vpop.f32.mrf.mxu3 }
 0x125   : > { %v1330_v14 = vadd.f32 %v1253_v46, %v1097_v13  ;;  %v1382_v46 = vld [vmem:[#allocation2 + $0x121] sm:$0xff] }
 0x126   : > { %v1491_v19 = vpop.f32.mrf.mxu0 }
 0x127   : > { %v3950_v36 = vadd.f32 %v1486_v21, %v1330_v14  ;;  %v1383_v14 = vld [vmem:[#allocation2 + $0x129] sm:$0xff] }
 0x128   : > { %v826_v38 = vpop.f32.mrf.mxu1 }
 0x129   : > { %1530 = vmatmul.bf16.gmra.mxu0 %v3771_v44  ;;  %v827_v0 = vadd.f32 %v826_v38, %v3875_v60  ;;  %v3241_v60 = vld [vmem:[%s4516_s3 + $0x188] sm:$0xff]  ;;  %v1403_v38 = vpack.c.bf16 %v1383_v14, %v1382_v46 }
 0x12a   : > { %v1022_v42 = vpop.f32.mrf.mxu2  ;;  %1945 = vmatpush.bf16.msra.mxu2 %v3241_v60  ;;  %v1150_v60 = vld [vmem:[#allocation2 + $0x128] sm:$0xff] }
 0x12b   : > { %v1098_v50 = vadd.f32 %v1022_v42, %v822_v41  ;;  %v3249_v41 = vld [vmem:[%s4516_s3 + $0x1c8] sm:$0xff] }
 0x12c   : > { %v1255_v5 = vpop.f32.mrf.mxu3  ;;  %2178 = vmatpush.bf16.msra.mxu3 %v3249_v41  ;;  %v3257_v42 = vld [vmem:[%s4516_s3 + $0x208] sm:$0xff] }
 0x12d   : > { %v1331_v3 = vadd.f32 %v1255_v5, %v1098_v50  ;;  %2411 = vmatpush.bf16.msra.mxu0 %v3257_v42  ;;  %v917_v50 = vld [vmem:[#allocation2 + $0x112] sm:$0xff]  ;;  %v1385_v42 = vld [vmem:[#allocation2 + $0x141] sm:$0xff] }
 0x12e   : > { %v1493_v8 = vpop.f32.mrf.mxu0 }
 0x12f   : > { %1064 = vmatmul.bf16.gmra.mxu2 %v3954_v1  ;;  %v3957_v21 = vadd.f32 %v1488_v10, %v1331_v3 }
 0x130   : > { %v829_v47 = vpop.f32.mrf.mxu1 }
 0x131   : > { %4519 = vst [vmem:[#allocation3_spill] sm:$0xff] %v3957_v21  ;;  %1297 = vmatmul.bf16.gmra.mxu3 %v1169_v27  ;;  %v830_v44 = vadd.f32 %v829_v47, %v3896_v12  ;;  %v3233_v12 = vld [vmem:[%s4516_s3 + $0x148] sm:$0xff]  ;;  %v1149_v47 = vld [vmem:[#allocation2 + $0x120] sm:$0xff] }
 0x132   : > { %v1025_v13 = vpop.f32.mrf.mxu2  ;;  %1711 = vmatpush.bf16.msra.mxu1 %v3233_v12 }
 0x133   : > { %v1099_v28 = vadd.f32 %v1025_v13, %v825_v29  ;;  %868 = vmatmul.bf16.gmra.mxu1 %v1169_v27  ;;  %v916_v29 = vld [vmem:[#allocation2 + $0x10a] sm:$0xff] }
 0x134   : > { %v1258_v10 = vpop.f32.mrf.mxu3  ;;  %v3975_v13 = vpack.c.bf16 %v917_v50, %v916_v29 }
 0x135   : > { %v1332_v26 = vadd.f32 %v1258_v10, %v1099_v28  ;;  %v1170_v28 = vpack.c.bf16 %v1150_v60, %v1149_v47  ;;  %v919_v47 = vld [vmem:[#allocation2 + $0x12a] sm:$0xff] }
 0x136   : > { %v1496_v52 = vpop.f32.mrf.mxu0 }
 0x137   : > { %v3972_v56 = vadd.f32 %v1491_v19, %v1332_v26 }
 0x138   : > { %v831_v5 = vpop.f32.mrf.mxu1 }
 0x139   : > { %4520 = vst [vmem:[#allocation4_spill] sm:$0xff] %v3972_v56  ;;  %1535 = vmatmul.bf16.gmra.mxu0 %v1403_v38  ;;  %v832_v3 = vadd.f32 %v831_v5, %v3906_v31  ;;  %v1384_v38 = vld [vmem:[#allocation2 + $0x139] sm:$0xff] }
 0x13a   : > { %v1027_v27 = vpop.f32.mrf.mxu2 }
 0x13b   : > { %v1100_v41 = vadd.f32 %v1027_v27, %v827_v0  ;;  %v1404_v0 = vpack.c.bf16 %v1385_v42, %v1384_v38  ;;  %v918_v27 = vld [vmem:[#allocation2 + $0x122] sm:$0xff] }
 0x13c   : > { %v1260_v46 = vpop.f32.mrf.mxu3 }
 0x13d   : > { %v1333_v14 = vadd.f32 %v1260_v46, %v1100_v41  ;;  %v1151_v41 = vld [vmem:[#allocation2 + $0x138] sm:$0xff]  ;;  %v1152_v46 = vld [vmem:[#allocation2 + $0x140] sm:$0xff] }
 0x13e   : > { %v1498_v10 = vpop.f32.mrf.mxu0 }
 0x13f   : > { %1069 = vmatmul.bf16.gmra.mxu2 %v3975_v13  ;;  %v3978_v19 = vadd.f32 %v1493_v8, %v1333_v14 }
 0x140   : > { %v834_v26 = vpop.f32.mrf.mxu1 }
 0x141   : > { %4521 = vst [vmem:[#allocation5_spill] sm:$0xff] %v3978_v19  ;;  %1302 = vmatmul.bf16.gmra.mxu3 %v1170_v28  ;;  %v3982_v19 = vpack.c.bf16 %v919_v47, %v918_v27 }
 0x142   : > { %v1030_v12 = vpop.f32.mrf.mxu2 }
 0x143   : > { %v1101_v31 = vadd.f32 %v1030_v12, %v830_v44  ;;  %873 = vmatmul.bf16.gmra.mxu1 %v1170_v28  ;;  %v1171_v28 = vpack.c.bf16 %v1152_v46, %v1151_v41  ;;  %v1387_v41 = vld [vmem:[#allocation2 + $0x159] sm:$0xff] }
 0x144   : > { %v1263_v5 = vpop.f32.mrf.mxu3 }
 0x145   : > { %v1334_v56 = vadd.f32 %v1263_v5, %v1101_v31  ;;  %v3342_v31 = vld [vmem:[%s3450_s27 + $0x78] sm:$0xff]   ;;  %v835_v5 = vadd.f32 %v834_v26, %v3813_v17  ;;  %v3382_v17 = vld [vmem:[%s4515_s2] ss:$0 sm:$0xff] }
 0x146   : > { %v1501_v29 = vpop.f32.mrf.mxu0  ;;  %v3326_v38 = vunpack.c.l.bf16 %v3342_v31 }
 0x147   : > { %v3980_v50 = vadd.f32 %v1496_v52, %v1334_v56  ;;  %v3327_v52 = vunpack.c.h.bf16 %v3342_v31 }
 0x148   : > { %v836_v60 = vpop.f32.mrf.mxu1 }
 0x149   : > { %1540 = vmatmul.bf16.gmra.mxu0 %v1404_v0  ;;  %v3381_v0 = vld [vmem:[%s4514_s1] ss:$0 sm:$0xff] }
 0x14a   : > { %v1032_v8 = vpop.f32.mrf.mxu2  ;;  %v334_v27 = vmul.f32 %v3381_v0, %v3326_v38  ;;  %v335_v47 = vmul.f32 %v3381_v0, %v3327_v52  ;;  %v3232_v38 = vld [vmem:[%s4516_s3 + $0x140] sm:$0xff] }
 0x14b   : > { %v1102_v14 = vadd.f32 %v1032_v8, %v832_v3  ;;  %v3240_v3 = vld [vmem:[%s4516_s3 + $0x180] sm:$0xff]  ;;  %v1386_v8 = vld [vmem:[#allocation2 + $0x151] sm:$0xff]  ;;  %1712 = vmatpush.bf16.msra.mxu1 %v3232_v38 }
 0x14c   : > { %v1265_v21 = vpop.f32.mrf.mxu3  ;;  %1946 = vmatpush.bf16.msra.mxu2 %v3240_v3  ;;  %v370_v26 = vadd.f32 %v3382_v17, %v334_v27  ;;  %v3256_v52 = vld [vmem:[%s4516_s3 + $0x200] sm:$0xff] }
 0x14d   : > { %v1335_v44 = vadd.f32 %v1265_v21, %v1102_v14  ;;  %v3248_v21 = vld [vmem:[%s4516_s3 + $0x1c0] sm:$0xff]  ;;  %v371_v14 = vadd.f32 %v3382_v17, %v335_v47  ;;  %2412 = vmatpush.bf16.msra.mxu0 %v3256_v52 }
 0x14e   : > { %v1503_v12 = vpop.f32.mrf.mxu0  ;;  %2179 = vmatpush.bf16.msra.mxu3 %v3248_v21  ;;  %v920_v21 = vld [vmem:[#allocation2 + $0x13a] sm:$0xff]  ;;  %v921_v27 = vld [vmem:[#allocation2 + $0x142] sm:$0xff] }
 0x14f   : > { %1074 = vmatmul.bf16.gmra.mxu2 %v3982_v19  ;;  %v3986_v56 = vadd.f32 %v1498_v10, %v1335_v44 }
 0x150   : > { %v839_v42 = vpop.f32.mrf.mxu1 }
 0x151   : > { %4522 = vst [vmem:[#allocation6_spill] sm:$0xff] %v3986_v56  ;;  %1307 = vmatmul.bf16.gmra.mxu3 %v1171_v28  ;;  %v1405_v56 = vpack.c.bf16 %v1387_v41, %v1386_v8  ;;  %v1153_v41 = vld [vmem:[#allocation2 + $0x150] sm:$0xff] }
 0x152   : > { %v1035_v10 = vpop.f32.mrf.mxu2 }
 0x153   : > { %v1103_v46 = vadd.f32 %v1035_v10, %v835_v5  ;;  %878 = vmatmul.bf16.gmra.mxu1 %v1171_v28  ;;  %v402_v28 = vmax.f32 %v370_v26, 0.0  ;;  %v403_v5 = vmax.f32 %v371_v14, 0.0  ;;  %v837_v10 = vadd.f32 %v836_v60, %v3818_v20  ;;  %v1388_v60 = vld [vmem:[#allocation2 + $0x169] sm:$0xff] }
 0x154   : > { %v1268_v44 = vpop.f32.mrf.mxu3  ;;  %v4012_v26 = vpack.c.bf16 %v921_v27, %v920_v21 }
 0x155   : > { %v1336_v31 = vadd.f32 %v1268_v44, %v1103_v46  ;;  %490 = vst.msk [vmem:[#allocation2 + $0x181] sm:$0xff] %vm459_vm0, %v402_v28  ;;  %v1154_v46 = vld [vmem:[#allocation2 + $0x158] sm:$0xff]  ;;  %v840_v28 = vadd.f32 %v839_v42, %v3826_v30  ;;  %v1155_v30 = vld [vmem:[#allocation2 + $0x168] sm:$0xff]  ;;  %v1156_v42 = vld [vmem:[#allocation2 + $0x170] sm:$0xff] }
 0x156   : > { %v1506_v3 = vpop.f32.mrf.mxu0  ;;  %491 = vst.msk [vmem:[#allocation2 + $0x189] sm:$0xff] %vm459_vm0, %v403_v5  ;;  %v1172_v38 = vpack.c.bf16 %v1154_v46, %v1153_v41  ;;  %v922_v41 = vld [vmem:[#allocation2 + $0x152] sm:$0xff]  ;;  %v923_v46 = vld [vmem:[#allocation2 + $0x15a] sm:$0xff] }
 0x157   : > { %v4008_v0 = vadd.f32 %v1501_v29, %v1336_v31 }
 0x158   : > { %v841_v47 = vpop.f32.mrf.mxu1 }
 0x159   : > { %4523 = vst [vmem:[#allocation7_spill] sm:$0xff] %v4008_v0  ;;  %1545 = vmatmul.bf16.gmra.mxu0 %v1405_v56  ;;  %v1389_v56 = vld [vmem:[#allocation2 + $0x171] sm:$0xff]  ;;  %v4021_v0 = vpack.c.bf16 %v923_v46, %v922_v41 }
 0x15a   : > { %v1037_v8 = vpop.f32.mrf.mxu2  ;;  %v1406_v27 = vpack.c.bf16 %v1389_v56, %v1388_v60 }
 0x15b   : > { %v1104_v17 = vadd.f32 %v1037_v8, %v837_v10 }
 0x15c   : > { %v1270_v14 = vpop.f32.mrf.mxu3 }
 0x15d   : > { %v1337_v44 = vadd.f32 %v1270_v14, %v1104_v17 }
 0x15e   : > { %v1508_v52 = vpop.f32.mrf.mxu0 }
 0x15f   : > { %1079 = vmatmul.bf16.gmra.mxu2 %v4012_v26  ;;  %v4015_v29 = vadd.f32 %v1503_v12, %v1337_v44  ;;  %v842_v12 = vadd.f32 %v841_v47, %v3846_v39  ;;  %v1390_v47 = vld [vmem:[#allocation2 + $0x181] sm:$0xff] }
 0x160   : > { %v844_v31 = vpop.f32.mrf.mxu1 }
 0x161   : > { %4524 = vst [vmem:[#allocation8_spill] sm:$0xff] %v4015_v29  ;;  %1312 = vmatmul.bf16.gmra.mxu3 %v1172_v38  ;;  %v845_v56 = vadd.f32 %v844_v31, %v3858_v48  ;;  %v1157_v48 = vld [vmem:[#allocation2 + $0x180] sm:$0xff]  ;;  %v1158_v31 = vld [vmem:[#allocation2 + $0x188] sm:$0xff] }
 0x162   : > { %v1040_v20 = vpop.f32.mrf.mxu2 }
 0x163   : > { %v1105_v5 = vadd.f32 %v1040_v20, %v840_v28  ;;  %883 = vmatmul.bf16.gmra.mxu1 %v1172_v38  ;;  %v1173_v20 = vpack.c.bf16 %v1156_v42, %v1155_v30  ;;  %v925_v30 = vld [vmem:[#allocation2 + $0x172] sm:$0xff] }
 0x164   : > { %v1273_v10 = vpop.f32.mrf.mxu3 }
 0x165   : > { %v1338_v21 = vadd.f32 %v1273_v10, %v1105_v5  ;;  %v1391_v10 = vld [vmem:[#allocation2 + $0x189] sm:$0xff] }
 0x166   : > { %v1511_v8 = vpop.f32.mrf.mxu0  ;;  %v1407_v46 = vpack.c.bf16 %v1391_v10, %v1390_v47 }
 0x167   : > { %v4018_v17 = vadd.f32 %v1506_v3, %v1338_v21 }
 0x168   : > { %v846_v14 = vpop.f32.mrf.mxu1 }
 0x169   : > { %1550 = vmatmul.bf16.gmra.mxu0 %v1406_v27 }
 0x16a   : > { %v1042_v44 = vpop.f32.mrf.mxu2 }
 0x16b   : > { %v1106_v29 = vadd.f32 %v1042_v44, %v842_v12  ;;  %v924_v44 = vld [vmem:[#allocation2 + $0x16a] sm:$0xff] }
 0x16c   : > { %v1275_v28 = vpop.f32.mrf.mxu3 }
 0x16d   : > { %v1339_v38 = vadd.f32 %v1275_v28, %v1106_v29 }
 0x16e   : > { %v1513_v5 = vpop.f32.mrf.mxu0 }
 0x16f   : > { %1084 = vmatmul.bf16.gmra.mxu2 %v4021_v0  ;;  %v4024_v3 = vadd.f32 %v1508_v52, %v1339_v38  ;;  %v847_v52 = vadd.f32 %v846_v14, %v3866_v53 }
 0x170   : > { %v849_v60 = vpop.f32.mrf.mxu1 }
 0x171   : > { %4525 = vst [vmem:[#allocation9_spill] sm:$0xff] %v4024_v3  ;;  %1317 = vmatmul.bf16.gmra.mxu3 %v1173_v20  ;;  %v4030_v3 = vpack.c.bf16 %v925_v30, %v924_v44  ;;  %v850_v10 = vadd.f32 %v849_v60, %v3878_v63  ;;  %v1595_v60 = vld [vmem:[#allocation2 + $0x32] sm:$0xff] }
 0x172   : > { %v1045_v39 = vpop.f32.mrf.mxu2 }
 0x173   : > { %v1107_v21 = vadd.f32 %v1045_v39, %v845_v56  ;;  %888 = vmatmul.bf16.gmra.mxu1 %v1173_v20  ;;  %v1174_v39 = vpack.c.bf16 %v1158_v31, %v1157_v48  ;;  %v2061_v48 = vld [vmem:[#allocation2 + $0x39] sm:$0xff] }
 0x174   : > { %v1278_v27 = vpop.f32.mrf.mxu3 }
 0x175   : > { %v1340_v41 = vadd.f32 %v1278_v27, %v1107_v21 }
 0x176   : > { %v1516_v12 = vpop.f32.mrf.mxu0 }
 0x177   : > { %v4027_v29 = vadd.f32 %v1511_v8, %v1340_v41 }
 0x178   : > { %v851_v42 = vpop.f32.mrf.mxu1 }
 0x179   : > { %1555 = vmatmul.bf16.gmra.mxu0 %v1407_v46 }
 0x17a   : > { %v1047_v28 = vpop.f32.mrf.mxu2 }
 0x17b   : > { %v1108_v38 = vadd.f32 %v1047_v28, %v847_v52  ;;  %v852_v52 = vadd.f32 %v851_v42, %v3898_v15  ;;  %v2060_v28 = vld [vmem:[#allocation2 + $0x31] sm:$0xff] }
 0x17c   : > { %v1280_v56 = vpop.f32.mrf.mxu3 }
 0x17d   : > { %v1341_v20 = vadd.f32 %v1280_v56, %v1108_v38  ;;  %v1596_v38 = vld [vmem:[#allocation2 + $0x3a] sm:$0xff] }
 0x17e   : > { %v1518_v21 = vpop.f32.mrf.mxu0 }
 0x17f   : > { %1089 = vmatmul.bf16.gmra.mxu2 %v4030_v3  ;;  %v4033_v8 = vadd.f32 %v1513_v5, %v1341_v20  ;;  %v2092_v20 = vpack.c.bf16 %v2061_v48, %v2060_v28  ;;  %v2062_v48 = vld [vmem:[#allocation2 + $0x49] sm:$0xff] }
 0x180   : > { %v854_v47 = vpop.f32.mrf.mxu1 }
 0x181   : > { %1322 = vmatmul.bf16.gmra.mxu3 %v1174_v39  ;;  %v1626_v39 = vpack.c.bf16 %v1596_v38, %v1595_v60  ;;  %v855_v15 = vadd.f32 %v854_v47, %v3834_v32  ;;  %v1597_v60 = vld [vmem:[#allocation2 + $0x4a] sm:$0xff]  ;;  %v1598_v38 = vld [vmem:[#allocation2 + $0x52] sm:$0xff] }
 0x182   : > { %v1050_v53 = vpop.f32.mrf.mxu2 }
 0x183   : > { %v1109_v14 = vadd.f32 %v1050_v53, %v850_v10  ;;  %1713 = vmatmul.bf16.vlgmr.msra.gmra.mxu1 %v3788_v61 }
 0x184   : > { %v1283_v27 = vpop.f32.mrf.mxu3 }
 0x185   : > { %v1342_v41 = vadd.f32 %v1283_v27, %v1109_v14 }
 0x186   : > { %v1521_v46 = vpop.f32.mrf.mxu0 }
 0x187   : > { %v4037_v44 = vadd.f32 %v1516_v12, %v1342_v41 }
 0x188   : > { %v856_v30 = vpop.f32.mrf.mxu1 }
 0x189   : > { %2413 = vmatmul.bf16.vlgmr.msra.gmra.mxu0 %v3795_v6 }
 0x18a   : > { %v1052_v5 = vpop.f32.mrf.mxu2 }
 0x18b   : > { %v1110_v31 = vadd.f32 %v1052_v5, %v852_v52  ;;  %v1829_v52 = vld [vmem:[#allocation2 + $0x48] sm:$0xff]  ;;  %v1830_v5 = vld [vmem:[#allocation2 + $0x50] sm:$0xff] }
 0x18c   : > { %v1285_v63 = vpop.f32.mrf.mxu3  ;;  %v1860_v47 = vpack.c.bf16 %v1830_v5, %v1829_v52  ;;  %v1831_v5 = vld [vmem:[#allocation2 + $0x60] sm:$0xff] }
 0x18d   : > { %v1343_v56 = vadd.f32 %v1285_v63, %v1110_v31  ;;  %v2063_v31 = vld [vmem:[#allocation2 + $0x51] sm:$0xff] }
 0x18e   : > { %v1523_v61 = vpop.f32.mrf.mxu0 }
 0x18f   : > { %1947 = vmatmul.bf16.vlgmr.msra.gmra.mxu2 %v3790_v62  ;;  %v4042_v12 = vadd.f32 %v1518_v21, %v1343_v56  ;;  %v857_v62 = vadd.f32 %v856_v30, %v3849_v40 }
 0x190   : > { %v859_v10 = vpop.f32.mrf.mxu1 }
 0x191   : > { %2180 = vmatmul.bf16.vlgmr.msra.gmra.mxu3 %v2092_v20  ;;  %v2093_v20 = vpack.c.bf16 %v2063_v31, %v2062_v48  ;;  %v860_v40 = vadd.f32 %v859_v10, %v3860_v49  ;;  %v2064_v31 = vld [vmem:[#allocation2 + $0x61] sm:$0xff] }
 0x192   : > { %v1055_v6 = vpop.f32.mrf.mxu2 }
 0x193   : > { %v1111_v42 = vadd.f32 %v1055_v6, %v855_v15  ;;  %1718 = vmatmul.bf16.gmra.mxu1 %v1626_v39 }
 0x194   : > { %v1288_v53 = vpop.f32.mrf.mxu3 }
 0x195   : > { %v1344_v14 = vadd.f32 %v1288_v53, %v1111_v42 }
 0x196   : > { %v1526_v27 = vpop.f32.mrf.mxu0 }
 0x197   : > { %v4045_v41 = vadd.f32 %v1521_v46, %v1344_v14  ;;  %v1627_v46 = vpack.c.bf16 %v1598_v38, %v1597_v60  ;;  %v1600_v60 = vld [vmem:[#allocation2 + $0x6a] sm:$0xff] }
 0x198   : > { %v861_v28 = vpop.f32.mrf.mxu1 }
 0x199   : > { %2418 = vmatmul.bf16.gmra.mxu0 %v3811_v16  ;;  %v862_v48 = vadd.f32 %v861_v28, %v3869_v54 }
 0x19a   : > { %v1057_v21 = vpop.f32.mrf.mxu2 }
 0x19b   : > { %v1112_v32 = vadd.f32 %v1057_v21, %v857_v62  ;;  %v1832_v62 = vld [vmem:[#allocation2 + $0x68] sm:$0xff] }
 0x19c   : > { %v1290_v63 = vpop.f32.mrf.mxu3  ;;  %v1861_v10 = vpack.c.bf16 %v1832_v62, %v1831_v5  ;;  %v1833_v5 = vld [vmem:[#allocation2 + $0x78] sm:$0xff]  ;;  %v1834_v62 = vld [vmem:[#allocation2 + $0x80] sm:$0xff] }
 0x19d   : > { %v1345_v56 = vadd.f32 %v1290_v63, %v1112_v32  ;;  %v2065_v32 = vld [vmem:[#allocation2 + $0x69] sm:$0xff] }
 0x19e   : > { %v1528_v39 = vpop.f32.mrf.mxu0  ;;  %v1599_v63 = vld [vmem:[#allocation2 + $0x62] sm:$0xff] }
 0x19f   : > { %1952 = vmatmul.bf16.gmra.mxu2 %v1860_v47  ;;  %v4049_v15 = vadd.f32 %v1523_v61, %v1345_v56  ;;  %v2094_v56 = vpack.c.bf16 %v2065_v32, %v2064_v31  ;;  %v2066_v31 = vld [vmem:[#allocation2 + $0x79] sm:$0xff]  ;;  %v2067_v32 = vld [vmem:[#allocation2 + $0x81] sm:$0xff] }
 0x1a0   : > { %v864_v6 = vpop.f32.mrf.mxu1 }
 0x1a1   : > { %2185 = vmatmul.bf16.gmra.mxu3 %v2093_v20  ;;  %v865_v54 = vadd.f32 %v864_v6, %v3886_v2  ;;  %v1862_v6 = vpack.c.bf16 %v1834_v62, %v1833_v5  ;;  %v1836_v5 = vld [vmem:[#allocation2 + $0x98] sm:$0xff] }
 0x1a2   : > { %v1060_v16 = vpop.f32.mrf.mxu2 }
 0x1a3   : > { %v1113_v30 = vadd.f32 %v1060_v16, %v860_v40  ;;  %1723 = vmatmul.bf16.gmra.mxu1 %v1627_v46 }
 0x1a4   : > { %v1293_v42 = vpop.f32.mrf.mxu3 }
 0x1a5   : > { %v1346_v53 = vadd.f32 %v1293_v42, %v1113_v30 }
 0x1a6   : > { %v1531_v14 = vpop.f32.mrf.mxu0 }
 0x1a7   : > { %v4052_v52 = vadd.f32 %v1526_v27, %v1346_v53  ;;  %v1628_v27 = vpack.c.bf16 %v1600_v60, %v1599_v63  ;;  %v2095_v60 = vpack.c.bf16 %v2067_v32, %v2066_v31  ;;  %v2069_v31 = vld [vmem:[#allocation2 + $0x99] sm:$0xff] }
 0x1a8   : > { %v866_v21 = vpop.f32.mrf.mxu1 }
 0x1a9   : > { %2423 = vmatmul.bf16.gmra.mxu0 %v3821_v25 }
 0x1aa   : > { %v1062_v61 = vpop.f32.mrf.mxu2 }
 0x1ab   : > { %v1114_v49 = vadd.f32 %v1062_v61, %v862_v48  ;;  %v867_v61 = vadd.f32 %v866_v21, %v3900_v18 }
 0x1ac   : > { %v1295_v47 = vpop.f32.mrf.mxu3 }
 0x1ad   : > { %v1347_v38 = vadd.f32 %v1295_v47, %v1114_v49  ;;  %v1602_v47 = vld [vmem:[#allocation2 + $0x82] sm:$0xff] }
 0x1ae   : > { %v1533_v20 = vpop.f32.mrf.mxu0 }
 0x1af   : > { %1957 = vmatmul.bf16.gmra.mxu2 %v1861_v10  ;;  %v4056_v46 = vadd.f32 %v1528_v39, %v1347_v38  ;;  %v1601_v10 = vld [vmem:[#allocation2 + $0x7a] sm:$0xff] }
 0x1b0   : > { %v869_v40 = vpop.f32.mrf.mxu1 }
 0x1b1   : > { %2190 = vmatmul.bf16.gmra.mxu3 %v2094_v56  ;;  %v870_v18 = vadd.f32 %v869_v40, %v3909_v34 }
 0x1b2   : > { %v1065_v25 = vpop.f32.mrf.mxu2 }
 0x1b3   : > { %v1115_v28 = vadd.f32 %v1065_v25, %v865_v54  ;;  %1728 = vmatmul.bf16.gmra.mxu1 %v1628_v27 }
 0x1b4   : > { %v1298_v16 = vpop.f32.mrf.mxu3 }
 0x1b5   : > { %v1348_v30 = vadd.f32 %v1298_v16, %v1115_v28 }
 0x1b6   : > { %v1536_v42 = vpop.f32.mrf.mxu0 }
 0x1b7   : > { %v4059_v53 = vadd.f32 %v1531_v14, %v1348_v30  ;;  %v1629_v14 = vpack.c.bf16 %v1602_v47, %v1601_v10  ;;  %v1835_v30 = vld [vmem:[#allocation2 + $0x90] sm:$0xff] }
 0x1b8   : > { %v871_v48 = vpop.f32.mrf.mxu1  ;;  %v1863_v40 = vpack.c.bf16 %v1836_v5, %v1835_v30 }
 0x1b9   : > { %2428 = vmatmul.bf16.gmra.mxu0 %v3851_v43 }
 0x1ba   : > { %v1067_v39 = vpop.f32.mrf.mxu2 }
 0x1bb   : > { %v1116_v2 = vadd.f32 %v1067_v39, %v867_v61  ;;  %v872_v61 = vadd.f32 %v871_v48, %v3915_v51  ;;  %v2068_v39 = vld [vmem:[#allocation2 + $0x91] sm:$0xff] }
 0x1bc   : > { %v1300_v49 = vpop.f32.mrf.mxu3  ;;  %v2096_v10 = vpack.c.bf16 %v2069_v31, %v2068_v39  ;;  %v1605_v31 = vld [vmem:[#allocation2 + $0xaa] sm:$0xff] }
 0x1bd   : > { %v1349_v63 = vadd.f32 %v1300_v49, %v1116_v2  ;;  %v1603_v2 = vld [vmem:[#allocation2 + $0x92] sm:$0xff] }
 0x1be   : > { %v1538_v38 = vpop.f32.mrf.mxu0 }
 0x1bf   : > { %1962 = vmatmul.bf16.gmra.mxu2 %v1862_v6  ;;  %v4063_v56 = vadd.f32 %v1533_v20, %v1349_v63  ;;  %v1604_v6 = vld [vmem:[#allocation2 + $0x9a] sm:$0xff] }
 0x1c0   : > { %v874_v27 = vpop.f32.mrf.mxu1 }
 0x1c1   : > { %2195 = vmatmul.bf16.gmra.mxu3 %v2095_v60  ;;  %v875_v51 = vadd.f32 %v874_v27, %v3836_v33 }
 0x1c2   : > { %v1070_v43 = vpop.f32.mrf.mxu2 }
 0x1c3   : > { %v1117_v21 = vadd.f32 %v1070_v43, %v870_v18  ;;  %1733 = vmatmul.bf16.gmra.mxu1 %v1629_v14 }
 0x1c4   : > { %v1303_v54 = vpop.f32.mrf.mxu3 }
 0x1c5   : > { %v1350_v25 = vadd.f32 %v1303_v54, %v1117_v21  ;;  %v1837_v54 = vld [vmem:[#allocation2 + $0xa8] sm:$0xff] }
 0x1c6   : > { %v1541_v28 = vpop.f32.mrf.mxu0 }
 0x1c7   : > { %v4066_v16 = vadd.f32 %v1536_v42, %v1350_v25  ;;  %v1630_v42 = vpack.c.bf16 %v1604_v6, %v1603_v2  ;;  %v1838_v25 = vld [vmem:[#allocation2 + $0xb0] sm:$0xff] }
 0x1c8   : > { %v876_v62 = vpop.f32.mrf.mxu1  ;;  %v1864_v27 = vpack.c.bf16 %v1838_v25, %v1837_v54  ;;  %v2072_v25 = vld [vmem:[#allocation2 + $0xc1] sm:$0xff] }
 0x1c9   : > { %2433 = vmatmul.bf16.gmra.mxu0 %v3871_v57  ;;  %v877_v5 = vadd.f32 %v876_v62, %v3853_v45 }
 0x1ca   : > { %v1072_v20 = vpop.f32.mrf.mxu2 }
 0x1cb   : > { %v1118_v34 = vadd.f32 %v1072_v20, %v872_v61  ;;  %v2070_v61 = vld [vmem:[#allocation2 + $0xa9] sm:$0xff]  ;;  %v2071_v20 = vld [vmem:[#allocation2 + $0xb1] sm:$0xff] }
 0x1cc   : > { %v1305_v32 = vpop.f32.mrf.mxu3 }
 0x1cd   : > { %v1351_v49 = vadd.f32 %v1305_v32, %v1118_v34  ;;  %v1606_v34 = vld [vmem:[#allocation2 + $0xb2] sm:$0xff]  ;;  %v2097_v32 = vpack.c.bf16 %v2071_v20, %v2070_v61  ;;  %v1607_v61 = vld [vmem:[#allocation2 + $0xc2] sm:$0xff]  ;;  %v1608_v20 = vld [vmem:[#allocation2 + $0xca] sm:$0xff] }
 0x1ce   : > { %v1543_v47 = vpop.f32.mrf.mxu0 }
 0x1cf   : > { %1967 = vmatmul.bf16.gmra.mxu2 %v1863_v40  ;;  %v4070_v63 = vadd.f32 %v1538_v38, %v1351_v49 }
 0x1d0   : > { %v879_v60 = vpop.f32.mrf.mxu1 }
 0x1d1   : > { %2200 = vmatmul.bf16.gmra.mxu3 %v2096_v10  ;;  %v880_v45 = vadd.f32 %v879_v60, %v3862_v11 }
 0x1d2   : > { %v1075_v57 = vpop.f32.mrf.mxu2 }
 0x1d3   : > { %v1119_v48 = vadd.f32 %v1075_v57, %v875_v51  ;;  %1738 = vmatmul.bf16.gmra.mxu1 %v1630_v42 }
 0x1d4   : > { %v1308_v14 = vpop.f32.mrf.mxu3 }
 0x1d5   : > { %v1352_v18 = vadd.f32 %v1308_v14, %v1119_v48  ;;  %v1839_v48 = vld [vmem:[#allocation2 + $0xc0] sm:$0xff]  ;;  %v1840_v14 = vld [vmem:[#allocation2 + $0xc8] sm:$0xff] }
 0x1d6   : > { %v1546_v43 = vpop.f32.mrf.mxu0  ;;  %v1865_v60 = vpack.c.bf16 %v1840_v14, %v1839_v48  ;;  %v2074_v48 = vld [vmem:[#allocation2 + $0xd9] sm:$0xff]  ;;  %v2075_v14 = vld [vmem:[#allocation2 + $0xe1] sm:$0xff] }
 0x1d7   : > { %v4073_v21 = vadd.f32 %v1541_v28, %v1352_v18  ;;  %v1631_v28 = vpack.c.bf16 %v1606_v34, %v1605_v31 }
 0x1d8   : > { %v881_v30 = vpop.f32.mrf.mxu1 }
 0x1d9   : > { %2438 = vmatmul.bf16.gmra.mxu0 %v3902_v22  ;;  %v882_v54 = vadd.f32 %v881_v30, %v3873_v58 }
 0x1da   : > { %v1077_v38 = vpop.f32.mrf.mxu2 }
 0x1db   : > { %v1120_v33 = vadd.f32 %v1077_v38, %v877_v5  ;;  %v2073_v5 = vld [vmem:[#allocation2 + $0xc9] sm:$0xff] }
 0x1dc   : > { %v1310_v39 = vpop.f32.mrf.mxu3 }
 0x1dd   : > { %v1353_v40 = vadd.f32 %v1310_v39, %v1120_v33 }
 0x1de   : > { %v1548_v2 = vpop.f32.mrf.mxu0 }
 0x1df   : > { %1972 = vmatmul.bf16.gmra.mxu2 %v1864_v27  ;;  %v4077_v6 = vadd.f32 %v1543_v47, %v1353_v40  ;;  %v2098_v27 = vpack.c.bf16 %v2073_v5, %v2072_v25  ;;  %v2099_v25 = vpack.c.bf16 %v2075_v14, %v2074_v48 }
 0x1e0   : > { %v884_v49 = vpop.f32.mrf.mxu1 }
 0x1e1   : > { %2205 = vmatmul.bf16.gmra.mxu3 %v2097_v32  ;;  %v885_v58 = vadd.f32 %v884_v49, %v3888_v7 }
 0x1e2   : > { %v1080_v22 = vpop.f32.mrf.mxu2 }
 0x1e3   : > { %v1121_v62 = vadd.f32 %v1080_v22, %v880_v45  ;;  %1743 = vmatmul.bf16.gmra.mxu1 %v1631_v28  ;;  %v1841_v22 = vld [vmem:[#allocation2 + $0xd8] sm:$0xff] }
 0x1e4   : > { %v1313_v10 = vpop.f32.mrf.mxu3 }
 0x1e5   : > { %v1354_v42 = vadd.f32 %v1313_v10, %v1121_v62  ;;  %v1842_v62 = vld [vmem:[#allocation2 + $0xe0] sm:$0xff] }
 0x1e6   : > { %v1551_v51 = vpop.f32.mrf.mxu0  ;;  %v1866_v49 = vpack.c.bf16 %v1842_v62, %v1841_v22 }
 0x1e7   : > { %v4080_v57 = vadd.f32 %v1546_v43, %v1354_v42  ;;  %v1632_v43 = vpack.c.bf16 %v1608_v20, %v1607_v61 }
 0x1e8   : > { %v886_v18 = vpop.f32.mrf.mxu1 }
 0x1e9   : > { %2443 = vmatmul.bf16.gmra.mxu0 %v3917_v55  ;;  %v887_v42 = vadd.f32 %v886_v18, %v3904_v24 }
 0x1ea   : > { %v1082_v47 = vpop.f32.mrf.mxu2 }
 0x1eb   : > { %v1122_v11 = vadd.f32 %v1082_v47, %v882_v54 }
 0x1ec   : > { %v1315_v38 = vpop.f32.mrf.mxu3 }
 0x1ed   : > { %v1355_v33 = vadd.f32 %v1315_v38, %v1122_v11 }
 0x1ee   : > { %v1553_v39 = vpop.f32.mrf.mxu0 }
 0x1ef   : > { %1977 = vmatmul.bf16.gmra.mxu2 %v1865_v60  ;;  %v4084_v31 = vadd.f32 %v1548_v2, %v1355_v33 }
 0x1f0   : > { %v889_v34 = vpop.f32.mrf.mxu1 }
 0x1f1   : > { %2210 = vmatmul.bf16.gmra.mxu3 %v2098_v27  ;;  %v890_v60 = vadd.f32 %v889_v34, %v3911_v35  ;;  %v1611_v34 = vld [vmem:[#allocation2 + $0xf2] sm:$0xff] }
 0x1f2   : > { %v1085_v55 = vpop.f32.mrf.mxu2 }
 0x1f3   : > { %v1123_v30 = vadd.f32 %v1085_v55, %v885_v58  ;;  %1748 = vmatmul.bf16.gmra.mxu1 %v1632_v43  ;;  %v2076_v58 = vld [vmem:[#allocation2 + $0xf1] sm:$0xff]  ;;  %v2077_v55 = vld [vmem:[#allocation2 + $0xf9] sm:$0xff] }
 0x1f4   : > { %v1318_v40 = vpop.f32.mrf.mxu3 }
 0x1f5   : > { %v1356_v32 = vadd.f32 %v1318_v40, %v1123_v30  ;;  %v1612_v40 = vld [vmem:[#allocation2 + $0xfa] sm:$0xff] }
 0x1f6   : > { %v1556_v28 = vpop.f32.mrf.mxu0 }
 0x1f7   : > { %v4087_v45 = vadd.f32 %v1551_v51, %v1356_v32 }
 0x1f8   : > { %v891_v10 = vpop.f32.mrf.mxu1 }
 0x1f9   : > { %2448 = vmatmul.bf16.gmra.mxu0 %v3940_v4  ;;  %v892_v43 = vadd.f32 %v891_v10, %v3919_v59 }
 0x1fa   : > { %v1087_v2 = vpop.f32.mrf.mxu2 }
 0x1fb   : > { %v1124_v7 = vadd.f32 %v1087_v2, %v887_v42 }
 0x1fc   : > { %v1320_v54 = vpop.f32.mrf.mxu3 }
 0x1fd   : > { %v1357_v47 = vadd.f32 %v1320_v54, %v1124_v7 }
 0x1fe   : > { %v1558_v5 = vpop.f32.mrf.mxu0 }
 0x1ff   : > { %1982 = vmatmul.bf16.gmra.mxu2 %v1866_v49  ;;  %v4091_v11 = vadd.f32 %v1553_v39, %v1357_v47  ;;  %v1846_v49 = vld [vmem:[#allocation2 + $0x110] sm:$0xff] }
 0x200   : > { %v1714_v51 = vpop.f32.mrf.mxu1 }
 0x201   : > { %2215 = vmatmul.bf16.gmra.mxu3 %v2099_v25  ;;  %v1794_v59 = vadd.f32 %v1714_v51, %v3936_v23  ;;  %v2079_v51 = vld [vmem:[#allocation2 + $0x111] sm:$0xff] }
 0x202   : > { %v1090_v38 = vpop.f32.mrf.mxu2 }
 0x203   : > { %v1125_v24 = vadd.f32 %v1090_v38, %v890_v60  ;;  %1753 = vmatmul.bf16.gmra.mxu1 %v3940_v4  ;;  %v2100_v4 = vpack.c.bf16 %v2077_v55, %v2076_v58 }
 0x204   : > { %v1323_v18 = vpop.f32.mrf.mxu3 }
 0x205   : > { %v1358_v61 = vadd.f32 %v1323_v18, %v1125_v24  ;;  %v1613_v18 = vld [vmem:[#allocation2 + $0x10a] sm:$0xff] }
 0x206   : > { %v2414_v20 = vpop.f32.mrf.mxu0 }
 0x207   : > { %v4095_v33 = vadd.f32 %v1556_v28, %v1358_v61  ;;  %v1634_v28 = vpack.c.bf16 %v1612_v40, %v1611_v34  ;;  %v1614_v61 = vld [vmem:[#allocation2 + $0x112] sm:$0xff] }
 0x208   : > { %v1716_v27 = vpop.f32.mrf.mxu1 }
 0x209   : > { %2453 = vmatmul.bf16.gmra.mxu0 %v3954_v1  ;;  %v1795_v47 = vadd.f32 %v1716_v27, %v3945_v37  ;;  %v1635_v37 = vpack.c.bf16 %v1614_v61, %v1613_v18 }
 0x20a   : > { %v1092_v39 = vpop.f32.mrf.mxu2 }
 0x20b   : > { %v1126_v30 = vadd.f32 %v1092_v39, %v892_v43 }
 0x20c   : > { %v1325_v35 = vpop.f32.mrf.mxu3 }
 0x20d   : > { %v1359_v32 = vadd.f32 %v1325_v35, %v1126_v30 }
 0x20e   : > { %v2416_v22 = vpop.f32.mrf.mxu0 }
 0x20f   : > { %1987 = vmatmul.bf16.gmra.mxu2 %v3942_v9  ;;  %v4100_v62 = vadd.f32 %v1558_v5, %v1359_v32  ;;  %v1845_v9 = vld [vmem:[#allocation2 + $0x108] sm:$0xff] }
 0x210   : > { %v1719_v42 = vpop.f32.mrf.mxu1  ;;  %v2078_v5 = vld [vmem:[#allocation2 + $0x109] sm:$0xff]  ;;  %v1868_v38 = vpack.c.bf16 %v1846_v49, %v1845_v9 }
 0x211   : > { %2220 = vmatmul.bf16.gmra.mxu3 %v2100_v4  ;;  %v2101_v43 = vpack.c.bf16 %v2079_v51, %v2078_v5  ;;  %v1796_v55 = vadd.f32 %v1719_v42, %v3950_v36 }
 0x212   : > { %v1948_v1 = vpop.f32.mrf.mxu2 }
 0x213   : > { %v2028_v10 = vadd.f32 %v1948_v1, %v1794_v59  ;;  %1758 = vmatmul.bf16.gmra.mxu1 %v1634_v28  ;;  %v1848_v28 = vld [vmem:[#allocation2 + $0x128] sm:$0xff] }
 0x214   : > { %v2181_v2 = vpop.f32.mrf.mxu3 }
 0x215   : > { %v2261_v48 = vadd.f32 %v2181_v2, %v2028_v10  ;;  %v4526_v10 = vld [vmem:[#allocation3_spill] sm:$0xff]  ;;  %v2080_v2 = vld [vmem:[#allocation2 + $0x121] sm:$0xff] }
 0x216   : > { %v2419_v14 = vpop.f32.mrf.mxu0 }
 0x217   : > { %v4103_v7 = vadd.f32 %v2414_v20, %v2261_v48  ;;  %v2081_v48 = vld [vmem:[#allocation2 + $0x129] sm:$0xff] }
 0x218   : > { %v1721_v23 = vpop.f32.mrf.mxu1  ;;  %v2102_v5 = vpack.c.bf16 %v2081_v48, %v2080_v2  ;;  %v1618_v2 = vld [vmem:[#allocation2 + $0x142] sm:$0xff] }
 0x219   : > { %v2526_v54 = vpack.c.bf16 %v4103_v7, %v4103_v7  ;;  %2458 = vmatmul.bf16.gmra.mxu0 %v3975_v13  ;;  %v1797_v36 = vadd.f32 %v1721_v23, %v4526_v10 }
 0x21a   : > { %v1950_v25 = vpop.f32.mrf.mxu2 }
 0x21b   : > { %2559 = vst.msk [vmem:[%s4110_s30] sm:$0xf] %vm2558_vm1, %v2526_v54  ;;  %v2029_v60 = vadd.f32 %v1950_v25, %v1795_v47  ;;  %v1615_v54 = vld [vmem:[#allocation2 + $0x122] sm:$0xff]  ;;  %v1616_v47 = vld [vmem:[#allocation2 + $0x12a] sm:$0xff] }
 0x21c   : > { %v2183_v24 = vpop.f32.mrf.mxu3  ;;  %v1636_v23 = vpack.c.bf16 %v1616_v47, %v1615_v54 }
 0x21d   : > { %v2262_v20 = vadd.f32 %v2183_v24, %v2029_v60  ;;  %v4527_v24 = vld [vmem:[#allocation4_spill] sm:$0xff] }
 0x21e   : > { %v2421_v39 = vpop.f32.mrf.mxu0 }
 0x21f   : > { %v4118_v58 = vadd.f32 %v2416_v22, %v2262_v20  ;;  %1992 = vmatmul.bf16.gmra.mxu2 %v1868_v38  ;;  %v1847_v22 = vld [vmem:[#allocation2 + $0x120] sm:$0xff] }
 0x220   : > { %v1724_v27 = vpop.f32.mrf.mxu1  ;;  %v1869_v49 = vpack.c.bf16 %v1848_v28, %v1847_v22  ;;  %v2082_v28 = vld [vmem:[#allocation2 + $0x139] sm:$0xff] }
 0x221   : > { %v2527_v13 = vpack.c.bf16 %v4118_v58, %v4118_v58  ;;  %2225 = vmatmul.bf16.gmra.mxu3 %v2101_v43  ;;  %v1798_v18 = vadd.f32 %v1724_v27, %v4527_v24 }
 0x222   : > { %v1953_v30 = vpop.f32.mrf.mxu2 }
 0x223   : > { %2560 = vst.msk [vmem:[%s4110_s30 + $0x4] sm:$0xf] %vm2558_vm1, %v2527_v13  ;;  %v2030_v35 = vadd.f32 %v1953_v30, %v1796_v55  ;;  %1763 = vmatmul.bf16.gmra.mxu1 %v1635_v37  ;;  %v1849_v55 = vld [vmem:[#allocation2 + $0x138] sm:$0xff]  ;;  %v1850_v30 = vld [vmem:[#allocation2 + $0x140] sm:$0xff] }
 0x224   : > { %v2186_v34 = vpop.f32.mrf.mxu3 }
 0x225   : > { %v2263_v40 = vadd.f32 %v2186_v34, %v2030_v35 }
 0x226   : > { %v2424_v32 = vpop.f32.mrf.mxu0 }
 0x227   : > { %v4125_v4 = vadd.f32 %v2419_v14, %v2263_v40  ;;  %v4528_v40 = vld [vmem:[#allocation5_spill] sm:$0xff] }
 0x228   : > { %v1726_v59 = vpop.f32.mrf.mxu1 }
 0x229   : > { %v2528_v1 = vpack.c.bf16 %v4125_v4, %v4125_v4  ;;  %2463 = vmatmul.bf16.gmra.mxu0 %v3982_v19  ;;  %v1799_v27 = vadd.f32 %v1726_v59, %v4528_v40 }
 0x22a   : > { %v1955_v42 = vpop.f32.mrf.mxu2 }
 0x22b   : > { %2561 = vst.msk [vmem:[%s4110_s30 + $0x8] sm:$0xf] %vm2558_vm1, %v2528_v1  ;;  %v2031_v9 = vadd.f32 %v1955_v42, %v1797_v36  ;;  %v2083_v1 = vld [vmem:[#allocation2 + $0x141] sm:$0xff]  ;;  %v1870_v36 = vpack.c.bf16 %v1850_v30, %v1849_v55  ;;  %v2084_v55 = vld [vmem:[#allocation2 + $0x151] sm:$0xff]  ;;  %v2085_v30 = vld [vmem:[#allocation2 + $0x159] sm:$0xff] }
 0x22c   : > { %v2188_v14 = vpop.f32.mrf.mxu3  ;;  %v1617_v42 = vld [vmem:[#allocation2 + $0x13a] sm:$0xff] }
 0x22d   : > { %v2264_v25 = vadd.f32 %v2188_v14, %v2031_v9  ;;  %v2103_v9 = vpack.c.bf16 %v2083_v1, %v2082_v28  ;;  %v1637_v59 = vpack.c.bf16 %v1618_v2, %v1617_v42  ;;  %v2104_v1 = vpack.c.bf16 %v2085_v30, %v2084_v55  ;;  %v4530_v42 = vld [vmem:[#allocation7_spill] sm:$0xff] }
 0x22e   : > { %v2426_v51 = vpop.f32.mrf.mxu0  ;;  %v1622_v30 = vld [vmem:[#allocation2 + $0x172] sm:$0xff] }
 0x22f   : > { %v4133_v60 = vadd.f32 %v2421_v39, %v2264_v25  ;;  %1997 = vmatmul.bf16.gmra.mxu2 %v1869_v49 }
 0x230   : > { %v1729_v38 = vpop.f32.mrf.mxu1 }
 0x231   : > { %v2529_v19 = vpack.c.bf16 %v4133_v60, %v4133_v60  ;;  %2230 = vmatmul.bf16.gmra.mxu3 %v2102_v5  ;;  %v1800_v47 = vadd.f32 %v1729_v38, %v3980_v50 }
 0x232   : > { %v1958_v61 = vpop.f32.mrf.mxu2 }
 0x233   : > { %2562 = vst.msk [vmem:[%s4110_s30 + $0xc] sm:$0xf] %vm2558_vm1, %v2529_v19  ;;  %v2032_v20 = vadd.f32 %v1958_v61, %v1798_v18  ;;  %1768 = vmatmul.bf16.gmra.mxu1 %v1636_v23  ;;  %v1851_v18 = vld [vmem:[#allocation2 + $0x150] sm:$0xff]  ;;  %v1852_v61 = vld [vmem:[#allocation2 + $0x158] sm:$0xff] }
 0x234   : > { %v2191_v43 = vpop.f32.mrf.mxu3  ;;  %v1871_v40 = vpack.c.bf16 %v1852_v61, %v1851_v18  ;;  %v4531_v18 = vld [vmem:[#allocation8_spill] sm:$0xff] }
 0x235   : > { %v2265_v37 = vadd.f32 %v2191_v43, %v2032_v20 }
 0x236   : > { %v2429_v13 = vpop.f32.mrf.mxu0 }
 0x237   : > { %v4140_v39 = vadd.f32 %v2424_v32, %v2265_v37  ;;  %v4529_v37 = vld [vmem:[#allocation6_spill] sm:$0xff] }
 0x238   : > { %v1731_v35 = vpop.f32.mrf.mxu1 }
 0x239   : > { %v2530_v34 = vpack.c.bf16 %v4140_v39, %v4140_v39  ;;  %2468 = vmatmul.bf16.gmra.mxu0 %v4012_v26  ;;  %v1801_v50 = vadd.f32 %v1731_v35, %v4529_v37  ;;  %v2087_v37 = vld [vmem:[#allocation2 + $0x171] sm:$0xff] }
 0x23a   : > { %v1960_v22 = vpop.f32.mrf.mxu2 }
 0x23b   : > { %2563 = vst.msk [vmem:[%s4110_s30 + $0x10] sm:$0xf] %vm2558_vm1, %v2530_v34  ;;  %v2033_v10 = vadd.f32 %v1960_v22, %v1799_v27  ;;  %v1619_v27 = vld [vmem:[#allocation2 + $0x152] sm:$0xff]  ;;  %v1620_v22 = vld [vmem:[#allocation2 + $0x15a] sm:$0xff] }
 0x23c   : > { %v2193_v32 = vpop.f32.mrf.mxu3  ;;  %v1638_v35 = vpack.c.bf16 %v1620_v22, %v1619_v27 }
 0x23d   : > { %v2266_v48 = vadd.f32 %v2193_v32, %v2033_v10 }
 0x23e   : > { %v2431_v49 = vpop.f32.mrf.mxu0 }
 0x23f   : > { %v4148_v14 = vadd.f32 %v2426_v51, %v2266_v48  ;;  %2002 = vmatmul.bf16.gmra.mxu2 %v1870_v36 }
 0x240   : > { %v1734_v54 = vpop.f32.mrf.mxu1 }
 0x241   : > { %v2531_v26 = vpack.c.bf16 %v4148_v14, %v4148_v14  ;;  %2235 = vmatmul.bf16.gmra.mxu3 %v2103_v9  ;;  %v1802_v2 = vadd.f32 %v1734_v54, %v4530_v42 }
 0x242   : > { %v1963_v25 = vpop.f32.mrf.mxu2 }
 0x243   : > { %2564 = vst.msk [vmem:[%s4110_s30 + $0x14] sm:$0xf] %vm2558_vm1, %v2531_v26  ;;  %v2034_v5 = vadd.f32 %v1963_v25, %v1800_v47  ;;  %1773 = vmatmul.bf16.gmra.mxu1 %v1637_v59  ;;  %v1853_v25 = vld [vmem:[#allocation2 + $0x168] sm:$0xff] }
 0x244   : > { %v2196_v23 = vpop.f32.mrf.mxu3 }
 0x245   : > { %v2267_v19 = vadd.f32 %v2196_v23, %v2034_v5  ;;  %v1854_v5 = vld [vmem:[#allocation2 + $0x170] sm:$0xff] }
 0x246   : > { %v2434_v24 = vpop.f32.mrf.mxu0 }
 0x247   : > { %v4155_v51 = vadd.f32 %v2429_v13, %v2267_v19 }
 0x248   : > { %v1736_v20 = vpop.f32.mrf.mxu1 }
 0x249   : > { %v2532_v43 = vpack.c.bf16 %v4155_v51, %v4155_v51  ;;  %2473 = vmatmul.bf16.gmra.mxu0 %v4021_v0  ;;  %v1803_v54 = vadd.f32 %v1736_v20, %v4531_v18 }
 0x24a   : > { %v1965_v38 = vpop.f32.mrf.mxu2 }
 0x24b   : > { %2565 = vst.msk [vmem:[%s4110_s30 + $0x18] sm:$0xf] %vm2558_vm1, %v2532_v43  ;;  %v2035_v34 = vadd.f32 %v1965_v38, %v1801_v50  ;;  %v2086_v43 = vld [vmem:[#allocation2 + $0x169] sm:$0xff]  ;;  %v1872_v38 = vpack.c.bf16 %v1854_v5, %v1853_v25 }
 0x24c   : > { %v2198_v13 = vpop.f32.mrf.mxu3  ;;  %v1856_v25 = vld [vmem:[#allocation2 + $0x188] sm:$0xff] }
 0x24d   : > { %v2268_v28 = vadd.f32 %v2198_v13, %v2035_v34 }
 0x24e   : > { %v2436_v10 = vpop.f32.mrf.mxu0 }
 0x24f   : > { %v4163_v36 = vadd.f32 %v2431_v49, %v2268_v28  ;;  %2007 = vmatmul.bf16.gmra.mxu2 %v1871_v40  ;;  %v2105_v40 = vpack.c.bf16 %v2087_v37, %v2086_v43 }
 0x250   : > { %v1739_v32 = vpop.f32.mrf.mxu1 }
 0x251   : > { %v2533_v0 = vpack.c.bf16 %v4163_v36, %v4163_v36  ;;  %2240 = vmatmul.bf16.gmra.mxu3 %v2104_v1  ;;  %v1804_v28 = vadd.f32 %v1739_v32, %v4018_v17  ;;  %v4532_v32 = vld [vmem:[#allocation9_spill] sm:$0xff] }
 0x252   : > { %v1968_v48 = vpop.f32.mrf.mxu2 }
 0x253   : > { %2566 = vst.msk [vmem:[%s4110_s30 + $0x1c] sm:$0xf] %vm2558_vm1, %v2533_v0  ;;  %v2036_v9 = vadd.f32 %v1968_v48, %v1802_v2  ;;  %1778 = vmatmul.bf16.gmra.mxu1 %v1638_v35  ;;  %v2321_v35 = vld [vmem:[#allocation2 + $0x182] sm:$0xff]  ;;  %v2322_v0 = vld [vmem:[#allocation2 + $0x18a] sm:$0xff] }
 0x254   : > { %v2201_v59 = vpop.f32.mrf.mxu3  ;;  %v2339_v48 = vpack.c.bf16 %v2322_v0, %v2321_v35 }
 0x255   : > { %v2269_v26 = vadd.f32 %v2201_v59, %v2036_v9 }
 0x256   : > { %v2439_v47 = vpop.f32.mrf.mxu0 }
 0x257   : > { %v4170_v49 = vadd.f32 %v2434_v24, %v2269_v26  ;;  %v1621_v24 = vld [vmem:[#allocation2 + $0x16a] sm:$0xff]  ;;  %v1855_v26 = vld [vmem:[#allocation2 + $0x180] sm:$0xff] }
 0x258   : > { %v1741_v23 = vpop.f32.mrf.mxu1  ;;  %v1639_v20 = vpack.c.bf16 %v1622_v30, %v1621_v24  ;;  %v1873_v37 = vpack.c.bf16 %v1856_v25, %v1855_v26  ;;  %v2090_v26 = vld [vmem:[#allocation2 + $0x199] sm:$0xff]  ;;  %v2091_v25 = vld [vmem:[#allocation2 + $0x1a1] sm:$0xff] }
 0x259   : > { %v2534_v19 = vpack.c.bf16 %v4170_v49, %v4170_v49  ;;  %2478 = vmatmul.bf16.gmra.mxu0 %v4030_v3 }
 0x25a   : > { %v1970_v61 = vpop.f32.mrf.mxu2 }
 0x25b   : > { %2567 = vst.msk [vmem:[%s4110_s30 + $0x20] sm:$0xf] %vm2558_vm1, %v2534_v19  ;;  %v2037_v50 = vadd.f32 %v1970_v61, %v1803_v54  ;;  %v1805_v19 = vadd.f32 %v1741_v23, %v4532_v32  ;;  %v2088_v54 = vld [vmem:[#allocation2 + $0x181] sm:$0xff]  ;;  %v2089_v61 = vld [vmem:[#allocation2 + $0x189] sm:$0xff] }
 0x25c   : > { %v2203_v55 = vpop.f32.mrf.mxu3 }
 0x25d   : > { %v2270_v34 = vadd.f32 %v2203_v55, %v2037_v50 }
 0x25e   : > { %v2441_v13 = vpop.f32.mrf.mxu0 }
 0x25f   : > { %v4178_v27 = vadd.f32 %v2436_v10, %v2270_v34  ;;  %2012 = vmatmul.bf16.gmra.mxu2 %v1872_v38  ;;  %v2106_v38 = vpack.c.bf16 %v2089_v61, %v2088_v54 }
 0x260   : > { %v1744_v22 = vpop.f32.mrf.mxu1 }
 0x261   : > { %v2535_v3 = vpack.c.bf16 %v4178_v27, %v4178_v27  ;;  %2245 = vmatmul.bf16.gmra.mxu3 %v2105_v40  ;;  %v1806_v34 = vadd.f32 %v1744_v22, %v4027_v29 }
 0x262   : > { %v1973_v1 = vpop.f32.mrf.mxu2 }
 0x263   : > { %2568 = vst.msk [vmem:[%s4110_s30 + $0x24] sm:$0xf] %vm2558_vm1, %v2535_v3  ;;  %v2038_v42 = vadd.f32 %v1973_v1, %v1804_v28  ;;  %1783 = vmatmul.bf16.gmra.mxu1 %v1639_v20  ;;  %v2323_v20 = vld [vmem:[#allocation2 + $0x19a] sm:$0xff]  ;;  %v2324_v3 = vld [vmem:[#allocation2 + $0x1a2] sm:$0xff] }
 0x264   : > { %v2206_v2 = vpop.f32.mrf.mxu3 }
 0x265   : > { %v2271_v10 = vadd.f32 %v2206_v2, %v2038_v42 }
 0x266   : > { %v2444_v9 = vpop.f32.mrf.mxu0 }
 0x267   : > { %v4185_v59 = vadd.f32 %v2439_v47, %v2271_v10 }
 0x268   : > { %v1746_v5 = vpop.f32.mrf.mxu1 }
 0x269   : > { %v2536_v17 = vpack.c.bf16 %v4185_v59, %v4185_v59  ;;  %2483 = vmatmul.bf16.gmra.mxu0 %v2339_v48  ;;  %v1807_v29 = vadd.f32 %v1746_v5, %v4033_v8 }
 0x26a   : > { %v1975_v18 = vpop.f32.mrf.mxu2 }
 0x26b   : > { %2569 = vst.msk [vmem:[%s4110_s30 + $0x28] sm:$0xf] %vm2558_vm1, %v2536_v17  ;;  %v2039_v43 = vadd.f32 %v1975_v18, %v1805_v19  ;;  %v3383_v17 = vld [vmem:[#allocation2] sm:$0xff] }
 0x26c   : > { %v2208_v50 = vpop.f32.mrf.mxu3  ;;  %v1874_v32 = vpack.c.bf16 %v3383_v17, %v3383_v17 }
 0x26d   : > { %v2272_v47 = vadd.f32 %v2208_v50, %v2039_v43 }
 0x26e   : > { %v2446_v55 = vpop.f32.mrf.mxu0 }
 0x26f   : > { %v4192_v24 = vadd.f32 %v2441_v13, %v2272_v47  ;;  %2017 = vmatmul.bf16.gmra.mxu2 %v1873_v37  ;;  %v2340_v13 = vpack.c.bf16 %v2324_v3, %v2323_v20 }
 0x270   : > { %v1749_v30 = vpop.f32.mrf.mxu1 }
 0x271   : > { %v2537_v23 = vpack.c.bf16 %v4192_v24, %v4192_v24  ;;  %2250 = vmatmul.bf16.gmra.mxu3 %v2106_v38  ;;  %v1808_v5 = vadd.f32 %v1749_v30, %v4037_v44 }
 0x272   : > { %v1978_v40 = vpop.f32.mrf.mxu2 }
 0x273   : > { %2570 = vst.msk [vmem:[%s4110_s30 + $0x2c] sm:$0xf] %vm2558_vm1, %v2537_v23  ;;  %v2040_v28 = vadd.f32 %v1978_v40, %v1806_v34  ;;  %1788 = vmatmul.bf16.gmra.mxu1 %v2339_v48 }
 0x274   : > { %v2211_v1 = vpop.f32.mrf.mxu3 }
 0x275   : > { %v2273_v35 = vadd.f32 %v2211_v1, %v2040_v28 }
 0x276   : > { %v2449_v0 = vpop.f32.mrf.mxu0 }
 0x277   : > { %v4199_v42 = vadd.f32 %v2444_v9, %v2273_v35  ;;  %v2107_v9 = vpack.c.bf16 %v2091_v25, %v2090_v26 }
 0x278   : > { %v1751_v2 = vpop.f32.mrf.mxu1 }
 0x279   : > { %v2538_v10 = vpack.c.bf16 %v4199_v42, %v4199_v42  ;;  %2488 = vmatmul.bf16.gmra.mxu0 %v2340_v13  ;;  %v1809_v20 = vadd.f32 %v1751_v2, %v4042_v12 }
 0x27a   : > { %v1980_v22 = vpop.f32.mrf.mxu2 }
 0x27b   : > { %2571 = vst.msk [vmem:[%s4110_s30 + $0x30] sm:$0xf] %vm2558_vm1, %v2538_v10  ;;  %v2041_v48 = vadd.f32 %v1980_v22, %v1807_v29 }
 0x27c   : > { %v2213_v19 = vpop.f32.mrf.mxu3 }
 0x27d   : > { %v2274_v18 = vadd.f32 %v2213_v19, %v2041_v48 }
 0x27e   : > { %v2451_v54 = vpop.f32.mrf.mxu0 }
 0x27f   : > { %v4206_v61 = vadd.f32 %v2446_v55, %v2274_v18  ;;  %2022 = vmatmul.bf16.gmra.mxu2 %v1874_v32 }
 0x280   : > { %v1754_v43 = vpop.f32.mrf.mxu1 }
 0x281   : > { %v2539_v8 = vpack.c.bf16 %v4206_v61, %v4206_v61  ;;  %2255 = vmatmul.bf16.gmra.mxu3 %v2107_v9  ;;  %v1810_v10 = vadd.f32 %v1754_v43, %v4045_v41 }
 0x282   : > { %v1983_v37 = vpop.f32.mrf.mxu2 }
 0x283   : > { %2572 = vst.msk [vmem:[%s4110_s30 + $0x34] sm:$0xf] %vm2558_vm1, %v2539_v8  ;;  %v2042_v50 = vadd.f32 %v1983_v37, %v1808_v5 }
 0x284   : > { %v2216_v47 = vpop.f32.mrf.mxu3 }
 0x285   : > { %v2275_v38 = vadd.f32 %v2216_v47, %v2042_v50 }
 0x286   : > { %v2454_v23 = vpop.f32.mrf.mxu0 }
 0x287   : > { %v4213_v34 = vadd.f32 %v2449_v0, %v2275_v38 }
 0x288   : > { %v1756_v55 = vpop.f32.mrf.mxu1 }
 0x289   : > { %v2540_v40 = vpack.c.bf16 %v4213_v34, %v4213_v34  ;;  %v1811_v32 = vadd.f32 %v1756_v55, %v4049_v15 }
 0x28a   : > { %v1985_v3 = vpop.f32.mrf.mxu2 }
 0x28b   : > { %2573 = vst.msk [vmem:[%s4110_s30 + $0x38] sm:$0xf] %vm2558_vm1, %v2540_v40  ;;  %v2043_v44 = vadd.f32 %v1985_v3, %v1809_v20 }
 0x28c   : > { %v2218_v30 = vpop.f32.mrf.mxu3 }
 0x28d   : > { %v2276_v28 = vadd.f32 %v2218_v30, %v2043_v44 }
 0x28e   : > { %v2456_v1 = vpop.f32.mrf.mxu0 }
 0x28f   : > { %v4220_v35 = vadd.f32 %v2451_v54, %v2276_v28 }
 0x290   : > { %v1759_v13 = vpop.f32.mrf.mxu1 }
 0x291   : > { %v2541_v0 = vpack.c.bf16 %v4220_v35, %v4220_v35  ;;  %v1812_v37 = vadd.f32 %v1759_v13, %v4052_v52 }
 0x292   : > { %v1988_v29 = vpop.f32.mrf.mxu2 }
 0x293   : > { %2574 = vst.msk [vmem:[%s4110_s30 + $0x3c] sm:$0xf] %vm2558_vm1, %v2541_v0  ;;  %v2044_v12 = vadd.f32 %v1988_v29, %v1810_v10 }
 0x294   : > { %v2221_v2 = vpop.f32.mrf.mxu3 }
 0x295   : > { %v2277_v22 = vadd.f32 %v2221_v2, %v2044_v12 }
 0x296   : > { %v2459_v26 = vpop.f32.mrf.mxu0 }
 0x297   : > { %v4227_v25 = vadd.f32 %v2454_v23, %v2277_v22 }
 0x298   : > { %v1761_v48 = vpop.f32.mrf.mxu1 }
 0x299   : > { %v2542_v17 = vpack.c.bf16 %v4227_v25, %v4227_v25  ;;  %v1813_v3 = vadd.f32 %v1761_v48, %v4056_v46 }
 0x29a   : > { %v1990_v19 = vpop.f32.mrf.mxu2 }
 0x29b   : > { %2575 = vst.msk [vmem:[%s4110_s30 + $0x40] sm:$0xf] %vm2558_vm1, %v2542_v17  ;;  %v2045_v41 = vadd.f32 %v1990_v19, %v1811_v32 }
 0x29c   : > { %v2223_v18 = vpop.f32.mrf.mxu3 }
 0x29d   : > { %v2278_v9 = vadd.f32 %v2223_v18, %v2045_v41  ;;  %v2592_v18 = vsel %vm459_vm0, %v4118_v58, 0.0 }
 0x29e   : > { %v2461_v54 = vpop.f32.mrf.mxu0 }
 0x29f   : > { %v4234_v43 = vadd.f32 %v2456_v1, %v2278_v9 }
 0x2a0   : > { %v1764_v8 = vpop.f32.mrf.mxu1 }
 0x2a1   : > { %v2543_v5 = vpack.c.bf16 %v4234_v43, %v4234_v43  ;;  %v1814_v29 = vadd.f32 %v1764_v8, %v4059_v53  ;;  %v2594_v8 = vsel %vm459_vm0, %v4125_v4, 0.0 }
 0x2a2   : > { %v1993_v50 = vpop.f32.mrf.mxu2 }
 0x2a3   : > { %2576 = vst.msk [vmem:[%s4110_s30 + $0x44] sm:$0xf] %vm2558_vm1, %v2543_v5  ;;  %v2046_v15 = vadd.f32 %v1993_v50, %v1812_v37 }
 0x2a4   : > { %v2226_v47 = vpop.f32.mrf.mxu3 }
 0x2a5   : > { %v2279_v38 = vadd.f32 %v2226_v47, %v2046_v15 }
 0x2a6   : > { %v2464_v23 = vpop.f32.mrf.mxu0 }
 0x2a7   : > { %v4241_v55 = vadd.f32 %v2459_v26, %v2279_v38 }
 0x2a8   : > { %v1766_v40 = vpop.f32.mrf.mxu1 }
 0x2a9   : > { %v2544_v20 = vpack.c.bf16 %v4241_v55, %v4241_v55  ;;  %v1815_v19 = vadd.f32 %v1766_v40, %v4063_v56  ;;  %v2596_v56 = vsel %vm459_vm0, %v4133_v60, 0.0 }
 0x2aa   : > { %v1995_v44 = vpop.f32.mrf.mxu2 }
 0x2ab   : > { %2577 = vst.msk [vmem:[%s4110_s30 + $0x48] sm:$0xf] %vm2558_vm1, %v2544_v20  ;;  %v2047_v52 = vadd.f32 %v1995_v44, %v1813_v3 }
 0x2ac   : > { %v2228_v30 = vpop.f32.mrf.mxu3 }
 0x2ad   : > { %v2280_v28 = vadd.f32 %v2228_v30, %v2047_v52  ;;  %v2600_v52 = vsel %vm459_vm0, %v4148_v14, 0.0 }
 0x2ae   : > { %v2466_v1 = vpop.f32.mrf.mxu0 }
 0x2af   : > { %v4248_v13 = vadd.f32 %v2461_v54, %v2280_v28  ;;  %v2591_v54 = vsel %vm459_vm0, %v4103_v7, 0.0 }
 0x2b0   : > { %v1769_v0 = vpop.f32.mrf.mxu1  ;;  %v2593_v37 = vadd.f32 %v2592_v18, %v2591_v54 }
 0x2b1   : > { %v2545_v10 = vpack.c.bf16 %v4248_v13, %v4248_v13  ;;  %v1816_v20 = vadd.f32 %v1769_v0, %v4066_v16 }
 0x2b2   : > { %v1998_v12 = vpop.f32.mrf.mxu2  ;;  %v2595_v47 = vadd.f32 %v2594_v8, %v2593_v37 }
 0x2b3   : > { %2578 = vst.msk [vmem:[%s4110_s30 + $0x4c] sm:$0xf] %vm2558_vm1, %v2545_v10  ;;  %v2048_v46 = vadd.f32 %v1998_v12, %v1814_v29  ;;  %v2602_v10 = vsel %vm459_vm0, %v4155_v51, 0.0 }
 0x2b4   : > { %v2231_v2 = vpop.f32.mrf.mxu3  ;;  %v2597_v3 = vadd.f32 %v2596_v56, %v2595_v47 }
 0x2b5   : > { %v2281_v22 = vadd.f32 %v2231_v2, %v2048_v46  ;;  %v2604_v46 = vsel %vm459_vm0, %v4163_v36, 0.0 }
 0x2b6   : > { %v2469_v26 = vpop.f32.mrf.mxu0 }
 0x2b7   : > { %v4255_v48 = vadd.f32 %v2464_v23, %v2281_v22  ;;  %v2598_v23 = vsel %vm459_vm0, %v4140_v39, 0.0  ;;  %v2606_v22 = vsel %vm459_vm0, %v4170_v49, 0.0 }
 0x2b8   : > { %v1771_v17 = vpop.f32.mrf.mxu1  ;;  %v2599_v28 = vadd.f32 %v2598_v23, %v2597_v3  ;;  %v2614_v23 = vsel %vm459_vm0, %v4199_v42, 0.0 }
 0x2b9   : > { %v2546_v32 = vpack.c.bf16 %v4255_v48, %v4255_v48 }
 0x2ba   : > { %v2000_v41 = vpop.f32.mrf.mxu2  ;;  %v2601_v12 = vadd.f32 %v2600_v52, %v2599_v28 }
 0x2bb   : > { %2579 = vst.msk [vmem:[%s4110_s30 + $0x50] sm:$0xf] %vm2558_vm1, %v2546_v32  ;;  %v2049_v53 = vadd.f32 %v2000_v41, %v1815_v19  ;;  %v1817_v19 = vadd.f32 %v1771_v17, %v4070_v63  ;;  %v2612_v63 = vsel %vm459_vm0, %v4192_v24, 0.0 }
 0x2bc   : > { %v2233_v9 = vpop.f32.mrf.mxu3  ;;  %v2603_v0 = vadd.f32 %v2602_v10, %v2601_v12 }
 0x2bd   : > { %v2282_v5 = vadd.f32 %v2233_v9, %v2049_v53  ;;  %v2608_v9 = vsel %vm459_vm0, %v4178_v27, 0.0 }
 0x2be   : > { %v2471_v50 = vpop.f32.mrf.mxu0  ;;  %v2605_v41 = vadd.f32 %v2604_v46, %v2603_v0 }
 0x2bf   : > { %v4270_v15 = vadd.f32 %v2466_v1, %v2282_v5  ;;  %v2610_v5 = vsel %vm459_vm0, %v4185_v59, 0.0 }
 0x2c0   : > { %v1774_v38 = vpop.f32.mrf.mxu1  ;;  %v2607_v54 = vadd.f32 %v2606_v22, %v2605_v41  ;;  %v2622_v22 = vsel %vm459_vm0, %v4227_v25, 0.0 }
 0x2c1   : > { %v2547_v40 = vpack.c.bf16 %v4270_v15, %v4270_v15 }
 0x2c2   : > { %v2003_v44 = vpop.f32.mrf.mxu2  ;;  %v2609_v56 = vadd.f32 %v2608_v9, %v2607_v54  ;;  %v2624_v9 = vsel %vm459_vm0, %v4234_v43, 0.0 }
 0x2c3   : > { %2580 = vst.msk [vmem:[%s4110_s30 + $0x54] sm:$0xf] %vm2558_vm1, %v2547_v40  ;;  %v2050_v30 = vadd.f32 %v2003_v44, %v1816_v20  ;;  %v1818_v20 = vadd.f32 %v1774_v38, %v4073_v21  ;;  %v2620_v21 = vsel %vm459_vm0, %v4220_v35, 0.0 }
 0x2c4   : > { %v2236_v1 = vpop.f32.mrf.mxu3  ;;  %v2611_v47 = vadd.f32 %v2610_v5, %v2609_v56  ;;  %v2626_v5 = vsel %vm459_vm0, %v4241_v55, 0.0 }
 0x2c5   : > { %v2283_v29 = vadd.f32 %v2236_v1, %v2050_v30  ;;  %v2616_v30 = vsel %vm459_vm0, %v4206_v61, 0.0 }
 0x2c6   : > { %v2474_v2 = vpop.f32.mrf.mxu0  ;;  %v2613_v3 = vadd.f32 %v2612_v63, %v2611_v47 }
 0x2c7   : > { %v4285_v16 = vadd.f32 %v2469_v26, %v2283_v29  ;;  %v2618_v29 = vsel %vm459_vm0, %v4213_v34, 0.0 }
 0x2c8   : > { %v1776_v53 = vpop.f32.mrf.mxu1 }
 0x2c9   : > { %v2548_v32 = vpack.c.bf16 %v4285_v16, %v4285_v16 }
 0x2ca   : > { %v2005_v18 = vpop.f32.mrf.mxu2 }
 0x2cb   : > { %2581 = vst.msk [vmem:[%s4110_s30 + $0x58] sm:$0xf] %vm2558_vm1, %v2548_v32  ;;  %v2051_v26 = vadd.f32 %v2005_v18, %v1817_v19  ;;  %v1819_v19 = vadd.f32 %v1776_v53, %v4077_v6  ;;  %v2628_v6 = vsel %vm459_vm0, %v4248_v13, 0.0 }
 0x2cc   : > { %v2238_v8 = vpop.f32.mrf.mxu3 }
 0x2cd   : > { %v2284_v37 = vadd.f32 %v2238_v8, %v2051_v26 }
 0x2ce   : > { %v2476_v52 = vpop.f32.mrf.mxu0 }
 0x2cf   : > { %v4300_v17 = vadd.f32 %v2471_v50, %v2284_v37  ;;  %v2615_v50 = vadd.f32 %v2614_v23, %v2613_v3  ;;  %v2630_v23 = vsel %vm459_vm0, %v4255_v48, 0.0 }
 0x2d0   : > { %v1779_v10 = vpop.f32.mrf.mxu1 }
 0x2d1   : > { %v2549_v40 = vpack.c.bf16 %v4300_v17, %v4300_v17  ;;  %v2617_v46 = vadd.f32 %v2616_v30, %v2615_v50  ;;  %v2632_v30 = vsel %vm459_vm0, %v4270_v15, 0.0 }
 0x2d2   : > { %v2008_v44 = vpop.f32.mrf.mxu2 }
 0x2d3   : > { %2582 = vst.msk [vmem:[%s4110_s30 + $0x5c] sm:$0xf] %vm2558_vm1, %v2549_v40  ;;  %v2052_v28 = vadd.f32 %v2008_v44, %v1818_v20  ;;  %v2619_v0 = vadd.f32 %v2618_v29, %v2617_v46  ;;  %v1820_v20 = vadd.f32 %v1779_v10, %v4080_v57  ;;  %v2636_v57 = vsel %vm459_vm0, %v4300_v17, 0.0 }
 0x2d4   : > { %v2241_v1 = vpop.f32.mrf.mxu3 }
 0x2d5   : > { %v2285_v12 = vadd.f32 %v2241_v1, %v2052_v28  ;;  %v2621_v41 = vadd.f32 %v2620_v21, %v2619_v0  ;;  %v2634_v1 = vsel %vm459_vm0, %v4285_v16, 0.0 }
 0x2d6   : > { %v2479_v8 = vpop.f32.mrf.mxu0 }
 0x2d7   : > { %v4315_v38 = vadd.f32 %v2474_v2, %v2285_v12  ;;  %v2623_v54 = vadd.f32 %v2622_v22, %v2621_v41 }
 0x2d8   : > { %v1781_v63 = vpop.f32.mrf.mxu1 }
 0x2d9   : > { %v2550_v32 = vpack.c.bf16 %v4315_v38, %v4315_v38  ;;  %v2625_v56 = vadd.f32 %v2624_v9, %v2623_v54  ;;  %v2638_v22 = vsel %vm459_vm0, %v4315_v38, 0.0 }
 0x2da   : > { %v2010_v18 = vpop.f32.mrf.mxu2 }
 0x2db   : > { %2583 = vst.msk [vmem:[%s4110_s30 + $0x60] sm:$0xf] %vm2558_vm1, %v2550_v32  ;;  %v2053_v26 = vadd.f32 %v2010_v18, %v1819_v19  ;;  %v2627_v47 = vadd.f32 %v2626_v5, %v2625_v56  ;;  %v1821_v19 = vadd.f32 %v1781_v63, %v4084_v31 }
 0x2dc   : > { %v2243_v2 = vpop.f32.mrf.mxu3 }
 0x2dd   : > { %v2286_v37 = vadd.f32 %v2243_v2, %v2053_v26  ;;  %v2629_v3 = vadd.f32 %v2628_v6, %v2627_v47 }
 0x2de   : > { %v2481_v46 = vpop.f32.mrf.mxu0 }
 0x2df   : > { %v4330_v53 = vadd.f32 %v2476_v52, %v2286_v37  ;;  %v2631_v50 = vadd.f32 %v2630_v23, %v2629_v3 }
 0x2e0   : > { %v1784_v0 = vpop.f32.mrf.mxu1 }
 0x2e1   : > { %v2551_v40 = vpack.c.bf16 %v4330_v53, %v4330_v53  ;;  %v2633_v12 = vadd.f32 %v2632_v30, %v2631_v50  ;;  %v2640_v9 = vsel %vm459_vm0, %v4330_v53, 0.0  ;;  %v1822_v23 = vadd.f32 %v1784_v0, %v4087_v45 }
 0x2e2   : > { %v2013_v44 = vpop.f32.mrf.mxu2 }
 0x2e3   : > { %2584 = vst.msk [vmem:[%s4110_s30 + $0x64] sm:$0xf] %vm2558_vm1, %v2551_v40  ;;  %v2054_v28 = vadd.f32 %v2013_v44, %v1820_v20  ;;  %v2635_v21 = vadd.f32 %v2634_v1, %v2633_v12 }
 0x2e4   : > { %v2246_v52 = vpop.f32.mrf.mxu3 }
 0x2e5   : > { %v2287_v29 = vadd.f32 %v2246_v52, %v2054_v28  ;;  %v2637_v41 = vadd.f32 %v2636_v57, %v2635_v21 }
 0x2e6   : > { %v2484_v31 = vpop.f32.mrf.mxu0 }
 0x2e7   : > { %v4345_v10 = vadd.f32 %v2479_v8, %v2287_v29  ;;  %v2639_v54 = vadd.f32 %v2638_v22, %v2637_v41 }
 0x2e8   : > { %v1786_v3 = vpop.f32.mrf.mxu1 }
 0x2e9   : > { %v2552_v32 = vpack.c.bf16 %v4345_v10, %v4345_v10  ;;  %v2642_v8 = vsel %vm459_vm0, %v4345_v10, 0.0  ;;  %v2641_v37 = vadd.f32 %v2640_v9, %v2639_v54  ;;  %v1823_v29 = vadd.f32 %v1786_v3, %v4091_v11 }
 0x2ea   : > { %v2015_v18 = vpop.f32.mrf.mxu2 }
 0x2eb   : > { %2585 = vst.msk [vmem:[%s4110_s30 + $0x68] sm:$0xf] %vm2558_vm1, %v2552_v32  ;;  %v2055_v26 = vadd.f32 %v2015_v18, %v1821_v19  ;;  %v2643_v6 = vadd.f32 %v2642_v8, %v2641_v37 }
 0x2ec   : > { %v2248_v2 = vpop.f32.mrf.mxu3 }
 0x2ed   : > { %v2288_v5 = vadd.f32 %v2248_v2, %v2055_v26 }
 0x2ef   : > { %v4358_v56 = vadd.f32 %v2481_v46, %v2288_v5  ;;  %v2486_v46 = vpop.f32.mrf.mxu0 }
 0x2f0   : > { %v1789_v0 = vpop.f32.mrf.mxu1 }
 0x2f1   : > { %v2553_v63 = vpack.c.bf16 %v4358_v56, %v4358_v56  ;;  %v2644_v47 = vsel %vm459_vm0, %v4358_v56, 0.0  ;;  %v1824_v18 = vadd.f32 %v1789_v0, %v4095_v33 }
 0x2f2   : > { %v2645_v40 = vadd.f32 %v2644_v47, %v2643_v6  ;;  %v2018_v20 = vpop.f32.mrf.mxu2  ;;  %v3394_v6 = vmov 256.0  }
 0x2f3   : > { %2586 = vst.msk [vmem:[%s4110_s30 + $0x6c] sm:$0xf] %vm2558_vm1, %v2553_v63  ;;  %v2056_v44 = vadd.f32 %v2018_v20, %v1822_v23  ;;  %3379 = vrcp.f32 %v3394_v6 }
 0x2f4   : > { %v2251_v30 = vpop.f32.mrf.mxu3 }
 0x2f5   : > { %v2289_v28 = vadd.f32 %v2251_v30, %v2056_v44 }
 0x2f7   : > { %v2522_v50 = vadd.f32 %v2484_v31, %v2289_v28  ;;  %v2489_v54 = vpop.f32.mrf.mxu0 }
 0x2f8   : > { %v1791_v5 = vpop.f32.mrf.mxu1 }
 0x2f9   : > { %v2554_v52 = vpack.c.bf16 %v2522_v50, %v2522_v50  ;;  %v2646_v1 = vsel %vm459_vm0, %v2522_v50, 0.0  ;;  %v1825_v47 = vadd.f32 %v1791_v5, %v4100_v62  ;;  %v3380_v44 = vpop.eup %3379 }
 0x2fa   : > { %v2647_v12 = vadd.f32 %v2646_v1, %v2645_v40  ;;  %v2020_v57 = vpop.f32.mrf.mxu2  ;;  %vm2665_vm3 = vweird.f32 %v3380_v44 }
 0x2fb   : > { %2587 = vst.msk [vmem:[%s4110_s30 + $0x70] sm:$0xf] %vm2558_vm1, %v2554_v52  ;;  %v2057_v45 = vadd.f32 %v2020_v57, %v1823_v29  ;;  %v2661_v29 = vmul.f32 256.0, %v3380_v44 }
 0x2fc   : > { %v2253_v21 = vpop.f32.mrf.mxu3 }
 0x2fd   : > { %v2290_v22 = vadd.f32 %v2253_v21, %v2057_v45  ;;  %v2662_v62 = vsub.f32 1.0, %v2661_v29 }
 0x2ff   : > { %v2523_v32 = vadd.f32 %v2486_v46, %v2290_v22  ;;  %v2491_v30 = vpop.f32.mrf.mxu0  ;;  %v2663_v21 = vmul.f32 %v3380_v44, %v2662_v62 }
 0x301   : > { %v2555_v19 = vpack.c.bf16 %v2523_v32, %v2523_v32  ;;  %v2648_v41 = vsel %vm459_vm0, %v2523_v32, 0.0 }
 0x302   : > { %v2649_v9 = vadd.f32 %v2648_v41, %v2647_v12  ;;  %v2023_v26 = vpop.f32.mrf.mxu2 }
 0x303   : > { %2588 = vst.msk [vmem:[%s4110_s30 + $0x74] sm:$0xf] %vm2558_vm1, %v2555_v19  ;;  %v2058_v11 = vadd.f32 %v2023_v26, %v1824_v18  ;;  %v2664_v19 = vadd.f32 %v3380_v44, %v2663_v21 }
 0x304   : > { %v2256_v2 = vpop.f32.mrf.mxu3 }
 0x305   : > { %v2291_v8 = vadd.f32 %v2256_v2, %v2058_v11  ;;  %v2666_v18 = vsel %vm2665_vm3, %v3380_v44, %v2664_v19 }
 0x307   : > { %v2524_v37 = vadd.f32 %v2489_v54, %v2291_v8 }
 0x309   : > { %v2556_v31 = vpack.c.bf16 %v2524_v37, %v2524_v37  ;;  %v2650_v63 = vsel %vm459_vm0, %v2524_v37, 0.0 }
 0x30a   : > { %v2651_v33 = vadd.f32 %v2650_v63, %v2649_v9  ;;  %v2025_v23 = vpop.f32.mrf.mxu2 }
 0x30b   : > { %2589 = vst.msk [vmem:[%s4110_s30 + $0x78] sm:$0xf] %vm2558_vm1, %v2556_v31  ;;  %v2059_v40 = vadd.f32 %v2025_v23, %v1825_v47 }
 0x30c   : > { %v2258_v20 = vpop.f32.mrf.mxu3 }
 0x30d   : > { %v2292_v3 = vadd.f32 %v2258_v20, %v2059_v40 }
 0x30f   : > { %v2525_v28 = vadd.f32 %v2491_v30, %v2292_v3 }
 0x311   : > { %v2557_v52 = vpack.c.bf16 %v2525_v28, %v2525_v28  ;;  %v2652_v1 = vsel %vm459_vm0, %v2525_v28, 0.0 }
 0x312   : > { %v2653_v12 = vadd.f32 %v2652_v1, %v2651_v33 }
 0x313   : > { %2590 = vst.msk [vmem:[%s4110_s30 + $0x7c] sm:$0xf] %vm2558_vm1, %v2557_v52 }
 0x314   : > { %v2654_v46 = vrot.slane %v2653_v12, 4 }
 0x316   : > { %v2655_v57 = vadd.f32 %v2654_v46, %v2653_v12 }
 0x318   : > { %v2656_v45 = vrot.slane %v2655_v57, 2 }
 0x31a   : > { %v2657_v0 = vadd.f32 %v2656_v45, %v2655_v57 }
 0x31c   : > { %v2658_v22 = vrot.slane %v2657_v0, 1 }
 0x31e   : > { %v2659_v41 = vadd.f32 %v2658_v22, %v2657_v0 }
 0x320   : > { %2701 = vst.msk [vmem:[%s4386_s8] sm:$0x1] %vm2700_vm2, %v2659_v41  ;;  %v4390_v9 = vmul.f32 %v2666_v18, %v2659_v41 }
 0x322   : > { %v4394_v26 = vsub.f32 %v4345_v10, %v4390_v9  ;;  %v4398_v11 = vsub.f32 %v4358_v56, %v4390_v9  ;;  %v4401_v54 = vsub.f32 %v2522_v50, %v4390_v9  ;;  %v4404_v2 = vsub.f32 %v2523_v32, %v4390_v9 }
 0x323   : > { %v4407_v8 = vsub.f32 %v2524_v37, %v4390_v9  ;;  %v4410_v5 = vsub.f32 %v2525_v28, %v4390_v9  ;;  %v2668_v10 = vsub.f32 %v4103_v7, %v4390_v9  ;;  %v2669_v6 = vsub.f32 %v4118_v58, %v4390_v9 }
 0x324   : > { %v2670_v56 = vsub.f32 %v4125_v4, %v4390_v9  ;;  %v2671_v50 = vsub.f32 %v4133_v60, %v4390_v9  ;;  %v2672_v37 = vsub.f32 %v4140_v39, %v4390_v9  ;;  %v2673_v47 = vsub.f32 %v4148_v14, %v4390_v9 }
 0x325   : > { %v2702_v32 = vmul.f32 %v2668_v10, %v2668_v10  ;;  %v2703_v31 = vmul.f32 %v2669_v6, %v2669_v6  ;;  %v2674_v4 = vsub.f32 %v4155_v51, %v4390_v9  ;;  %v2675_v39 = vsub.f32 %v4163_v36, %v4390_v9 }
 0x326   : > { %v2704_v63 = vmul.f32 %v2670_v56, %v2670_v56  ;;  %v2705_v33 = vmul.f32 %v2671_v50, %v2671_v50  ;;  %v2706_v40 = vmul.f32 %v2672_v37, %v2672_v37  ;;  %v2707_v3 = vmul.f32 %v2673_v47, %v2673_v47 }
 0x327   : > { %v2734_v7 = vsel %vm459_vm0, %v2702_v32, 0.0  ;;  %v2735_v58 = vsel %vm459_vm0, %v2703_v31, 0.0  ;;  %v2676_v30 = vsub.f32 %v4170_v49, %v4390_v9  ;;  %v2708_v28 = vmul.f32 %v2674_v4, %v2674_v4 }
 0x328   : > { %v2736_v23 = vadd.f32 %v2735_v58, %v2734_v7  ;;  %v2737_v60 = vsel %vm459_vm0, %v2704_v63, 0.0  ;;  %v2739_v44 = vsel %vm459_vm0, %v2705_v33, 0.0  ;;  %v2741_v52 = vsel %vm459_vm0, %v2706_v40, 0.0 }
 0x329   : > { %v2677_v51 = vsub.f32 %v4178_v27, %v4390_v9  ;;  %v2709_v29 = vmul.f32 %v2675_v39, %v2675_v39  ;;  %v2743_v12 = vsel %vm459_vm0, %v2707_v3, 0.0  ;;  %v2678_v36 = vsub.f32 %v4185_v59, %v4390_v9 }
 0x32a   : > { %v2738_v20 = vadd.f32 %v2737_v60, %v2736_v23  ;;  %v2710_v62 = vmul.f32 %v2676_v30, %v2676_v30  ;;  %v2745_v57 = vsel %vm459_vm0, %v2708_v28, 0.0  ;;  %v2679_v49 = vsub.f32 %v4192_v24, %v4390_v9 }
 0x32b   : > { %v2711_v21 = vmul.f32 %v2677_v51, %v2677_v51  ;;  %v2747_v0 = vsel %vm459_vm0, %v2709_v29, 0.0  ;;  %v2680_v27 = vsub.f32 %v4199_v42, %v4390_v9  ;;  %v2712_v19 = vmul.f32 %v2678_v36, %v2678_v36 }
 0x32c   : > { %v2740_v14 = vadd.f32 %v2739_v44, %v2738_v20  ;;  %v2749_v41 = vsel %vm459_vm0, %v2710_v62, 0.0  ;;  %v2681_v59 = vsub.f32 %v4206_v61, %v4390_v9  ;;  %v2713_v10 = vmul.f32 %v2679_v49, %v2679_v49 }
 0x32d   : > { %v2751_v6 = vsel %vm459_vm0, %v2711_v21, 0.0  ;;  %v2682_v24 = vsub.f32 %v4213_v34, %v4390_v9  ;;  %v2714_v50 = vmul.f32 %v2680_v27, %v2680_v27  ;;  %v2753_v32 = vsel %vm459_vm0, %v2712_v19, 0.0 }
 0x32e   : > { %v2742_v1 = vadd.f32 %v2741_v52, %v2740_v14  ;;  %v2683_v42 = vsub.f32 %v4220_v35, %v4390_v9  ;;  %v2715_v37 = vmul.f32 %v2681_v59, %v2681_v59  ;;  %v2755_v63 = vsel %vm459_vm0, %v2713_v10, 0.0 }
 0x32f   : > { %v2684_v61 = vsub.f32 %v4227_v25, %v4390_v9  ;;  %v2716_v33 = vmul.f32 %v2682_v24, %v2682_v24  ;;  %v2757_v7 = vsel %vm459_vm0, %v2714_v50, 0.0  ;;  %v2685_v34 = vsub.f32 %v4234_v43, %v4390_v9 }
 0x330   : > { %v2744_v46 = vadd.f32 %v2743_v12, %v2742_v1  ;;  %v2717_v23 = vmul.f32 %v2683_v42, %v2683_v42  ;;  %v2759_v4 = vsel %vm459_vm0, %v2715_v37, 0.0  ;;  %v2686_v35 = vsub.f32 %v4241_v55, %v4390_v9 }
 0x331   : > { %v2718_v60 = vmul.f32 %v2684_v61, %v2684_v61  ;;  %v2761_v20 = vsel %vm459_vm0, %v2716_v33, 0.0  ;;  %v2687_v25 = vsub.f32 %v4248_v13, %v4390_v9  ;;  %v2719_v3 = vmul.f32 %v2685_v34, %v2685_v34 }
 0x332   : > { %v2746_v45 = vadd.f32 %v2745_v57, %v2744_v46  ;;  %v2763_v44 = vsel %vm459_vm0, %v2717_v23, 0.0  ;;  %v2688_v43 = vsub.f32 %v4255_v48, %v4390_v9  ;;  %v2720_v30 = vmul.f32 %v2686_v35, %v2686_v35 }
 0x333   : > { %v2765_v28 = vsel %vm459_vm0, %v2718_v60, 0.0  ;;  %v2689_v55 = vsub.f32 %v4270_v15, %v4390_v9  ;;  %v2721_v1 = vmul.f32 %v2687_v25, %v2687_v25  ;;  %v2767_v51 = vsel %vm459_vm0, %v2719_v3, 0.0 }
 0x334   : > { %v2748_v22 = vadd.f32 %v2747_v0, %v2746_v45  ;;  %v2690_v13 = vsub.f32 %v4285_v16, %v4390_v9  ;;  %v2722_v12 = vmul.f32 %v2688_v43, %v2688_v43  ;;  %v2769_v46 = vsel %vm459_vm0, %v2720_v30, 0.0 }
 0x335   : > { %v2691_v48 = vsub.f32 %v4300_v17, %v4390_v9  ;;  %v2723_v62 = vmul.f32 %v2689_v55, %v2689_v55  ;;  %v2771_v57 = vsel %vm459_vm0, %v2721_v1, 0.0  ;;  %v2692_v15 = vsub.f32 %v4315_v38, %v4390_v9 }
 0x336   : > { %v2750_v18 = vadd.f32 %v2749_v41, %v2748_v22  ;;  %v2724_v49 = vmul.f32 %v2690_v13, %v2690_v13  ;;  %v2773_v21 = vsel %vm459_vm0, %v2722_v12, 0.0  ;;  %v2693_v16 = vsub.f32 %v4330_v53, %v4390_v9 }
 0x337   : > { %v2725_v22 = vmul.f32 %v2691_v48, %v2691_v48  ;;  %v2775_v27 = vsel %vm459_vm0, %v2723_v62, 0.0  ;;  %v2726_v41 = vmul.f32 %v2692_v15, %v2692_v15  ;;  %v2728_v38 = vmul.f32 %v4394_v26, %v4394_v26 }
 0x338   : > { %v2752_v56 = vadd.f32 %v2751_v6, %v2750_v18  ;;  %v2777_v17 = vsel %vm459_vm0, %v2724_v49, 0.0  ;;  %v2727_v59 = vmul.f32 %v2693_v16, %v2693_v16  ;;  %v2729_v53 = vmul.f32 %v4398_v11, %v4398_v11 }
 0x339   : > { %v2779_v10 = vsel %vm459_vm0, %v2725_v22, 0.0  ;;  %v2731_v37 = vmul.f32 %v4404_v2, %v4404_v2  ;;  %v2733_v33 = vmul.f32 %v4410_v5, %v4410_v5 }
 0x33a   : > { %v2754_v31 = vadd.f32 %v2753_v32, %v2752_v56  ;;  %v2781_v56 = vsel %vm459_vm0, %v2726_v41, 0.0  ;;  %v2783_v9 = vsel %vm459_vm0, %v2727_v59, 0.0  ;;  %v2730_v32 = vmul.f32 %v4401_v54, %v4401_v54 }
 0x33b   : > { %v2787_v26 = vsel %vm459_vm0, %v2729_v53, 0.0  ;;  %v2791_v54 = vsel %vm459_vm0, %v2731_v37, 0.0  ;;  %v2795_v2 = vsel %vm459_vm0, %v2733_v33, 0.0 }
 0x33c   : > { %v2756_v47 = vadd.f32 %v2755_v63, %v2754_v31  ;;  %v2785_v31 = vsel %vm459_vm0, %v2728_v38, 0.0  ;;  %v2789_v11 = vsel %vm459_vm0, %v2730_v32, 0.0 }
 0x33e   : > { %v2758_v58 = vadd.f32 %v2757_v7, %v2756_v47  ;;  %v2732_v47 = vmul.f32 %v4407_v8, %v4407_v8 }
 0x340   : > { %v2760_v40 = vadd.f32 %v2759_v4, %v2758_v58  ;;  %v2793_v58 = vsel %vm459_vm0, %v2732_v47, 0.0 }
 0x342   : > { %v2762_v39 = vadd.f32 %v2761_v20, %v2760_v40 }
 0x344   : > { %v2764_v14 = vadd.f32 %v2763_v44, %v2762_v39 }
 0x346   : > { %v2766_v52 = vadd.f32 %v2765_v28, %v2764_v14 }
 0x348   : > { %v2768_v29 = vadd.f32 %v2767_v51, %v2766_v52 }
 0x34a   : > { %v2770_v36 = vadd.f32 %v2769_v46, %v2768_v29 }
 0x34c   : > { %v2772_v45 = vadd.f32 %v2771_v57, %v2770_v36 }
 0x34e   : > { %v2774_v0 = vadd.f32 %v2773_v21, %v2772_v45 }
 0x350   : > { %v2776_v19 = vadd.f32 %v2775_v27, %v2774_v0 }
 0x352   : > { %v2778_v18 = vadd.f32 %v2777_v17, %v2776_v19 }
 0x354   : > { %v2780_v6 = vadd.f32 %v2779_v10, %v2778_v18 }
 0x356   : > { %v2782_v24 = vadd.f32 %v2781_v56, %v2780_v6 }
 0x358   : > { %v2784_v50 = vadd.f32 %v2783_v9, %v2782_v24 }
 0x35a   : > { %v2786_v42 = vadd.f32 %v2785_v31, %v2784_v50 }
 0x35c   : > { %v2788_v63 = vadd.f32 %v2787_v26, %v2786_v42 }
 0x35e   : > { %v2790_v61 = vadd.f32 %v2789_v11, %v2788_v63 }
 0x360   : > { %v2792_v7 = vadd.f32 %v2791_v54, %v2790_v61 }
 0x362   : > { %v2794_v34 = vadd.f32 %v2793_v58, %v2792_v7 }
 0x364   : > { %v2796_v23 = vadd.f32 %v2795_v2, %v2794_v34 }
 0x366   : > { %v2797_v4 = vrot.slane %v2796_v23, 4 }
 0x368   : > { %v2798_v40 = vadd.f32 %v2797_v4, %v2796_v23 }
 0x36a   : > { %v2799_v35 = vrot.slane %v2798_v40, 2 }
 0x36c   : > { %v2800_v8 = vadd.f32 %v2799_v35, %v2798_v40 }
 0x36e   : > { %v2801_v60 = vrot.slane %v2800_v8, 1 }
 0x370   : > { %v2802_v20 = vadd.f32 %v2801_v60, %v2800_v8 }
 0x372   : > { %2803 = vst.msk [vmem:[%s4386_s8 + $0x1] sm:$0x1] %vm2700_vm2, %v2802_v20 }
 0x373 PF: > { %s16_s18 = sadd.s32 1, %s3390_s18  }
 0x374   : > { %p13_p4 = scmp.ge.s32.totalorder %s16_s18, 4  }
 0x376   :  { %15 = sbr.rel (!%p13_p4) target bundleno = 1 (0x1), region = 80 }

</bundles_post_ra>
